<compile_context>
chip_gen: v6e
topology: v6e:2x2x1
jax: 0.10.0
libtpu: 0.0.40
codegen_flags: <defaults>
</compile_context>

<pallas_src>
import functools

import jax
import jax.numpy as jnp
from jax import lax
from jax.experimental import pallas as pl
from jax.experimental.pallas import tpu as pltpu

GP = 128          # per-gate lane padding: gate g occupies lanes [g*GP, g*GP + H)
G3 = 3 * GP       # packed gate width (r | z | n)
NBLK = 12         # head concat blocks: art_f art_b q_f q_b (a..d) x (f, b)


# --------------------------------------------------------------------------- kernel
def _gru_network_kernel(art_ref, que_ref, opt_ref,
                        wih_f_ref, whh_f_ref, bih_f_ref, bhhn_f_ref,
                        wih_b_ref, bih_b_ref, bhhn_b_ref,
                        w1t_ref, b1_ref, w2_ref, b2_ref,
                        out_ref,
                        haf_ref, hab_ref, hqf_ref, hqb_ref,
                        *, BP, T_art, T_que, T_opt):
    """Grid step g: 0 = article GRU, 1 = question GRU, 2 = option GRUs + FF head.

    art_ref/que_ref: (T*BP, 300) bf16 time-major, batch padded to BP (multiple of 8)
    opt_ref:         (T_opt*4*BP, 300) bf16, options a|b|c|d stacked along batch
    wih_f_ref: (300, G3) bf16   current GRU's forward input weights (block g)
    whh_f_ref: (GP, G3)  bf16   forward hidden weights (rows >= H zeroed)
    bih_*_ref: (1, G3)   f32    b_ih with b_hh's r/z lanes folded in
    bhhn_*_ref:(1, GP)   f32    b_hh n-gate lanes only (multiplied by r)
    wih_b_ref: (300, G3) bf16   backward input weights (one step only, h0 = 0)
    w1t_ref:   (16, 12*GP) f32  head W1 transposed, lane-dense
    out_ref:   (BP, GP)  f32    final sigmoid output; real logits in lanes [0, 4)
    """
    g = pl.program_id(0)

    def gru_fwd_last(x, T, nb):
        # Hoisted input projection: one bf16 MXU matmul for all T steps (f32 accum).
        gi_all = (jnp.dot(x, wih_f_ref[...], preferred_element_type=jnp.float32)
                  + bih_f_ref[...])                                     # (T*nb, G3)
        w_hh = whh_f_ref[...]                                           # (GP, G3) bf16
        bhh_n = jnp.broadcast_to(bhhn_f_ref[...], (nb, GP))             # hoisted
        h = jnp.zeros((nb, GP), jnp.float32)
        for t in range(T):                                              # static unroll
            gi = gi_all[t * nb:(t + 1) * nb]                            # 8-aligned rows
            gh = jnp.dot(h.astype(jnp.bfloat16), w_hh,
                         preferred_element_type=jnp.float32)
            r = jax.nn.sigmoid(gi[:, :GP] + gh[:, :GP])
            z = jax.nn.sigmoid(gi[:, GP:2 * GP] + gh[:, GP:2 * GP])
            n = jnp.tanh(gi[:, 2 * GP:] + r * (gh[:, 2 * GP:] + bhh_n))
            h = (1.0 - z) * n + z * h
        return h                                                        # (nb, GP)

    def gru_bwd_last(x_last, nb):
        # Reverse-direction output at the last position == one GRU step from h0 = 0:
        # h0 @ W_hh vanishes; only b_hh's n-gate lanes survive (r/z lanes folded).
        gi = (jnp.dot(x_last, wih_b_ref[...], preferred_element_type=jnp.float32)
              + bih_b_ref[...])
        r = jax.nn.sigmoid(gi[:, :GP])
        z = jax.nn.sigmoid(gi[:, GP:2 * GP])
        n = jnp.tanh(gi[:, 2 * GP:] + r * jnp.broadcast_to(bhhn_b_ref[...], (nb, GP)))
        return (1.0 - z) * n

    @pl.when(g == 0)
    def _():
        x = art_ref[...]
        haf_ref[...] = gru_fwd_last(x, T_art, BP)
        hab_ref[...] = gru_bwd_last(x[(T_art - 1) * BP:], BP)

    @pl.when(g == 1)
    def _():
        x = que_ref[...]
        hqf_ref[...] = gru_fwd_last(x, T_que, BP)
        hqb_ref[...] = gru_bwd_last(x[(T_que - 1) * BP:], BP)

    @pl.when(g == 2)
    def _():
        nb = 4 * BP
        x = opt_ref[...]
        h_of = gru_fwd_last(x, T_opt, nb)                   # (4*BP, GP)
        h_ob = gru_bwd_last(x[(T_opt - 1) * nb:], nb)

        # Lane-aligned concat of 12 (BP, 128) blocks -> (BP, 1536); all slices 8-aligned.
        pieces = [haf_ref[...], hab_ref[...], hqf_ref[...], hqb_ref[...]]
        for i in range(4):                                  # options a, b, c, d
            pieces.append(h_of[i * BP:(i + 1) * BP])
            pieces.append(h_ob[i * BP:(i + 1) * BP])
        feat = jax.nn.sigmoid(jnp.concatenate(pieces, axis=1))

        # Sigmoid -> Linear(448,16) -> LeakyReLU(0.01) -> Linear(16,4) -> Sigmoid.
        # Padding positions give sigmoid(0)=0.5 but W1t's padded columns are zero.
        hid = lax.dot_general(feat, w1t_ref[...], (((1,), (1,)), ((), ())),
                              preferred_element_type=jnp.float32) + b1_ref[...]
        hid = jnp.where(hid >= 0.0, hid, 0.01 * hid)
        y = jnp.dot(hid, w2_ref[...], preferred_element_type=jnp.float32) + b2_ref[...]
        out_ref[...] = jax.nn.sigmoid(y)


# --------------------------------------------------------------------------- wrapper
def _pad_batch(x, BP):
    B = x.shape[0]
    return jnp.zeros((BP,) + x.shape[1:], jnp.float32).at[:B].set(x)


def _flatten_time_major(x_btd):
    """(NB, T, D) -> (T*NB, D) bf16: per-step rows contiguous and 8-sublane aligned."""
    NB, T, D = x_btd.shape
    return jnp.transpose(x_btd, (1, 0, 2)).reshape(T * NB, D).astype(jnp.bfloat16)


@jax.jit
def gru_network_forward(params, article, q, a, b, c, d):
    B, T_art, _ = article.shape
    T_que, T_opt = q.shape[1], a.shape[1]
    BP = ((B + 7) // 8) * 8                                  # sublane-aligned batch

    art_x = _flatten_time_major(_pad_batch(article, BP))
    que_x = _flatten_time_major(_pad_batch(q, BP))
    opt_x = _flatten_time_major(
        jnp.concatenate([_pad_batch(o, BP) for o in (a, b, c, d)], axis=0))

    kernel = functools.partial(_gru_network_kernel,
                               BP=BP, T_art=T_art, T_que=T_que, T_opt=T_opt)

    const2 = lambda g: (0, 0)
    per_gru3 = lambda g: (g, 0, 0)
    grid_spec = pltpu.PrefetchScalarGridSpec(
        num_scalar_prefetch=0,
        grid=(3,),
        in_specs=[
            pl.BlockSpec((T_art * BP, 300), const2),          # article (resident)
            pl.BlockSpec((T_que * BP, 300), const2),          # question (resident)
            pl.BlockSpec((T_opt * 4 * BP, 300), const2),      # options (resident)
            pl.BlockSpec((None, 300, G3), per_gru3),          # wih_f   (pipelined per GRU)
            pl.BlockSpec((None, GP, G3), per_gru3),           # whh_f
            pl.BlockSpec((None, 1, G3), per_gru3),            # bih_f (+ bhh r/z folded)
            pl.BlockSpec((None, 1, GP), per_gru3),            # bhh_f n-gate
            pl.BlockSpec((None, 300, G3), per_gru3),          # wih_b
            pl.BlockSpec((None, 1, G3), per_gru3),            # bih_b (+ bhh r/z folded)
            pl.BlockSpec((None, 1, GP), per_gru3),            # bhh_b n-gate
            pl.BlockSpec((16, NBLK * GP), const2),            # W1^T lane-dense
            pl.BlockSpec((1, 16), const2),                    # b1
            pl.BlockSpec((16, GP), const2),                   # W2 (lanes :4 real)
            pl.BlockSpec((1, GP), const2),                    # b2
        ],
        out_specs=pl.BlockSpec((BP, GP), const2),
        scratch_shapes=[pltpu.VMEM((BP, GP), jnp.float32)] * 4,   # art_f art_b q_f q_b
    )

    out_pad = pl.pallas_call(
        kernel,
        out_shape=jax.ShapeDtypeStruct((BP, GP), jnp.float32),
        grid_spec=grid_spec,
        compiler_params=pltpu.CompilerParams(
            dimension_semantics=("arbitrary",)),
    )(art_x, que_x, opt_x,
      params["wih_f"], params["whh_f"], params["bih_f"], params["bhhn_f"],
      params["wih_b"], params["bih_b"], params["bhhn_b"],
      params["w1t"], params["b1"], params["w2"], params["b2"])
    return out_pad[:B, :4]


# --------------------------------------------------------------------------- params
def _uniform(key, shape, bound):
    return jax.random.uniform(key, shape, jnp.float32, -bound, bound)


def _init_gru_direction(key, d_in, hidden):
    bound = hidden ** -0.5
    ks = jax.random.split(key, 4)
    return {
        "w_ih": _uniform(ks[0], (3 * hidden, d_in), bound),   # torch layout, gates r|z|n
        "w_hh": _uniform(ks[1], (3 * hidden, hidden), bound),
        "b_ih": _uniform(ks[2], (3 * hidden,), bound),
        "b_hh": _uniform(ks[3], (3 * hidden,), bound),
    }


def _pack_direction(raw, hidden, d_in):
    """torch layout -> lane-padded kernel layout; folds b_hh's r/z lanes into b_ih."""
    wih = jnp.zeros((d_in, G3), jnp.float32)
    whh = jnp.zeros((GP, G3), jnp.float32)
    bih = jnp.zeros((1, G3), jnp.float32)
    bhhn = jnp.zeros((1, GP), jnp.float32)
    for gate in range(3):
        rows = slice(gate * hidden, (gate + 1) * hidden)
        lanes = slice(gate * GP, gate * GP + hidden)
        wih = wih.at[:, lanes].set(raw["w_ih"][rows, :].T)
        whh = whh.at[:hidden, lanes].set(raw["w_hh"][rows, :].T)
        if gate < 2:   # r, z: b_hh is additive with the hoisted projection -> fold
            bih = bih.at[0, lanes].set(raw["b_ih"][rows] + raw["b_hh"][rows])
        else:          # n: b_hh is multiplied by r -> keep separate
            bih = bih.at[0, lanes].set(raw["b_ih"][rows])
            bhhn = bhhn.at[0, :hidden].set(raw["b_hh"][rows])
    return wih, whh, bih, bhhn


def init_params(key):
    specs = [("art", 64), ("que", 32), ("opt", 32)]
    k_grus, k_ffn = jax.random.split(key)
    gru_keys = jax.random.split(k_grus, len(specs))

    raw = {}
    wih_f, whh_f, bih_f, bhhn_f = [], [], [], []
    wih_b, bih_b, bhhn_b = [], [], []
    for (name, hidden), k in zip(specs, gru_keys):
        kf, kb = jax.random.split(k)
        raw_f = _init_gru_direction(kf, 300, hidden)
        raw_b = _init_gru_direction(kb, 300, hidden)
        raw[name] = {"f": raw_f, "b": raw_b, "hidden": hidden}
        pf = _pack_direction(raw_f, hidden, 300)
        pb = _pack_direction(raw_b, hidden, 300)
        wih_f.append(pf[0]); whh_f.append(pf[1]); bih_f.append(pf[2]); bhhn_f.append(pf[3])
        wih_b.append(pb[0]); bih_b.append(pb[2]); bhhn_b.append(pb[3])

    # FF head: Sigmoid -> Linear(448,16) -> LeakyReLU -> Linear(16,4) -> Sigmoid
    d_ff = 2 * (64 + 32 * 5)                              # 448
    k1w, k1b, k2w, k2b = jax.random.split(k_ffn, 4)
    bnd1, bnd2 = d_ff ** -0.5, 16 ** -0.5
    w1 = _uniform(k1w, (d_ff, 16), bnd1)
    b1 = _uniform(k1b, (1, 16), bnd1)
    w2 = _uniform(k2w, (16, 4), bnd2)
    b2 = _uniform(k2b, (1, 4), bnd2)
    raw["final"] = {"w1": w1, "b1": b1, "w2": w2, "b2": b2}

    # W1 stored transposed & lane-dense (16, 12*128): column block k holds W1's rows for
    # concat block k (art_f art_b q_f q_b a_f a_b b_f b_b c_f c_b d_f d_b); pad cols = 0.
    widths = [64, 64] + [32] * 10
    w1t = jnp.zeros((16, NBLK * GP), jnp.float32)
    off = 0
    for blk, w in enumerate(widths):
        w1t = w1t.at[:, blk * GP:blk * GP + w].set(w1[off:off + w, :].T)
        off += w
    w2_pad = jnp.zeros((16, GP), jnp.float32).at[:, :4].set(w2)
    b2_pad = jnp.zeros((1, GP), jnp.float32).at[:, :4].set(b2)

    kernel_params = {
        # bf16 only on MXU operands (pad lanes remain exactly 0 after the cast);
        # biases / head stay f32 so all VPU/EUP gate math is f32 (v5e-safe).
        "wih_f": jnp.stack(wih_f).astype(jnp.bfloat16),
        "whh_f": jnp.stack(whh_f).astype(jnp.bfloat16),
        "bih_f": jnp.stack(bih_f),
        "bhhn_f": jnp.stack(bhhn_f),
        "wih_b": jnp.stack(wih_b).astype(jnp.bfloat16),
        "bih_b": jnp.stack(bih_b),
        "bhhn_b": jnp.stack(bhhn_b),
        "w1t": w1t, "b1": b1, "w2": w2_pad, "b2": b2_pad,
    }
    return kernel_params, raw


# --------------------------------------------------------------------------- reference
def _ref_gru_step(h, x_t, p, hidden):
    gi = x_t @ p["w_ih"].T + p["b_ih"]
    gh = h @ p["w_hh"].T + p["b_hh"]
    r = jax.nn.sigmoid(gi[:, :hidden] + gh[:, :hidden])
    z = jax.nn.sigmoid(gi[:, hidden:2 * hidden] + gh[:, hidden:2 * hidden])
    n = jnp.tanh(gi[:, 2 * hidden:] + r * gh[:, 2 * hidden:])
    return (1.0 - z) * n + z * h


def _ref_bigru_last(x, p):
    B, T, _ = x.shape
    hidden = p["hidden"]
    h = jnp.zeros((B, hidden), jnp.float32)
    for t in range(T):
        h = _ref_gru_step(h, x[:, t, :], p["f"], hidden)
    hb = _ref_gru_step(jnp.zeros((B, hidden), jnp.float32), x[:, T - 1, :], p["b"], hidden)
    return jnp.concatenate([h, hb], axis=1)


def reference_forward(raw, article, q, a, b, c, d):
    parts = [_ref_bigru_last(article, raw["art"]), _ref_bigru_last(q, raw["que"])]
    for x in (a, b, c, d):
        parts.append(_ref_bigru_last(x, raw["opt"]))
    full = jnp.concatenate(parts, axis=1)                 # (B, 448)
    x = jax.nn.sigmoid(full)
    h = x @ raw["final"]["w1"] + raw["final"]["b1"]
    h = jnp.where(h >= 0.0, h, 0.01 * h)
    y = h @ raw["final"]["w2"] + raw["final"]["b2"]
    return jax.nn.sigmoid(y)


# --------------------------------------------------------------------------- main
if __name__ == "__main__":
    key = jax.random.PRNGKey(0)
    k_params, k_in = jax.random.split(key)
    params, raw = init_params(k_params)

    B = 2
    ks = jax.random.split(k_in, 6)
    article = jax.random.normal(ks[0], (B, 8, 300), jnp.float32)
    q = jax.random.normal(ks[1], (B, 5, 300), jnp.float32)
    a = jax.random.normal(ks[2], (B, 4, 300), jnp.float32)
    b = jax.random.normal(ks[3], (B, 4, 300), jnp.float32)
    c = jax.random.normal(ks[4], (B, 4, 300), jnp.float32)
    d = jax.random.normal(ks[5], (B, 4, 300), jnp.float32)

    out = jax.block_until_ready(gru_network_forward(params, article, q, a, b, c, d))
    ref = jax.block_until_ready(reference_forward(raw, article, q, a, b, c, d))

    assert out.shape == (B, 4), out.shape
    assert bool(jnp.all(jnp.isfinite(out)))
    assert bool(jnp.all((out >= 0.0) & (out <= 1.0)))      # final sigmoid range
    err = float(jnp.max(jnp.abs(out - ref)))
    assert err < 1e-2, f"kernel/reference mismatch vs f32 reference (bf16 MXU): {err}"
    print("KERNEL_OK")
</pallas_src>

<mosaic_0001>
module attributes {stable_mosaic.version = 11 : i64} {
  func.func @_gru_network_kernel(%arg0: i32, %arg1: memref<64x300xbf16, #tpu.memory_space<vmem>>, %arg2: memref<40x300xbf16, #tpu.memory_space<vmem>>, %arg3: memref<128x300xbf16, #tpu.memory_space<vmem>>, %arg4: memref<1x300x384xbf16, #tpu.memory_space<vmem>>, %arg5: memref<1x128x384xbf16, #tpu.memory_space<vmem>>, %arg6: memref<1x1x384xf32, #tpu.memory_space<vmem>>, %arg7: memref<1x1x128xf32, #tpu.memory_space<vmem>>, %arg8: memref<1x300x384xbf16, #tpu.memory_space<vmem>>, %arg9: memref<1x1x384xf32, #tpu.memory_space<vmem>>, %arg10: memref<1x1x128xf32, #tpu.memory_space<vmem>>, %arg11: memref<16x1536xf32, #tpu.memory_space<vmem>>, %arg12: memref<1x16xf32, #tpu.memory_space<vmem>>, %arg13: memref<16x128xf32, #tpu.memory_space<vmem>>, %arg14: memref<1x128xf32, #tpu.memory_space<vmem>>, %arg15: memref<8x128xf32, #tpu.memory_space<vmem>>, %arg16: memref<8x128xf32, #tpu.memory_space<vmem>>, %arg17: memref<8x128xf32, #tpu.memory_space<vmem>>, %arg18: memref<8x128xf32, #tpu.memory_space<vmem>>, %arg19: memref<8x128xf32, #tpu.memory_space<vmem>>) attributes {dimension_semantics = [#tpu.dimension_semantics<arbitrary>], iteration_bounds = array<i64: 3>, scalar_prefetch = 0 : i64, scratch_operands = 4 : i64, tpu.core_type = #tpu.core_type<tc>, window_params = [{pipeline_mode = #tpu.pipeline_mode<synchronous>, transform_indices = @transform_0, window_bounds = array<i64: 64, 300>}, {pipeline_mode = #tpu.pipeline_mode<synchronous>, transform_indices = @transform_1, window_bounds = array<i64: 40, 300>}, {pipeline_mode = #tpu.pipeline_mode<synchronous>, transform_indices = @transform_2, window_bounds = array<i64: 128, 300>}, {transform_indices = @transform_3, window_bounds = array<i64: 1, 300, 384>}, {transform_indices = @transform_4, window_bounds = array<i64: 1, 128, 384>}, {transform_indices = @transform_5, window_bounds = array<i64: 1, 1, 384>}, {transform_indices = @transform_6, window_bounds = array<i64: 1, 1, 128>}, {transform_indices = @transform_7, window_bounds = array<i64: 1, 300, 384>}, {transform_indices = @transform_8, window_bounds = array<i64: 1, 1, 384>}, {transform_indices = @transform_9, window_bounds = array<i64: 1, 1, 128>}, {pipeline_mode = #tpu.pipeline_mode<synchronous>, transform_indices = @transform_10, window_bounds = array<i64: 16, 1536>}, {pipeline_mode = #tpu.pipeline_mode<synchronous>, transform_indices = @transform_11, window_bounds = array<i64: 1, 16>}, {pipeline_mode = #tpu.pipeline_mode<synchronous>, transform_indices = @transform_12, window_bounds = array<i64: 16, 128>}, {pipeline_mode = #tpu.pipeline_mode<synchronous>, transform_indices = @transform_13, window_bounds = array<i64: 1, 128>}, {pipeline_mode = #tpu.pipeline_mode<synchronous>, transform_indices = @transform_14, window_bounds = array<i64: 8, 128>}]} {
    %c0_i32 = arith.constant 0 : i32
    %0 = arith.cmpi eq, %arg0, %c0_i32 : i32
    %1 = arith.extui %0 : i1 to i32
    %c0_i32_0 = arith.constant 0 : i32
    %2 = arith.cmpi ne, %1, %c0_i32_0 : i32
    scf.if %2 {
      %c0 = arith.constant 0 : index
      %c0_3 = arith.constant 0 : index
      %9 = vector.load %arg1[%c0, %c0_3] : memref<64x300xbf16, #tpu.memory_space<vmem>>, vector<64x300xbf16>
      %c0_4 = arith.constant 0 : index
      %c0_5 = arith.constant 0 : index
      %c0_6 = arith.constant 0 : index
      %10 = vector.load %arg4[%c0_4, %c0_5, %c0_6] : memref<1x300x384xbf16, #tpu.memory_space<vmem>>, vector<1x300x384xbf16>
      %11 = vector.shape_cast %10 : vector<1x300x384xbf16> to vector<300x384xbf16>
      %cst = arith.constant dense<0.000000e+00> : vector<64x384xf32>
      %12 = tpu.matmul %9, %11, %cst {dimension_numbers = #tpu.dot_dimension_numbers<[1], [0], [0], [1], [0, 0, 1, 1], [], []>} : vector<64x300xbf16>, vector<300x384xbf16>, vector<64x384xf32> -> vector<64x384xf32>
      %c0_7 = arith.constant 0 : index
      %c0_8 = arith.constant 0 : index
      %c0_9 = arith.constant 0 : index
      %13 = vector.load %arg6[%c0_7, %c0_8, %c0_9] : memref<1x1x384xf32, #tpu.memory_space<vmem>>, vector<1x1x384xf32>
      %14 = vector.shape_cast %13 : vector<1x1x384xf32> to vector<1x384xf32>
      %15 = vector.broadcast %14 : vector<1x384xf32> to vector<64x384xf32>
      %16 = arith.addf %12, %15 : vector<64x384xf32>
      %c0_10 = arith.constant 0 : index
      %c0_11 = arith.constant 0 : index
      %c0_12 = arith.constant 0 : index
      %17 = vector.load %arg5[%c0_10, %c0_11, %c0_12] : memref<1x128x384xbf16, #tpu.memory_space<vmem>>, vector<1x128x384xbf16>
      %18 = vector.shape_cast %17 : vector<1x128x384xbf16> to vector<128x384xbf16>
      %c0_13 = arith.constant 0 : index
      %c0_14 = arith.constant 0 : index
      %c0_15 = arith.constant 0 : index
      %19 = vector.load %arg7[%c0_13, %c0_14, %c0_15] : memref<1x1x128xf32, #tpu.memory_space<vmem>>, vector<1x1x128xf32>
      %20 = vector.shape_cast %19 : vector<1x1x128xf32> to vector<1x128xf32>
      %21 = vector.shape_cast %20 : vector<1x128xf32> to vector<1x128xf32>
      %22 = vector.broadcast %21 : vector<1x128xf32> to vector<8x128xf32>
      %cst_16 = arith.constant 0.000000e+00 : f32
      %23 = vector.broadcast %cst_16 : f32 to vector<8x128xf32>
      %24 = vector.extract_strided_slice %16 {offsets = [0, 0], sizes = [8, 384], strides = [1, 1]} : vector<64x384xf32> to vector<8x384xf32>
      %25 = arith.truncf %23 : vector<8x128xf32> to vector<8x128xbf16>
      %cst_17 = arith.constant dense<0.000000e+00> : vector<8x384xf32>
      %26 = tpu.matmul %25, %18, %cst_17 {dimension_numbers = #tpu.dot_dimension_numbers<[1], [0], [0], [1], [0, 0, 1, 1], [], []>} : vector<8x128xbf16>, vector<128x384xbf16>, vector<8x384xf32> -> vector<8x384xf32>
      %27 = vector.extract_strided_slice %24 {offsets = [0, 0], sizes = [8, 128], strides = [1, 1]} : vector<8x384xf32> to vector<8x128xf32>
      %28 = vector.extract_strided_slice %26 {offsets = [0, 0], sizes = [8, 128], strides = [1, 1]} : vector<8x384xf32> to vector<8x128xf32>
      %29 = arith.addf %27, %28 : vector<8x128xf32>
      %30 = arith.negf %29 : vector<8x128xf32>
      %31 = math.exp %30 : vector<8x128xf32>
      %cst_18 = arith.constant 1.000000e+00 : f32
      %32 = vector.broadcast %cst_18 : f32 to vector<8x128xf32>
      %33 = arith.addf %32, %31 : vector<8x128xf32>
      %34 = arith.divf %32, %33 : vector<8x128xf32>
      %35 = vector.extract_strided_slice %24 {offsets = [0, 128], sizes = [8, 128], strides = [1, 1]} : vector<8x384xf32> to vector<8x128xf32>
      %36 = vector.extract_strided_slice %26 {offsets = [0, 128], sizes = [8, 128], strides = [1, 1]} : vector<8x384xf32> to vector<8x128xf32>
      %37 = arith.addf %35, %36 : vector<8x128xf32>
      %38 = arith.negf %37 : vector<8x128xf32>
      %39 = math.exp %38 : vector<8x128xf32>
      %cst_19 = arith.constant 1.000000e+00 : f32
      %40 = vector.broadcast %cst_19 : f32 to vector<8x128xf32>
      %41 = arith.addf %40, %39 : vector<8x128xf32>
      %42 = arith.divf %40, %41 : vector<8x128xf32>
      %43 = vector.extract_strided_slice %24 {offsets = [0, 256], sizes = [8, 128], strides = [1, 1]} : vector<8x384xf32> to vector<8x128xf32>
      %44 = vector.extract_strided_slice %26 {offsets = [0, 256], sizes = [8, 128], strides = [1, 1]} : vector<8x384xf32> to vector<8x128xf32>
      %45 = arith.addf %44, %22 : vector<8x128xf32>
      %46 = arith.mulf %34, %45 : vector<8x128xf32>
      %47 = arith.addf %43, %46 : vector<8x128xf32>
      %48 = math.tanh %47 : vector<8x128xf32>
      %cst_20 = arith.constant 1.000000e+00 : f32
      %49 = vector.broadcast %cst_20 : f32 to vector<8x128xf32>
      %50 = arith.subf %49, %42 : vector<8x128xf32>
      %51 = arith.mulf %50, %48 : vector<8x128xf32>
      %52 = arith.mulf %42, %23 : vector<8x128xf32>
      %53 = arith.addf %51, %52 : vector<8x128xf32>
      %54 = vector.extract_strided_slice %16 {offsets = [8, 0], sizes = [8, 384], strides = [1, 1]} : vector<64x384xf32> to vector<8x384xf32>
      %55 = arith.truncf %53 : vector<8x128xf32> to vector<8x128xbf16>
      %cst_21 = arith.constant dense<0.000000e+00> : vector<8x384xf32>
      %56 = tpu.matmul %55, %18, %cst_21 {dimension_numbers = #tpu.dot_dimension_numbers<[1], [0], [0], [1], [0, 0, 1, 1], [], []>} : vector<8x128xbf16>, vector<128x384xbf16>, vector<8x384xf32> -> vector<8x384xf32>
      %57 = vector.extract_strided_slice %54 {offsets = [0, 0], sizes = [8, 128], strides = [1, 1]} : vector<8x384xf32> to vector<8x128xf32>
      %58 = vector.extract_strided_slice %56 {offsets = [0, 0], sizes = [8, 128], strides = [1, 1]} : vector<8x384xf32> to vector<8x128xf32>
      %59 = arith.addf %57, %58 : vector<8x128xf32>
      %60 = arith.negf %59 : vector<8x128xf32>
      %61 = math.exp %60 : vector<8x128xf32>
      %cst_22 = arith.constant 1.000000e+00 : f32
      %62 = vector.broadcast %cst_22 : f32 to vector<8x128xf32>
      %63 = arith.addf %62, %61 : vector<8x128xf32>
      %64 = arith.divf %62, %63 : vector<8x128xf32>
      %65 = vector.extract_strided_slice %54 {offsets = [0, 128], sizes = [8, 128], strides = [1, 1]} : vector<8x384xf32> to vector<8x128xf32>
      %66 = vector.extract_strided_slice %56 {offsets = [0, 128], sizes = [8, 128], strides = [1, 1]} : vector<8x384xf32> to vector<8x128xf32>
      %67 = arith.addf %65, %66 : vector<8x128xf32>
      %68 = arith.negf %67 : vector<8x128xf32>
      %69 = math.exp %68 : vector<8x128xf32>
      %cst_23 = arith.constant 1.000000e+00 : f32
      %70 = vector.broadcast %cst_23 : f32 to vector<8x128xf32>
      %71 = arith.addf %70, %69 : vector<8x128xf32>
      %72 = arith.divf %70, %71 : vector<8x128xf32>
      %73 = vector.extract_strided_slice %54 {offsets = [0, 256], sizes = [8, 128], strides = [1, 1]} : vector<8x384xf32> to vector<8x128xf32>
      %74 = vector.extract_strided_slice %56 {offsets = [0, 256], sizes = [8, 128], strides = [1, 1]} : vector<8x384xf32> to vector<8x128xf32>
      %75 = arith.addf %74, %22 : vector<8x128xf32>
      %76 = arith.mulf %64, %75 : vector<8x128xf32>
      %77 = arith.addf %73, %76 : vector<8x128xf32>
      %78 = math.tanh %77 : vector<8x128xf32>
      %cst_24 = arith.constant 1.000000e+00 : f32
      %79 = vector.broadcast %cst_24 : f32 to vector<8x128xf32>
      %80 = arith.subf %79, %72 : vector<8x128xf32>
      %81 = arith.mulf %80, %78 : vector<8x128xf32>
      %82 = arith.mulf %72, %53 : vector<8x128xf32>
      %83 = arith.addf %81, %82 : vector<8x128xf32>
      %84 = vector.extract_strided_slice %16 {offsets = [16, 0], sizes = [8, 384], strides = [1, 1]} : vector<64x384xf32> to vector<8x384xf32>
      %85 = arith.truncf %83 : vector<8x128xf32> to vector<8x128xbf16>
      %cst_25 = arith.constant dense<0.000000e+00> : vector<8x384xf32>
      %86 = tpu.matmul %85, %18, %cst_25 {dimension_numbers = #tpu.dot_dimension_numbers<[1], [0], [0], [1], [0, 0, 1, 1], [], []>} : vector<8x128xbf16>, vector<128x384xbf16>, vector<8x384xf32> -> vector<8x384xf32>
      %87 = vector.extract_strided_slice %84 {offsets = [0, 0], sizes = [8, 128], strides = [1, 1]} : vector<8x384xf32> to vector<8x128xf32>
      %88 = vector.extract_strided_slice %86 {offsets = [0, 0], sizes = [8, 128], strides = [1, 1]} : vector<8x384xf32> to vector<8x128xf32>
      %89 = arith.addf %87, %88 : vector<8x128xf32>
      %90 = arith.negf %89 : vector<8x128xf32>
      %91 = math.exp %90 : vector<8x128xf32>
      %cst_26 = arith.constant 1.000000e+00 : f32
      %92 = vector.broadcast %cst_26 : f32 to vector<8x128xf32>
      %93 = arith.addf %92, %91 : vector<8x128xf32>
      %94 = arith.divf %92, %93 : vector<8x128xf32>
      %95 = vector.extract_strided_slice %84 {offsets = [0, 128], sizes = [8, 128], strides = [1, 1]} : vector<8x384xf32> to vector<8x128xf32>
      %96 = vector.extract_strided_slice %86 {offsets = [0, 128], sizes = [8, 128], strides = [1, 1]} : vector<8x384xf32> to vector<8x128xf32>
      %97 = arith.addf %95, %96 : vector<8x128xf32>
      %98 = arith.negf %97 : vector<8x128xf32>
      %99 = math.exp %98 : vector<8x128xf32>
      %cst_27 = arith.constant 1.000000e+00 : f32
      %100 = vector.broadcast %cst_27 : f32 to vector<8x128xf32>
      %101 = arith.addf %100, %99 : vector<8x128xf32>
      %102 = arith.divf %100, %101 : vector<8x128xf32>
      %103 = vector.extract_strided_slice %84 {offsets = [0, 256], sizes = [8, 128], strides = [1, 1]} : vector<8x384xf32> to vector<8x128xf32>
      %104 = vector.extract_strided_slice %86 {offsets = [0, 256], sizes = [8, 128], strides = [1, 1]} : vector<8x384xf32> to vector<8x128xf32>
      %105 = arith.addf %104, %22 : vector<8x128xf32>
      %106 = arith.mulf %94, %105 : vector<8x128xf32>
      %107 = arith.addf %103, %106 : vector<8x128xf32>
      %108 = math.tanh %107 : vector<8x128xf32>
      %cst_28 = arith.constant 1.000000e+00 : f32
      %109 = vector.broadcast %cst_28 : f32 to vector<8x128xf32>
      %110 = arith.subf %109, %102 : vector<8x128xf32>
      %111 = arith.mulf %110, %108 : vector<8x128xf32>
      %112 = arith.mulf %102, %83 : vector<8x128xf32>
      %113 = arith.addf %111, %112 : vector<8x128xf32>
      %114 = vector.extract_strided_slice %16 {offsets = [24, 0], sizes = [8, 384], strides = [1, 1]} : vector<64x384xf32> to vector<8x384xf32>
      %115 = arith.truncf %113 : vector<8x128xf32> to vector<8x128xbf16>
      %cst_29 = arith.constant dense<0.000000e+00> : vector<8x384xf32>
      %116 = tpu.matmul %115, %18, %cst_29 {dimension_numbers = #tpu.dot_dimension_numbers<[1], [0], [0], [1], [0, 0, 1, 1], [], []>} : vector<8x128xbf16>, vector<128x384xbf16>, vector<8x384xf32> -> vector<8x384xf32>
      %117 = vector.extract_strided_slice %114 {offsets = [0, 0], sizes = [8, 128], strides = [1, 1]} : vector<8x384xf32> to vector<8x128xf32>
      %118 = vector.extract_strided_slice %116 {offsets = [0, 0], sizes = [8, 128], strides = [1, 1]} : vector<8x384xf32> to vector<8x128xf32>
      %119 = arith.addf %117, %118 : vector<8x128xf32>
      %120 = arith.negf %119 : vector<8x128xf32>
      %121 = math.exp %120 : vector<8x128xf32>
      %cst_30 = arith.constant 1.000000e+00 : f32
      %122 = vector.broadcast %cst_30 : f32 to vector<8x128xf32>
      %123 = arith.addf %122, %121 : vector<8x128xf32>
      %124 = arith.divf %122, %123 : vector<8x128xf32>
      %125 = vector.extract_strided_slice %114 {offsets = [0, 128], sizes = [8, 128], strides = [1, 1]} : vector<8x384xf32> to vector<8x128xf32>
      %126 = vector.extract_strided_slice %116 {offsets = [0, 128], sizes = [8, 128], strides = [1, 1]} : vector<8x384xf32> to vector<8x128xf32>
      %127 = arith.addf %125, %126 : vector<8x128xf32>
      %128 = arith.negf %127 : vector<8x128xf32>
      %129 = math.exp %128 : vector<8x128xf32>
      %cst_31 = arith.constant 1.000000e+00 : f32
      %130 = vector.broadcast %cst_31 : f32 to vector<8x128xf32>
      %131 = arith.addf %130, %129 : vector<8x128xf32>
      %132 = arith.divf %130, %131 : vector<8x128xf32>
      %133 = vector.extract_strided_slice %114 {offsets = [0, 256], sizes = [8, 128], strides = [1, 1]} : vector<8x384xf32> to vector<8x128xf32>
      %134 = vector.extract_strided_slice %116 {offsets = [0, 256], sizes = [8, 128], strides = [1, 1]} : vector<8x384xf32> to vector<8x128xf32>
      %135 = arith.addf %134, %22 : vector<8x128xf32>
      %136 = arith.mulf %124, %135 : vector<8x128xf32>
      %137 = arith.addf %133, %136 : vector<8x128xf32>
      %138 = math.tanh %137 : vector<8x128xf32>
      %cst_32 = arith.constant 1.000000e+00 : f32
      %139 = vector.broadcast %cst_32 : f32 to vector<8x128xf32>
      %140 = arith.subf %139, %132 : vector<8x128xf32>
      %141 = arith.mulf %140, %138 : vector<8x128xf32>
      %142 = arith.mulf %132, %113 : vector<8x128xf32>
      %143 = arith.addf %141, %142 : vector<8x128xf32>
      %144 = vector.extract_strided_slice %16 {offsets = [32, 0], sizes = [8, 384], strides = [1, 1]} : vector<64x384xf32> to vector<8x384xf32>
      %145 = arith.truncf %143 : vector<8x128xf32> to vector<8x128xbf16>
      %cst_33 = arith.constant dense<0.000000e+00> : vector<8x384xf32>
      %146 = tpu.matmul %145, %18, %cst_33 {dimension_numbers = #tpu.dot_dimension_numbers<[1], [0], [0], [1], [0, 0, 1, 1], [], []>} : vector<8x128xbf16>, vector<128x384xbf16>, vector<8x384xf32> -> vector<8x384xf32>
      %147 = vector.extract_strided_slice %144 {offsets = [0, 0], sizes = [8, 128], strides = [1, 1]} : vector<8x384xf32> to vector<8x128xf32>
      %148 = vector.extract_strided_slice %146 {offsets = [0, 0], sizes = [8, 128], strides = [1, 1]} : vector<8x384xf32> to vector<8x128xf32>
      %149 = arith.addf %147, %148 : vector<8x128xf32>
      %150 = arith.negf %149 : vector<8x128xf32>
      %151 = math.exp %150 : vector<8x128xf32>
      %cst_34 = arith.constant 1.000000e+00 : f32
      %152 = vector.broadcast %cst_34 : f32 to vector<8x128xf32>
      %153 = arith.addf %152, %151 : vector<8x128xf32>
      %154 = arith.divf %152, %153 : vector<8x128xf32>
      %155 = vector.extract_strided_slice %144 {offsets = [0, 128], sizes = [8, 128], strides = [1, 1]} : vector<8x384xf32> to vector<8x128xf32>
      %156 = vector.extract_strided_slice %146 {offsets = [0, 128], sizes = [8, 128], strides = [1, 1]} : vector<8x384xf32> to vector<8x128xf32>
      %157 = arith.addf %155, %156 : vector<8x128xf32>
      %158 = arith.negf %157 : vector<8x128xf32>
      %159 = math.exp %158 : vector<8x128xf32>
      %cst_35 = arith.constant 1.000000e+00 : f32
      %160 = vector.broadcast %cst_35 : f32 to vector<8x128xf32>
      %161 = arith.addf %160, %159 : vector<8x128xf32>
      %162 = arith.divf %160, %161 : vector<8x128xf32>
      %163 = vector.extract_strided_slice %144 {offsets = [0, 256], sizes = [8, 128], strides = [1, 1]} : vector<8x384xf32> to vector<8x128xf32>
      %164 = vector.extract_strided_slice %146 {offsets = [0, 256], sizes = [8, 128], strides = [1, 1]} : vector<8x384xf32> to vector<8x128xf32>
      %165 = arith.addf %164, %22 : vector<8x128xf32>
      %166 = arith.mulf %154, %165 : vector<8x128xf32>
      %167 = arith.addf %163, %166 : vector<8x128xf32>
      %168 = math.tanh %167 : vector<8x128xf32>
      %cst_36 = arith.constant 1.000000e+00 : f32
      %169 = vector.broadcast %cst_36 : f32 to vector<8x128xf32>
      %170 = arith.subf %169, %162 : vector<8x128xf32>
      %171 = arith.mulf %170, %168 : vector<8x128xf32>
      %172 = arith.mulf %162, %143 : vector<8x128xf32>
      %173 = arith.addf %171, %172 : vector<8x128xf32>
      %174 = vector.extract_strided_slice %16 {offsets = [40, 0], sizes = [8, 384], strides = [1, 1]} : vector<64x384xf32> to vector<8x384xf32>
      %175 = arith.truncf %173 : vector<8x128xf32> to vector<8x128xbf16>
      %cst_37 = arith.constant dense<0.000000e+00> : vector<8x384xf32>
      %176 = tpu.matmul %175, %18, %cst_37 {dimension_numbers = #tpu.dot_dimension_numbers<[1], [0], [0], [1], [0, 0, 1, 1], [], []>} : vector<8x128xbf16>, vector<128x384xbf16>, vector<8x384xf32> -> vector<8x384xf32>
      %177 = vector.extract_strided_slice %174 {offsets = [0, 0], sizes = [8, 128], strides = [1, 1]} : vector<8x384xf32> to vector<8x128xf32>
      %178 = vector.extract_strided_slice %176 {offsets = [0, 0], sizes = [8, 128], strides = [1, 1]} : vector<8x384xf32> to vector<8x128xf32>
      %179 = arith.addf %177, %178 : vector<8x128xf32>
      %180 = arith.negf %179 : vector<8x128xf32>
      %181 = math.exp %180 : vector<8x128xf32>
      %cst_38 = arith.constant 1.000000e+00 : f32
      %182 = vector.broadcast %cst_38 : f32 to vector<8x128xf32>
      %183 = arith.addf %182, %181 : vector<8x128xf32>
      %184 = arith.divf %182, %183 : vector<8x128xf32>
      %185 = vector.extract_strided_slice %174 {offsets = [0, 128], sizes = [8, 128], strides = [1, 1]} : vector<8x384xf32> to vector<8x128xf32>
      %186 = vector.extract_strided_slice %176 {offsets = [0, 128], sizes = [8, 128], strides = [1, 1]} : vector<8x384xf32> to vector<8x128xf32>
      %187 = arith.addf %185, %186 : vector<8x128xf32>
      %188 = arith.negf %187 : vector<8x128xf32>
      %189 = math.exp %188 : vector<8x128xf32>
      %cst_39 = arith.constant 1.000000e+00 : f32
      %190 = vector.broadcast %cst_39 : f32 to vector<8x128xf32>
      %191 = arith.addf %190, %189 : vector<8x128xf32>
      %192 = arith.divf %190, %191 : vector<8x128xf32>
      %193 = vector.extract_strided_slice %174 {offsets = [0, 256], sizes = [8, 128], strides = [1, 1]} : vector<8x384xf32> to vector<8x128xf32>
      %194 = vector.extract_strided_slice %176 {offsets = [0, 256], sizes = [8, 128], strides = [1, 1]} : vector<8x384xf32> to vector<8x128xf32>
      %195 = arith.addf %194, %22 : vector<8x128xf32>
      %196 = arith.mulf %184, %195 : vector<8x128xf32>
      %197 = arith.addf %193, %196 : vector<8x128xf32>
      %198 = math.tanh %197 : vector<8x128xf32>
      %cst_40 = arith.constant 1.000000e+00 : f32
      %199 = vector.broadcast %cst_40 : f32 to vector<8x128xf32>
      %200 = arith.subf %199, %192 : vector<8x128xf32>
      %201 = arith.mulf %200, %198 : vector<8x128xf32>
      %202 = arith.mulf %192, %173 : vector<8x128xf32>
      %203 = arith.addf %201, %202 : vector<8x128xf32>
      %204 = vector.extract_strided_slice %16 {offsets = [48, 0], sizes = [8, 384], strides = [1, 1]} : vector<64x384xf32> to vector<8x384xf32>
      %205 = arith.truncf %203 : vector<8x128xf32> to vector<8x128xbf16>
      %cst_41 = arith.constant dense<0.000000e+00> : vector<8x384xf32>
      %206 = tpu.matmul %205, %18, %cst_41 {dimension_numbers = #tpu.dot_dimension_numbers<[1], [0], [0], [1], [0, 0, 1, 1], [], []>} : vector<8x128xbf16>, vector<128x384xbf16>, vector<8x384xf32> -> vector<8x384xf32>
      %207 = vector.extract_strided_slice %204 {offsets = [0, 0], sizes = [8, 128], strides = [1, 1]} : vector<8x384xf32> to vector<8x128xf32>
      %208 = vector.extract_strided_slice %206 {offsets = [0, 0], sizes = [8, 128], strides = [1, 1]} : vector<8x384xf32> to vector<8x128xf32>
      %209 = arith.addf %207, %208 : vector<8x128xf32>
      %210 = arith.negf %209 : vector<8x128xf32>
      %211 = math.exp %210 : vector<8x128xf32>
      %cst_42 = arith.constant 1.000000e+00 : f32
      %212 = vector.broadcast %cst_42 : f32 to vector<8x128xf32>
      %213 = arith.addf %212, %211 : vector<8x128xf32>
      %214 = arith.divf %212, %213 : vector<8x128xf32>
      %215 = vector.extract_strided_slice %204 {offsets = [0, 128], sizes = [8, 128], strides = [1, 1]} : vector<8x384xf32> to vector<8x128xf32>
      %216 = vector.extract_strided_slice %206 {offsets = [0, 128], sizes = [8, 128], strides = [1, 1]} : vector<8x384xf32> to vector<8x128xf32>
      %217 = arith.addf %215, %216 : vector<8x128xf32>
      %218 = arith.negf %217 : vector<8x128xf32>
      %219 = math.exp %218 : vector<8x128xf32>
      %cst_43 = arith.constant 1.000000e+00 : f32
      %220 = vector.broadcast %cst_43 : f32 to vector<8x128xf32>
      %221 = arith.addf %220, %219 : vector<8x128xf32>
      %222 = arith.divf %220, %221 : vector<8x128xf32>
      %223 = vector.extract_strided_slice %204 {offsets = [0, 256], sizes = [8, 128], strides = [1, 1]} : vector<8x384xf32> to vector<8x128xf32>
      %224 = vector.extract_strided_slice %206 {offsets = [0, 256], sizes = [8, 128], strides = [1, 1]} : vector<8x384xf32> to vector<8x128xf32>
      %225 = arith.addf %224, %22 : vector<8x128xf32>
      %226 = arith.mulf %214, %225 : vector<8x128xf32>
      %227 = arith.addf %223, %226 : vector<8x128xf32>
      %228 = math.tanh %227 : vector<8x128xf32>
      %cst_44 = arith.constant 1.000000e+00 : f32
      %229 = vector.broadcast %cst_44 : f32 to vector<8x128xf32>
      %230 = arith.subf %229, %222 : vector<8x128xf32>
      %231 = arith.mulf %230, %228 : vector<8x128xf32>
      %232 = arith.mulf %222, %203 : vector<8x128xf32>
      %233 = arith.addf %231, %232 : vector<8x128xf32>
      %234 = vector.extract_strided_slice %16 {offsets = [56, 0], sizes = [8, 384], strides = [1, 1]} : vector<64x384xf32> to vector<8x384xf32>
      %235 = arith.truncf %233 : vector<8x128xf32> to vector<8x128xbf16>
      %cst_45 = arith.constant dense<0.000000e+00> : vector<8x384xf32>
      %236 = tpu.matmul %235, %18, %cst_45 {dimension_numbers = #tpu.dot_dimension_numbers<[1], [0], [0], [1], [0, 0, 1, 1], [], []>} : vector<8x128xbf16>, vector<128x384xbf16>, vector<8x384xf32> -> vector<8x384xf32>
      %237 = vector.extract_strided_slice %234 {offsets = [0, 0], sizes = [8, 128], strides = [1, 1]} : vector<8x384xf32> to vector<8x128xf32>
      %238 = vector.extract_strided_slice %236 {offsets = [0, 0], sizes = [8, 128], strides = [1, 1]} : vector<8x384xf32> to vector<8x128xf32>
      %239 = arith.addf %237, %238 : vector<8x128xf32>
      %240 = arith.negf %239 : vector<8x128xf32>
      %241 = math.exp %240 : vector<8x128xf32>
      %cst_46 = arith.constant 1.000000e+00 : f32
      %242 = vector.broadcast %cst_46 : f32 to vector<8x128xf32>
      %243 = arith.addf %242, %241 : vector<8x128xf32>
      %244 = arith.divf %242, %243 : vector<8x128xf32>
      %245 = vector.extract_strided_slice %234 {offsets = [0, 128], sizes = [8, 128], strides = [1, 1]} : vector<8x384xf32> to vector<8x128xf32>
      %246 = vector.extract_strided_slice %236 {offsets = [0, 128], sizes = [8, 128], strides = [1, 1]} : vector<8x384xf32> to vector<8x128xf32>
      %247 = arith.addf %245, %246 : vector<8x128xf32>
      %248 = arith.negf %247 : vector<8x128xf32>
      %249 = math.exp %248 : vector<8x128xf32>
      %cst_47 = arith.constant 1.000000e+00 : f32
      %250 = vector.broadcast %cst_47 : f32 to vector<8x128xf32>
      %251 = arith.addf %250, %249 : vector<8x128xf32>
      %252 = arith.divf %250, %251 : vector<8x128xf32>
      %253 = vector.extract_strided_slice %234 {offsets = [0, 256], sizes = [8, 128], strides = [1, 1]} : vector<8x384xf32> to vector<8x128xf32>
      %254 = vector.extract_strided_slice %236 {offsets = [0, 256], sizes = [8, 128], strides = [1, 1]} : vector<8x384xf32> to vector<8x128xf32>
      %255 = arith.addf %254, %22 : vector<8x128xf32>
      %256 = arith.mulf %244, %255 : vector<8x128xf32>
      %257 = arith.addf %253, %256 : vector<8x128xf32>
      %258 = math.tanh %257 : vector<8x128xf32>
      %cst_48 = arith.constant 1.000000e+00 : f32
      %259 = vector.broadcast %cst_48 : f32 to vector<8x128xf32>
      %260 = arith.subf %259, %252 : vector<8x128xf32>
      %261 = arith.mulf %260, %258 : vector<8x128xf32>
      %262 = arith.mulf %252, %233 : vector<8x128xf32>
      %263 = arith.addf %261, %262 : vector<8x128xf32>
      %c0_49 = arith.constant 0 : index
      %c0_50 = arith.constant 0 : index
      %264 = vector.load %arg16[%c0_49, %c0_50] : memref<8x128xf32, #tpu.memory_space<vmem>>, vector<8x128xf32>
      tpu.vector_store %arg16[%c0_49, %c0_50], %263 {strides = array<i32>} : memref<8x128xf32, #tpu.memory_space<vmem>>, vector<8x128xf32>,
      %265 = vector.extract_strided_slice %9 {offsets = [56, 0], sizes = [8, 300], strides = [1, 1]} : vector<64x300xbf16> to vector<8x300xbf16>
      %c0_51 = arith.constant 0 : index
      %c0_52 = arith.constant 0 : index
      %c0_53 = arith.constant 0 : index
      %266 = vector.load %arg8[%c0_51, %c0_52, %c0_53] : memref<1x300x384xbf16, #tpu.memory_space<vmem>>, vector<1x300x384xbf16>
      %267 = vector.shape_cast %266 : vector<1x300x384xbf16> to vector<300x384xbf16>
      %cst_54 = arith.constant dense<0.000000e+00> : vector<8x384xf32>
      %268 = tpu.matmul %265, %267, %cst_54 {dimension_numbers = #tpu.dot_dimension_numbers<[1], [0], [0], [1], [0, 0, 1, 1], [], []>} : vector<8x300xbf16>, vector<300x384xbf16>, vector<8x384xf32> -> vector<8x384xf32>
      %c0_55 = arith.constant 0 : index
      %c0_56 = arith.constant 0 : index
      %c0_57 = arith.constant 0 : index
      %269 = vector.load %arg9[%c0_55, %c0_56, %c0_57] : memref<1x1x384xf32, #tpu.memory_space<vmem>>, vector<1x1x384xf32>
      %270 = vector.shape_cast %269 : vector<1x1x384xf32> to vector<1x384xf32>
      %271 = vector.broadcast %270 : vector<1x384xf32> to vector<8x384xf32>
      %272 = arith.addf %268, %271 : vector<8x384xf32>
      %273 = vector.extract_strided_slice %272 {offsets = [0, 0], sizes = [8, 128], strides = [1, 1]} : vector<8x384xf32> to vector<8x128xf32>
      %274 = arith.negf %273 : vector<8x128xf32>
      %275 = math.exp %274 : vector<8x128xf32>
      %cst_58 = arith.constant 1.000000e+00 : f32
      %276 = vector.broadcast %cst_58 : f32 to vector<8x128xf32>
      %277 = arith.addf %276, %275 : vector<8x128xf32>
      %278 = arith.divf %276, %277 : vector<8x128xf32>
      %279 = vector.extract_strided_slice %272 {offsets = [0, 128], sizes = [8, 128], strides = [1, 1]} : vector<8x384xf32> to vector<8x128xf32>
      %280 = arith.negf %279 : vector<8x128xf32>
      %281 = math.exp %280 : vector<8x128xf32>
      %cst_59 = arith.constant 1.000000e+00 : f32
      %282 = vector.broadcast %cst_59 : f32 to vector<8x128xf32>
      %283 = arith.addf %282, %281 : vector<8x128xf32>
      %284 = arith.divf %282, %283 : vector<8x128xf32>
      %285 = vector.extract_strided_slice %272 {offsets = [0, 256], sizes = [8, 128], strides = [1, 1]} : vector<8x384xf32> to vector<8x128xf32>
      %c0_60 = arith.constant 0 : index
      %c0_61 = arith.constant 0 : index
      %c0_62 = arith.constant 0 : index
      %286 = vector.load %arg10[%c0_60, %c0_61, %c0_62] : memref<1x1x128xf32, #tpu.memory_space<vmem>>, vector<1x1x128xf32>
      %287 = vector.shape_cast %286 : vector<1x1x128xf32> to vector<1x128xf32>
      %288 = vector.shape_cast %287 : vector<1x128xf32> to vector<1x128xf32>
      %289 = vector.broadcast %288 : vector<1x128xf32> to vector<8x128xf32>
      %290 = arith.mulf %278, %289 : vector<8x128xf32>
      %291 = arith.addf %285, %290 : vector<8x128xf32>
      %292 = math.tanh %291 : vector<8x128xf32>
      %cst_63 = arith.constant 1.000000e+00 : f32
      %293 = vector.broadcast %cst_63 : f32 to vector<8x128xf32>
      %294 = arith.subf %293, %284 : vector<8x128xf32>
      %295 = arith.mulf %294, %292 : vector<8x128xf32>
      %c0_64 = arith.constant 0 : index
      %c0_65 = arith.constant 0 : index
      %296 = vector.load %arg17[%c0_64, %c0_65] : memref<8x128xf32, #tpu.memory_space<vmem>>, vector<8x128xf32>
      tpu.vector_store %arg17[%c0_64, %c0_65], %295 {strides = array<i32>} : memref<8x128xf32, #tpu.memory_space<vmem>>, vector<8x128xf32>,
    } else {
    }
    %c1_i32 = arith.constant 1 : i32
    %3 = arith.cmpi eq, %arg0, %c1_i32 : i32
    %4 = arith.extui %3 : i1 to i32
    %c0_i32_1 = arith.constant 0 : i32
    %5 = arith.cmpi ne, %4, %c0_i32_1 : i32
    scf.if %5 {
      %c0 = arith.constant 0 : index
      %c0_3 = arith.constant 0 : index
      %9 = vector.load %arg2[%c0, %c0_3] : memref<40x300xbf16, #tpu.memory_space<vmem>>, vector<40x300xbf16>
      %c0_4 = arith.constant 0 : index
      %c0_5 = arith.constant 0 : index
      %c0_6 = arith.constant 0 : index
      %10 = vector.load %arg4[%c0_4, %c0_5, %c0_6] : memref<1x300x384xbf16, #tpu.memory_space<vmem>>, vector<1x300x384xbf16>
      %11 = vector.shape_cast %10 : vector<1x300x384xbf16> to vector<300x384xbf16>
      %cst = arith.constant dense<0.000000e+00> : vector<40x384xf32>
      %12 = tpu.matmul %9, %11, %cst {dimension_numbers = #tpu.dot_dimension_numbers<[1], [0], [0], [1], [0, 0, 1, 1], [], []>} : vector<40x300xbf16>, vector<300x384xbf16>, vector<40x384xf32> -> vector<40x384xf32>
      %c0_7 = arith.constant 0 : index
      %c0_8 = arith.constant 0 : index
      %c0_9 = arith.constant 0 : index
      %13 = vector.load %arg6[%c0_7, %c0_8, %c0_9] : memref<1x1x384xf32, #tpu.memory_space<vmem>>, vector<1x1x384xf32>
      %14 = vector.shape_cast %13 : vector<1x1x384xf32> to vector<1x384xf32>
      %15 = vector.broadcast %14 : vector<1x384xf32> to vector<40x384xf32>
      %16 = arith.addf %12, %15 : vector<40x384xf32>
      %c0_10 = arith.constant 0 : index
      %c0_11 = arith.constant 0 : index
      %c0_12 = arith.constant 0 : index
      %17 = vector.load %arg5[%c0_10, %c0_11, %c0_12] : memref<1x128x384xbf16, #tpu.memory_space<vmem>>, vector<1x128x384xbf16>
      %18 = vector.shape_cast %17 : vector<1x128x384xbf16> to vector<128x384xbf16>
      %c0_13 = arith.constant 0 : index
      %c0_14 = arith.constant 0 : index
      %c0_15 = arith.constant 0 : index
      %19 = vector.load %arg7[%c0_13, %c0_14, %c0_15] : memref<1x1x128xf32, #tpu.memory_space<vmem>>, vector<1x1x128xf32>
      %20 = vector.shape_cast %19 : vector<1x1x128xf32> to vector<1x128xf32>
      %21 = vector.shape_cast %20 : vector<1x128xf32> to vector<1x128xf32>
      %22 = vector.broadcast %21 : vector<1x128xf32> to vector<8x128xf32>
      %cst_16 = arith.constant 0.000000e+00 : f32
      %23 = vector.broadcast %cst_16 : f32 to vector<8x128xf32>
      %24 = vector.extract_strided_slice %16 {offsets = [0, 0], sizes = [8, 384], strides = [1, 1]} : vector<40x384xf32> to vector<8x384xf32>
      %25 = arith.truncf %23 : vector<8x128xf32> to vector<8x128xbf16>
      %cst_17 = arith.constant dense<0.000000e+00> : vector<8x384xf32>
      %26 = tpu.matmul %25, %18, %cst_17 {dimension_numbers = #tpu.dot_dimension_numbers<[1], [0], [0], [1], [0, 0, 1, 1], [], []>} : vector<8x128xbf16>, vector<128x384xbf16>, vector<8x384xf32> -> vector<8x384xf32>
      %27 = vector.extract_strided_slice %24 {offsets = [0, 0], sizes = [8, 128], strides = [1, 1]} : vector<8x384xf32> to vector<8x128xf32>
      %28 = vector.extract_strided_slice %26 {offsets = [0, 0], sizes = [8, 128], strides = [1, 1]} : vector<8x384xf32> to vector<8x128xf32>
      %29 = arith.addf %27, %28 : vector<8x128xf32>
      %30 = arith.negf %29 : vector<8x128xf32>
      %31 = math.exp %30 : vector<8x128xf32>
      %cst_18 = arith.constant 1.000000e+00 : f32
      %32 = vector.broadcast %cst_18 : f32 to vector<8x128xf32>
      %33 = arith.addf %32, %31 : vector<8x128xf32>
      %34 = arith.divf %32, %33 : vector<8x128xf32>
      %35 = vector.extract_strided_slice %24 {offsets = [0, 128], sizes = [8, 128], strides = [1, 1]} : vector<8x384xf32> to vector<8x128xf32>
      %36 = vector.extract_strided_slice %26 {offsets = [0, 128], sizes = [8, 128], strides = [1, 1]} : vector<8x384xf32> to vector<8x128xf32>
      %37 = arith.addf %35, %36 : vector<8x128xf32>
      %38 = arith.negf %37 : vector<8x128xf32>
      %39 = math.exp %38 : vector<8x128xf32>
      %cst_19 = arith.constant 1.000000e+00 : f32
      %40 = vector.broadcast %cst_19 : f32 to vector<8x128xf32>
      %41 = arith.addf %40, %39 : vector<8x128xf32>
      %42 = arith.divf %40, %41 : vector<8x128xf32>
      %43 = vector.extract_strided_slice %24 {offsets = [0, 256], sizes = [8, 128], strides = [1, 1]} : vector<8x384xf32> to vector<8x128xf32>
      %44 = vector.extract_strided_slice %26 {offsets = [0, 256], sizes = [8, 128], strides = [1, 1]} : vector<8x384xf32> to vector<8x128xf32>
      %45 = arith.addf %44, %22 : vector<8x128xf32>
      %46 = arith.mulf %34, %45 : vector<8x128xf32>
      %47 = arith.addf %43, %46 : vector<8x128xf32>
      %48 = math.tanh %47 : vector<8x128xf32>
      %cst_20 = arith.constant 1.000000e+00 : f32
      %49 = vector.broadcast %cst_20 : f32 to vector<8x128xf32>
      %50 = arith.subf %49, %42 : vector<8x128xf32>
      %51 = arith.mulf %50, %48 : vector<8x128xf32>
      %52 = arith.mulf %42, %23 : vector<8x128xf32>
      %53 = arith.addf %51, %52 : vector<8x128xf32>
      %54 = vector.extract_strided_slice %16 {offsets = [8, 0], sizes = [8, 384], strides = [1, 1]} : vector<40x384xf32> to vector<8x384xf32>
      %55 = arith.truncf %53 : vector<8x128xf32> to vector<8x128xbf16>
      %cst_21 = arith.constant dense<0.000000e+00> : vector<8x384xf32>
      %56 = tpu.matmul %55, %18, %cst_21 {dimension_numbers = #tpu.dot_dimension_numbers<[1], [0], [0], [1], [0, 0, 1, 1], [], []>} : vector<8x128xbf16>, vector<128x384xbf16>, vector<8x384xf32> -> vector<8x384xf32>
      %57 = vector.extract_strided_slice %54 {offsets = [0, 0], sizes = [8, 128], strides = [1, 1]} : vector<8x384xf32> to vector<8x128xf32>
      %58 = vector.extract_strided_slice %56 {offsets = [0, 0], sizes = [8, 128], strides = [1, 1]} : vector<8x384xf32> to vector<8x128xf32>
      %59 = arith.addf %57, %58 : vector<8x128xf32>
      %60 = arith.negf %59 : vector<8x128xf32>
      %61 = math.exp %60 : vector<8x128xf32>
      %cst_22 = arith.constant 1.000000e+00 : f32
      %62 = vector.broadcast %cst_22 : f32 to vector<8x128xf32>
      %63 = arith.addf %62, %61 : vector<8x128xf32>
      %64 = arith.divf %62, %63 : vector<8x128xf32>
      %65 = vector.extract_strided_slice %54 {offsets = [0, 128], sizes = [8, 128], strides = [1, 1]} : vector<8x384xf32> to vector<8x128xf32>
      %66 = vector.extract_strided_slice %56 {offsets = [0, 128], sizes = [8, 128], strides = [1, 1]} : vector<8x384xf32> to vector<8x128xf32>
      %67 = arith.addf %65, %66 : vector<8x128xf32>
      %68 = arith.negf %67 : vector<8x128xf32>
      %69 = math.exp %68 : vector<8x128xf32>
      %cst_23 = arith.constant 1.000000e+00 : f32
      %70 = vector.broadcast %cst_23 : f32 to vector<8x128xf32>
      %71 = arith.addf %70, %69 : vector<8x128xf32>
      %72 = arith.divf %70, %71 : vector<8x128xf32>
      %73 = vector.extract_strided_slice %54 {offsets = [0, 256], sizes = [8, 128], strides = [1, 1]} : vector<8x384xf32> to vector<8x128xf32>
      %74 = vector.extract_strided_slice %56 {offsets = [0, 256], sizes = [8, 128], strides = [1, 1]} : vector<8x384xf32> to vector<8x128xf32>
      %75 = arith.addf %74, %22 : vector<8x128xf32>
      %76 = arith.mulf %64, %75 : vector<8x128xf32>
      %77 = arith.addf %73, %76 : vector<8x128xf32>
      %78 = math.tanh %77 : vector<8x128xf32>
      %cst_24 = arith.constant 1.000000e+00 : f32
      %79 = vector.broadcast %cst_24 : f32 to vector<8x128xf32>
      %80 = arith.subf %79, %72 : vector<8x128xf32>
      %81 = arith.mulf %80, %78 : vector<8x128xf32>
      %82 = arith.mulf %72, %53 : vector<8x128xf32>
      %83 = arith.addf %81, %82 : vector<8x128xf32>
      %84 = vector.extract_strided_slice %16 {offsets = [16, 0], sizes = [8, 384], strides = [1, 1]} : vector<40x384xf32> to vector<8x384xf32>
      %85 = arith.truncf %83 : vector<8x128xf32> to vector<8x128xbf16>
      %cst_25 = arith.constant dense<0.000000e+00> : vector<8x384xf32>
      %86 = tpu.matmul %85, %18, %cst_25 {dimension_numbers = #tpu.dot_dimension_numbers<[1], [0], [0], [1], [0, 0, 1, 1], [], []>} : vector<8x128xbf16>, vector<128x384xbf16>, vector<8x384xf32> -> vector<8x384xf32>
      %87 = vector.extract_strided_slice %84 {offsets = [0, 0], sizes = [8, 128], strides = [1, 1]} : vector<8x384xf32> to vector<8x128xf32>
      %88 = vector.extract_strided_slice %86 {offsets = [0, 0], sizes = [8, 128], strides = [1, 1]} : vector<8x384xf32> to vector<8x128xf32>
      %89 = arith.addf %87, %88 : vector<8x128xf32>
      %90 = arith.negf %89 : vector<8x128xf32>
      %91 = math.exp %90 : vector<8x128xf32>
      %cst_26 = arith.constant 1.000000e+00 : f32
      %92 = vector.broadcast %cst_26 : f32 to vector<8x128xf32>
      %93 = arith.addf %92, %91 : vector<8x128xf32>
      %94 = arith.divf %92, %93 : vector<8x128xf32>
      %95 = vector.extract_strided_slice %84 {offsets = [0, 128], sizes = [8, 128], strides = [1, 1]} : vector<8x384xf32> to vector<8x128xf32>
      %96 = vector.extract_strided_slice %86 {offsets = [0, 128], sizes = [8, 128], strides = [1, 1]} : vector<8x384xf32> to vector<8x128xf32>
      %97 = arith.addf %95, %96 : vector<8x128xf32>
      %98 = arith.negf %97 : vector<8x128xf32>
      %99 = math.exp %98 : vector<8x128xf32>
      %cst_27 = arith.constant 1.000000e+00 : f32
      %100 = vector.broadcast %cst_27 : f32 to vector<8x128xf32>
      %101 = arith.addf %100, %99 : vector<8x128xf32>
      %102 = arith.divf %100, %101 : vector<8x128xf32>
      %103 = vector.extract_strided_slice %84 {offsets = [0, 256], sizes = [8, 128], strides = [1, 1]} : vector<8x384xf32> to vector<8x128xf32>
      %104 = vector.extract_strided_slice %86 {offsets = [0, 256], sizes = [8, 128], strides = [1, 1]} : vector<8x384xf32> to vector<8x128xf32>
      %105 = arith.addf %104, %22 : vector<8x128xf32>
      %106 = arith.mulf %94, %105 : vector<8x128xf32>
      %107 = arith.addf %103, %106 : vector<8x128xf32>
      %108 = math.tanh %107 : vector<8x128xf32>
      %cst_28 = arith.constant 1.000000e+00 : f32
      %109 = vector.broadcast %cst_28 : f32 to vector<8x128xf32>
      %110 = arith.subf %109, %102 : vector<8x128xf32>
      %111 = arith.mulf %110, %108 : vector<8x128xf32>
      %112 = arith.mulf %102, %83 : vector<8x128xf32>
      %113 = arith.addf %111, %112 : vector<8x128xf32>
      %114 = vector.extract_strided_slice %16 {offsets = [24, 0], sizes = [8, 384], strides = [1, 1]} : vector<40x384xf32> to vector<8x384xf32>
      %115 = arith.truncf %113 : vector<8x128xf32> to vector<8x128xbf16>
      %cst_29 = arith.constant dense<0.000000e+00> : vector<8x384xf32>
      %116 = tpu.matmul %115, %18, %cst_29 {dimension_numbers = #tpu.dot_dimension_numbers<[1], [0], [0], [1], [0, 0, 1, 1], [], []>} : vector<8x128xbf16>, vector<128x384xbf16>, vector<8x384xf32> -> vector<8x384xf32>
      %117 = vector.extract_strided_slice %114 {offsets = [0, 0], sizes = [8, 128], strides = [1, 1]} : vector<8x384xf32> to vector<8x128xf32>
      %118 = vector.extract_strided_slice %116 {offsets = [0, 0], sizes = [8, 128], strides = [1, 1]} : vector<8x384xf32> to vector<8x128xf32>
      %119 = arith.addf %117, %118 : vector<8x128xf32>
      %120 = arith.negf %119 : vector<8x128xf32>
      %121 = math.exp %120 : vector<8x128xf32>
      %cst_30 = arith.constant 1.000000e+00 : f32
      %122 = vector.broadcast %cst_30 : f32 to vector<8x128xf32>
      %123 = arith.addf %122, %121 : vector<8x128xf32>
      %124 = arith.divf %122, %123 : vector<8x128xf32>
      %125 = vector.extract_strided_slice %114 {offsets = [0, 128], sizes = [8, 128], strides = [1, 1]} : vector<8x384xf32> to vector<8x128xf32>
      %126 = vector.extract_strided_slice %116 {offsets = [0, 128], sizes = [8, 128], strides = [1, 1]} : vector<8x384xf32> to vector<8x128xf32>
      %127 = arith.addf %125, %126 : vector<8x128xf32>
      %128 = arith.negf %127 : vector<8x128xf32>
      %129 = math.exp %128 : vector<8x128xf32>
      %cst_31 = arith.constant 1.000000e+00 : f32
      %130 = vector.broadcast %cst_31 : f32 to vector<8x128xf32>
      %131 = arith.addf %130, %129 : vector<8x128xf32>
      %132 = arith.divf %130, %131 : vector<8x128xf32>
      %133 = vector.extract_strided_slice %114 {offsets = [0, 256], sizes = [8, 128], strides = [1, 1]} : vector<8x384xf32> to vector<8x128xf32>
      %134 = vector.extract_strided_slice %116 {offsets = [0, 256], sizes = [8, 128], strides = [1, 1]} : vector<8x384xf32> to vector<8x128xf32>
      %135 = arith.addf %134, %22 : vector<8x128xf32>
      %136 = arith.mulf %124, %135 : vector<8x128xf32>
      %137 = arith.addf %133, %136 : vector<8x128xf32>
      %138 = math.tanh %137 : vector<8x128xf32>
      %cst_32 = arith.constant 1.000000e+00 : f32
      %139 = vector.broadcast %cst_32 : f32 to vector<8x128xf32>
      %140 = arith.subf %139, %132 : vector<8x128xf32>
      %141 = arith.mulf %140, %138 : vector<8x128xf32>
      %142 = arith.mulf %132, %113 : vector<8x128xf32>
      %143 = arith.addf %141, %142 : vector<8x128xf32>
      %144 = vector.extract_strided_slice %16 {offsets = [32, 0], sizes = [8, 384], strides = [1, 1]} : vector<40x384xf32> to vector<8x384xf32>
      %145 = arith.truncf %143 : vector<8x128xf32> to vector<8x128xbf16>
      %cst_33 = arith.constant dense<0.000000e+00> : vector<8x384xf32>
      %146 = tpu.matmul %145, %18, %cst_33 {dimension_numbers = #tpu.dot_dimension_numbers<[1], [0], [0], [1], [0, 0, 1, 1], [], []>} : vector<8x128xbf16>, vector<128x384xbf16>, vector<8x384xf32> -> vector<8x384xf32>
      %147 = vector.extract_strided_slice %144 {offsets = [0, 0], sizes = [8, 128], strides = [1, 1]} : vector<8x384xf32> to vector<8x128xf32>
      %148 = vector.extract_strided_slice %146 {offsets = [0, 0], sizes = [8, 128], strides = [1, 1]} : vector<8x384xf32> to vector<8x128xf32>
      %149 = arith.addf %147, %148 : vector<8x128xf32>
      %150 = arith.negf %149 : vector<8x128xf32>
      %151 = math.exp %150 : vector<8x128xf32>
      %cst_34 = arith.constant 1.000000e+00 : f32
      %152 = vector.broadcast %cst_34 : f32 to vector<8x128xf32>
      %153 = arith.addf %152, %151 : vector<8x128xf32>
      %154 = arith.divf %152, %153 : vector<8x128xf32>
      %155 = vector.extract_strided_slice %144 {offsets = [0, 128], sizes = [8, 128], strides = [1, 1]} : vector<8x384xf32> to vector<8x128xf32>
      %156 = vector.extract_strided_slice %146 {offsets = [0, 128], sizes = [8, 128], strides = [1, 1]} : vector<8x384xf32> to vector<8x128xf32>
      %157 = arith.addf %155, %156 : vector<8x128xf32>
      %158 = arith.negf %157 : vector<8x128xf32>
      %159 = math.exp %158 : vector<8x128xf32>
      %cst_35 = arith.constant 1.000000e+00 : f32
      %160 = vector.broadcast %cst_35 : f32 to vector<8x128xf32>
      %161 = arith.addf %160, %159 : vector<8x128xf32>
      %162 = arith.divf %160, %161 : vector<8x128xf32>
      %163 = vector.extract_strided_slice %144 {offsets = [0, 256], sizes = [8, 128], strides = [1, 1]} : vector<8x384xf32> to vector<8x128xf32>
      %164 = vector.extract_strided_slice %146 {offsets = [0, 256], sizes = [8, 128], strides = [1, 1]} : vector<8x384xf32> to vector<8x128xf32>
      %165 = arith.addf %164, %22 : vector<8x128xf32>
      %166 = arith.mulf %154, %165 : vector<8x128xf32>
      %167 = arith.addf %163, %166 : vector<8x128xf32>
      %168 = math.tanh %167 : vector<8x128xf32>
      %cst_36 = arith.constant 1.000000e+00 : f32
      %169 = vector.broadcast %cst_36 : f32 to vector<8x128xf32>
      %170 = arith.subf %169, %162 : vector<8x128xf32>
      %171 = arith.mulf %170, %168 : vector<8x128xf32>
      %172 = arith.mulf %162, %143 : vector<8x128xf32>
      %173 = arith.addf %171, %172 : vector<8x128xf32>
      %c0_37 = arith.constant 0 : index
      %c0_38 = arith.constant 0 : index
      %174 = vector.load %arg18[%c0_37, %c0_38] : memref<8x128xf32, #tpu.memory_space<vmem>>, vector<8x128xf32>
      tpu.vector_store %arg18[%c0_37, %c0_38], %173 {strides = array<i32>} : memref<8x128xf32, #tpu.memory_space<vmem>>, vector<8x128xf32>,
      %175 = vector.extract_strided_slice %9 {offsets = [32, 0], sizes = [8, 300], strides = [1, 1]} : vector<40x300xbf16> to vector<8x300xbf16>
      %c0_39 = arith.constant 0 : index
      %c0_40 = arith.constant 0 : index
      %c0_41 = arith.constant 0 : index
      %176 = vector.load %arg8[%c0_39, %c0_40, %c0_41] : memref<1x300x384xbf16, #tpu.memory_space<vmem>>, vector<1x300x384xbf16>
      %177 = vector.shape_cast %176 : vector<1x300x384xbf16> to vector<300x384xbf16>
      %cst_42 = arith.constant dense<0.000000e+00> : vector<8x384xf32>
      %178 = tpu.matmul %175, %177, %cst_42 {dimension_numbers = #tpu.dot_dimension_numbers<[1], [0], [0], [1], [0, 0, 1, 1], [], []>} : vector<8x300xbf16>, vector<300x384xbf16>, vector<8x384xf32> -> vector<8x384xf32>
      %c0_43 = arith.constant 0 : index
      %c0_44 = arith.constant 0 : index
      %c0_45 = arith.constant 0 : index
      %179 = vector.load %arg9[%c0_43, %c0_44, %c0_45] : memref<1x1x384xf32, #tpu.memory_space<vmem>>, vector<1x1x384xf32>
      %180 = vector.shape_cast %179 : vector<1x1x384xf32> to vector<1x384xf32>
      %181 = vector.broadcast %180 : vector<1x384xf32> to vector<8x384xf32>
      %182 = arith.addf %178, %181 : vector<8x384xf32>
      %183 = vector.extract_strided_slice %182 {offsets = [0, 0], sizes = [8, 128], strides = [1, 1]} : vector<8x384xf32> to vector<8x128xf32>
      %184 = arith.negf %183 : vector<8x128xf32>
      %185 = math.exp %184 : vector<8x128xf32>
      %cst_46 = arith.constant 1.000000e+00 : f32
      %186 = vector.broadcast %cst_46 : f32 to vector<8x128xf32>
      %187 = arith.addf %186, %185 : vector<8x128xf32>
      %188 = arith.divf %186, %187 : vector<8x128xf32>
      %189 = vector.extract_strided_slice %182 {offsets = [0, 128], sizes = [8, 128], strides = [1, 1]} : vector<8x384xf32> to vector<8x128xf32>
      %190 = arith.negf %189 : vector<8x128xf32>
      %191 = math.exp %190 : vector<8x128xf32>
      %cst_47 = arith.constant 1.000000e+00 : f32
      %192 = vector.broadcast %cst_47 : f32 to vector<8x128xf32>
      %193 = arith.addf %192, %191 : vector<8x128xf32>
      %194 = arith.divf %192, %193 : vector<8x128xf32>
      %195 = vector.extract_strided_slice %182 {offsets = [0, 256], sizes = [8, 128], strides = [1, 1]} : vector<8x384xf32> to vector<8x128xf32>
      %c0_48 = arith.constant 0 : index
      %c0_49 = arith.constant 0 : index
      %c0_50 = arith.constant 0 : index
      %196 = vector.load %arg10[%c0_48, %c0_49, %c0_50] : memref<1x1x128xf32, #tpu.memory_space<vmem>>, vector<1x1x128xf32>
      %197 = vector.shape_cast %196 : vector<1x1x128xf32> to vector<1x128xf32>
      %198 = vector.shape_cast %197 : vector<1x128xf32> to vector<1x128xf32>
      %199 = vector.broadcast %198 : vector<1x128xf32> to vector<8x128xf32>
      %200 = arith.mulf %188, %199 : vector<8x128xf32>
      %201 = arith.addf %195, %200 : vector<8x128xf32>
      %202 = math.tanh %201 : vector<8x128xf32>
      %cst_51 = arith.constant 1.000000e+00 : f32
      %203 = vector.broadcast %cst_51 : f32 to vector<8x128xf32>
      %204 = arith.subf %203, %194 : vector<8x128xf32>
      %205 = arith.mulf %204, %202 : vector<8x128xf32>
      %c0_52 = arith.constant 0 : index
      %c0_53 = arith.constant 0 : index
      %206 = vector.load %arg19[%c0_52, %c0_53] : memref<8x128xf32, #tpu.memory_space<vmem>>, vector<8x128xf32>
      tpu.vector_store %arg19[%c0_52, %c0_53], %205 {strides = array<i32>} : memref<8x128xf32, #tpu.memory_space<vmem>>, vector<8x128xf32>,
    } else {
    }
    %c2_i32 = arith.constant 2 : i32
    %6 = arith.cmpi eq, %arg0, %c2_i32 : i32
    %7 = arith.extui %6 : i1 to i32
    %c0_i32_2 = arith.constant 0 : i32
    %8 = arith.cmpi ne, %7, %c0_i32_2 : i32
    scf.if %8 {
      %c0 = arith.constant 0 : index
      %c0_3 = arith.constant 0 : index
      %9 = vector.load %arg3[%c0, %c0_3] : memref<128x300xbf16, #tpu.memory_space<vmem>>, vector<128x300xbf16>
      %c0_4 = arith.constant 0 : index
      %c0_5 = arith.constant 0 : index
      %c0_6 = arith.constant 0 : index
      %10 = vector.load %arg4[%c0_4, %c0_5, %c0_6] : memref<1x300x384xbf16, #tpu.memory_space<vmem>>, vector<1x300x384xbf16>
      %11 = vector.shape_cast %10 : vector<1x300x384xbf16> to vector<300x384xbf16>
      %cst = arith.constant dense<0.000000e+00> : vector<128x384xf32>
      %12 = tpu.matmul %9, %11, %cst {dimension_numbers = #tpu.dot_dimension_numbers<[1], [0], [0], [1], [0, 0, 1, 1], [], []>} : vector<128x300xbf16>, vector<300x384xbf16>, vector<128x384xf32> -> vector<128x384xf32>
      %c0_7 = arith.constant 0 : index
      %c0_8 = arith.constant 0 : index
      %c0_9 = arith.constant 0 : index
      %13 = vector.load %arg6[%c0_7, %c0_8, %c0_9] : memref<1x1x384xf32, #tpu.memory_space<vmem>>, vector<1x1x384xf32>
      %14 = vector.shape_cast %13 : vector<1x1x384xf32> to vector<1x384xf32>
      %15 = vector.broadcast %14 : vector<1x384xf32> to vector<128x384xf32>
      %16 = arith.addf %12, %15 : vector<128x384xf32>
      %c0_10 = arith.constant 0 : index
      %c0_11 = arith.constant 0 : index
      %c0_12 = arith.constant 0 : index
      %17 = vector.load %arg5[%c0_10, %c0_11, %c0_12] : memref<1x128x384xbf16, #tpu.memory_space<vmem>>, vector<1x128x384xbf16>
      %18 = vector.shape_cast %17 : vector<1x128x384xbf16> to vector<128x384xbf16>
      %c0_13 = arith.constant 0 : index
      %c0_14 = arith.constant 0 : index
      %c0_15 = arith.constant 0 : index
      %19 = vector.load %arg7[%c0_13, %c0_14, %c0_15] : memref<1x1x128xf32, #tpu.memory_space<vmem>>, vector<1x1x128xf32>
      %20 = vector.shape_cast %19 : vector<1x1x128xf32> to vector<1x128xf32>
      %21 = vector.shape_cast %20 : vector<1x128xf32> to vector<1x128xf32>
      %22 = vector.broadcast %21 : vector<1x128xf32> to vector<32x128xf32>
      %cst_16 = arith.constant 0.000000e+00 : f32
      %23 = vector.broadcast %cst_16 : f32 to vector<32x128xf32>
      %24 = vector.extract_strided_slice %16 {offsets = [0, 0], sizes = [32, 384], strides = [1, 1]} : vector<128x384xf32> to vector<32x384xf32>
      %25 = arith.truncf %23 : vector<32x128xf32> to vector<32x128xbf16>
      %cst_17 = arith.constant dense<0.000000e+00> : vector<32x384xf32>
      %26 = tpu.matmul %25, %18, %cst_17 {dimension_numbers = #tpu.dot_dimension_numbers<[1], [0], [0], [1], [0, 0, 1, 1], [], []>} : vector<32x128xbf16>, vector<128x384xbf16>, vector<32x384xf32> -> vector<32x384xf32>
      %27 = vector.extract_strided_slice %24 {offsets = [0, 0], sizes = [32, 128], strides = [1, 1]} : vector<32x384xf32> to vector<32x128xf32>
      %28 = vector.extract_strided_slice %26 {offsets = [0, 0], sizes = [32, 128], strides = [1, 1]} : vector<32x384xf32> to vector<32x128xf32>
      %29 = arith.addf %27, %28 : vector<32x128xf32>
      %30 = arith.negf %29 : vector<32x128xf32>
      %31 = math.exp %30 : vector<32x128xf32>
      %cst_18 = arith.constant 1.000000e+00 : f32
      %32 = vector.broadcast %cst_18 : f32 to vector<32x128xf32>
      %33 = arith.addf %32, %31 : vector<32x128xf32>
      %34 = arith.divf %32, %33 : vector<32x128xf32>
      %35 = vector.extract_strided_slice %24 {offsets = [0, 128], sizes = [32, 128], strides = [1, 1]} : vector<32x384xf32> to vector<32x128xf32>
      %36 = vector.extract_strided_slice %26 {offsets = [0, 128], sizes = [32, 128], strides = [1, 1]} : vector<32x384xf32> to vector<32x128xf32>
      %37 = arith.addf %35, %36 : vector<32x128xf32>
      %38 = arith.negf %37 : vector<32x128xf32>
      %39 = math.exp %38 : vector<32x128xf32>
      %cst_19 = arith.constant 1.000000e+00 : f32
      %40 = vector.broadcast %cst_19 : f32 to vector<32x128xf32>
      %41 = arith.addf %40, %39 : vector<32x128xf32>
      %42 = arith.divf %40, %41 : vector<32x128xf32>
      %43 = vector.extract_strided_slice %24 {offsets = [0, 256], sizes = [32, 128], strides = [1, 1]} : vector<32x384xf32> to vector<32x128xf32>
      %44 = vector.extract_strided_slice %26 {offsets = [0, 256], sizes = [32, 128], strides = [1, 1]} : vector<32x384xf32> to vector<32x128xf32>
      %45 = arith.addf %44, %22 : vector<32x128xf32>
      %46 = arith.mulf %34, %45 : vector<32x128xf32>
      %47 = arith.addf %43, %46 : vector<32x128xf32>
      %48 = math.tanh %47 : vector<32x128xf32>
      %cst_20 = arith.constant 1.000000e+00 : f32
      %49 = vector.broadcast %cst_20 : f32 to vector<32x128xf32>
      %50 = arith.subf %49, %42 : vector<32x128xf32>
      %51 = arith.mulf %50, %48 : vector<32x128xf32>
      %52 = arith.mulf %42, %23 : vector<32x128xf32>
      %53 = arith.addf %51, %52 : vector<32x128xf32>
      %54 = vector.extract_strided_slice %16 {offsets = [32, 0], sizes = [32, 384], strides = [1, 1]} : vector<128x384xf32> to vector<32x384xf32>
      %55 = arith.truncf %53 : vector<32x128xf32> to vector<32x128xbf16>
      %cst_21 = arith.constant dense<0.000000e+00> : vector<32x384xf32>
      %56 = tpu.matmul %55, %18, %cst_21 {dimension_numbers = #tpu.dot_dimension_numbers<[1], [0], [0], [1], [0, 0, 1, 1], [], []>} : vector<32x128xbf16>, vector<128x384xbf16>, vector<32x384xf32> -> vector<32x384xf32>
      %57 = vector.extract_strided_slice %54 {offsets = [0, 0], sizes = [32, 128], strides = [1, 1]} : vector<32x384xf32> to vector<32x128xf32>
      %58 = vector.extract_strided_slice %56 {offsets = [0, 0], sizes = [32, 128], strides = [1, 1]} : vector<32x384xf32> to vector<32x128xf32>
      %59 = arith.addf %57, %58 : vector<32x128xf32>
      %60 = arith.negf %59 : vector<32x128xf32>
      %61 = math.exp %60 : vector<32x128xf32>
      %cst_22 = arith.constant 1.000000e+00 : f32
      %62 = vector.broadcast %cst_22 : f32 to vector<32x128xf32>
      %63 = arith.addf %62, %61 : vector<32x128xf32>
      %64 = arith.divf %62, %63 : vector<32x128xf32>
      %65 = vector.extract_strided_slice %54 {offsets = [0, 128], sizes = [32, 128], strides = [1, 1]} : vector<32x384xf32> to vector<32x128xf32>
      %66 = vector.extract_strided_slice %56 {offsets = [0, 128], sizes = [32, 128], strides = [1, 1]} : vector<32x384xf32> to vector<32x128xf32>
      %67 = arith.addf %65, %66 : vector<32x128xf32>
      %68 = arith.negf %67 : vector<32x128xf32>
      %69 = math.exp %68 : vector<32x128xf32>
      %cst_23 = arith.constant 1.000000e+00 : f32
      %70 = vector.broadcast %cst_23 : f32 to vector<32x128xf32>
      %71 = arith.addf %70, %69 : vector<32x128xf32>
      %72 = arith.divf %70, %71 : vector<32x128xf32>
      %73 = vector.extract_strided_slice %54 {offsets = [0, 256], sizes = [32, 128], strides = [1, 1]} : vector<32x384xf32> to vector<32x128xf32>
      %74 = vector.extract_strided_slice %56 {offsets = [0, 256], sizes = [32, 128], strides = [1, 1]} : vector<32x384xf32> to vector<32x128xf32>
      %75 = arith.addf %74, %22 : vector<32x128xf32>
      %76 = arith.mulf %64, %75 : vector<32x128xf32>
      %77 = arith.addf %73, %76 : vector<32x128xf32>
      %78 = math.tanh %77 : vector<32x128xf32>
      %cst_24 = arith.constant 1.000000e+00 : f32
      %79 = vector.broadcast %cst_24 : f32 to vector<32x128xf32>
      %80 = arith.subf %79, %72 : vector<32x128xf32>
      %81 = arith.mulf %80, %78 : vector<32x128xf32>
      %82 = arith.mulf %72, %53 : vector<32x128xf32>
      %83 = arith.addf %81, %82 : vector<32x128xf32>
      %84 = vector.extract_strided_slice %16 {offsets = [64, 0], sizes = [32, 384], strides = [1, 1]} : vector<128x384xf32> to vector<32x384xf32>
      %85 = arith.truncf %83 : vector<32x128xf32> to vector<32x128xbf16>
      %cst_25 = arith.constant dense<0.000000e+00> : vector<32x384xf32>
      %86 = tpu.matmul %85, %18, %cst_25 {dimension_numbers = #tpu.dot_dimension_numbers<[1], [0], [0], [1], [0, 0, 1, 1], [], []>} : vector<32x128xbf16>, vector<128x384xbf16>, vector<32x384xf32> -> vector<32x384xf32>
      %87 = vector.extract_strided_slice %84 {offsets = [0, 0], sizes = [32, 128], strides = [1, 1]} : vector<32x384xf32> to vector<32x128xf32>
      %88 = vector.extract_strided_slice %86 {offsets = [0, 0], sizes = [32, 128], strides = [1, 1]} : vector<32x384xf32> to vector<32x128xf32>
      %89 = arith.addf %87, %88 : vector<32x128xf32>
      %90 = arith.negf %89 : vector<32x128xf32>
      %91 = math.exp %90 : vector<32x128xf32>
      %cst_26 = arith.constant 1.000000e+00 : f32
      %92 = vector.broadcast %cst_26 : f32 to vector<32x128xf32>
      %93 = arith.addf %92, %91 : vector<32x128xf32>
      %94 = arith.divf %92, %93 : vector<32x128xf32>
      %95 = vector.extract_strided_slice %84 {offsets = [0, 128], sizes = [32, 128], strides = [1, 1]} : vector<32x384xf32> to vector<32x128xf32>
      %96 = vector.extract_strided_slice %86 {offsets = [0, 128], sizes = [32, 128], strides = [1, 1]} : vector<32x384xf32> to vector<32x128xf32>
      %97 = arith.addf %95, %96 : vector<32x128xf32>
      %98 = arith.negf %97 : vector<32x128xf32>
      %99 = math.exp %98 : vector<32x128xf32>
      %cst_27 = arith.constant 1.000000e+00 : f32
      %100 = vector.broadcast %cst_27 : f32 to vector<32x128xf32>
      %101 = arith.addf %100, %99 : vector<32x128xf32>
      %102 = arith.divf %100, %101 : vector<32x128xf32>
      %103 = vector.extract_strided_slice %84 {offsets = [0, 256], sizes = [32, 128], strides = [1, 1]} : vector<32x384xf32> to vector<32x128xf32>
      %104 = vector.extract_strided_slice %86 {offsets = [0, 256], sizes = [32, 128], strides = [1, 1]} : vector<32x384xf32> to vector<32x128xf32>
      %105 = arith.addf %104, %22 : vector<32x128xf32>
      %106 = arith.mulf %94, %105 : vector<32x128xf32>
      %107 = arith.addf %103, %106 : vector<32x128xf32>
      %108 = math.tanh %107 : vector<32x128xf32>
      %cst_28 = arith.constant 1.000000e+00 : f32
      %109 = vector.broadcast %cst_28 : f32 to vector<32x128xf32>
      %110 = arith.subf %109, %102 : vector<32x128xf32>
      %111 = arith.mulf %110, %108 : vector<32x128xf32>
      %112 = arith.mulf %102, %83 : vector<32x128xf32>
      %113 = arith.addf %111, %112 : vector<32x128xf32>
      %114 = vector.extract_strided_slice %16 {offsets = [96, 0], sizes = [32, 384], strides = [1, 1]} : vector<128x384xf32> to vector<32x384xf32>
      %115 = arith.truncf %113 : vector<32x128xf32> to vector<32x128xbf16>
      %cst_29 = arith.constant dense<0.000000e+00> : vector<32x384xf32>
      %116 = tpu.matmul %115, %18, %cst_29 {dimension_numbers = #tpu.dot_dimension_numbers<[1], [0], [0], [1], [0, 0, 1, 1], [], []>} : vector<32x128xbf16>, vector<128x384xbf16>, vector<32x384xf32> -> vector<32x384xf32>
      %117 = vector.extract_strided_slice %114 {offsets = [0, 0], sizes = [32, 128], strides = [1, 1]} : vector<32x384xf32> to vector<32x128xf32>
      %118 = vector.extract_strided_slice %116 {offsets = [0, 0], sizes = [32, 128], strides = [1, 1]} : vector<32x384xf32> to vector<32x128xf32>
      %119 = arith.addf %117, %118 : vector<32x128xf32>
      %120 = arith.negf %119 : vector<32x128xf32>
      %121 = math.exp %120 : vector<32x128xf32>
      %cst_30 = arith.constant 1.000000e+00 : f32
      %122 = vector.broadcast %cst_30 : f32 to vector<32x128xf32>
      %123 = arith.addf %122, %121 : vector<32x128xf32>
      %124 = arith.divf %122, %123 : vector<32x128xf32>
      %125 = vector.extract_strided_slice %114 {offsets = [0, 128], sizes = [32, 128], strides = [1, 1]} : vector<32x384xf32> to vector<32x128xf32>
      %126 = vector.extract_strided_slice %116 {offsets = [0, 128], sizes = [32, 128], strides = [1, 1]} : vector<32x384xf32> to vector<32x128xf32>
      %127 = arith.addf %125, %126 : vector<32x128xf32>
      %128 = arith.negf %127 : vector<32x128xf32>
      %129 = math.exp %128 : vector<32x128xf32>
      %cst_31 = arith.constant 1.000000e+00 : f32
      %130 = vector.broadcast %cst_31 : f32 to vector<32x128xf32>
      %131 = arith.addf %130, %129 : vector<32x128xf32>
      %132 = arith.divf %130, %131 : vector<32x128xf32>
      %133 = vector.extract_strided_slice %114 {offsets = [0, 256], sizes = [32, 128], strides = [1, 1]} : vector<32x384xf32> to vector<32x128xf32>
      %134 = vector.extract_strided_slice %116 {offsets = [0, 256], sizes = [32, 128], strides = [1, 1]} : vector<32x384xf32> to vector<32x128xf32>
      %135 = arith.addf %134, %22 : vector<32x128xf32>
      %136 = arith.mulf %124, %135 : vector<32x128xf32>
      %137 = arith.addf %133, %136 : vector<32x128xf32>
      %138 = math.tanh %137 : vector<32x128xf32>
      %cst_32 = arith.constant 1.000000e+00 : f32
      %139 = vector.broadcast %cst_32 : f32 to vector<32x128xf32>
      %140 = arith.subf %139, %132 : vector<32x128xf32>
      %141 = arith.mulf %140, %138 : vector<32x128xf32>
      %142 = arith.mulf %132, %113 : vector<32x128xf32>
      %143 = arith.addf %141, %142 : vector<32x128xf32>
      %144 = vector.extract_strided_slice %9 {offsets = [96, 0], sizes = [32, 300], strides = [1, 1]} : vector<128x300xbf16> to vector<32x300xbf16>
      %c0_33 = arith.constant 0 : index
      %c0_34 = arith.constant 0 : index
      %c0_35 = arith.constant 0 : index
      %145 = vector.load %arg8[%c0_33, %c0_34, %c0_35] : memref<1x300x384xbf16, #tpu.memory_space<vmem>>, vector<1x300x384xbf16>
      %146 = vector.shape_cast %145 : vector<1x300x384xbf16> to vector<300x384xbf16>
      %cst_36 = arith.constant dense<0.000000e+00> : vector<32x384xf32>
      %147 = tpu.matmul %144, %146, %cst_36 {dimension_numbers = #tpu.dot_dimension_numbers<[1], [0], [0], [1], [0, 0, 1, 1], [], []>} : vector<32x300xbf16>, vector<300x384xbf16>, vector<32x384xf32> -> vector<32x384xf32>
      %c0_37 = arith.constant 0 : index
      %c0_38 = arith.constant 0 : index
      %c0_39 = arith.constant 0 : index
      %148 = vector.load %arg9[%c0_37, %c0_38, %c0_39] : memref<1x1x384xf32, #tpu.memory_space<vmem>>, vector<1x1x384xf32>
      %149 = vector.shape_cast %148 : vector<1x1x384xf32> to vector<1x384xf32>
      %150 = vector.broadcast %149 : vector<1x384xf32> to vector<32x384xf32>
      %151 = arith.addf %147, %150 : vector<32x384xf32>
      %152 = vector.extract_strided_slice %151 {offsets = [0, 0], sizes = [32, 128], strides = [1, 1]} : vector<32x384xf32> to vector<32x128xf32>
      %153 = arith.negf %152 : vector<32x128xf32>
      %154 = math.exp %153 : vector<32x128xf32>
      %cst_40 = arith.constant 1.000000e+00 : f32
      %155 = vector.broadcast %cst_40 : f32 to vector<32x128xf32>
      %156 = arith.addf %155, %154 : vector<32x128xf32>
      %157 = arith.divf %155, %156 : vector<32x128xf32>
      %158 = vector.extract_strided_slice %151 {offsets = [0, 128], sizes = [32, 128], strides = [1, 1]} : vector<32x384xf32> to vector<32x128xf32>
      %159 = arith.negf %158 : vector<32x128xf32>
      %160 = math.exp %159 : vector<32x128xf32>
      %cst_41 = arith.constant 1.000000e+00 : f32
      %161 = vector.broadcast %cst_41 : f32 to vector<32x128xf32>
      %162 = arith.addf %161, %160 : vector<32x128xf32>
      %163 = arith.divf %161, %162 : vector<32x128xf32>
      %164 = vector.extract_strided_slice %151 {offsets = [0, 256], sizes = [32, 128], strides = [1, 1]} : vector<32x384xf32> to vector<32x128xf32>
      %c0_42 = arith.constant 0 : index
      %c0_43 = arith.constant 0 : index
      %c0_44 = arith.constant 0 : index
      %165 = vector.load %arg10[%c0_42, %c0_43, %c0_44] : memref<1x1x128xf32, #tpu.memory_space<vmem>>, vector<1x1x128xf32>
      %166 = vector.shape_cast %165 : vector<1x1x128xf32> to vector<1x128xf32>
      %167 = vector.shape_cast %166 : vector<1x128xf32> to vector<1x128xf32>
      %168 = vector.broadcast %167 : vector<1x128xf32> to vector<32x128xf32>
      %169 = arith.mulf %157, %168 : vector<32x128xf32>
      %170 = arith.addf %164, %169 : vector<32x128xf32>
      %171 = math.tanh %170 : vector<32x128xf32>
      %cst_45 = arith.constant 1.000000e+00 : f32
      %172 = vector.broadcast %cst_45 : f32 to vector<32x128xf32>
      %173 = arith.subf %172, %163 : vector<32x128xf32>
      %174 = arith.mulf %173, %171 : vector<32x128xf32>
      %c0_46 = arith.constant 0 : index
      %c0_47 = arith.constant 0 : index
      %175 = vector.load %arg16[%c0_46, %c0_47] : memref<8x128xf32, #tpu.memory_space<vmem>>, vector<8x128xf32>
      %c0_48 = arith.constant 0 : index
      %c0_49 = arith.constant 0 : index
      %176 = vector.load %arg17[%c0_48, %c0_49] : memref<8x128xf32, #tpu.memory_space<vmem>>, vector<8x128xf32>
      %c0_50 = arith.constant 0 : index
      %c0_51 = arith.constant 0 : index
      %177 = vector.load %arg18[%c0_50, %c0_51] : memref<8x128xf32, #tpu.memory_space<vmem>>, vector<8x128xf32>
      %c0_52 = arith.constant 0 : index
      %c0_53 = arith.constant 0 : index
      %178 = vector.load %arg19[%c0_52, %c0_53] : memref<8x128xf32, #tpu.memory_space<vmem>>, vector<8x128xf32>
      %179 = vector.extract_strided_slice %143 {offsets = [0, 0], sizes = [8, 128], strides = [1, 1]} : vector<32x128xf32> to vector<8x128xf32>
      %180 = vector.extract_strided_slice %174 {offsets = [0, 0], sizes = [8, 128], strides = [1, 1]} : vector<32x128xf32> to vector<8x128xf32>
      %181 = vector.extract_strided_slice %143 {offsets = [8, 0], sizes = [8, 128], strides = [1, 1]} : vector<32x128xf32> to vector<8x128xf32>
      %182 = vector.extract_strided_slice %174 {offsets = [8, 0], sizes = [8, 128], strides = [1, 1]} : vector<32x128xf32> to vector<8x128xf32>
      %183 = vector.extract_strided_slice %143 {offsets = [16, 0], sizes = [8, 128], strides = [1, 1]} : vector<32x128xf32> to vector<8x128xf32>
      %184 = vector.extract_strided_slice %174 {offsets = [16, 0], sizes = [8, 128], strides = [1, 1]} : vector<32x128xf32> to vector<8x128xf32>
      %185 = vector.extract_strided_slice %143 {offsets = [24, 0], sizes = [8, 128], strides = [1, 1]} : vector<32x128xf32> to vector<8x128xf32>
      %186 = vector.extract_strided_slice %174 {offsets = [24, 0], sizes = [8, 128], strides = [1, 1]} : vector<32x128xf32> to vector<8x128xf32>
      %187 = tpu.concatenate %175, %176, %177, %178, %179, %180, %181, %182, %183, %184, %185, %186 in 1 : vector<8x128xf32>, vector<8x128xf32>, vector<8x128xf32>, vector<8x128xf32>, vector<8x128xf32>, vector<8x128xf32>, vector<8x128xf32>, vector<8x128xf32>, vector<8x128xf32>, vector<8x128xf32>, vector<8x128xf32>, vector<8x128xf32> -> vector<8x1536xf32>
      %188 = arith.negf %187 : vector<8x1536xf32>
      %189 = math.exp %188 : vector<8x1536xf32>
      %cst_54 = arith.constant 1.000000e+00 : f32
      %190 = vector.broadcast %cst_54 : f32 to vector<8x1536xf32>
      %191 = arith.addf %190, %189 : vector<8x1536xf32>
      %192 = arith.divf %190, %191 : vector<8x1536xf32>
      %c0_55 = arith.constant 0 : index
      %c0_56 = arith.constant 0 : index
      %193 = vector.load %arg11[%c0_55, %c0_56] : memref<16x1536xf32, #tpu.memory_space<vmem>>, vector<16x1536xf32>
      %cst_57 = arith.constant dense<0.000000e+00> : vector<8x16xf32>
      %194 = tpu.matmul %192, %193, %cst_57 {dimension_numbers = #tpu.dot_dimension_numbers<[1], [1], [0], [0], [0, 0, 1, 0], [], []>} : vector<8x1536xf32>, vector<16x1536xf32>, vector<8x16xf32> -> vector<8x16xf32>
      %c0_58 = arith.constant 0 : index
      %c0_59 = arith.constant 0 : index
      %195 = vector.load %arg12[%c0_58, %c0_59] : memref<1x16xf32, #tpu.memory_space<vmem>>, vector<1x16xf32>
      %196 = vector.broadcast %195 : vector<1x16xf32> to vector<8x16xf32>
      %197 = arith.addf %194, %196 : vector<8x16xf32>
      %cst_60 = arith.constant 0.000000e+00 : f32
      %198 = vector.broadcast %cst_60 : f32 to vector<8x16xf32>
      %199 = arith.cmpf oge, %197, %198 : vector<8x16xf32>
      %cst_61 = arith.constant 0.00999999977 : f32
      %200 = vector.broadcast %cst_61 : f32 to vector<8x16xf32>
      %201 = arith.mulf %200, %197 : vector<8x16xf32>
      %202 = arith.select %199, %197, %201 : vector<8x16xi1>, vector<8x16xf32>
      %c0_62 = arith.constant 0 : index
      %c0_63 = arith.constant 0 : index
      %203 = vector.load %arg13[%c0_62, %c0_63] : memref<16x128xf32, #tpu.memory_space<vmem>>, vector<16x128xf32>
      %cst_64 = arith.constant dense<0.000000e+00> : vector<8x128xf32>
      %204 = tpu.matmul %202, %203, %cst_64 {dimension_numbers = #tpu.dot_dimension_numbers<[1], [0], [0], [1], [0, 0, 1, 1], [], []>} : vector<8x16xf32>, vector<16x128xf32>, vector<8x128xf32> -> vector<8x128xf32>
      %c0_65 = arith.constant 0 : index
      %c0_66 = arith.constant 0 : index
      %205 = vector.load %arg14[%c0_65, %c0_66] : memref<1x128xf32, #tpu.memory_space<vmem>>, vector<1x128xf32>
      %206 = vector.broadcast %205 : vector<1x128xf32> to vector<8x128xf32>
      %207 = arith.addf %204, %206 : vector<8x128xf32>
      %208 = arith.negf %207 : vector<8x128xf32>
      %209 = math.exp %208 : vector<8x128xf32>
      %cst_67 = arith.constant 1.000000e+00 : f32
      %210 = vector.broadcast %cst_67 : f32 to vector<8x128xf32>
      %211 = arith.addf %210, %209 : vector<8x128xf32>
      %212 = arith.divf %210, %211 : vector<8x128xf32>
      %c0_68 = arith.constant 0 : index
      %c0_69 = arith.constant 0 : index
      %213 = vector.load %arg15[%c0_68, %c0_69] : memref<8x128xf32, #tpu.memory_space<vmem>>, vector<8x128xf32>
      tpu.vector_store %arg15[%c0_68, %c0_69], %212 {strides = array<i32>} : memref<8x128xf32, #tpu.memory_space<vmem>>, vector<8x128xf32>,
    } else {
    }
    return
  }
  func.func @transform_0(%arg0: i32) -> (i32, i32) {
    %c0_i32 = arith.constant 0 : i32
    %c0_i32_0 = arith.constant 0 : i32
    %c0_i32_1 = arith.constant 0 : i32
    return %c0_i32, %c0_i32_0 : i32, i32
  }
  func.func @transform_1(%arg0: i32) -> (i32, i32) {
    %c0_i32 = arith.constant 0 : i32
    %c0_i32_0 = arith.constant 0 : i32
    %c0_i32_1 = arith.constant 0 : i32
    return %c0_i32, %c0_i32_0 : i32, i32
  }
  func.func @transform_2(%arg0: i32) -> (i32, i32) {
    %c0_i32 = arith.constant 0 : i32
    %c0_i32_0 = arith.constant 0 : i32
    %c0_i32_1 = arith.constant 0 : i32
    return %c0_i32, %c0_i32_0 : i32, i32
  }
  func.func @transform_3(%arg0: i32) -> (i32, i32, i32) {
    %c0_i32 = arith.constant 0 : i32
    %c0_i32_0 = arith.constant 0 : i32
    %c0_i32_1 = arith.constant 0 : i32
    return %arg0, %c0_i32, %c0_i32_0 : i32, i32, i32
  }
  func.func @transform_4(%arg0: i32) -> (i32, i32, i32) {
    %c0_i32 = arith.constant 0 : i32
    %c0_i32_0 = arith.constant 0 : i32
    %c0_i32_1 = arith.constant 0 : i32
    return %arg0, %c0_i32, %c0_i32_0 : i32, i32, i32
  }
  func.func @transform_5(%arg0: i32) -> (i32, i32, i32) {
    %c0_i32 = arith.constant 0 : i32
    %c0_i32_0 = arith.constant 0 : i32
    %c0_i32_1 = arith.constant 0 : i32
    return %arg0, %c0_i32, %c0_i32_0 : i32, i32, i32
  }
  func.func @transform_6(%arg0: i32) -> (i32, i32, i32) {
    %c0_i32 = arith.constant 0 : i32
    %c0_i32_0 = arith.constant 0 : i32
    %c0_i32_1 = arith.constant 0 : i32
    return %arg0, %c0_i32, %c0_i32_0 : i32, i32, i32
  }
  func.func @transform_7(%arg0: i32) -> (i32, i32, i32) {
    %c0_i32 = arith.constant 0 : i32
    %c0_i32_0 = arith.constant 0 : i32
    %c0_i32_1 = arith.constant 0 : i32
    return %arg0, %c0_i32, %c0_i32_0 : i32, i32, i32
  }
  func.func @transform_8(%arg0: i32) -> (i32, i32, i32) {
    %c0_i32 = arith.constant 0 : i32
    %c0_i32_0 = arith.constant 0 : i32
    %c0_i32_1 = arith.constant 0 : i32
    return %arg0, %c0_i32, %c0_i32_0 : i32, i32, i32
  }
  func.func @transform_9(%arg0: i32) -> (i32, i32, i32) {
    %c0_i32 = arith.constant 0 : i32
    %c0_i32_0 = arith.constant 0 : i32
    %c0_i32_1 = arith.constant 0 : i32
    return %arg0, %c0_i32, %c0_i32_0 : i32, i32, i32
  }
  func.func @transform_10(%arg0: i32) -> (i32, i32) {
    %c0_i32 = arith.constant 0 : i32
    %c0_i32_0 = arith.constant 0 : i32
    %c0_i32_1 = arith.constant 0 : i32
    return %c0_i32, %c0_i32_0 : i32, i32
  }
  func.func @transform_11(%arg0: i32) -> (i32, i32) {
    %c0_i32 = arith.constant 0 : i32
    %c0_i32_0 = arith.constant 0 : i32
    %c0_i32_1 = arith.constant 0 : i32
    return %c0_i32, %c0_i32_0 : i32, i32
  }
  func.func @transform_12(%arg0: i32) -> (i32, i32) {
    %c0_i32 = arith.constant 0 : i32
    %c0_i32_0 = arith.constant 0 : i32
    %c0_i32_1 = arith.constant 0 : i32
    return %c0_i32, %c0_i32_0 : i32, i32
  }
  func.func @transform_13(%arg0: i32) -> (i32, i32) {
    %c0_i32 = arith.constant 0 : i32
    %c0_i32_0 = arith.constant 0 : i32
    %c0_i32_1 = arith.constant 0 : i32
    return %c0_i32, %c0_i32_0 : i32, i32
  }
  func.func @transform_14(%arg0: i32) -> (i32, i32) {
    %c0_i32 = arith.constant 0 : i32
    %c0_i32_0 = arith.constant 0 : i32
    %c0_i32_1 = arith.constant 0 : i32
    return %c0_i32, %c0_i32_0 : i32, i32
  }
}

</mosaic_0001>

<bundles_post_ra>
// kernel: gru_network_forward.1
= control target key start
LH: loop header
LB: loop body
LE: loop exit
PB: predicated region body
PF: predicated region fallthrough
CT: control target
= control target key end

     0   :  { %s13712_s0 = inlined_call_operand.vmem [shape: bf16[64,300], index: 0, kind: input, shape index: {}]   ;;  %s13713_s1 = inlined_call_operand.vmem [shape: bf16[40,300], index: 1, kind: input, shape index: {}]   ;;  %s13714_s2 = inlined_call_operand.vmem [shape: bf16[128,300], index: 2, kind: input, shape index: {}]   ;;  %s13715_s3 = inlined_call_operand.hbm [shape: bf16[3,300,384], index: 3, kind: input, shape index: {}]   ;;  %s13716_s4 = inlined_call_operand.vmem [shape: bf16[3,128,384], index: 4, kind: input, shape index: {}]   ;;  %s13717_s5 = inlined_call_operand.vmem [shape: f32[3,1,384], index: 5, kind: input, shape index: {}]   ;;  %s13718_s6 = inlined_call_operand.vmem [shape: f32[3,1,128], index: 6, kind: input, shape index: {}]   ;;  %s13719_s7 = inlined_call_operand.hbm [shape: bf16[3,300,384], index: 7, kind: input, shape index: {}]   ;;  %s13720_s8 = inlined_call_operand.vmem [shape: f32[3,1,384], index: 8, kind: input, shape index: {}]   ;;  %s13721_s9 = inlined_call_operand.vmem [shape: f32[3,1,128], index: 9, kind: input, shape index: {}]   ;;  %s13722_s10 = inlined_call_operand.vmem [shape: f32[16,1536], index: 10, kind: input, shape index: {}]   ;;  %s13723_s11 = inlined_call_operand.vmem [shape: f32[1,16], index: 11, kind: input, shape index: {}]   ;;  %s13724_s12 = inlined_call_operand.vmem [shape: f32[16,128], index: 12, kind: input, shape index: {}]   ;;  %s13725_s13 = inlined_call_operand.vmem [shape: f32[1,128], index: 13, kind: input, shape index: {}]   ;;  %s13726_s14 = inlined_call_operand.vmem [shape: f32[8,128], index: 14, kind: output, shape index: {}]  }
   0x1   :  { %13774 = sst [smem:[#allocation44_spill]] %s13715_s3 }
   0x2   :  { %13775 = sst [smem:[#allocation45_spill]] %s13719_s7 }
   0x3   :  { %13776 = sst [smem:[#allocation46_spill]] %s13725_s13 }
   0x4   :  { %13777 = sst [smem:[#allocation47_spill]] %s13726_s14 }
   0x5   :  { %19 = vsyncpa [#allocation7], 0 }
   0x6   :  { %21 = vsyncpa [#allocation7 + $0x1], 0 }
   0x7   :  { %22 = vsyncpa [#allocation9], 0 }
   0x8   :  { %24 = vsyncpa [#allocation9 + $0x1], 0  ;;  %s11072_s29 = smov 0   ;;  %s11074_s30 = smov 0  }
   0x9   :  { %s11076_s15 = smov 0   ;;  %s11078_s16 = smov 0  }
   0xa LB: > { %13778 = sst [smem:[#allocation12_spill]] %s10978_s15  ;;  %s11091_s17 = sadd.s32 4294967295, %s10982_s16   ;;  %s10982_s16 = sphi %s11078_s16, %s13864_s16   ;;  %s10978_s15 = sphi %s11076_s15, %s13866_s15   ;;  %s10974_s30 = sphi %s11074_s30, %s13868_s30   ;;  %s10970_s29 = sphi %s11072_s29, %s13867_s29  }
   0xb   : > { %s11094_s18 = sadd.s32 1, %s10982_s16   ;;  %s100_s20 = sadd.s32 1, %s10978_s15 }
   0xc   : > { %13779 = sst [smem:[#allocation13_spill]] %s11094_s18  ;;  %s97_s19 = ssub.s32 %s10982_s16, %s11094_s18 }
   0xd   : > { %p98_p0 = scmp.eq.s32.totalorder %s97_s19, 0  ;;  %p107_p1 = scmp.ne.s32.totalorder %s10978_s15, %s10974_s30 }
   0xe   : > { %p108_p2 = scmp.eq.s32.totalorder %s10982_s16, 0  ;;  %p113_p3 = scmp.ne.s32.totalorder %s10974_s30, %s10970_s29 }
   0xf   : > { %s11104_s21 = scalar_select %p98_p0, %s10978_s15, %s100_s20  }
  0x10   : > { %p109_p4 = por %p108_p2, %p107_p1  ;;  %p114_p5 = scmp.eq.s32.totalorder %s11091_s17, 0 }
  0x11   : > { %13780 = sst [smem:[#allocation14_spill]] %s11104_s21  ;;  %p9770_p6 = scmp.lt.s32.totalorder %s10982_s16, 3 }
  0x12   : > { %p11108_p7 = por %p114_p5, %p113_p3  ;;  %s11113_s23 = sand.u32 1, %s10978_s15  }
  0x13   : > { %s13731_s24 = smul.u32 456, %s11113_s23  ;;  %p11117_p8 = pnand %p9770_p6, %p109_p4 }
  0x14   : > { %s13781_s22 = scalar_select %p11108_p7, 1, 0 }
  0x15   : > { %s13728_s25 = smul.u32 7296, %s10982_s16  ;;  %s13783_s3 = sld [smem:[#allocation44_spill]] }
  0x16   : > { %s423_s19 = scalar_lea.vmem [#allocation6], %s13731_s24  ;;  %s420_s21 = scalar_lea.sflag [#allocation7], %s11113_s23 }
  0x17   : > { %s430_s20 = sshll.u32 %s423_s19, 4  ;;  %p10890_p11 = pneg %p11117_p8  ;;  %s11130_s20 = int_to_ptr.vmem [resolvable:$true] %s430_s20 }
  0x1b   : > { %s11126_s29 = scalar_lea.hbm %s13783_s3, %s13728_s25  ;;  %s10893_s25 = scalar_lea.hbm %s13783_s3, 21888 }
  0x1c   : > { %s10888_s15 = scalar_lea.hbm %s11126_s29, 7296  ;;  %p10894_p0 = scmp.lt.s32.totalorder %s11126_s29, %s13783_s3 }
  0x1d   : > { %p10889_p10 = scmp.ne.s32.totalorder %s11126_s29, %s10888_s15  ;;  %p10895_p1 = scmp.lt.s32.totalorder %s10893_s25, %s10888_s15 }
  0x1f   : > { %p10891_p12 = pnand %p10890_p11, %p10889_p10  ;;  %p10896_p2 = por %p10895_p1, %p10894_p0 }
  0x21   : > { %p10892_p13 = pneg %p10891_p12 }
  0x23   : > { %p10897_p3 = pnand %p10896_p2, %p10892_p13 }
  0x25   : > { %10900 = shalt.err (!%p10897_p3)
}
  0x26   : > { %s10901_s19 = scalar_lea.vmem %s11130_s20, 7296  ;;  %s10984_s27 = smov [#allocation6]  }
  0x27   : > { %p10902_p4 = scmp.ne.s32.totalorder %s11130_s20, %s10901_s19  ;;  %s10906_s28 = sshll.u32 %s10984_s27, 4  ;;  %s10907_s28 = int_to_ptr.vmem [resolvable:$false] %s10906_s28 }
  0x28   : > { %s10908_s24 = scalar_lea.vmem %s10907_s28, 14592  ;;  %p10909_p10 = scmp.lt.s32.totalorder %s11130_s20, %s10907_s28 }
  0x29   : > { %p10904_p5 = pnand %p10902_p4, %p10890_p11  ;;  %p10910_p12 = scmp.lt.s32.totalorder %s10908_s24, %s10901_s19 }
  0x2b   : > { %p10905_p6 = pneg %p10904_p5  ;;  %p10911_p9 = por %p10910_p12, %p10909_p10 }
  0x2d   : > { %p10912_p0 = pnand %p10911_p9, %p10905_p6 }
  0x2f   : > { %10915 = shalt.err (!%p10912_p0)
}
  0x30   : > { %s10985_s14 = smov 192   ;;  %s10986_s15 = smov 12  }
  0x31   : > { %9766 = dma.hbm_to_vmem [thread:$0]  (!%p11117_p8), %s11126_s29, 7296, %s11130_s20, %s420_s21, %s10985_s14, %s10985_s14, %s10986_s15  }
  0x32   : > { %p493_p9 = scmp.lt.s32.totalorder %s10982_s16, 4  ;;  %s13784_s18 = smul.u32 7296, %s10982_s16 }
  0x33   : > { %s13785_s7 = sld [smem:[#allocation45_spill]]  ;;  %p13786_p13 = scmp.ge.s32.totalorder %s10982_s16, 1 }
  0x34   : > { %s13788_s28 = smul.u32 456, %s11113_s23  ;;  %s462_s21 = scalar_lea.sflag [#allocation9], %s11113_s23 }
  0x35   : > { %p11173_p1 = pnand %p13786_p13, %p493_p9 }
  0x36   : > { %s465_s3 = scalar_lea.vmem [#allocation8], %s13788_s28 }
  0x37   : > { %s472_s13 = sshll.u32 %s465_s3, 4  ;;  %s11179_s13 = int_to_ptr.vmem [resolvable:$true] %s472_s13 }
  0x39   : > { %s11169_s19 = scalar_lea.hbm %s13785_s7, %s13784_s18  ;;  %s10921_s18 = scalar_lea.hbm %s13785_s7, 21888 }
  0x3a   : > { %s10916_s29 = scalar_lea.hbm %s11169_s19, 7296  ;;  %p10922_p5 = scmp.lt.s32.totalorder %s11169_s19, %s13785_s7 }
  0x3b   : > { %p10917_p2 = scmp.ne.s32.totalorder %s11169_s19, %s10916_s29  ;;  %p10923_p6 = scmp.lt.s32.totalorder %s10921_s18, %s10916_s29 }
  0x3d   : > { %p10919_p3 = pnand %p10917_p2, %p10890_p11  ;;  %p10924_p10 = por %p10923_p6, %p10922_p5 }
  0x3f   : > { %p10920_p4 = pneg %p10919_p3 }
  0x41   : > { %p10925_p12 = pnand %p10924_p10, %p10920_p4 }
  0x43   : > { %10928 = shalt.err (!%p10925_p12)
}
  0x44   : > { %s10929_s3 = scalar_lea.vmem %s11179_s13, 7296  ;;  %s10987_s23 = smov [#allocation8]  }
  0x45   : > { %p10930_p0 = scmp.ne.s32.totalorder %s11179_s13, %s10929_s3  ;;  %s10934_s28 = sshll.u32 %s10987_s23, 4  ;;  %s10935_s28 = int_to_ptr.vmem [resolvable:$false] %s10934_s28 }
  0x46   : > { %s10936_s16 = scalar_lea.vmem %s10935_s28, 14592  ;;  %p10937_p2 = scmp.lt.s32.totalorder %s11179_s13, %s10935_s28 }
  0x47   : > { %p10932_p9 = pnand %p10930_p0, %p10890_p11  ;;  %p10938_p3 = scmp.lt.s32.totalorder %s10936_s16, %s10929_s3 }
  0x49   : > { %p10933_p13 = pneg %p10932_p9  ;;  %p10939_p7 = por %p10938_p3, %p10937_p2 }
  0x4b   : > { %p10940_p5 = pnand %p10939_p7, %p10933_p13 }
  0x4d   : > { %10943 = shalt.err (!%p10940_p5)
}
  0x4e   : > { %9769 = dma.hbm_to_vmem [thread:$0]  (!%p11117_p8), %s11169_s19, 7296, %s11179_s13, %s462_s21, %s10985_s14, %s10985_s14, %s10986_s15  }
  0x4f   : > { %497 = sbr.rel (%p11173_p1) target bundleno = 5383 (0x1507), region = 76  ;;  %s499_s29 = sand.u32 (!%p11173_p1), 1, %s10974_s30  }
  0x50   : > { %s9756_s20 = smul.u32 (!%p11173_p1), 456, %s499_s29  ;;  %s500_s18 = scalar_lea.sflag (!%p11173_p1), [#allocation7], %s499_s29 }
  0x51   : > { %p13789_p7 = scmp.ne.s32.totalorder (!%p11173_p1), %s13781_s22, 0 }
  0x52   : > { %s11210_s24 = scalar_lea.vmem (!%p11173_p1), [#allocation6], %s9756_s20 }
  0x54   : > { %10961 = dma.done.wait (%p13789_p7), %s500_s18, 7296  }
  0x55   : > { %10963 = vsyncadd (%p13789_p7), %s500_s18, 4294960000  ;;  %s509_s26 = scalar_lea.sflag [#allocation9], %s499_s29  ;;  %s11216_s25 = scalar_lea.vmem [#allocation8], %s9756_s20 }
  0x56   : > { %10965 = dma.done.wait (%p13789_p7), %s509_s26, 7296  }
  0x57   : > { %10967 = vsyncadd (%p13789_p7), %s509_s26, 4294960000  ;;  %p576_p8 = scmp.lt.s32.totalorder %s11091_s17, 2  ;;  %p8308_p11 = scmp.ne.s32.totalorder %s11091_s17, 0 }
  0x59   : > { %s577_s13 = scalar_select %p576_p8, %s11091_s17, 2 }
  0x5a   : > { %599 = sbr.rel (%p8308_p11) target bundleno = 2263 (0x8d7), region = 88 }
  0x5b   : > { %s9757_s14 = smul.u32 192, %s577_s13  ;;  %s11227_s27 = scalar_lea.vmem %s13718_s6, %s577_s13 }
  0x5c   : > { %s9758_s21 = smul.u32 3, %s577_s13  ;;  %s11232_s28 = scalar_lea.vmem %s13721_s9, %s577_s13 }
  0x5d   : > { %s11237_s22 = scalar_lea.vmem %s13716_s4, %s9757_s14 }
  0x5e   : > { %s11242_s26 = scalar_lea.vmem %s13717_s5, %s9758_s21  ;;  %s11247_s19 = scalar_lea.vmem %s13720_s8, %s9758_s21 }
  0x5f   : > { %v9814_v0 = vld [vmem:[%s11210_s24 + $0xac] ss:$12 sps:$4 sm:$0xff]   ;;  %vm1083_vm0 = vcmask 1045504   ;;  %v9816_v1 = vld [vmem:[%s11210_s24 + $0x1b4] ss:$12 sps:$4 sm:$0x3f]  }
  0x60   : > { %v13734_v2 = vmov 0   ;;  %1093 = vmatprep.subr.bf16.mxu0 %v9814_v0  ;;  %v9818_v3 = vld [vmem:[%s11210_s24 + $0xa8] ss:$12 sps:$4 sm:$0xff]   ;;  %v9819_v4 = vld [vmem:[%s11210_s24 + $0x1b0] ss:$12 sps:$4 sm:$0x3f]   ;;  %8378 = vmatprep.subr.msk.bf16.mxu1 %vm1083_vm0, %v9816_v1 }
  0x61   : > { %1198 = vmatprep.mubr.bf16.mxu1 %v13734_v2  ;;  %v9820_v5 = vld [vmem:[%s11210_s24 + $0x94] ss:$12 sps:$4 sm:$0xff]   ;;  %1094 = vmatpush1.bf16.msra.mxu0 %v9818_v3  ;;  %v1085_v6 = vsel %vm1083_vm0, %v9819_v4, 0  ;;  %v9822_v7 = vld [vmem:[%s11210_s24 + $0x19c] ss:$12 sps:$4 sm:$0xff]   ;;  %vm1070_vm1 = vcmask 359424  }
  0x62   : > { %v9824_v8 = vld [vmem:[%s11210_s24 + $0x90] ss:$12 sps:$4 sm:$0xff]   ;;  %1177 = vmatpush1.bf16.msra.mxu1 %v1085_v6  ;;  %1095 = vmatprep.subr.bf16.mxu0 %v9820_v5  ;;  %v9825_v9 = vld [vmem:[%s11210_s24 + $0x198] ss:$12 sps:$4 sm:$0xff]   ;;  %v9831_v13 = vld [vmem:[%s11210_s24 + $0x180] ss:$12 sps:$4 sm:$0xff]  }
  0x63   : > { %1178 = vmatprep.subr.bf16.mxu1 %v9822_v7  ;;  %v9826_v10 = vld [vmem:[%s11210_s24 + $0x7c] ss:$12 sps:$4 sm:$0xff]   ;;  %v9828_v11 = vld [vmem:[%s11210_s24 + $0x184] ss:$12 sps:$4 sm:$0xff]   ;;  %v9836_v17 = vld [vmem:[%s11210_s24 + $0x60] ss:$12 sps:$4 sm:$0xff]  }
  0x64   : > { %v9830_v12 = vld [vmem:[%s11210_s24 + $0x78] ss:$12 sps:$4 sm:$0xff]   ;;  %v11269_v15 = vld [vmem:[%s13712_s0 + $0x8] ss:$12 sps:$4 sm:$0xff]   ;;  %v9835_v16 = vld [vmem:[%s11210_s24 + $0x170] ss:$12 sps:$4 sm:$0xff]  }
  0x65   : > { %1096 = vmatpush1.bf16.msra.mxu0 %v9824_v8  ;;  %v9832_v14 = vld [vmem:[%s11210_s24 + $0x64] ss:$12 sps:$4 sm:$0xff]   ;;  %v9838_v19 = vld [vmem:[%s11210_s24 + $0x4c] ss:$12 sps:$4 sm:$0xff]   ;;  %v9841_v21 = vld [vmem:[%s11210_s24 + $0x48] ss:$12 sps:$4 sm:$0xff]  }
  0x66   : > { %1179 = vmatpush1.bf16.msra.mxu1 %v9825_v9  ;;  %1097 = vmatprep.subr.bf16.mxu0 %v9826_v10  ;;  %v9837_v18 = vld [vmem:[%s11210_s24 + $0xb0] ss:$12 sps:$4 sm:$0xff]   ;;  %v9840_v20 = vld [vmem:[%s11210_s24 + $0x158] ss:$12 sps:$4 sm:$0xff]   ;;  %v9843_v23 = vld [vmem:[%s11210_s24 + $0x34] ss:$12 sps:$4 sm:$0xff]  }
  0x67   : > { %1180 = vmatprep.subr.bf16.mxu1 %v9828_v11  ;;  %v9842_v22 = vld [vmem:[%s11210_s24 + $0x98] ss:$12 sps:$4 sm:$0xff]   ;;  %v9846_v25 = vld [vmem:[%s11210_s24 + $0x140] ss:$12 sps:$4 sm:$0xff]   ;;  %v9847_v26 = vld [vmem:[%s11210_s24 + $0x30] ss:$12 sps:$4 sm:$0xff]  }
  0x68   : > { %v11285_v24 = vld [vmem:[%s13712_s0 + $0x20] ss:$12 sps:$4 sm:$0xff]   ;;  %v9849_v28 = vld [vmem:[%s11210_s24 + $0x1c] ss:$12 sps:$4 sm:$0xff]   ;;  %v614_v8 = vld [vmem:[%s13712_s0 + $0x54] sm:$0xff]  ;;  %vm10990_vm2 = vmmov 0  }
  0x69   : > { %1098 = vmatpush1.bf16.msra.mxu0 %v9830_v12  ;;  %v9848_v27 = vld [vmem:[%s11210_s24 + $0x80] ss:$12 sps:$4 sm:$0xff]   ;;  %v9851_v29 = vld [vmem:[%s11210_s24 + $0x128] ss:$12 sps:$4 sm:$0xff]   ;;  %v9852_v30 = vld [vmem:[%s11210_s24 + $0x18] ss:$12 sps:$4 sm:$0xff]  }
  0x6a   : > { %1181 = vmatpush1.bf16.msra.mxu1 %v9831_v13  ;;  %1099 = vmatprep.subr.bf16.mxu0 %v9832_v14  ;;  %v9853_v31 = vld [vmem:[%s11210_s24 + $0x68] ss:$12 sps:$4 sm:$0xff]   ;;  %v9854_v32 = vld [vmem:[%s11210_s24 + $0x4] ss:$12 sps:$4 sm:$0xff]   ;;  %v9858_v35 = vld [vmem:[%s11210_s24] ss:$12 sps:$4 sm:$0xff]  }
  0x6b   : > { %8911 = vmatprep.subr.bf16.mxu1 %v9835_v16  ;;  %v9857_v33 = vld [vmem:[%s11210_s24 + $0x110] ss:$12 sps:$4 sm:$0xff]   ;;  %v9860_v37 = vld [vmem:[%s11210_s24 + $0x16c] ss:$12 sps:$4 sm:$0xff]   ;;  %v9863_v39 = vld [vmem:[%s11210_s24 + $0x168] ss:$12 sps:$4 sm:$0xff]  }
  0x6c   : > { %v11302_v34 = vld [vmem:[%s13712_s0 + $0x38] ss:$12 sps:$4 sm:$0xff]   ;;  %v9865_v41 = vld [vmem:[%s11210_s24 + $0x154] ss:$12 sps:$4 sm:$0xff]   ;;  %v613_v42 = vld [vmem:[%s13712_s0 + $0x50] sm:$0xf] }
  0x6d   : > { %8379 = vmatmul.mubr.msk.bf16.vlgmr.msra.gmra.mxu1 %vm1070_vm1, %v11269_v15  ;;  %1100 = vmatpush1.bf16.msra.mxu0 %v9836_v17  ;;  %v9859_v36 = vld [vmem:[%s11210_s24 + $0x50] ss:$12 sps:$4 sm:$0xff]   ;;  %v9862_v38 = vld [vmem:[%s11210_s24 + $0xf8] ss:$12 sps:$4 sm:$0xff]   ;;  %v9869_v44 = vld [vmem:[%s11210_s24 + $0xe0] ss:$12 sps:$4 sm:$0xff]  }
  0x6e   : > { %8912 = vmatpush3.bf16.msra.mxu1 %v9837_v18  ;;  %1101 = vmatprep.subr.bf16.mxu0 %v9838_v19  ;;  %v9864_v40 = vld [vmem:[%s11210_s24 + $0x38] ss:$12 sps:$4 sm:$0xff]   ;;  %v615_v43 = vld [vmem:[%s13712_s0 + $0x5c] sm:$0xf]  ;;  %v9871_v47 = vld [vmem:[%s11210_s24 + $0x20] ss:$12 sps:$4 sm:$0xff]  }
  0x6f   : > { %8913 = vmatprep.subr.bf16.mxu1 %v9840_v20  ;;  %1208 = vmatprep.mubr.bf16.mxu1 %v13734_v2  ;;  %v9870_v45 = vld [vmem:[%s11210_s24 + $0x150] ss:$12 sps:$4 sm:$0xff]   ;;  %v11322_v46 = vcombine.low %v613_v42, %v615_v43  ;;  %v9874_v49 = vld [vmem:[%s11210_s24 + $0xc8] ss:$12 sps:$4 sm:$0xff]   ;;  %v9875_v51 = vld [vmem:[%s11210_s24 + $0x138] ss:$12 sps:$4 sm:$0xff]  }
  0x70   : > { %v9872_v48 = vld [vmem:[%s11210_s24 + $0x13c] ss:$12 sps:$4 sm:$0xff]   ;;  %v9880_v53 = vld [vmem:[%s11210_s24 + $0x124] ss:$12 sps:$4 sm:$0xff]   ;;  %v9882_v55 = vld [vmem:[%s11210_s24 + $0x120] ss:$12 sps:$4 sm:$0xff]  }
  0x71   : > { %1102 = vmatpush1.bf16.msra.mxu0 %v9841_v21  ;;  %v9879_v50 = vld [vmem:[%s13712_s0 + $0x4] ss:$12 sps:$4 sm:$0xff]   ;;  %v9877_v54 = vld [vmem:[%s13712_s0] ss:$12 sps:$4 sm:$0xff]   ;;  %v9886_v57 = vld [vmem:[%s13712_s0 + $0x1c] ss:$12 sps:$4 sm:$0xff]  }
  0x72   : > { %8914 = vmatpush3.bf16.msra.mxu1 %v9842_v22  ;;  %1103 = vmatprep.subr.bf16.mxu0 %v9843_v23  ;;  %v9876_v52 = vld [vmem:[%s11210_s24 + $0x8] ss:$12 sps:$4 sm:$0xff]   ;;  %v9883_v56 = vld [vmem:[%s11210_s24 + $0x10c] ss:$12 sps:$4 sm:$0xff]   ;;  %v9891_v62 = vld [vmem:[%s11210_s24 + $0xf0] ss:$12 sps:$4 sm:$0xff]  }
  0x73   : > { %8915 = vmatprep.subr.bf16.mxu1 %v9846_v25  ;;  %1125 = vmatprep.mubr.bf16.mxu0 %v9879_v50  ;;  %v9885_v58 = vld [vmem:[%s11210_s24 + $0x108] ss:$12 sps:$4 sm:$0xff]   ;;  %v9901_v60 = vld [vmem:[%s11210_s24 + $0x1b8] ss:$12 sps:$4 sm:$0x3f]   ;;  %v13736_v13 = vmov 0.0  }
  0x74   : > { %v9888_v59 = vld [vmem:[%s11210_s24 + $0xf4] ss:$12 sps:$4 sm:$0xff]   ;;  %v9890_v61 = vld [vmem:[%s13712_s0 + $0x18] ss:$12 sps:$4 sm:$0xff]   ;;  %v1091_v0 = vsel %vm1083_vm0, %v9901_v60, 0 }
  0x75   : > { %8380 = vmatmul.mubr.msk.bf16.gmra.mxu1 %vm1070_vm1, %v11285_v24  ;;  %1104 = vmatpush1.bf16.msra.mxu0 %v9847_v26  ;;  %v9892_v63 = vld [vmem:[%s11210_s24 + $0xdc] ss:$12 sps:$4 sm:$0xff]   ;;  %v9895_v1 = vld [vmem:[%s13712_s0 + $0x34] ss:$12 sps:$4 sm:$0xff]   ;;  %v9897_v6 = vld [vmem:[%s11210_s24 + $0xc4] ss:$12 sps:$4 sm:$0xff]  }
  0x76   : > { %8916 = vmatpush3.bf16.msra.mxu1 %v9848_v27  ;;  %1105 = vmatprep.subr.bf16.mxu0 %v9849_v28  ;;  %v9907_v3 = vld [vmem:[%s11210_s24 + $0x1a0] ss:$12 sps:$4 sm:$0xff]   ;;  %v9911_v4 = vld [vmem:[%s11210_s24 + $0x188] ss:$12 sps:$4 sm:$0xff]   ;;  %v9894_v5 = vld [vmem:[%s11210_s24 + $0xd8] ss:$12 sps:$4 sm:$0xff]  }
  0x77   : > { %8917 = vmatprep.subr.bf16.mxu1 %v9851_v29  ;;  %1218 = vmatprep.mubr.bf16.mxu1 %v13734_v2  ;;  %v612_v7 = vld [vmem:[%s13712_s0 + $0x48] sm:$0xff]  ;;  %v9899_v9 = vld [vmem:[%s13712_s0 + $0x30] ss:$12 sps:$4 sm:$0xff]   ;;  %v11379_v16 = vld [vmem:[%s11237_s22 + $0x94] ss:$12 sps:$4 sm:$0xff]  }
  0x78   : > { %v9900_v10 = vld [vmem:[%s11210_s24 + $0xc0] ss:$12 sps:$4 sm:$0xff]   ;;  %v8319_v12 = vcombine.high %v612_v7, %v614_v8  ;;  %v8318_v17 = vcombine.low %v612_v7, %v614_v8  ;;  %v11383_v18 = vld [vmem:[%s11237_s22 + $0x90] ss:$12 sps:$4 sm:$0xff]   ;;  %v11390_v20 = vld [vmem:[%s11237_s22 + $0x78] ss:$12 sps:$4 sm:$0xff]  }
  0x79   : > { %1106 = vmatpush1.bf16.msra.mxu0 %v9852_v30  ;;  %v11371_v11 = vld [vmem:[%s11237_s22 + $0xac] ss:$12 sps:$4 sm:$0xff]   ;;  %v11375_v14 = vld [vmem:[%s11237_s22 + $0xa8] ss:$12 sps:$4 sm:$0xff]   ;;  %v11393_v21 = vld [vmem:[%s11237_s22 + $0x64] ss:$12 sps:$4 sm:$0xff]  }
  0x7a   : > { %8918 = vmatpush3.bf16.msra.mxu1 %v9853_v31  ;;  %1107 = vmatprep.subr.bf16.mxu0 %v9854_v32  ;;  %13790 = vst [vmem:[#allocation15_spill] sm:$0xff] %v11371_v11  ;;  %v11387_v19 = vld [vmem:[%s11237_s22 + $0x7c] ss:$12 sps:$4 sm:$0xff]   ;;  %v11400_v22 = vld [vmem:[%s11237_s22 + $0x60] ss:$12 sps:$4 sm:$0xff]  }
  0x7b   : > { %8919 = vmatprep.subr.bf16.mxu1 %v9857_v33  ;;  %v11403_v23 = vld [vmem:[%s11237_s22 + $0x4c] ss:$12 sps:$4 sm:$0xff]   ;;  %v11407_v25 = vld [vmem:[%s11237_s22 + $0xb0] ss:$12 sps:$4 sm:$0xff]   ;;  %v11411_v26 = vld [vmem:[%s11237_s22 + $0x48] ss:$12 sps:$4 sm:$0xff]  }
  0x7c   : > { %v11414_v27 = vld [vmem:[%s11237_s22 + $0x34] ss:$12 sps:$4 sm:$0xff]   ;;  %v11426_v28 = vld [vmem:[%s11237_s22 + $0x30] ss:$12 sps:$4 sm:$0xff]   ;;  %v11439_v30 = vld [vmem:[%s11237_s22 + $0x18] ss:$12 sps:$4 sm:$0xff]  }
  0x7d   : > { %8381 = vmatmul.mubr.msk.bf16.gmra.mxu1 %vm1070_vm1, %v11302_v34  ;;  %1108 = vmatpush1.bf16.msra.mxu0 %v9858_v35  ;;  %v11430_v29 = vld [vmem:[%s11237_s22 + $0x1c] ss:$12 sps:$4 sm:$0xff]   ;;  %v11443_v31 = vld [vmem:[%s11237_s22 + $0x4] ss:$12 sps:$4 sm:$0xff]   ;;  %v11456_v33 = vld [vmem:[%s11237_s22] ss:$12 sps:$4 sm:$0xff]  }
  0x7e   : > { %8920 = vmatpush3.bf16.msra.mxu1 %v9859_v36  ;;  %1109 = vmatprep.subr.bf16.mxu0 %v9860_v37  ;;  %13791 = vst [vmem:[#allocation16_spill] sm:$0xff] %v11443_v31  ;;  %v11450_v32 = vld [vmem:[%s11237_s22 + $0x68] ss:$12 sps:$4 sm:$0xff]   ;;  %13792 = vst [vmem:[#allocation17_spill] sm:$0xff] %v11456_v33  ;;  %v11472_v35 = vld [vmem:[%s11237_s22 + $0x38] ss:$12 sps:$4 sm:$0xff]  }
  0x7f   : > { %8921 = vmatprep.subr.bf16.mxu1 %v9862_v38  ;;  %1228 = vmatprep.mubr.bf16.mxu1 %v13734_v2  ;;  %v11481_v36 = vld [vmem:[%s11237_s22 + $0x20] ss:$12 sps:$4 sm:$0xff]   ;;  %v11488_v37 = vld [vmem:[%s11237_s22 + $0x8] ss:$12 sps:$4 sm:$0xff]  }
  0x80   : > { %13793 = vst [vmem:[#allocation18_spill] sm:$0xff] %v11481_v36  ;;  %13794 = vst [vmem:[#allocation19_spill] sm:$0xff] %v11488_v37 }
  0x81   : > { %1110 = vmatpush2.bf16.msra.mxu0 %v9863_v39 }
  0x82   : > { %8922 = vmatpush3.bf16.msra.mxu1 %v9864_v40  ;;  %1111 = vmatprep.subr.bf16.mxu0 %v9865_v41 }
  0x83   : > { %8923 = vmatprep.subr.bf16.mxu1 %v9869_v44 }
  0x85   : > { %8382 = vmatmul.mubr.msk.bf16.gmra.mxu1 %vm1070_vm1, %v11322_v46  ;;  %1112 = vmatpush2.bf16.msra.mxu0 %v9870_v45 }
  0x86   : > { %8924 = vmatpush3.bf16.msra.mxu1 %v9871_v47  ;;  %1113 = vmatprep.subr.bf16.mxu0 %v9872_v48 }
  0x87   : > { %8925 = vmatprep.subr.bf16.mxu1 %v9874_v49  ;;  %1271 = vmatprep.mubr.bf16.mxu1 %v9879_v50 }
  0x89   : > { %1114 = vmatpush2.bf16.msra.mxu0 %v9875_v51 }
  0x8a   : > { %8926 = vmatpush3.bf16.msra.mxu1 %v9876_v52  ;;  %1115 = vmatprep.subr.bf16.mxu0 %v9880_v53  ;;  %v694_v52 = vlaneseq }
  0x8b   : > { %9749 = vmatprep.subr.msk.bf16.mxu1 %vm1083_vm0, %v9901_v60  ;;  %v692_v60 = vld [vmem:[%s11242_s26] sm:$0x7] }
  0x8d   : > { %1272 = vmatmul.mubr.bf16.vlgmr.msra.gmra.mxu1 %v9877_v54  ;;  %1116 = vmatpush2.bf16.msra.mxu0 %v9882_v55  ;;  %v11550_v55 = vshrl.u32 %v694_v52, 7 }
  0x8e   : > { %1117 = vmatprep.subr.bf16.mxu0 %v9883_v56  ;;  %1279 = vmatprep.mubr.bf16.mxu1 %v9886_v57 }
  0x8f   : > { %9319 = vmatpush3.bf16.msra.mxu1 %v1091_v0  ;;  %13795 = vst [vmem:[#allocation20_spill] sm:$0xff] %v11550_v55 }
  0x90   : > { %9320 = vmatprep.subr.bf16.mxu1 %v9907_v3 }
  0x91   : > { %1118 = vmatpush2.bf16.msra.mxu0 %v9885_v58 }
  0x92   : > { %1119 = vmatprep.subr.bf16.mxu0 %v9888_v59 }
  0x93   : > { %9321 = vmatpush3.bf16.msra.mxu1 %v9907_v3 }
  0x94   : > { %9322 = vmatprep.subr.bf16.mxu1 %v9911_v4 }
  0x95   : > { %1280 = vmatmul.mubr.bf16.gmra.mxu1 %v9890_v61  ;;  %1120 = vmatpush2.bf16.msra.mxu0 %v9891_v62 }
  0x96   : > { %1121 = vmatprep.subr.bf16.mxu0 %v9892_v63  ;;  %1287 = vmatprep.mubr.bf16.mxu1 %v9895_v1 }
  0x97   : > { %9323 = vmatpush3.bf16.msra.mxu1 %v9911_v4 }
  0x98   : > { %9332 = vmatprep.subr.bf16.mxu1 %v13736_v13 }
  0x99   : > { %1122 = vmatpush2.bf16.msra.mxu0 %v9894_v5 }
  0x9a   : > { %1123 = vmatprep.subr.bf16.mxu0 %v9897_v6 }
  0x9d   : > { %1288 = vmatmul.mubr.bf16.gmra.mxu1 %v9899_v9  ;;  %1124 = vmatpush2.bf16.msra.mxu0 %v9900_v10 }
  0x9e   : > { %1536 = vmatprep.subr.bf16.mxu0 %v11371_v11  ;;  %1295 = vmatprep.mubr.bf16.mxu1 %v8319_v12 }
  0xa0   : > { %1126 = vmatmul.mubr.bf16.vlgmr.msra.gmra.mxu0 %v9877_v54 }
  0xa1   : > { %1537 = vmatpush1.bf16.msra.mxu0 %v11375_v14  ;;  %1135 = vmatprep.mubr.bf16.mxu0 %v9886_v57  ;;  %v13733_v57 = vsub.s32 2, %v11550_v55 }
  0xa2   : > { %1538 = vmatprep.subr.bf16.mxu0 %v11379_v16 }
  0xa5   : > { %1296 = vmatmul.mubr.bf16.gmra.mxu1 %v8318_v17  ;;  %1539 = vmatpush1.bf16.msra.mxu0 %v11383_v18 }
  0xa6   : > { %1540 = vmatprep.subr.bf16.mxu0 %v11387_v19  ;;  %9324 = vmatprep.mubr.msk.bf16.mxu1 %vm1070_vm1, %v11269_v15  ;;  %v11420_v15 = vld [vmem:[%s11237_s22 + $0x98] ss:$12 sps:$4 sm:$0xff]  }
  0xa8   : > { %1136 = vmatmul.mubr.bf16.gmra.mxu0 %v9890_v61  ;;  %v11560_v61 = vrot.slane %v692_v60, %v13733_v57 }
  0xa9   : > { %1541 = vmatpush1.bf16.msra.mxu0 %v11390_v20  ;;  %1145 = vmatprep.mubr.bf16.mxu0 %v9895_v1 }
  0xaa   : > { %1542 = vmatprep.subr.bf16.mxu0 %v11393_v21 }
  0xad   : > { %9325 = vmatmul.mubr.msk.bf16.vlgmr.msra.gmra.mxu1 %vm1070_vm1, %v11285_v24  ;;  %1543 = vmatpush1.bf16.msra.mxu0 %v11400_v22  ;;  %v11435_v24 = vld [vmem:[%s11237_s22 + $0x80] ss:$12 sps:$4 sm:$0xff]  }
  0xae   : > { %1544 = vmatprep.subr.bf16.mxu0 %v11403_v23  ;;  %9328 = vmatprep.mubr.msk.bf16.mxu1 %vm1070_vm1, %v11302_v34  ;;  %v11463_v34 = vld [vmem:[%s11237_s22 + $0x50] ss:$12 sps:$4 sm:$0xff]  }
  0xaf   : > { %9333 = vmatpush3.bf16.msra.mxu1 %v11407_v25 }
  0xb0   : > { %1146 = vmatmul.mubr.bf16.gmra.mxu0 %v9899_v9  ;;  %9334 = vmatprep.subr.bf16.mxu1 %v13736_v13 }
  0xb1   : > { %1545 = vmatpush1.bf16.msra.mxu0 %v11411_v26  ;;  %1155 = vmatprep.mubr.bf16.mxu0 %v8319_v12 }
  0xb2   : > { %1546 = vmatprep.subr.bf16.mxu0 %v11414_v27 }
  0xb3   : > { %9335 = vmatpush3.bf16.msra.mxu1 %v11420_v15 }
  0xb4   : > { %9336 = vmatprep.subr.bf16.mxu1 %v13736_v13 }
  0xb5   : > { %9329 = vmatmul.mubr.msk.bf16.gmra.mxu1 %vm1070_vm1, %v11322_v46  ;;  %1547 = vmatpush1.bf16.msra.mxu0 %v11426_v28 }
  0xb6   : > { %1548 = vmatprep.subr.bf16.mxu0 %v11430_v29  ;;  %9348 = vmatprep.mubr.msk.bf16.mxu1 %vm10990_vm2, %v13736_v13 }
  0xb7   : > { %9337 = vmatpush3.bf16.msra.mxu1 %v11435_v24 }
  0xb8   : > { %1156 = vmatmul.mubr.bf16.gmra.mxu0 %v8318_v17  ;;  %9338 = vmatprep.subr.bf16.mxu1 %v13736_v13  ;;  %v13742_v17 = vsub.s32 0, %v11550_v55 }
  0xb9   : > { %1549 = vmatpush1.bf16.msra.mxu0 %v11439_v30  ;;  %1568 = vmatprep.mubr.bf16.mxu0 %v13734_v2 }
  0xba   : > { %1550 = vmatprep.subr.bf16.mxu0 %v11443_v31 }
  0xbb   : > { %9339 = vmatpush3.bf16.msra.mxu1 %v11450_v32 }
  0xbc   : > { %9340 = vmatprep.subr.bf16.mxu1 %v13736_v13 }
  0xbd   : > { %1551 = vmatpush1.bf16.msra.mxu0 %v11456_v33 }
  0xbe   : > { %1640 = vmatprep.subr.bf16.mxu0 %v11371_v11 }
  0xbf   : > { %9341 = vmatpush3.bf16.msra.mxu1 %v11463_v34 }
  0xc0   : > { %1569 = vmatmul.mubr.bf16.vlgmr.msra.gmra.mxu0 %v13734_v2  ;;  %9342 = vmatprep.subr.bf16.mxu1 %v13736_v13 }
  0xc1   : > { %1641 = vmatpush1.bf16.msra.mxu0 %v11375_v14  ;;  %1672 = vmatprep.mubr.bf16.mxu0 %v13734_v2 }
  0xc2   : > { %1642 = vmatprep.subr.bf16.mxu0 %v11379_v16 }
  0xc3   : > { %9343 = vmatpush3.bf16.msra.mxu1 %v11472_v35 }
  0xc4   : > { %9344 = vmatprep.subr.bf16.mxu1 %v13736_v13 }
  0xc5   : > { %1643 = vmatpush1.bf16.msra.mxu0 %v11383_v18 }
  0xc6   : > { %1644 = vmatprep.subr.bf16.mxu0 %v11387_v19 }
  0xc7   : > { %9345 = vmatpush3.bf16.msra.mxu1 %v11481_v36 }
  0xc8   : > { %9346 = vmatprep.subr.bf16.mxu1 %v13736_v13 }
  0xc9   : > { %1645 = vmatpush1.bf16.msra.mxu0 %v11390_v20 }
  0xca   : > { %1646 = vmatprep.subr.bf16.mxu0 %v11393_v21 }
  0xcb   : > { %9347 = vmatpush3.bf16.msra.mxu1 %v11488_v37 }
  0xcc   : > { %9352 = vmatprep.subr.bf16.mxu1 %v13736_v13 }
  0xcd   : > { %1647 = vmatpush1.bf16.msra.mxu0 %v11400_v22 }
  0xce   : > { %9349 = vmatmul.mubr.bf16.vlgmr.msra.gmra.mxu1 %v13734_v2  ;;  %1648 = vmatprep.subr.bf16.mxu0 %v11403_v23 }
  0xcf   : > { %9353 = vmatpush3.bf16.msra.mxu1 %v11407_v25  ;;  %9368 = vmatprep.mubr.msk.bf16.mxu1 %vm10990_vm2, %v13736_v13 }
  0xd0   : > { %9354 = vmatprep.subr.bf16.mxu1 %v13736_v13 }
  0xd1   : > { %1649 = vmatpush1.bf16.msra.mxu0 %v11411_v26 }
  0xd2   : > { %1650 = vmatprep.subr.bf16.mxu0 %v11414_v27 }
  0xd3   : > { %9355 = vmatpush3.bf16.msra.mxu1 %v11420_v15 }
  0xd4   : > { %9356 = vmatprep.subr.bf16.mxu1 %v13736_v13 }
  0xd5   : > { %1651 = vmatpush1.bf16.msra.mxu0 %v11426_v28 }
  0xd6   : > { %1652 = vmatprep.subr.bf16.mxu0 %v11430_v29 }
  0xd7   : > { %9357 = vmatpush3.bf16.msra.mxu1 %v11435_v24 }
  0xd8   : > { %9358 = vmatprep.subr.bf16.mxu1 %v13736_v13 }
  0xd9   : > { %1653 = vmatpush1.bf16.msra.mxu0 %v11439_v30 }
  0xda   : > { %1654 = vmatprep.subr.bf16.mxu0 %v11443_v31 }
  0xdb   : > { %9359 = vmatpush3.bf16.msra.mxu1 %v11450_v32 }
  0xdc   : > { %9360 = vmatprep.subr.bf16.mxu1 %v13736_v13 }
  0xdd   : > { %1655 = vmatpush1.bf16.msra.mxu0 %v11456_v33 }
  0xde   : > { %1744 = vmatprep.subr.bf16.mxu0 %v11371_v11 }
  0xdf   : > { %9361 = vmatpush3.bf16.msra.mxu1 %v11463_v34 }
  0xe0   : > { %9362 = vmatprep.subr.bf16.mxu1 %v13736_v13 }
  0xe3   : > { %9363 = vmatpush3.bf16.msra.mxu1 %v11472_v35 }
  0xe4   : > { %9364 = vmatprep.subr.bf16.mxu1 %v13736_v13 }
  0xe7   : > { %9365 = vmatpush3.bf16.msra.mxu1 %v11481_v36 }
  0xe8   : > { %9366 = vmatprep.subr.bf16.mxu1 %v13736_v13 }
  0xeb   : > { %9367 = vmatpush3.bf16.msra.mxu1 %v11488_v37 }
  0xec   : > { %9372 = vmatprep.subr.bf16.mxu1 %v13736_v13 }
 0x12d   : > { %v11524_v38 = vpop.f32.mrf.mxu1 }
 0x12f   : > { %v11526_v39 = vpop.f32.mrf.mxu1 }
 0x131   : > { %v1204_v40 = vpop.f32.mrf.mxu1 }
 0x133   : > { %v1206_v41 = vpop.f32.mrf.mxu1 }
 0x135   : > { %v1210_v42 = vpop.f32.mrf.mxu1 }
 0x137   : > { %v11528_v43 = vpop.f32.mrf.mxu1 }
 0x139   : > { %v11530_v44 = vpop.f32.mrf.mxu1 }
 0x13b   : > { %v11532_v45 = vpop.f32.mrf.mxu1 }
 0x13d   : > { %v11534_v46 = vpop.f32.mrf.mxu1 }
 0x13f   : > { %v11536_v47 = vpop.f32.mrf.mxu1 }
 0x141   : > { %v11538_v48 = vpop.f32.mrf.mxu1 }
 0x143   : > { %v11540_v49 = vpop.f32.mrf.mxu1 }
 0x145   : > { %v11542_v50 = vpop.f32.mrf.mxu1 }
 0x147   : > { %v11544_v51 = vpop.f32.mrf.mxu1 }
 0x149   : > { %v11546_v53 = vpop.f32.mrf.mxu1 }
 0x14b   : > { %v11548_v54 = vpop.f32.mrf.mxu1 }
 0x14d   : > { %v11552_v56 = vpop.f32.mrf.mxu1 }
 0x14f   : > { %v11555_v58 = vpop.f32.mrf.mxu1 }
 0x151   : > { %v8930_v59 = vpop.f32.mrf.mxu1 }
 0x153   : > { %v8931_v62 = vpop.f32.mrf.mxu1 }
 0x154   : > { %v8932_v63 = vadd.f32 %v8931_v62, %v8930_v59  ;;  %v13747_v62 = vsub.s32 1, %v11550_v55 }
 0x155   : > { %v8933_v0 = vpop.f32.mrf.mxu1 }
 0x156   : > { %v1277_v1 = vadd.f32 %v8932_v63, %v11560_v61 }
 0x157   : > { %v8934_v3 = vpop.f32.mrf.mxu1 }
 0x158   : > { %v8935_v4 = vadd.f32 %v8934_v3, %v8933_v0  ;;  %v11574_v3 = vrot.slane %v692_v60, %v13742_v17 }
 0x159   : > { %v8936_v5 = vpop.f32.mrf.mxu1 }
 0x15a   : > { %v1282_v6 = vadd.f32 %v8935_v4, %v11560_v61 }
 0x15b   : > { %v8937_v7 = vpop.f32.mrf.mxu1 }
 0x15c   : > { %v8938_v8 = vadd.f32 %v8937_v7, %v8936_v5 }
 0x15d   : > { %v8939_v9 = vpop.f32.mrf.mxu1 }
 0x15e   : > { %v1285_v10 = vadd.f32 %v8938_v8, %v11560_v61  ;;  %v11578_v8 = vrot.slane %v692_v60, %v13747_v62 }
 0x15f   : > { %v8940_v12 = vpop.f32.mrf.mxu1 }
 0x160   : > { %v8941_v52 = vadd.f32 %v8940_v12, %v8939_v9  ;;  %v11566_v57 = vpop.f32.mrf.mxu0 }
 0x161   : > { %v8942_v59 = vpop.f32.mrf.mxu1 }
 0x162   : > { %v11569_v63 = vpop.f32.mrf.mxu0  ;;  %v1290_v0 = vadd.f32 %v8941_v52, %v11560_v61 }
 0x163   : > { %v8943_v4 = vpop.f32.mrf.mxu1 }
 0x164   : > { %v8944_v5 = vadd.f32 %v8943_v4, %v8942_v59  ;;  %v1131_v7 = vpop.f32.mrf.mxu0 }
 0x165   : > { %v1132_v9 = vadd.f32 %v1131_v7, %v11574_v3  ;;  %v8945_v12 = vpop.f32.mrf.mxu1 }
 0x166   : > { %v1133_v2 = vpop.f32.mrf.mxu0  ;;  %v1293_v13 = vadd.f32 %v8944_v5, %v11560_v61 }
 0x167   : > { %v1134_v11 = vadd.f32 %v1133_v2, %v11578_v8  ;;  %v8946_v52 = vpop.f32.mrf.mxu1  ;;  %v11583_v37 = vadd.f32 %v1204_v40, %v1132_v9 }
 0x168   : > { %v8947_v17 = vadd.f32 %v8946_v52, %v8945_v12  ;;  %v1137_v33 = vpop.f32.mrf.mxu0 }
 0x169   : > { %v1138_v59 = vadd.f32 %v1137_v33, %v11574_v3  ;;  %v8948_v4 = vpop.f32.mrf.mxu1  ;;  %v11586_v31 = vadd.f32 %v1206_v41, %v1134_v11 }
 0x16a   : > { %v1139_v60 = vpop.f32.mrf.mxu0  ;;  %v1298_v62 = vadd.f32 %v8947_v17, %v11560_v61 }
 0x16b   : > { %v1140_v7 = vadd.f32 %v1139_v60, %v11578_v8  ;;  %v8949_v55 = vpop.f32.mrf.mxu1  ;;  %v11590_v36 = vadd.f32 %v1210_v42, %v1138_v59 }
 0x16c   : > { %v8950_v5 = vadd.f32 %v8949_v55, %v8948_v4  ;;  %v1141_v2 = vpop.f32.mrf.mxu0 }
 0x16d   : > { %v1142_v40 = vadd.f32 %v1141_v2, %v11574_v3  ;;  %v9326_v9 = vpop.f32.mrf.mxu1  ;;  %v11594_v12 = vadd.f32 %v11528_v43, %v1140_v7 }
 0x16e   : > { %v11596_v33 = vadd.f32 %v9326_v9, %v1282_v6  ;;  %v1143_v11 = vpop.f32.mrf.mxu0  ;;  %v1301_v41 = vadd.f32 %v8950_v5, %v11560_v61 }
 0x16f   : > { %v1144_v17 = vadd.f32 %v1143_v11, %v11578_v8  ;;  %v11600_v52 = vpop.f32.mrf.mxu1  ;;  %v11603_v42 = vadd.f32 %v11530_v44, %v1142_v40 }
 0x170   : > { %v1147_v55 = vpop.f32.mrf.mxu0 }
 0x171   : > { %v1148_v59 = vadd.f32 %v1147_v55, %v11574_v3  ;;  %v9327_v4 = vpop.f32.mrf.mxu1  ;;  %v11607_v60 = vadd.f32 %v11532_v45, %v1144_v17 }
 0x172   : > { %v11609_v43 = vadd.f32 %v9327_v4, %v1285_v10  ;;  %v1149_v6 = vpop.f32.mrf.mxu0 }
 0x173   : > { %v1150_v7 = vadd.f32 %v1149_v6, %v11578_v8  ;;  %v1341_v5 = vpop.f32.mrf.mxu1  ;;  %v11613_v2 = vadd.f32 %v11534_v46, %v1148_v59 }
 0x174   : > { %v11615_v9 = vadd.f32 %v1341_v5, %v1277_v1  ;;  %v1151_v44 = vpop.f32.mrf.mxu0 }
 0x175   : > { %v1152_v40 = vadd.f32 %v1151_v44, %v11574_v3  ;;  %v9330_v11 = vpop.f32.mrf.mxu1  ;;  %v11619_v55 = vadd.f32 %v11536_v47, %v1150_v7  ;;  %v1128_v7 = vadd.f32 %v11566_v57, %v11574_v3 }
 0x176   : > { %v11621_v45 = vadd.f32 %v9330_v11, %v1298_v62  ;;  %v1153_v10 = vpop.f32.mrf.mxu0 }
 0x177   : > { %v1154_v17 = vadd.f32 %v1153_v10, %v11578_v8  ;;  %v1354_v4 = vpop.f32.mrf.mxu1  ;;  %v11625_v6 = vadd.f32 %v11538_v48, %v1152_v40 }
 0x178   : > { %v11627_v46 = vadd.f32 %v1354_v4, %v1290_v0  ;;  %v1157_v1 = vpop.f32.mrf.mxu0 }
 0x179   : > { %v1158_v59 = vadd.f32 %v1157_v1, %v11574_v3  ;;  %v9331_v5 = vpop.f32.mrf.mxu1  ;;  %v11631_v44 = vadd.f32 %v11540_v49, %v1154_v17  ;;  %v1201_v1 = vadd.f32 %v11524_v38, %v1128_v7 }
 0x17a   : > { %v11633_v47 = vadd.f32 %v9331_v5, %v1301_v41  ;;  %v1159_v62 = vpop.f32.mrf.mxu0 }
 0x17b   : > { %v1160_v11 = vadd.f32 %v1159_v62, %v11578_v8  ;;  %v1357_v10 = vpop.f32.mrf.mxu1  ;;  %v11639_v48 = vadd.f32 %v11542_v50, %v1158_v59  ;;  %v1130_v50 = vadd.f32 %v11569_v63, %v11578_v8 }
 0x17c   : > { %13796 = vst [vmem:[#allocation21_spill] sm:$0xff] %v11633_v47  ;;  %v11641_v0 = vadd.f32 %v1357_v10, %v1293_v13  ;;  %v1161_v40 = vpop.f32.mrf.mxu0 }
 0x17d   : > { %v1162_v4 = vadd.f32 %v1161_v40, %v11574_v3  ;;  %v11645_v49 = vadd.f32 %v11544_v51, %v1160_v11  ;;  %v1203_v11 = vadd.f32 %v11526_v39, %v1130_v50 }
 0x17e   : > { %v1163_v41 = vpop.f32.mrf.mxu0 }
 0x17f   : > { %v1164_v17 = vadd.f32 %v1163_v41, %v11578_v8  ;;  %v11650_v57 = vadd.f32 %v11546_v53, %v1162_v4 }
 0x180   : > { %v1570_v5 = vpop.f32.mrf.mxu0 }
 0x181   : > { %v1617_v13 = vadd.f32 %v1570_v5, %v1201_v1  ;;  %v11655_v59 = vadd.f32 %v11548_v54, %v1164_v17  ;;  %v11659_v17 = vld [vmem:[%s11227_s27] ss:$0 sm:$0xff]  ;;  %v8929_v1 = vadd.f32 %v11555_v58, %v11552_v56  ;;  %v13798_v58 = vmov 0.0  }
 0x182   : > { %v1572_v3 = vpop.f32.mrf.mxu0 }
 0x183   : > { %13797 = vst [vmem:[#allocation22_spill] sm:$0xff] %v11655_v59  ;;  %v8412_v62 = vmul.f32 -1.442695, %v1617_v13  ;;  %v1624_v38 = vadd.f32 %v1572_v3, %v1203_v11  ;;  %v1274_v50 = vadd.f32 %v8929_v1, %v11560_v61  ;;  %v13799_v61 = vmov 0  }
 0x184   : > { %v1574_v51 = vpop.f32.mrf.mxu0 }
 0x185   : > { %10016 = vpow2.f32 %v8412_v62  ;;  %v8413_v7 = vmul.f32 -1.442695, %v1624_v38  ;;  %v1339_v3 = vadd.f32 %v11600_v52, %v1274_v50  ;;  %v13800_v52 = vld [vmem:[#allocation18_spill] sm:$0xff] }
 0x186   : > { %v1575_v10 = vpop.f32.mrf.mxu0 }
 0x187   : > { %10018 = vpow2.f32 %v8413_v7 }
 0x18e   : > { %v1611_v53 = vpop.f32.mrf.mxu1 }
 0x18f   : > { %v1631_v39 = vadd.f32 %v11659_v17, %v1611_v53  ;;  %v13801_v53 = vld [vmem:[#allocation16_spill] sm:$0xff] }
 0x190   : > { %v9350_v40 = vpop.f32.mrf.mxu1 }
 0x192   : > { %v10017_v4 = vpop.eup %10016  ;;  %v1614_v41 = vpop.f32.mrf.mxu1 }
 0x193   : > { %v1621_v63 = vadd.f32 1.0, %v10017_v4  ;;  %v13802_v41 = vld [vmem:[#allocation17_spill] sm:$0xff] }
 0x194   : > { %v9351_v8 = vpop.f32.mrf.mxu1  ;;  %v10019_v54 = vpop.eup %10018 }
 0x195   : > { %10020 = vrcp.f32 %v1621_v63  ;;  %v1628_v5 = vadd.f32 1.0, %v10019_v54  ;;  %v13803_v63 = vld [vmem:[#allocation19_spill] sm:$0xff] }
 0x196   : > { %v13804_v8 = vld [vmem:[#allocation15_spill] sm:$0xff] }
 0x197   : > { %10022 = vrcp.f32 %v1628_v5 }
 0x1a2   : > { %v10021_v13 = vpop.eup %10020 }
 0x1a3   : > { %v1632_v62 = vmul.f32 %v10021_v13, %v1631_v39 }
 0x1a4   : > { %v10023_v11 = vpop.eup %10022 }
 0x1a5   : > { %v1633_v51 = vadd.f32 %v1632_v62, %v1339_v3  ;;  %v1635_v10 = vsub.f32 1.0, %v10023_v11  ;;  %v1637_v40 = vmul.f32 0.0, %v10023_v11 }
 0x1a7   : > { %10024 = vtanh.f32 %v1633_v51 }
 0x1b4   : > { %v10025_v38 = vpop.eup %10024 }
 0x1b5   : > { %v1636_v7 = vmul.f32 %v10025_v38, %v1635_v10 }
 0x1b7   : > { %v11666_v4 = vadd.f32 %v1637_v40, %v1636_v7 }
 0x1b9   : > { %v1639_v56 = vpack.c.bf16 %v11666_v4, %v11666_v4 }
 0x1bb   : > { %1673 = vmatmul.mubr.bf16.vlgmr.msra.gmra.mxu0 %v1639_v56  ;;  %9369 = vmatmul.mubr.bf16.vlgmr.msra.gmra.mxu1 %v1639_v56 }
 0x1bc   : > { %1745 = vmatpush1.bf16.msra.mxu0 %v11375_v14  ;;  %9373 = vmatpush3.bf16.msra.mxu1 %v11407_v25 }
 0x1bd   : > { %1746 = vmatprep.subr.bf16.mxu0 %v11379_v16  ;;  %9374 = vmatprep.subr.bf16.mxu1 %v13798_v58 }
 0x1be   : > { %1776 = vmatprep.mubr.bf16.mxu0 %v13799_v61  ;;  %9388 = vmatprep.mubr.msk.bf16.mxu1 %vm10990_vm2, %v13798_v58 }
 0x1c0   : > { %1747 = vmatpush1.bf16.msra.mxu0 %v11383_v18  ;;  %9375 = vmatpush3.bf16.msra.mxu1 %v11420_v15 }
 0x1c1   : > { %1748 = vmatprep.subr.bf16.mxu0 %v11387_v19  ;;  %9376 = vmatprep.subr.bf16.mxu1 %v13798_v58 }
 0x1c4   : > { %1749 = vmatpush1.bf16.msra.mxu0 %v11390_v20  ;;  %9377 = vmatpush3.bf16.msra.mxu1 %v11435_v24 }
 0x1c5   : > { %1750 = vmatprep.subr.bf16.mxu0 %v11393_v21  ;;  %9378 = vmatprep.subr.bf16.mxu1 %v13798_v58 }
 0x1c8   : > { %1751 = vmatpush1.bf16.msra.mxu0 %v11400_v22  ;;  %9379 = vmatpush3.bf16.msra.mxu1 %v11450_v32 }
 0x1c9   : > { %1752 = vmatprep.subr.bf16.mxu0 %v11403_v23  ;;  %9380 = vmatprep.subr.bf16.mxu1 %v13798_v58 }
 0x1cc   : > { %1753 = vmatpush1.bf16.msra.mxu0 %v11411_v26  ;;  %9381 = vmatpush3.bf16.msra.mxu1 %v11463_v34 }
 0x1cd   : > { %1754 = vmatprep.subr.bf16.mxu0 %v11414_v27  ;;  %9382 = vmatprep.subr.bf16.mxu1 %v13798_v58 }
 0x1d0   : > { %1755 = vmatpush1.bf16.msra.mxu0 %v11426_v28  ;;  %9383 = vmatpush3.bf16.msra.mxu1 %v11472_v35 }
 0x1d1   : > { %1756 = vmatprep.subr.bf16.mxu0 %v11430_v29  ;;  %9384 = vmatprep.subr.bf16.mxu1 %v13798_v58 }
 0x1d4   : > { %1757 = vmatpush1.bf16.msra.mxu0 %v11439_v30  ;;  %9385 = vmatpush3.bf16.msra.mxu1 %v13800_v52 }
 0x1d5   : > { %1758 = vmatprep.subr.bf16.mxu0 %v13801_v53  ;;  %9386 = vmatprep.subr.bf16.mxu1 %v13798_v58 }
 0x1d8   : > { %1759 = vmatpush1.bf16.msra.mxu0 %v13802_v41  ;;  %9387 = vmatpush3.bf16.msra.mxu1 %v13803_v63 }
 0x1d9   : > { %1848 = vmatprep.subr.bf16.mxu0 %v13804_v8  ;;  %9392 = vmatprep.subr.bf16.mxu1 %v13798_v58 }
 0x27b   : > { %v1674_v54 = vpop.f32.mrf.mxu0  ;;  %v1715_v1 = vpop.f32.mrf.mxu1 }
 0x27c   : > { %v1721_v5 = vadd.f32 %v1674_v54, %v11583_v37  ;;  %v1735_v59 = vadd.f32 %v11659_v17, %v1715_v1 }
 0x27d   : > { %v1676_v39 = vpop.f32.mrf.mxu0  ;;  %v9370_v50 = vpop.f32.mrf.mxu1 }
 0x27e   : > { %v8414_v13 = vmul.f32 -1.442695, %v1721_v5  ;;  %v1728_v10 = vadd.f32 %v1676_v39, %v11586_v31 }
 0x27f   : > { %v1678_v3 = vpop.f32.mrf.mxu0  ;;  %v1718_v62 = vpop.f32.mrf.mxu1 }
 0x280   : > { %10026 = vpow2.f32 %v8414_v13  ;;  %v8415_v38 = vmul.f32 -1.442695, %v1728_v10 }
 0x281   : > { %v1679_v51 = vpop.f32.mrf.mxu0  ;;  %v9371_v11 = vpop.f32.mrf.mxu1 }
 0x282   : > { %10028 = vpow2.f32 %v8415_v38 }
 0x28d   : > { %v10027_v7 = vpop.eup %10026 }
 0x28e   : > { %v1725_v40 = vadd.f32 1.0, %v10027_v7 }
 0x28f   : > { %v10029_v56 = vpop.eup %10028 }
 0x290   : > { %10030 = vrcp.f32 %v1725_v40  ;;  %v1732_v47 = vadd.f32 1.0, %v10029_v56 }
 0x292   : > { %10032 = vrcp.f32 %v1732_v47 }
 0x29d   : > { %v10031_v37 = vpop.eup %10030 }
 0x29e   : > { %v1736_v54 = vmul.f32 %v10031_v37, %v1735_v59 }
 0x29f   : > { %v10033_v50 = vpop.eup %10032 }
 0x2a0   : > { %v1737_v5 = vadd.f32 %v1736_v54, %v11615_v9  ;;  %v1739_v13 = vsub.f32 1.0, %v10033_v50  ;;  %v1741_v31 = vmul.f32 %v10033_v50, %v11666_v4 }
 0x2a2   : > { %10034 = vtanh.f32 %v1737_v5 }
 0x2af   : > { %v10035_v3 = vpop.eup %10034 }
 0x2b0   : > { %v1740_v62 = vmul.f32 %v10035_v3, %v1739_v13 }
 0x2b2   : > { %v11710_v39 = vadd.f32 %v1741_v31, %v1740_v62 }
 0x2b4   : > { %v1743_v51 = vpack.c.bf16 %v11710_v39, %v11710_v39 }
 0x2b6   : > { %1777 = vmatmul.mubr.bf16.vlgmr.msra.gmra.mxu0 %v1743_v51  ;;  %9389 = vmatmul.mubr.bf16.vlgmr.msra.gmra.mxu1 %v1743_v51 }
 0x2b7   : > { %1849 = vmatpush1.bf16.msra.mxu0 %v11375_v14  ;;  %9393 = vmatpush3.bf16.msra.mxu1 %v11407_v25 }
 0x2b8   : > { %1850 = vmatprep.subr.bf16.mxu0 %v11379_v16  ;;  %9394 = vmatprep.subr.bf16.mxu1 %v13798_v58 }
 0x2b9   : > { %1880 = vmatprep.mubr.bf16.mxu0 %v13799_v61  ;;  %9408 = vmatprep.mubr.msk.bf16.mxu1 %vm10990_vm2, %v13798_v58 }
 0x2bb   : > { %1851 = vmatpush1.bf16.msra.mxu0 %v11383_v18  ;;  %9395 = vmatpush3.bf16.msra.mxu1 %v11420_v15 }
 0x2bc   : > { %1852 = vmatprep.subr.bf16.mxu0 %v11387_v19  ;;  %9396 = vmatprep.subr.bf16.mxu1 %v13798_v58 }
 0x2bf   : > { %1853 = vmatpush1.bf16.msra.mxu0 %v11390_v20  ;;  %9397 = vmatpush3.bf16.msra.mxu1 %v11435_v24 }
 0x2c0   : > { %1854 = vmatprep.subr.bf16.mxu0 %v11393_v21  ;;  %9398 = vmatprep.subr.bf16.mxu1 %v13798_v58 }
 0x2c3   : > { %1855 = vmatpush1.bf16.msra.mxu0 %v11400_v22  ;;  %9399 = vmatpush3.bf16.msra.mxu1 %v11450_v32 }
 0x2c4   : > { %1856 = vmatprep.subr.bf16.mxu0 %v11403_v23  ;;  %9400 = vmatprep.subr.bf16.mxu1 %v13798_v58 }
 0x2c7   : > { %1857 = vmatpush1.bf16.msra.mxu0 %v11411_v26  ;;  %9401 = vmatpush3.bf16.msra.mxu1 %v11463_v34 }
 0x2c8   : > { %1858 = vmatprep.subr.bf16.mxu0 %v11414_v27  ;;  %9402 = vmatprep.subr.bf16.mxu1 %v13798_v58 }
 0x2cb   : > { %1859 = vmatpush1.bf16.msra.mxu0 %v11426_v28  ;;  %9403 = vmatpush3.bf16.msra.mxu1 %v11472_v35 }
 0x2cc   : > { %1860 = vmatprep.subr.bf16.mxu0 %v11430_v29  ;;  %9404 = vmatprep.subr.bf16.mxu1 %v13798_v58 }
 0x2cf   : > { %1861 = vmatpush1.bf16.msra.mxu0 %v11439_v30  ;;  %9405 = vmatpush3.bf16.msra.mxu1 %v13800_v52 }
 0x2d0   : > { %1862 = vmatprep.subr.bf16.mxu0 %v13801_v53  ;;  %9406 = vmatprep.subr.bf16.mxu1 %v13798_v58 }
 0x2d3   : > { %1863 = vmatpush1.bf16.msra.mxu0 %v13802_v41  ;;  %9407 = vmatpush3.bf16.msra.mxu1 %v13803_v63 }
 0x2d4   : > { %1952 = vmatprep.subr.bf16.mxu0 %v13804_v8  ;;  %9412 = vmatprep.subr.bf16.mxu1 %v13798_v58 }
 0x376   : > { %v1778_v9 = vpop.f32.mrf.mxu0  ;;  %v1819_v47 = vpop.f32.mrf.mxu1 }
 0x377   : > { %v1825_v59 = vadd.f32 %v1778_v9, %v11590_v36  ;;  %v1839_v13 = vadd.f32 %v11659_v17, %v1819_v47 }
 0x378   : > { %v1780_v4 = vpop.f32.mrf.mxu0  ;;  %v9390_v1 = vpop.f32.mrf.mxu1 }
 0x379   : > { %v8416_v11 = vmul.f32 -1.442695, %v1825_v59  ;;  %v1832_v56 = vadd.f32 %v1780_v4, %v11594_v12 }
 0x37a   : > { %v1782_v10 = vpop.f32.mrf.mxu0  ;;  %v1822_v38 = vpop.f32.mrf.mxu1 }
 0x37b   : > { %10036 = vpow2.f32 %v8416_v11  ;;  %v8417_v37 = vmul.f32 -1.442695, %v1832_v56 }
 0x37c   : > { %v1783_v7 = vpop.f32.mrf.mxu0  ;;  %v9391_v40 = vpop.f32.mrf.mxu1 }
 0x37d   : > { %10038 = vpow2.f32 %v8417_v37 }
 0x388   : > { %v10037_v54 = vpop.eup %10036 }
 0x389   : > { %v1829_v8 = vadd.f32 1.0, %v10037_v54 }
 0x38a   : > { %v10039_v5 = vpop.eup %10038 }
 0x38b   : > { %10040 = vrcp.f32 %v1829_v8  ;;  %v1836_v50 = vadd.f32 1.0, %v10039_v5 }
 0x38d   : > { %10042 = vrcp.f32 %v1836_v50 }
 0x398   : > { %v10041_v36 = vpop.eup %10040 }
 0x399   : > { %v1840_v3 = vmul.f32 %v10041_v36, %v1839_v13 }
 0x39a   : > { %v10043_v31 = vpop.eup %10042 }
 0x39b   : > { %v1841_v62 = vadd.f32 %v1840_v3, %v11596_v33  ;;  %v1843_v51 = vsub.f32 1.0, %v10043_v31  ;;  %v1845_v12 = vmul.f32 %v10043_v31, %v11710_v39  ;;  %v11806_v3 = vld [vmem:[%s11237_s22 + $0xa8] ss:$12 sps:$4 sm:$0xff]   ;;  %v11829_v31 = vld [vmem:[%s11237_s22 + $0x78] ss:$12 sps:$4 sm:$0xff]  }
 0x39d   : > { %10044 = vtanh.f32 %v1841_v62  ;;  %v11819_v62 = vld [vmem:[%s11237_s22 + $0x90] ss:$12 sps:$4 sm:$0xff]  }
 0x3aa   : > { %v10045_v9 = vpop.eup %10044 }
 0x3ab   : > { %v1844_v59 = vmul.f32 %v10045_v9, %v1843_v51  ;;  %v11834_v51 = vld [vmem:[%s11237_s22 + $0x64] ss:$12 sps:$4 sm:$0xff]   ;;  %v11844_v9 = vld [vmem:[%s11237_s22 + $0x4c] ss:$12 sps:$4 sm:$0xff]  }
 0x3ad   : > { %v11754_v4 = vadd.f32 %v1845_v12, %v1844_v59  ;;  %v11849_v59 = vld [vmem:[%s11237_s22 + $0x48] ss:$12 sps:$4 sm:$0xff]  }
 0x3af   : > { %v1847_v1 = vpack.c.bf16 %v11754_v4, %v11754_v4 }
 0x3b1   : > { %1881 = vmatmul.mubr.bf16.vlgmr.msra.gmra.mxu0 %v1847_v1  ;;  %9409 = vmatmul.mubr.bf16.vlgmr.msra.gmra.mxu1 %v1847_v1 }
 0x3b2   : > { %1953 = vmatpush1.bf16.msra.mxu0 %v11375_v14  ;;  %9413 = vmatpush3.bf16.msra.mxu1 %v11407_v25  ;;  %v11792_v14 = vld [vmem:[%s11237_s22 + $0xac] ss:$12 sps:$4 sm:$0xff]  }
 0x3b3   : > { %1954 = vmatprep.subr.bf16.mxu0 %v11379_v16  ;;  %9414 = vmatprep.subr.bf16.mxu1 %v13798_v58 }
 0x3b4   : > { %1984 = vmatprep.mubr.bf16.mxu0 %v13799_v61  ;;  %9428 = vmatprep.mubr.msk.bf16.mxu1 %vm10990_vm2, %v13798_v58 }
 0x3b6   : > { %1955 = vmatpush1.bf16.msra.mxu0 %v11383_v18  ;;  %9415 = vmatpush3.bf16.msra.mxu1 %v11420_v15 }
 0x3b7   : > { %1956 = vmatprep.subr.bf16.mxu0 %v11387_v19  ;;  %9416 = vmatprep.subr.bf16.mxu1 %v13798_v58 }
 0x3ba   : > { %1957 = vmatpush1.bf16.msra.mxu0 %v11390_v20  ;;  %9417 = vmatpush3.bf16.msra.mxu1 %v11435_v24 }
 0x3bb   : > { %1958 = vmatprep.subr.bf16.mxu0 %v11393_v21  ;;  %9418 = vmatprep.subr.bf16.mxu1 %v13798_v58 }
 0x3be   : > { %1959 = vmatpush1.bf16.msra.mxu0 %v11400_v22  ;;  %9419 = vmatpush3.bf16.msra.mxu1 %v11450_v32 }
 0x3bf   : > { %1960 = vmatprep.subr.bf16.mxu0 %v11403_v23  ;;  %9420 = vmatprep.subr.bf16.mxu1 %v13798_v58 }
 0x3c2   : > { %1961 = vmatpush1.bf16.msra.mxu0 %v11411_v26  ;;  %9421 = vmatpush3.bf16.msra.mxu1 %v11463_v34 }
 0x3c3   : > { %1962 = vmatprep.subr.bf16.mxu0 %v11414_v27  ;;  %9422 = vmatprep.subr.bf16.mxu1 %v13798_v58 }
 0x3c6   : > { %1963 = vmatpush1.bf16.msra.mxu0 %v11426_v28  ;;  %9423 = vmatpush3.bf16.msra.mxu1 %v11472_v35 }
 0x3c7   : > { %1964 = vmatprep.subr.bf16.mxu0 %v11430_v29  ;;  %9424 = vmatprep.subr.bf16.mxu1 %v13798_v58 }
 0x3ca   : > { %1965 = vmatpush1.bf16.msra.mxu0 %v11439_v30  ;;  %9425 = vmatpush3.bf16.msra.mxu1 %v13800_v52 }
 0x3cb   : > { %1966 = vmatprep.subr.bf16.mxu0 %v13801_v53  ;;  %9426 = vmatprep.subr.bf16.mxu1 %v13798_v58 }
 0x3ce   : > { %1967 = vmatpush1.bf16.msra.mxu0 %v13802_v41  ;;  %9427 = vmatpush3.bf16.msra.mxu1 %v13803_v63 }
 0x3cf   : > { %2056 = vmatprep.subr.bf16.mxu0 %v11792_v14  ;;  %9432 = vmatprep.subr.bf16.mxu1 %v13798_v58 }
 0x471   : > { %v1882_v16 = vpop.f32.mrf.mxu0  ;;  %v1923_v18 = vpop.f32.mrf.mxu1 }
 0x472   : > { %v1929_v19 = vadd.f32 %v1882_v16, %v11603_v42  ;;  %v1943_v42 = vadd.f32 %v11659_v17, %v1923_v18 }
 0x473   : > { %v1884_v20 = vpop.f32.mrf.mxu0  ;;  %v9410_v21 = vpop.f32.mrf.mxu1 }
 0x474   : > { %v8418_v22 = vmul.f32 -1.442695, %v1929_v19  ;;  %v1936_v39 = vadd.f32 %v1884_v20, %v11607_v60 }
 0x475   : > { %v1886_v23 = vpop.f32.mrf.mxu0  ;;  %v1926_v26 = vpop.f32.mrf.mxu1 }
 0x476   : > { %10046 = vpow2.f32 %v8418_v22  ;;  %v8419_v47 = vmul.f32 -1.442695, %v1936_v39 }
 0x477   : > { %v1887_v27 = vpop.f32.mrf.mxu0  ;;  %v9411_v33 = vpop.f32.mrf.mxu1 }
 0x478   : > { %10048 = vpow2.f32 %v8419_v47 }
 0x483   : > { %v10047_v11 = vpop.eup %10046 }
 0x484   : > { %v1933_v10 = vadd.f32 1.0, %v10047_v11 }
 0x485   : > { %v10049_v38 = vpop.eup %10048 }
 0x486   : > { %10050 = vrcp.f32 %v1933_v10  ;;  %v1940_v7 = vadd.f32 1.0, %v10049_v38 }
 0x488   : > { %10052 = vrcp.f32 %v1940_v7  ;;  %v11881_v7 = vld [vmem:[%s11237_s22 + $0xb0] ss:$12 sps:$4 sm:$0xff]  }
 0x493   : > { %v10051_v40 = vpop.eup %10050 }
 0x494   : > { %v1944_v56 = vmul.f32 %v10051_v40, %v1943_v42  ;;  %v11898_v42 = vld [vmem:[%s11237_s22 + $0x80] ss:$12 sps:$4 sm:$0xff]   ;;  %v11905_v40 = vld [vmem:[%s11237_s22 + $0x68] ss:$12 sps:$4 sm:$0xff]  }
 0x495   : > { %v10053_v54 = vpop.eup %10052 }
 0x496   : > { %v1945_v37 = vadd.f32 %v1944_v56, %v11609_v43  ;;  %v1947_v8 = vsub.f32 1.0, %v10053_v54  ;;  %v1949_v50 = vmul.f32 %v10053_v54, %v11754_v4  ;;  %v11811_v43 = vld [vmem:[%s11237_s22 + $0x94] ss:$12 sps:$4 sm:$0xff]   ;;  %v11912_v56 = vld [vmem:[%s11237_s22 + $0x50] ss:$12 sps:$4 sm:$0xff]  }
 0x497   : > { %v11923_v54 = vld [vmem:[%s11237_s22 + $0x1c] ss:$12 sps:$4 sm:$0xff]  }
 0x498   : > { %10054 = vtanh.f32 %v1945_v37  ;;  %v11918_v37 = vld [vmem:[%s11237_s22 + $0x30] ss:$12 sps:$4 sm:$0xff]  }
 0x4a5   : > { %v10055_v60 = vpop.eup %10054 }
 0x4a6   : > { %v1948_v5 = vmul.f32 %v10055_v60, %v1947_v8  ;;  %v11928_v8 = vld [vmem:[%s11237_s22 + $0x18] ss:$12 sps:$4 sm:$0xff]  }
 0x4a7   : > { %v11933_v60 = vld [vmem:[%s11237_s22 + $0x4] ss:$12 sps:$4 sm:$0xff]  }
 0x4a8   : > { %v11801_v13 = vadd.f32 %v1949_v50, %v1948_v5  ;;  %v11938_v5 = vld [vmem:[%s11237_s22] ss:$12 sps:$4 sm:$0xff]  }
 0x4aa   : > { %v1951_v36 = vpack.c.bf16 %v11801_v13, %v11801_v13 }
 0x4ac   : > { %1985 = vmatmul.mubr.bf16.vlgmr.msra.gmra.mxu0 %v1951_v36  ;;  %9429 = vmatmul.mubr.bf16.vlgmr.msra.gmra.mxu1 %v1951_v36 }
 0x4ad   : > { %2057 = vmatpush1.bf16.msra.mxu0 %v11806_v3  ;;  %9433 = vmatpush3.bf16.msra.mxu1 %v11407_v25  ;;  %v11824_v25 = vld [vmem:[%s11237_s22 + $0x7c] ss:$12 sps:$4 sm:$0xff]  }
 0x4ae   : > { %2058 = vmatprep.subr.bf16.mxu0 %v11811_v43  ;;  %9434 = vmatprep.subr.bf16.mxu1 %v13798_v58 }
 0x4af   : > { %2088 = vmatprep.mubr.bf16.mxu0 %v13799_v61  ;;  %9448 = vmatprep.mubr.msk.bf16.mxu1 %vm10990_vm2, %v13798_v58 }
 0x4b1   : > { %2059 = vmatpush1.bf16.msra.mxu0 %v11819_v62  ;;  %9435 = vmatpush3.bf16.msra.mxu1 %v11420_v15  ;;  %v11839_v15 = vld [vmem:[%s11237_s22 + $0x60] ss:$12 sps:$4 sm:$0xff]  }
 0x4b2   : > { %2060 = vmatprep.subr.bf16.mxu0 %v11824_v25  ;;  %9436 = vmatprep.subr.bf16.mxu1 %v13798_v58 }
 0x4b5   : > { %2061 = vmatpush1.bf16.msra.mxu0 %v11829_v31  ;;  %9437 = vmatpush3.bf16.msra.mxu1 %v11435_v24  ;;  %v11854_v24 = vld [vmem:[%s11237_s22 + $0x34] ss:$12 sps:$4 sm:$0xff]  }
 0x4b6   : > { %2062 = vmatprep.subr.bf16.mxu0 %v11834_v51  ;;  %9438 = vmatprep.subr.bf16.mxu1 %v13798_v58 }
 0x4b9   : > { %2063 = vmatpush1.bf16.msra.mxu0 %v11839_v15  ;;  %9439 = vmatpush3.bf16.msra.mxu1 %v11450_v32 }
 0x4ba   : > { %2064 = vmatprep.subr.bf16.mxu0 %v11844_v9  ;;  %9440 = vmatprep.subr.bf16.mxu1 %v13798_v58 }
 0x4bd   : > { %2065 = vmatpush1.bf16.msra.mxu0 %v11849_v59  ;;  %9441 = vmatpush3.bf16.msra.mxu1 %v11463_v34 }
 0x4be   : > { %2066 = vmatprep.subr.bf16.mxu0 %v11854_v24  ;;  %9442 = vmatprep.subr.bf16.mxu1 %v13798_v58 }
 0x4c1   : > { %2067 = vmatpush1.bf16.msra.mxu0 %v11426_v28  ;;  %9443 = vmatpush3.bf16.msra.mxu1 %v11472_v35 }
 0x4c2   : > { %2068 = vmatprep.subr.bf16.mxu0 %v11430_v29  ;;  %9444 = vmatprep.subr.bf16.mxu1 %v13798_v58 }
 0x4c5   : > { %2069 = vmatpush1.bf16.msra.mxu0 %v11439_v30  ;;  %9445 = vmatpush3.bf16.msra.mxu1 %v13800_v52 }
 0x4c6   : > { %2070 = vmatprep.subr.bf16.mxu0 %v13801_v53  ;;  %9446 = vmatprep.subr.bf16.mxu1 %v13798_v58 }
 0x4c9   : > { %2071 = vmatpush1.bf16.msra.mxu0 %v13802_v41  ;;  %9447 = vmatpush3.bf16.msra.mxu1 %v13803_v63 }
 0x4ca   : > { %2160 = vmatprep.subr.bf16.mxu0 %v11792_v14  ;;  %9452 = vmatprep.subr.bf16.mxu1 %v13798_v58 }
 0x56c   : > { %v1986_v28 = vpop.f32.mrf.mxu0  ;;  %v2027_v29 = vpop.f32.mrf.mxu1 }
 0x56d   : > { %v2033_v32 = vadd.f32 %v1986_v28, %v11613_v2  ;;  %v2047_v23 = vadd.f32 %v11659_v17, %v2027_v29 }
 0x56e   : > { %v1988_v34 = vpop.f32.mrf.mxu0  ;;  %v9430_v30 = vpop.f32.mrf.mxu1 }
 0x56f   : > { %v8420_v12 = vmul.f32 -1.442695, %v2033_v32  ;;  %v2040_v41 = vadd.f32 %v1988_v34, %v11619_v55 }
 0x570   : > { %v1990_v4 = vpop.f32.mrf.mxu0  ;;  %v2030_v1 = vpop.f32.mrf.mxu1 }
 0x571   : > { %10056 = vpow2.f32 %v8420_v12  ;;  %v8421_v18 = vmul.f32 -1.442695, %v2040_v41 }
 0x572   : > { %v1991_v53 = vpop.f32.mrf.mxu0  ;;  %v9431_v16 = vpop.f32.mrf.mxu1 }
 0x573   : > { %10058 = vpow2.f32 %v8421_v18 }
 0x57e   : > { %v10057_v19 = vpop.eup %10056 }
 0x57f   : > { %v2037_v20 = vadd.f32 1.0, %v10057_v19 }
 0x580   : > { %v10059_v21 = vpop.eup %10058 }
 0x581   : > { %10060 = vrcp.f32 %v2037_v20  ;;  %v2044_v22 = vadd.f32 1.0, %v10059_v21 }
 0x583   : > { %10062 = vrcp.f32 %v2044_v22 }
 0x58e   : > { %v10061_v2 = vpop.eup %10060 }
 0x58f   : > { %v2048_v26 = vmul.f32 %v10061_v2, %v2047_v23 }
 0x590   : > { %v10063_v33 = vpop.eup %10062 }
 0x591   : > { %v2049_v27 = vadd.f32 %v2048_v26, %v11627_v46  ;;  %v2051_v39 = vsub.f32 1.0, %v10063_v33  ;;  %v2053_v11 = vmul.f32 %v10063_v33, %v11801_v13  ;;  %v11891_v46 = vld [vmem:[%s11237_s22 + $0x98] ss:$12 sps:$4 sm:$0xff]  }
 0x593   : > { %10064 = vtanh.f32 %v2049_v27 }
 0x5a0   : > { %v10065_v55 = vpop.eup %10064 }
 0x5a1   : > { %v2052_v47 = vmul.f32 %v10065_v55, %v2051_v39 }
 0x5a3   : > { %v11875_v10 = vadd.f32 %v2053_v11, %v2052_v47 }
 0x5a5   : > { %v2055_v38 = vpack.c.bf16 %v11875_v10, %v11875_v10 }
 0x5a7   : > { %2089 = vmatmul.mubr.bf16.vlgmr.msra.gmra.mxu0 %v2055_v38  ;;  %9449 = vmatmul.mubr.bf16.vlgmr.msra.gmra.mxu1 %v2055_v38 }
 0x5a8   : > { %2161 = vmatpush1.bf16.msra.mxu0 %v11806_v3  ;;  %9453 = vmatpush3.bf16.msra.mxu1 %v11881_v7 }
 0x5a9   : > { %2162 = vmatprep.subr.bf16.mxu0 %v11811_v43  ;;  %9454 = vmatprep.subr.bf16.mxu1 %v13798_v58 }
 0x5aa   : > { %2192 = vmatprep.mubr.bf16.mxu0 %v13799_v61  ;;  %9468 = vmatprep.mubr.msk.bf16.mxu1 %vm10990_vm2, %v13798_v58 }
 0x5ac   : > { %2163 = vmatpush1.bf16.msra.mxu0 %v11819_v62  ;;  %9455 = vmatpush3.bf16.msra.mxu1 %v11891_v46 }
 0x5ad   : > { %2164 = vmatprep.subr.bf16.mxu0 %v11824_v25  ;;  %9456 = vmatprep.subr.bf16.mxu1 %v13798_v58 }
 0x5b0   : > { %2165 = vmatpush1.bf16.msra.mxu0 %v11829_v31  ;;  %9457 = vmatpush3.bf16.msra.mxu1 %v11898_v42 }
 0x5b1   : > { %2166 = vmatprep.subr.bf16.mxu0 %v11834_v51  ;;  %9458 = vmatprep.subr.bf16.mxu1 %v13798_v58 }
 0x5b4   : > { %2167 = vmatpush1.bf16.msra.mxu0 %v11839_v15  ;;  %9459 = vmatpush3.bf16.msra.mxu1 %v11905_v40 }
 0x5b5   : > { %2168 = vmatprep.subr.bf16.mxu0 %v11844_v9  ;;  %9460 = vmatprep.subr.bf16.mxu1 %v13798_v58 }
 0x5b8   : > { %2169 = vmatpush1.bf16.msra.mxu0 %v11849_v59  ;;  %9461 = vmatpush3.bf16.msra.mxu1 %v11912_v56 }
 0x5b9   : > { %2170 = vmatprep.subr.bf16.mxu0 %v11854_v24  ;;  %9462 = vmatprep.subr.bf16.mxu1 %v13798_v58 }
 0x5bc   : > { %2171 = vmatpush1.bf16.msra.mxu0 %v11918_v37  ;;  %9463 = vmatpush3.bf16.msra.mxu1 %v11472_v35 }
 0x5bd   : > { %2172 = vmatprep.subr.bf16.mxu0 %v11923_v54  ;;  %9464 = vmatprep.subr.bf16.mxu1 %v13798_v58 }
 0x5c0   : > { %2173 = vmatpush1.bf16.msra.mxu0 %v11928_v8  ;;  %9465 = vmatpush3.bf16.msra.mxu1 %v13800_v52 }
 0x5c1   : > { %2174 = vmatprep.subr.bf16.mxu0 %v11933_v60  ;;  %9466 = vmatprep.subr.bf16.mxu1 %v13798_v58 }
 0x5c4   : > { %2175 = vmatpush1.bf16.msra.mxu0 %v11938_v5  ;;  %9467 = vmatpush3.bf16.msra.mxu1 %v13803_v63 }
 0x5c5   : > { %2264 = vmatprep.subr.bf16.mxu0 %v11792_v14  ;;  %9472 = vmatprep.subr.bf16.mxu1 %v13798_v58 }
 0x667   : > { %v2090_v35 = vpop.f32.mrf.mxu0  ;;  %v2131_v50 = vpop.f32.mrf.mxu1 }
 0x668   : > { %v2137_v52 = vadd.f32 %v2090_v35, %v11625_v6  ;;  %v2151_v16 = vadd.f32 %v11659_v17, %v2131_v50  ;;  %v9943_v50 = vld [vmem:[%s11216_s25 + $0x94] ss:$12 sps:$4 sm:$0xff]  }
 0x669   : > { %v2092_v13 = vpop.f32.mrf.mxu0  ;;  %v9450_v36 = vpop.f32.mrf.mxu1 }
 0x66a   : > { %v8422_v28 = vmul.f32 -1.442695, %v2137_v52  ;;  %v2144_v12 = vadd.f32 %v2092_v13, %v11631_v44  ;;  %v9976_v52 = vld [vmem:[%s11216_s25 + $0x19c] ss:$12 sps:$4 sm:$0xff]  }
 0x66b   : > { %v2094_v29 = vpop.f32.mrf.mxu0  ;;  %v2134_v32 = vpop.f32.mrf.mxu1  ;;  %v12006_v13 = vld [vmem:[%s13712_s0 + $0x54] sm:$0xff] }
 0x66c   : > { %10066 = vpow2.f32 %v8422_v28  ;;  %v8423_v4 = vmul.f32 -1.442695, %v2144_v12  ;;  %v8429_v36 = vcombine.high %v12006_v13, %v12006_v13  ;;  %v9941_v28 = vld [vmem:[%s11216_s25 + $0x90] ss:$12 sps:$4 sm:$0xff]   ;;  %v9974_v29 = vld [vmem:[%s11216_s25 + $0x198] ss:$12 sps:$4 sm:$0xff]  }
 0x66d   : > { %v2095_v34 = vpop.f32.mrf.mxu0  ;;  %v9451_v30 = vpop.f32.mrf.mxu1  ;;  %v9946_v32 = vld [vmem:[%s11216_s25 + $0x7c] ss:$12 sps:$4 sm:$0xff]   ;;  %v9980_v12 = vld [vmem:[%s11216_s25 + $0x180] ss:$12 sps:$4 sm:$0xff]  }
 0x66e   : > { %10068 = vpow2.f32 %v8423_v4  ;;  %v9982_v34 = vld [vmem:[%s11216_s25 + $0x184] ss:$12 sps:$4 sm:$0xff]  }
 0x66f   : > { %v9944_v30 = vld [vmem:[%s11216_s25 + $0x78] ss:$12 sps:$4 sm:$0xff]  }
 0x670   : > { %v9949_v4 = vld [vmem:[%s11216_s25 + $0x64] ss:$12 sps:$4 sm:$0xff]  }
 0x679   : > { %v10067_v63 = vpop.eup %10066 }
 0x67a   : > { %v2141_v14 = vadd.f32 1.0, %v10067_v63  ;;  %v9986_v63 = vld [vmem:[%s11216_s25 + $0x170] ss:$12 sps:$4 sm:$0xff]  }
 0x67b   : > { %v10069_v1 = vpop.eup %10068 }
 0x67c   : > { %10070 = vrcp.f32 %v2141_v14  ;;  %v2148_v53 = vadd.f32 1.0, %v10069_v1  ;;  %v10131_v14 = vld [vmem:[%s13712_s0 + $0x5c] sm:$0xf] }
 0x67d   : > { %v12022_v1 = vcombine.low %v10131_v14, %v10131_v14 }
 0x67e   : > { %10072 = vrcp.f32 %v2148_v53  ;;  %v9987_v53 = vld [vmem:[%s11216_s25 + $0xb0] ss:$12 sps:$4 sm:$0xff]  }
 0x689   : > { %v10071_v6 = vpop.eup %10070 }
 0x68a   : > { %v2152_v41 = vmul.f32 %v10071_v6, %v2151_v16  ;;  %v9952_v16 = vld [vmem:[%s11216_s25 + $0x4c] ss:$12 sps:$4 sm:$0xff]  }
 0x68b   : > { %v10073_v19 = vpop.eup %10072  ;;  %v9991_v6 = vld [vmem:[%s11216_s25 + $0x158] ss:$12 sps:$4 sm:$0xff]  }
 0x68c   : > { %v2153_v18 = vadd.f32 %v2152_v41, %v11641_v0  ;;  %v2155_v20 = vsub.f32 1.0, %v10073_v19  ;;  %v2157_v44 = vmul.f32 %v10073_v19, %v11875_v10  ;;  %v10127_v0 = vld [vmem:[%s11237_s22 + $0x38] ss:$12 sps:$4 sm:$0xff]  }
 0x68d   : > { %v9950_v41 = vld [vmem:[%s11216_s25 + $0x48] ss:$12 sps:$4 sm:$0xff]  }
 0x68e   : > { %10074 = vtanh.f32 %v2153_v18  ;;  %v9992_v18 = vld [vmem:[%s11216_s25 + $0x98] ss:$12 sps:$4 sm:$0xff]   ;;  %v9955_v19 = vld [vmem:[%s11216_s25 + $0x34] ss:$12 sps:$4 sm:$0xff]  }
 0x69b   : > { %v10075_v21 = vpop.eup %10074 }
 0x69c   : > { %v2156_v22 = vmul.f32 %v10075_v21, %v2155_v20  ;;  %v9996_v20 = vld [vmem:[%s11216_s25 + $0x140] ss:$12 sps:$4 sm:$0xff]   ;;  %v9953_v21 = vld [vmem:[%s11216_s25 + $0x30] ss:$12 sps:$4 sm:$0xff]  }
 0x69e   : > { %v11949_v23 = vadd.f32 %v2157_v44, %v2156_v22  ;;  %v9997_v22 = vld [vmem:[%s11216_s25 + $0x80] ss:$12 sps:$4 sm:$0xff]   ;;  %v9958_v44 = vld [vmem:[%s11216_s25 + $0x1c] ss:$12 sps:$4 sm:$0xff]  }
 0x6a0   : > { %v2159_v2 = vpack.c.bf16 %v11949_v23, %v11949_v23 }
 0x6a2   : > { %2193 = vmatmul.mubr.bf16.vlgmr.msra.gmra.mxu0 %v2159_v2  ;;  %9469 = vmatmul.mubr.bf16.vlgmr.msra.gmra.mxu1 %v2159_v2  ;;  %v9956_v2 = vld [vmem:[%s11216_s25 + $0x18] ss:$12 sps:$4 sm:$0xff]  }
 0x6a3   : > { %2265 = vmatpush1.bf16.msra.mxu0 %v11806_v3  ;;  %9473 = vmatpush3.bf16.msra.mxu1 %v11881_v7  ;;  %v10128_v3 = vld [vmem:[%s11237_s22 + $0x20] ss:$12 sps:$4 sm:$0xff]  }
 0x6a4   : > { %2266 = vmatprep.subr.bf16.mxu0 %v11811_v43  ;;  %9474 = vmatprep.subr.bf16.mxu1 %v13798_v58  ;;  %v10129_v43 = vld [vmem:[%s11237_s22 + $0x8] ss:$12 sps:$4 sm:$0xff]  }
 0x6a5   : > { %2296 = vmatprep.mubr.bf16.mxu0 %v13799_v61  ;;  %9488 = vmatprep.mubr.msk.bf16.mxu1 %vm10990_vm2, %v13798_v58 }
 0x6a7   : > { %2267 = vmatpush1.bf16.msra.mxu0 %v11819_v62  ;;  %9475 = vmatpush3.bf16.msra.mxu1 %v11891_v46  ;;  %v9940_v62 = vld [vmem:[%s11216_s25 + $0xac] ss:$12 sps:$4 sm:$0xff]  }
 0x6a8   : > { %2268 = vmatprep.subr.bf16.mxu0 %v11824_v25  ;;  %9476 = vmatprep.subr.bf16.mxu1 %v13798_v58  ;;  %v9968_v25 = vld [vmem:[%s11216_s25 + $0x1b4] ss:$12 sps:$4 sm:$0x3f]  }
 0x6ab   : > { %2269 = vmatpush1.bf16.msra.mxu0 %v11829_v31  ;;  %9477 = vmatpush3.bf16.msra.mxu1 %v11898_v42 }
 0x6ac   : > { %2270 = vmatprep.subr.bf16.mxu0 %v11834_v51  ;;  %9478 = vmatprep.subr.bf16.mxu1 %v13798_v58 }
 0x6af   : > { %2271 = vmatpush1.bf16.msra.mxu0 %v11839_v15  ;;  %9479 = vmatpush3.bf16.msra.mxu1 %v11905_v40 }
 0x6b0   : > { %2272 = vmatprep.subr.bf16.mxu0 %v11844_v9  ;;  %9480 = vmatprep.subr.bf16.mxu1 %v13798_v58 }
 0x6b3   : > { %2273 = vmatpush1.bf16.msra.mxu0 %v11849_v59  ;;  %9481 = vmatpush3.bf16.msra.mxu1 %v11912_v56 }
 0x6b4   : > { %2274 = vmatprep.subr.bf16.mxu0 %v11854_v24  ;;  %9482 = vmatprep.subr.bf16.mxu1 %v13798_v58 }
 0x6b7   : > { %2275 = vmatpush1.bf16.msra.mxu0 %v11918_v37  ;;  %9483 = vmatpush3.bf16.msra.mxu1 %v10127_v0  ;;  %v10003_v0 = vld [vmem:[%s11216_s25 + $0x68] ss:$12 sps:$4 sm:$0xff]  }
 0x6b8   : > { %2276 = vmatprep.subr.bf16.mxu0 %v11923_v54  ;;  %9484 = vmatprep.subr.bf16.mxu1 %v13798_v58 }
 0x6bb   : > { %2277 = vmatpush1.bf16.msra.mxu0 %v11928_v8  ;;  %9485 = vmatpush3.bf16.msra.mxu1 %v10128_v3  ;;  %v9961_v3 = vld [vmem:[%s11216_s25 + $0x4] ss:$12 sps:$4 sm:$0xff]  }
 0x6bc   : > { %2278 = vmatprep.subr.bf16.mxu0 %v11933_v60  ;;  %9486 = vmatprep.subr.bf16.mxu1 %v13798_v58  ;;  %v9970_v60 = vld [vmem:[%s11216_s25 + $0x1b0] ss:$12 sps:$4 sm:$0x3f]  }
 0x6bf   : > { %2279 = vmatpush1.bf16.msra.mxu0 %v11938_v5  ;;  %9487 = vmatpush3.bf16.msra.mxu1 %v10129_v43  ;;  %v10005_v43 = vld [vmem:[%s11216_s25 + $0x110] ss:$12 sps:$4 sm:$0xff]  }
 0x6c0   : > { %2779 = vmatprep.subr.bf16.mxu0 %v9940_v62  ;;  %8488 = vmatprep.subr.msk.bf16.mxu1 %vm1083_vm0, %v9968_v25  ;;  %v9959_v62 = vld [vmem:[%s11216_s25] ss:$12 sps:$4 sm:$0xff]   ;;  %v10006_v25 = vld [vmem:[%s11216_s25 + $0x50] ss:$12 sps:$4 sm:$0xff]  }
 0x762   : > { %v2194_v31 = vpop.f32.mrf.mxu0  ;;  %v2235_v51 = vpop.f32.mrf.mxu1 }
 0x763   : > { %v2241_v15 = vadd.f32 %v2194_v31, %v11639_v48  ;;  %v2255_v48 = vadd.f32 %v11659_v17, %v2235_v51  ;;  %v9938_v17 = vld [vmem:[%s11216_s25 + $0xa8] ss:$12 sps:$4 sm:$0xff]   ;;  %v9964_v31 = vld [vmem:[%s11216_s25 + $0x16c] ss:$12 sps:$4 sm:$0xff]  }
 0x764   : > { %v2196_v9 = vpop.f32.mrf.mxu0  ;;  %v9470_v59 = vpop.f32.mrf.mxu1  ;;  %v10007_v51 = vld [vmem:[%s11216_s25 + $0xf8] ss:$12 sps:$4 sm:$0xff]  }
 0x765   : > { %v8424_v24 = vmul.f32 -1.442695, %v2241_v15  ;;  %v2248_v55 = vadd.f32 %v2196_v9, %v11645_v49  ;;  %v9962_v15 = vld [vmem:[%s11216_s25 + $0x168] ss:$12 sps:$4 sm:$0xff]   ;;  %v10008_v9 = vld [vmem:[%s11216_s25 + $0x38] ss:$12 sps:$4 sm:$0xff]  }
 0x766   : > { %v2198_v26 = vpop.f32.mrf.mxu0  ;;  %v2238_v27 = vpop.f32.mrf.mxu1  ;;  %v9967_v59 = vld [vmem:[%s11216_s25 + $0x154] ss:$12 sps:$4 sm:$0xff]  }
 0x767   : > { %10076 = vpow2.f32 %v8424_v24  ;;  %v8425_v47 = vmul.f32 -1.442695, %v2248_v55  ;;  %v10009_v24 = vld [vmem:[%s11216_s25 + $0xe0] ss:$12 sps:$4 sm:$0xff]   ;;  %v9965_v26 = vld [vmem:[%s11216_s25 + $0x150] ss:$12 sps:$4 sm:$0xff]  }
 0x768   : > { %v2199_v33 = vpop.f32.mrf.mxu0  ;;  %v9471_v39 = vpop.f32.mrf.mxu1  ;;  %v10010_v27 = vld [vmem:[%s11216_s25 + $0x20] ss:$12 sps:$4 sm:$0xff]   ;;  %v9971_v55 = vld [vmem:[%s11216_s25 + $0x138] ss:$12 sps:$4 sm:$0xff]  }
 0x769   : > { %10078 = vpow2.f32 %v8425_v47  ;;  %v9973_v33 = vld [vmem:[%s11216_s25 + $0x13c] ss:$12 sps:$4 sm:$0xff]  }
 0x76a   : > { %v10011_v39 = vld [vmem:[%s11216_s25 + $0xc8] ss:$12 sps:$4 sm:$0xff]  }
 0x76b   : > { %v10012_v47 = vld [vmem:[%s11216_s25 + $0x8] ss:$12 sps:$4 sm:$0xff]  }
 0x774   : > { %v10077_v11 = vpop.eup %10076 }
 0x775   : > { %v2245_v10 = vadd.f32 1.0, %v10077_v11  ;;  %v9979_v11 = vld [vmem:[%s11216_s25 + $0x124] ss:$12 sps:$4 sm:$0xff]  }
 0x776   : > { %v10079_v38 = vpop.eup %10078 }
 0x777   : > { %10080 = vrcp.f32 %v2245_v10  ;;  %v2252_v7 = vadd.f32 1.0, %v10079_v38  ;;  %v10013_v10 = vld [vmem:[%s11216_s25 + $0x1b8] ss:$12 sps:$4 sm:$0x3f]   ;;  %v9977_v38 = vld [vmem:[%s11216_s25 + $0x120] ss:$12 sps:$4 sm:$0xff]  }
 0x779   : > { %10082 = vrcp.f32 %v2252_v7  ;;  %v9985_v7 = vld [vmem:[%s11216_s25 + $0x10c] ss:$12 sps:$4 sm:$0xff]  }
 0x784   : > { %v10081_v46 = vpop.eup %10080 }
 0x785   : > { %v2256_v42 = vmul.f32 %v10081_v46, %v2255_v48  ;;  %v8428_v48 = vcombine.low %v12006_v13, %v12006_v13  ;;  %v2777_v46 = vsel %vm1083_vm0, %v10013_v10, 0 }
 0x786   : > { %v10083_v49 = vpop.eup %10082 }
 0x787   : > { %v2257_v40 = vadd.f32 %v2256_v42, %v11621_v45  ;;  %v2259_v56 = vsub.f32 1.0, %v10083_v49  ;;  %v2261_v8 = vmul.f32 %v10083_v49, %v11949_v23  ;;  %v2771_v45 = vsel %vm1083_vm0, %v9970_v60, 0  ;;  %v10001_v23 = vld [vmem:[%s11216_s25 + $0x128] ss:$12 sps:$4 sm:$0xff]   ;;  %v10000_v60 = vld [vmem:[%s11216_s25 + $0xc4] ss:$12 sps:$4 sm:$0xff]  }
 0x788   : > { %v9983_v42 = vld [vmem:[%s11216_s25 + $0x108] ss:$12 sps:$4 sm:$0xff]  }
 0x789   : > { %10084 = vtanh.f32 %v2257_v40  ;;  %v10014_v40 = vld [vmem:[%s11216_s25 + $0x1a0] ss:$12 sps:$4 sm:$0xff]  }
 0x78a   : > { %v9990_v49 = vld [vmem:[%s11216_s25 + $0xf4] ss:$12 sps:$4 sm:$0xff]  }
 0x796   : > { %v10085_v37 = vpop.eup %10084 }
 0x797   : > { %v2260_v54 = vmul.f32 %v10085_v37, %v2259_v56  ;;  %v9988_v56 = vld [vmem:[%s11216_s25 + $0xf0] ss:$12 sps:$4 sm:$0xff]   ;;  %v10015_v37 = vld [vmem:[%s11216_s25 + $0x188] ss:$12 sps:$4 sm:$0xff]  }
 0x799   : > { %v11995_v5 = vadd.f32 %v2261_v8, %v2260_v54  ;;  %v9995_v54 = vld [vmem:[%s11216_s25 + $0xdc] ss:$12 sps:$4 sm:$0xff]   ;;  %v9993_v8 = vld [vmem:[%s11216_s25 + $0xd8] ss:$12 sps:$4 sm:$0xff]  }
 0x79b   : > { %v2263_v35 = vpack.c.bf16 %v11995_v5, %v11995_v5 }
 0x79d   : > { %2297 = vmatmul.mubr.bf16.vlgmr.msra.gmra.mxu0 %v2263_v35  ;;  %9489 = vmatmul.mubr.bf16.vlgmr.msra.gmra.mxu1 %v2263_v35 }
 0x79e   : > { %2780 = vmatpush1.bf16.msra.mxu0 %v9938_v17  ;;  %2831 = vmatpush1.bf16.msra.mxu1 %v2771_v45  ;;  %v9998_v17 = vld [vmem:[%s11216_s25 + $0xc0] ss:$12 sps:$4 sm:$0xff]  }
 0x79f   : > { %2781 = vmatprep.subr.bf16.mxu0 %v9943_v50  ;;  %2832 = vmatprep.subr.bf16.mxu1 %v9976_v52 }
 0x7a0   : > { %2852 = vmatprep.mubr.bf16.mxu1 %v13799_v61  ;;  %2811 = vmatprep.mubr.bf16.mxu0 %v8429_v36  ;;  %v9947_v61 = vld [vmem:[%s11216_s25 + $0x60] ss:$12 sps:$4 sm:$0xff]  }
 0x7a2   : > { %2782 = vmatpush1.bf16.msra.mxu0 %v9941_v28  ;;  %2833 = vmatpush1.bf16.msra.mxu1 %v9974_v29 }
 0x7a3   : > { %2783 = vmatprep.subr.bf16.mxu0 %v9946_v32  ;;  %2834 = vmatprep.subr.bf16.mxu1 %v9982_v34  ;;  %v13805_v34 = vld [vmem:[#allocation22_spill] sm:$0xff] }
 0x7a6   : > { %2784 = vmatpush1.bf16.msra.mxu0 %v9944_v30  ;;  %2835 = vmatpush1.bf16.msra.mxu1 %v9980_v12 }
 0x7a7   : > { %2785 = vmatprep.subr.bf16.mxu0 %v9949_v4  ;;  %9030 = vmatprep.subr.bf16.mxu1 %v9986_v63 }
 0x7a9   : > { %8489 = vmatmul.mubr.msk.bf16.vlgmr.msra.gmra.mxu1 %vm1070_vm1, %v12022_v1 }
 0x7aa   : > { %2786 = vmatpush1.bf16.msra.mxu0 %v9947_v61  ;;  %9031 = vmatpush3.bf16.msra.mxu1 %v9987_v53 }
 0x7ab   : > { %2787 = vmatprep.subr.bf16.mxu0 %v9952_v16  ;;  %9032 = vmatprep.subr.bf16.mxu1 %v9991_v6  ;;  %v10132_v6 = vld [vmem:[%s11227_s27] ss:$0 sm:$0xff] }
 0x7ac   : > { %2893 = vmatprep.mubr.bf16.mxu1 %v8429_v36 }
 0x7ae   : > { %2788 = vmatpush1.bf16.msra.mxu0 %v9950_v41  ;;  %9033 = vmatpush3.bf16.msra.mxu1 %v9992_v18 }
 0x7af   : > { %2789 = vmatprep.subr.bf16.mxu0 %v9955_v19  ;;  %9034 = vmatprep.subr.bf16.mxu1 %v9996_v20  ;;  %v13806_v20 = vld [vmem:[#allocation21_spill] sm:$0xff] }
 0x7b2   : > { %2790 = vmatpush1.bf16.msra.mxu0 %v9953_v21  ;;  %9035 = vmatpush3.bf16.msra.mxu1 %v9997_v22 }
 0x7b3   : > { %2791 = vmatprep.subr.bf16.mxu0 %v9958_v44  ;;  %9036 = vmatprep.subr.bf16.mxu1 %v10001_v23 }
 0x7b6   : > { %2792 = vmatpush1.bf16.msra.mxu0 %v9956_v2  ;;  %9037 = vmatpush3.bf16.msra.mxu1 %v10003_v0 }
 0x7b7   : > { %2793 = vmatprep.subr.bf16.mxu0 %v9961_v3  ;;  %9038 = vmatprep.subr.bf16.mxu1 %v10005_v43 }
 0x7ba   : > { %2794 = vmatpush1.bf16.msra.mxu0 %v9959_v62  ;;  %9039 = vmatpush3.bf16.msra.mxu1 %v10006_v25 }
 0x7bb   : > { %2795 = vmatprep.subr.bf16.mxu0 %v9964_v31  ;;  %9040 = vmatprep.subr.bf16.mxu1 %v10007_v51 }
 0x7be   : > { %2796 = vmatpush2.bf16.msra.mxu0 %v9962_v15  ;;  %9041 = vmatpush3.bf16.msra.mxu1 %v10008_v9  ;;  %v2444_v15 = vld [vmem:[%s11247_s19] sm:$0x7] }
 0x7bf   : > { %2797 = vmatprep.subr.bf16.mxu0 %v9967_v59  ;;  %9042 = vmatprep.subr.bf16.mxu1 %v10009_v24  ;;  %v13807_v24 = vld [vmem:[#allocation20_spill] sm:$0xff] }
 0x7c2   : > { %2798 = vmatpush2.bf16.msra.mxu0 %v9965_v26  ;;  %9043 = vmatpush3.bf16.msra.mxu1 %v10010_v27  ;;  %v13808_v26 = vsub.s32 0, %v13807_v24 }
 0x7c3   : > { %2799 = vmatprep.subr.bf16.mxu0 %v9973_v33  ;;  %9044 = vmatprep.subr.bf16.mxu1 %v10011_v39 }
 0x7c4   : > { %v2449_v27 = vrot.slane %v2444_v15, %v13808_v26 }
 0x7c6   : > { %2800 = vmatpush2.bf16.msra.mxu0 %v9971_v55  ;;  %9045 = vmatpush3.bf16.msra.mxu1 %v10012_v47  ;;  %v13809_v47 = vsub.s32 1, %v13807_v24 }
 0x7c7   : > { %2801 = vmatprep.subr.bf16.mxu0 %v9979_v11  ;;  %9492 = vmatprep.subr.bf16.mxu1 %v13798_v58 }
 0x7c8   : > { %v2453_v11 = vrot.slane %v2444_v15, %v13809_v47 }
 0x7c9   : > { %2894 = vmatmul.mubr.bf16.vlgmr.msra.gmra.mxu1 %v8428_v48 }
 0x7ca   : > { %2802 = vmatpush2.bf16.msra.mxu0 %v9977_v38  ;;  %9493 = vmatpush3.bf16.msra.mxu1 %v2777_v46 }
 0x7cb   : > { %2803 = vmatprep.subr.bf16.mxu0 %v9985_v7  ;;  %9494 = vmatprep.subr.bf16.mxu1 %v13798_v58 }
 0x7cc   : > { %9498 = vmatprep.mubr.msk.bf16.mxu1 %vm10990_vm2, %v13798_v58 }
 0x7ce   : > { %2804 = vmatpush2.bf16.msra.mxu0 %v9983_v42  ;;  %9495 = vmatpush3.bf16.msra.mxu1 %v10014_v40 }
 0x7cf   : > { %2805 = vmatprep.subr.bf16.mxu0 %v9990_v49  ;;  %9496 = vmatprep.subr.bf16.mxu1 %v13798_v58 }
 0x7d2   : > { %2806 = vmatpush2.bf16.msra.mxu0 %v9988_v56  ;;  %9497 = vmatpush3.bf16.msra.mxu1 %v10015_v37 }
 0x7d3   : > { %2807 = vmatprep.subr.bf16.mxu0 %v9995_v54  ;;  %v13810_v54 = vsub.s32 2, %v13807_v24 }
 0x7d5   : > { %9499 = vmatmul.mubr.msk.bf16.vlgmr.msra.gmra.mxu1 %vm1070_vm1, %v12022_v1 }
 0x7d6   : > { %2808 = vmatpush2.bf16.msra.mxu0 %v9993_v8  ;;  %v2457_v8 = vrot.slane %v2444_v15, %v13810_v54 }
 0x7d7   : > { %2809 = vmatprep.subr.bf16.mxu0 %v10000_v60 }
 0x7da   : > { %2810 = vmatpush2.bf16.msra.mxu0 %v9998_v17 }
 0x7dd   : > { %2812 = vmatmul.mubr.bf16.vlgmr.msra.gmra.mxu0 %v8428_v48 }
 0x85d   : > { %v2298_v35 = vpop.f32.mrf.mxu0  ;;  %v2339_v50 = vpop.f32.mrf.mxu1 }
 0x85e   : > { %v2345_v45 = vadd.f32 %v2298_v35, %v11650_v57  ;;  %v2359_v41 = vadd.f32 %v10132_v6, %v2339_v50  ;;  %v8493_v50 = vld [vmem:[%s11232_s28] ss:$0 sm:$0xff] }
 0x85f   : > { %v2300_v52 = vpop.f32.mrf.mxu0  ;;  %v9490_v13 = vpop.f32.mrf.mxu1 }
 0x860   : > { %v8426_v58 = vmul.f32 -1.442695, %v2345_v45  ;;  %v2352_v30 = vadd.f32 %v2300_v52, %v13805_v34 }
 0x861   : > { %v2302_v36 = vpop.f32.mrf.mxu0  ;;  %v2342_v28 = vpop.f32.mrf.mxu1 }
 0x862   : > { %10086 = vpow2.f32 %v8426_v58  ;;  %v8427_v12 = vmul.f32 -1.442695, %v2352_v30 }
 0x863   : > { %v2303_v29 = vpop.f32.mrf.mxu0  ;;  %v9491_v32 = vpop.f32.mrf.mxu1 }
 0x864   : > { %10088 = vpow2.f32 %v8427_v12 }
 0x869   : > { %v2854_v4 = vpop.f32.mrf.mxu1 }
 0x86b   : > { %v2856_v63 = vpop.f32.mrf.mxu1 }
 0x86d   : > { %v2858_v14 = vpop.f32.mrf.mxu1 }
 0x86f   : > { %v10087_v1 = vpop.eup %10086  ;;  %v2859_v61 = vpop.f32.mrf.mxu1 }
 0x870   : > { %v2349_v53 = vadd.f32 1.0, %v10087_v1 }
 0x871   : > { %v10089_v57 = vpop.eup %10088 }
 0x872   : > { %10090 = vrcp.f32 %v2349_v53  ;;  %v2356_v16 = vadd.f32 1.0, %v10089_v57 }
 0x874   : > { %10092 = vrcp.f32 %v2356_v16 }
 0x87f   : > { %v10091_v18 = vpop.eup %10090 }
 0x880   : > { %v2360_v19 = vmul.f32 %v10091_v18, %v2359_v41 }
 0x881   : > { %v10093_v23 = vpop.eup %10092 }
 0x882   : > { %v2361_v21 = vadd.f32 %v2360_v19, %v13806_v20  ;;  %v2363_v3 = vsub.f32 1.0, %v10093_v23  ;;  %v2365_v25 = vmul.f32 %v10093_v23, %v11995_v5 }
 0x884   : > { %10094 = vtanh.f32 %v2361_v21 }
 0x889   : > { %v9046_v22 = vpop.f32.mrf.mxu1 }
 0x88b   : > { %v9047_v44 = vpop.f32.mrf.mxu1 }
 0x88c   : > { %v9048_v37 = vadd.f32 %v9047_v44, %v9046_v22 }
 0x88d   : > { %v9049_v2 = vpop.f32.mrf.mxu1 }
 0x88e   : > { %v2896_v35 = vadd.f32 %v9048_v37, %v2457_v8 }
 0x88f   : > { %v9050_v0 = vpop.f32.mrf.mxu1 }
 0x891   : > { %v10095_v43 = vpop.eup %10094 }
 0x892   : > { %v2364_v62 = vmul.f32 %v10095_v43, %v2363_v3 }
 0x894   : > { %v2366_v31 = vadd.f32 %v2365_v25, %v2364_v62 }
 0x895   : > { %v2935_v51 = vpop.f32.mrf.mxu1 }
 0x896   : > { %2367 = vst [vmem:[#allocation2] sm:$0xff] %v2366_v31  ;;  %v2936_v52 = vadd.f32 %v2935_v51, %v2896_v35 }
 0x897   : > { %v9500_v9 = vpop.f32.mrf.mxu1 }
 0x899   : > { %v2938_v59 = vpop.f32.mrf.mxu1 }
 0x89b   : > { %v9501_v33 = vpop.f32.mrf.mxu1 }
 0x89d   : > { %v2813_v39 = vpop.f32.mrf.mxu0 }
 0x89e   : > { %v2814_v55 = vadd.f32 %v2813_v39, %v2449_v27 }
 0x89f   : > { %v2815_v10 = vpop.f32.mrf.mxu0 }
 0x8a0   : > { %v2855_v38 = vadd.f32 %v2854_v4, %v2814_v55  ;;  %v2816_v48 = vadd.f32 %v2815_v10, %v2453_v11 }
 0x8a1   : > { %v2817_v7 = vpop.f32.mrf.mxu0 }
 0x8a2   : > { %v8491_v5 = vmul.f32 -1.442695, %v2855_v38  ;;  %v2857_v42 = vadd.f32 %v2856_v63, %v2816_v48 }
 0x8a3   : > { %v2818_v46 = vpop.f32.mrf.mxu0 }
 0x8a4   : > { %10096 = vpow2.f32 %v8491_v5  ;;  %v8492_v40 = vmul.f32 -1.442695, %v2857_v42 }
 0x8a6   : > { %10098 = vpow2.f32 %v8492_v40 }
 0x8b1   : > { %v10097_v49 = vpop.eup %10096 }
 0x8b2   : > { %v2944_v56 = vadd.f32 1.0, %v10097_v49 }
 0x8b3   : > { %v10099_v60 = vpop.eup %10098 }
 0x8b4   : > { %10100 = vrcp.f32 %v2944_v56  ;;  %v2950_v17 = vadd.f32 1.0, %v10099_v60 }
 0x8b6   : > { %10102 = vrcp.f32 %v2950_v17 }
 0x8c1   : > { %v10101_v45 = vpop.eup %10100 }
 0x8c2   : > { %v2960_v13 = vmul.f32 %v10101_v45, %v8493_v50 }
 0x8c3   : > { %v10103_v36 = vpop.eup %10102 }
 0x8c4   : > { %v2961_v58 = vadd.f32 %v2960_v13, %v2936_v52  ;;  %v2963_v28 = vsub.f32 1.0, %v10103_v36 }
 0x8c6   : > { %10104 = vtanh.f32 %v2961_v58 }
 0x8d3   : > { %v10105_v29 = vpop.eup %10104 }
 0x8d4   : > { %v2964_v32 = vmul.f32 %v10105_v29, %v2963_v28 }
 0x8d6   : > { %2965 = vst [vmem:[#allocation3] sm:$0xff] %v2964_v32 }
 0x8d7 PF: > { %p8494_p1 = scmp.ne.s32.totalorder %s11091_s17, 1 }
 0x8d9   : > { %2969 = sbr.rel (%p8494_p1) target bundleno = 3685 (0xe65), region = 92 }
 0x8de   : > { %v10133_v34 = vld [vmem:[%s11210_s24 + $0xac] ss:$12 sps:$4 sm:$0xff]   ;;  %v10135_v30 = vld [vmem:[%s11210_s24 + $0xa8] ss:$12 sps:$4 sm:$0xff]   ;;  %v13753_v12 = vmov 0   ;;  %vm3424_vm3 = vcmask 1045504  }
 0x8df   : > { %3527 = vmatprep.mubr.bf16.mxu1 %v13753_v12  ;;  %3434 = vmatprep.subr.bf16.mxu0 %v10133_v34  ;;  %v10136_v4 = vld [vmem:[%s11210_s24 + $0x94] ss:$12 sps:$4 sm:$0xff]   ;;  %v10138_v63 = vld [vmem:[%s11210_s24 + $0x90] ss:$12 sps:$4 sm:$0xff]   ;;  %v10144_v57 = vld [vmem:[%s11210_s24 + $0x78] ss:$12 sps:$4 sm:$0xff]  }
 0x8e0   : > { %3435 = vmatpush1.bf16.msra.mxu0 %v10135_v30  ;;  %v10139_v14 = vld [vmem:[%s11210_s24 + $0x1b4] ss:$12 sps:$4 sm:$0x3f]   ;;  %v10141_v1 = vld [vmem:[%s11210_s24 + $0x1b0] ss:$12 sps:$4 sm:$0x3f]  }
 0x8e1   : > { %3436 = vmatprep.subr.bf16.mxu0 %v10136_v4  ;;  %v10142_v61 = vld [vmem:[%s11210_s24 + $0x7c] ss:$12 sps:$4 sm:$0xff]   ;;  %8561 = vmatprep.subr.msk.bf16.mxu1 %vm3424_vm3, %v10139_v14  ;;  %v3426_v53 = vsel %vm3424_vm3, %v10141_v1, 0  ;;  %v10147_v6 = vld [vmem:[%s11210_s24 + $0x198] ss:$12 sps:$4 sm:$0xff]   ;;  %vm3414_vm4 = vcmask 359424  }
 0x8e2   : > { %v10145_v16 = vld [vmem:[%s11210_s24 + $0x19c] ss:$12 sps:$4 sm:$0xff]   ;;  %3506 = vmatpush1.bf16.msra.mxu1 %v3426_v53  ;;  %v10148_v41 = vld [vmem:[%s11210_s24 + $0x64] ss:$12 sps:$4 sm:$0xff]   ;;  %v10150_v19 = vld [vmem:[%s11210_s24 + $0x60] ss:$12 sps:$4 sm:$0xff]  }
 0x8e3   : > { %3507 = vmatprep.subr.bf16.mxu1 %v10145_v16  ;;  %v10151_v18 = vld [vmem:[%s11210_s24 + $0x184] ss:$12 sps:$4 sm:$0xff]   ;;  %v10153_v20 = vld [vmem:[%s11210_s24 + $0x180] ss:$12 sps:$4 sm:$0xff]   ;;  %v10156_v44 = vld [vmem:[%s11210_s24 + $0x48] ss:$12 sps:$4 sm:$0xff]  }
 0x8e4   : > { %3437 = vmatpush1.bf16.msra.mxu0 %v10138_v63  ;;  %v10154_v21 = vld [vmem:[%s11210_s24 + $0x4c] ss:$12 sps:$4 sm:$0xff]   ;;  %v10157_v22 = vld [vmem:[%s11210_s24 + $0x170] ss:$12 sps:$4 sm:$0xff]   ;;  %v10160_v0 = vld [vmem:[%s11210_s24 + $0x34] ss:$12 sps:$4 sm:$0xff]  }
 0x8e5   : > { %3438 = vmatprep.subr.bf16.mxu0 %v10142_v61  ;;  %v12116_v23 = vld [vmem:[%s13713_s1 + $0x8] ss:$12 sps:$4 sm:$0xff]   ;;  %v10159_v2 = vld [vmem:[%s11210_s24 + $0xb0] ss:$12 sps:$4 sm:$0xff]   ;;  %v10163_v3 = vld [vmem:[%s11210_s24 + $0x158] ss:$12 sps:$4 sm:$0xff]  }
 0x8e6   : > { %3508 = vmatpush1.bf16.msra.mxu1 %v10147_v6  ;;  %v10162_v43 = vld [vmem:[%s11210_s24 + $0x30] ss:$12 sps:$4 sm:$0xff]   ;;  %v10164_v62 = vld [vmem:[%s11210_s24 + $0x98] ss:$12 sps:$4 sm:$0xff]   ;;  %v10168_v31 = vld [vmem:[%s11210_s24 + $0x140] ss:$12 sps:$4 sm:$0xff]  }
 0x8e7   : > { %3509 = vmatprep.subr.bf16.mxu1 %v10151_v18  ;;  %v10165_v25 = vld [vmem:[%s11210_s24 + $0x1c] ss:$12 sps:$4 sm:$0xff]   ;;  %v10167_v51 = vld [vmem:[%s11210_s24 + $0x18] ss:$12 sps:$4 sm:$0xff]   ;;  %v10169_v15 = vld [vmem:[%s11210_s24 + $0x80] ss:$12 sps:$4 sm:$0xff]  }
 0x8e8   : > { %3439 = vmatpush1.bf16.msra.mxu0 %v10144_v57  ;;  %v10170_v9 = vld [vmem:[%s11210_s24 + $0x4] ss:$12 sps:$4 sm:$0xff]   ;;  %v10173_v59 = vld [vmem:[%s11210_s24 + $0x128] ss:$12 sps:$4 sm:$0xff]   ;;  %v10172_v24 = vld [vmem:[%s11210_s24] ss:$12 sps:$4 sm:$0xff]  }
 0x8e9   : > { %3440 = vmatprep.subr.bf16.mxu0 %v10148_v41  ;;  %v12136_v26 = vld [vmem:[%s13713_s1 + $0x20] ss:$12 sps:$4 sm:$0xff]   ;;  %v10174_v27 = vld [vmem:[%s11210_s24 + $0x68] ss:$12 sps:$4 sm:$0xff]   ;;  %v10179_v39 = vld [vmem:[%s11210_s24 + $0x110] ss:$12 sps:$4 sm:$0xff]  }
 0x8ea   : > { %3510 = vmatpush1.bf16.msra.mxu1 %v10153_v20  ;;  %v10175_v33 = vld [vmem:[%s11210_s24 + $0x16c] ss:$12 sps:$4 sm:$0xff]   ;;  %v10177_v55 = vld [vmem:[%s11210_s24 + $0x168] ss:$12 sps:$4 sm:$0xff]   ;;  %v10180_v47 = vld [vmem:[%s11210_s24 + $0x50] ss:$12 sps:$4 sm:$0xff]  }
 0x8eb   : > { %9056 = vmatprep.subr.bf16.mxu1 %v10157_v22  ;;  %v10181_v11 = vld [vmem:[%s11210_s24 + $0x154] ss:$12 sps:$4 sm:$0xff]   ;;  %v10184_v10 = vld [vmem:[%s11210_s24 + $0xf8] ss:$12 sps:$4 sm:$0xff]   ;;  %v10183_v7 = vld [vmem:[%s11210_s24 + $0x150] ss:$12 sps:$4 sm:$0xff]  }
 0x8ec   : > { %3441 = vmatpush1.bf16.msra.mxu0 %v10150_v19  ;;  %v12151_v38 = vld [vmem:[%s13713_s1 + $0x38] ss:$0 sps:$4 sm:$0xff]   ;;  %v10186_v48 = vld [vmem:[%s11210_s24 + $0x13c] ss:$12 sps:$4 sm:$0xff]   ;;  %v10190_v46 = vld [vmem:[%s11210_s24 + $0xe0] ss:$12 sps:$4 sm:$0xff]  }
 0x8ed   : > { %3442 = vmatprep.subr.bf16.mxu0 %v10154_v21  ;;  %8562 = vmatmul.mubr.msk.bf16.vlgmr.msra.gmra.mxu1 %vm3414_vm4, %v12116_v23  ;;  %v10185_v5 = vld [vmem:[%s11210_s24 + $0x38] ss:$12 sps:$4 sm:$0xff]   ;;  %v10191_v40 = vld [vmem:[%s11210_s24 + $0x20] ss:$12 sps:$4 sm:$0xff]   ;;  %v10195_v56 = vld [vmem:[%s11210_s24 + $0xc8] ss:$12 sps:$4 sm:$0xff]  }
 0x8ee   : > { %9057 = vmatpush3.bf16.msra.mxu1 %v10159_v2  ;;  %3537 = vmatprep.mubr.bf16.mxu1 %v13753_v12  ;;  %v10188_v42 = vld [vmem:[%s11210_s24 + $0x138] ss:$12 sps:$4 sm:$0xff]   ;;  %v10194_v54 = vld [vmem:[%s11210_s24 + $0x120] ss:$12 sps:$4 sm:$0xff]   ;;  %v10196_v8 = vld [vmem:[%s11210_s24 + $0x8] ss:$12 sps:$4 sm:$0xff]  }
 0x8ef   : > { %9058 = vmatprep.subr.bf16.mxu1 %v10163_v3  ;;  %v10192_v49 = vld [vmem:[%s11210_s24 + $0x124] ss:$12 sps:$4 sm:$0xff]   ;;  %v10197_v60 = vld [vmem:[%s11210_s24 + $0x10c] ss:$12 sps:$4 sm:$0xff]   ;;  %v10202_v35 = vld [vmem:[%s11210_s24 + $0x108] ss:$12 sps:$4 sm:$0xff]  }
 0x8f0   : > { %3443 = vmatpush1.bf16.msra.mxu0 %v10156_v44  ;;  %v10201_v37 = vld [vmem:[%s13713_s1 + $0x4] ss:$12 sps:$4 sm:$0xff]   ;;  %v10199_v17 = vld [vmem:[%s13713_s1] ss:$12 sps:$4 sm:$0xff]   ;;  %v10208_v50 = vld [vmem:[%s13713_s1 + $0x1c] ss:$12 sps:$4 sm:$0xff]  }
 0x8f1   : > { %3444 = vmatprep.subr.bf16.mxu0 %v10160_v0  ;;  %3466 = vmatprep.mubr.bf16.mxu0 %v10201_v37  ;;  %v10215_v45 = vld [vmem:[%s11210_s24 + $0x1b8] ss:$12 sps:$4 sm:$0x3f]   ;;  %v10203_v52 = vld [vmem:[%s11210_s24 + $0xf4] ss:$12 sps:$4 sm:$0xff]   ;;  %v13755_v13 = vmov 0.0  }
 0x8f2   : > { %9059 = vmatpush3.bf16.msra.mxu1 %v10164_v62  ;;  %v3432_v58 = vsel %vm3424_vm3, %v10215_v45, 0  ;;  %v10205_v36 = vld [vmem:[%s11210_s24 + $0xf0] ss:$12 sps:$4 sm:$0xff]   ;;  %v10221_v32 = vld [vmem:[%s11210_s24 + $0x1a0] ss:$12 sps:$4 sm:$0xff]   ;;  %vm10993_vm5 = vmmov 0  }
 0x8f3   : > { %9060 = vmatprep.subr.bf16.mxu1 %v10168_v31  ;;  %v10206_v28 = vld [vmem:[%s11210_s24 + $0xdc] ss:$12 sps:$4 sm:$0xff]   ;;  %v10210_v30 = vld [vmem:[%s11210_s24 + $0xd8] ss:$12 sps:$4 sm:$0xff]   ;;  %v10214_v1 = vld [vmem:[%s11210_s24 + $0xc0] ss:$12 sps:$4 sm:$0xff]  }
 0x8f4   : > { %3445 = vmatpush1.bf16.msra.mxu0 %v10162_v43  ;;  %v2978_v29 = vld [vmem:[%s13713_s1 + $0x30] sm:$0xff]  ;;  %v10211_v34 = vld [vmem:[%s13713_s1 + $0x18] ss:$12 sps:$4 sm:$0xff]   ;;  %v12220_v41 = vld [vmem:[%s11237_s22 + $0x7c] ss:$12 sps:$4 sm:$0xff]  }
 0x8f5   : > { %3446 = vmatprep.subr.bf16.mxu0 %v10165_v25  ;;  %8563 = vmatmul.mubr.msk.bf16.gmra.mxu1 %vm3414_vm4, %v12136_v26  ;;  %v12191_v4 = vcombine.high %v2978_v29, %v2978_v29  ;;  %v10212_v63 = vld [vmem:[%s11210_s24 + $0xc4] ss:$12 sps:$4 sm:$0xff]   ;;  %v10225_v14 = vld [vmem:[%s11210_s24 + $0x188] ss:$12 sps:$4 sm:$0xff]   ;;  %v12202_v53 = vcombine.low %v2978_v29, %v2978_v29 }
 0x8f6   : > { %9061 = vmatpush3.bf16.msra.mxu1 %v10169_v15  ;;  %3547 = vmatprep.mubr.bf16.mxu1 %v13753_v12  ;;  %v12199_v61 = vld [vmem:[%s11237_s22 + $0xac] ss:$12 sps:$4 sm:$0xff]   ;;  %v12205_v57 = vld [vmem:[%s11237_s22 + $0xa8] ss:$12 sps:$4 sm:$0xff]   ;;  %v12214_v6 = vld [vmem:[%s11237_s22 + $0x90] ss:$12 sps:$4 sm:$0xff]  }
 0x8f7   : > { %9062 = vmatprep.subr.bf16.mxu1 %v10173_v59  ;;  %13811 = vst [vmem:[#allocation23_spill] sm:$0xff] %v12202_v53  ;;  %v12209_v16 = vld [vmem:[%s11237_s22 + $0x94] ss:$12 sps:$4 sm:$0xff]   ;;  %v12223_v18 = vld [vmem:[%s11237_s22 + $0x78] ss:$12 sps:$4 sm:$0xff]  }
 0x8f8   : > { %3447 = vmatpush1.bf16.msra.mxu0 %v10167_v51  ;;  %v12226_v19 = vld [vmem:[%s11237_s22 + $0x64] ss:$12 sps:$4 sm:$0xff]   ;;  %v12234_v21 = vld [vmem:[%s11237_s22 + $0x60] ss:$12 sps:$4 sm:$0xff]   ;;  %v12250_v2 = vld [vmem:[%s11237_s22 + $0x48] ss:$12 sps:$4 sm:$0xff]  }
 0x8f9   : > { %3448 = vmatprep.subr.bf16.mxu0 %v10170_v9  ;;  %v12230_v20 = vld [vmem:[%s11237_s22 + $0xb0] ss:$12 sps:$4 sm:$0xff]   ;;  %v12239_v22 = vld [vmem:[%s11237_s22 + $0x4c] ss:$12 sps:$4 sm:$0xff]   ;;  %v12282_v25 = vld [vmem:[%s11237_s22 + $0x68] ss:$12 sps:$4 sm:$0xff]  }
 0x8fa   : > { %9063 = vmatpush3.bf16.msra.mxu1 %v10174_v27  ;;  %v12244_v44 = vld [vmem:[%s11237_s22 + $0x98] ss:$12 sps:$4 sm:$0xff]   ;;  %v12260_v0 = vld [vmem:[%s11237_s22 + $0x80] ss:$12 sps:$4 sm:$0xff]   ;;  %v12263_v3 = vld [vmem:[%s11237_s22 + $0x30] ss:$12 sps:$4 sm:$0xff]  }
 0x8fb   : > { %9064 = vmatprep.subr.bf16.mxu1 %v10179_v39  ;;  %v12270_v43 = vld [vmem:[%s11237_s22 + $0x1c] ss:$12 sps:$4 sm:$0xff]   ;;  %v12278_v62 = vld [vmem:[%s11237_s22 + $0x18] ss:$12 sps:$4 sm:$0xff]   ;;  %v12292_v51 = vld [vmem:[%s11237_s22] ss:$12 sps:$4 sm:$0xff]  }
 0x8fc   : > { %3449 = vmatpush1.bf16.msra.mxu0 %v10172_v24  ;;  %v12285_v31 = vld [vmem:[%s11237_s22 + $0x4] ss:$12 sps:$4 sm:$0xff]   ;;  %v12315_v59 = vld [vmem:[%s11237_s22 + $0x20] ss:$12 sps:$4 sm:$0xff]   ;;  %v12323_v24 = vld [vmem:[%s11237_s22 + $0x8] ss:$12 sps:$4 sm:$0xff]  }
 0x8fd   : > { %3450 = vmatprep.subr.bf16.mxu0 %v10175_v33  ;;  %8564 = vmatmul.mubr.msk.bf16.gmra.mxu1 %vm3414_vm4, %v12151_v38  ;;  %v12295_v15 = vld [vmem:[%s11237_s22 + $0x50] ss:$12 sps:$4 sm:$0xff]   ;;  %v12308_v9 = vld [vmem:[%s11237_s22 + $0x38] ss:$12 sps:$4 sm:$0xff]  }
 0x8fe   : > { %9065 = vmatpush3.bf16.msra.mxu1 %v10180_v47  ;;  %3588 = vmatprep.mubr.bf16.mxu1 %v10201_v37 }
 0x8ff   : > { %9066 = vmatprep.subr.bf16.mxu1 %v10184_v10 }
 0x900   : > { %3451 = vmatpush2.bf16.msra.mxu0 %v10177_v55 }
 0x901   : > { %3452 = vmatprep.subr.bf16.mxu0 %v10181_v11 }
 0x902   : > { %9067 = vmatpush3.bf16.msra.mxu1 %v10185_v5 }
 0x903   : > { %9068 = vmatprep.subr.bf16.mxu1 %v10190_v46  ;;  %v3058_v46 = vlaneseq }
 0x904   : > { %3453 = vmatpush2.bf16.msra.mxu0 %v10183_v7 }
 0x905   : > { %3454 = vmatprep.subr.bf16.mxu0 %v10186_v48 }
 0x906   : > { %9069 = vmatpush3.bf16.msra.mxu1 %v10191_v40 }
 0x907   : > { %9070 = vmatprep.subr.bf16.mxu1 %v10195_v56 }
 0x908   : > { %3455 = vmatpush2.bf16.msra.mxu0 %v10188_v42  ;;  %v12371_v42 = vshrl.u32 %v3058_v46, 7 }
 0x909   : > { %3456 = vmatprep.subr.bf16.mxu0 %v10192_v49 }
 0x90a   : > { %9071 = vmatpush3.bf16.msra.mxu1 %v10196_v8  ;;  %13812 = vst [vmem:[#allocation24_spill] sm:$0xff] %v12371_v42  ;;  %v13752_v49 = vsub.s32 2, %v12371_v42  ;;  %v3056_v8 = vld [vmem:[%s11242_s26] sm:$0x7] }
 0x90b   : > { %9502 = vmatprep.subr.bf16.mxu1 %v13755_v13 }
 0x90c   : > { %3457 = vmatpush2.bf16.msra.mxu0 %v10194_v54 }
 0x90d   : > { %3458 = vmatprep.subr.bf16.mxu0 %v10197_v60  ;;  %3589 = vmatmul.mubr.bf16.vlgmr.msra.gmra.mxu1 %v10199_v17  ;;  %v12379_v60 = vrot.slane %v3056_v8, %v13752_v49 }
 0x90e   : > { %3596 = vmatprep.mubr.bf16.mxu1 %v10208_v50  ;;  %9503 = vmatpush3.bf16.msra.mxu1 %v3432_v58 }
 0x90f   : > { %9504 = vmatprep.subr.bf16.mxu1 %v13755_v13 }
 0x910   : > { %3459 = vmatpush2.bf16.msra.mxu0 %v10202_v35 }
 0x911   : > { %3460 = vmatprep.subr.bf16.mxu0 %v10203_v52 }
 0x912   : > { %9505 = vmatpush3.bf16.msra.mxu1 %v10221_v32 }
 0x913   : > { %9506 = vmatprep.subr.bf16.mxu1 %v13755_v13 }
 0x914   : > { %3461 = vmatpush2.bf16.msra.mxu0 %v10205_v36 }
 0x915   : > { %3462 = vmatprep.subr.bf16.mxu0 %v10206_v28  ;;  %3597 = vmatmul.mubr.bf16.gmra.mxu1 %v10211_v34 }
 0x916   : > { %3604 = vmatprep.mubr.bf16.mxu1 %v12191_v4  ;;  %9507 = vmatpush3.bf16.msra.mxu1 %v10225_v14  ;;  %v13758_v14 = vsub.s32 1, %v12371_v42 }
 0x917   : > { %9520 = vmatprep.subr.bf16.mxu1 %v13755_v13 }
 0x918   : > { %3463 = vmatpush2.bf16.msra.mxu0 %v10210_v30 }
 0x919   : > { %3464 = vmatprep.subr.bf16.mxu0 %v10212_v63 }
 0x91c   : > { %3465 = vmatpush2.bf16.msra.mxu0 %v10214_v1 }
 0x91d   : > { %3835 = vmatprep.subr.bf16.mxu0 %v12199_v61  ;;  %3605 = vmatmul.mubr.bf16.gmra.mxu1 %v12202_v53 }
 0x91e   : > { %9508 = vmatprep.mubr.msk.bf16.mxu1 %vm10993_vm5, %v13755_v13 }
 0x91f   : > { %3467 = vmatmul.mubr.bf16.vlgmr.msra.gmra.mxu0 %v10199_v17 }
 0x920   : > { %3836 = vmatpush1.bf16.msra.mxu0 %v12205_v57  ;;  %3476 = vmatprep.mubr.bf16.mxu0 %v10208_v50 }
 0x921   : > { %3837 = vmatprep.subr.bf16.mxu0 %v12209_v16 }
 0x924   : > { %3838 = vmatpush1.bf16.msra.mxu0 %v12214_v6 }
 0x925   : > { %3839 = vmatprep.subr.bf16.mxu0 %v12220_v41  ;;  %9509 = vmatmul.mubr.msk.bf16.vlgmr.msra.gmra.mxu1 %vm3414_vm4, %v12116_v23  ;;  %v12254_v23 = vld [vmem:[%s11237_s22 + $0x34] ss:$12 sps:$4 sm:$0xff]  }
 0x926   : > { %9512 = vmatprep.mubr.msk.bf16.mxu1 %vm10993_vm5, %v13755_v13  ;;  %9521 = vmatpush3.bf16.msra.mxu1 %v12230_v20 }
 0x927   : > { %3477 = vmatmul.mubr.bf16.gmra.mxu0 %v10211_v34  ;;  %9522 = vmatprep.subr.bf16.mxu1 %v13755_v13  ;;  %v13757_v34 = vsub.s32 0, %v12371_v42 }
 0x928   : > { %3840 = vmatpush1.bf16.msra.mxu0 %v12223_v18  ;;  %3486 = vmatprep.mubr.bf16.mxu0 %v12191_v4 }
 0x929   : > { %3841 = vmatprep.subr.bf16.mxu0 %v12226_v19  ;;  %v3061_v46 = vrot.slane %v3056_v8, %v13757_v34 }
 0x92a   : > { %9523 = vmatpush3.bf16.msra.mxu1 %v12244_v44 }
 0x92b   : > { %9524 = vmatprep.subr.bf16.mxu1 %v13755_v13 }
 0x92c   : > { %3842 = vmatpush1.bf16.msra.mxu0 %v12234_v21 }
 0x92d   : > { %3843 = vmatprep.subr.bf16.mxu0 %v12239_v22  ;;  %9513 = vmatmul.mubr.msk.bf16.gmra.mxu1 %vm3414_vm4, %v12136_v26 }
 0x92e   : > { %9516 = vmatprep.mubr.msk.bf16.mxu1 %vm10993_vm5, %v13755_v13  ;;  %9525 = vmatpush3.bf16.msra.mxu1 %v12260_v0 }
 0x92f   : > { %3487 = vmatmul.mubr.bf16.gmra.mxu0 %v12202_v53  ;;  %9526 = vmatprep.subr.bf16.mxu1 %v13755_v13 }
 0x930   : > { %3844 = vmatpush1.bf16.msra.mxu0 %v12250_v2  ;;  %3867 = vmatprep.mubr.bf16.mxu0 %v13753_v12 }
 0x931   : > { %3845 = vmatprep.subr.bf16.mxu0 %v12254_v23 }
 0x932   : > { %9527 = vmatpush3.bf16.msra.mxu1 %v12282_v25 }
 0x933   : > { %9528 = vmatprep.subr.bf16.mxu1 %v13755_v13 }
 0x934   : > { %3846 = vmatpush1.bf16.msra.mxu0 %v12263_v3 }
 0x935   : > { %3847 = vmatprep.subr.bf16.mxu0 %v12270_v43  ;;  %9517 = vmatmul.mubr.msk.bf16.gmra.mxu1 %vm3414_vm4, %v12151_v38 }
 0x936   : > { %9536 = vmatprep.mubr.msk.bf16.mxu1 %vm10993_vm5, %v13755_v13  ;;  %9529 = vmatpush3.bf16.msra.mxu1 %v12295_v15 }
 0x937   : > { %9530 = vmatprep.subr.bf16.mxu1 %v13755_v13 }
 0x938   : > { %3848 = vmatpush1.bf16.msra.mxu0 %v12278_v62 }
 0x939   : > { %3849 = vmatprep.subr.bf16.mxu0 %v12285_v31 }
 0x93a   : > { %9531 = vmatpush3.bf16.msra.mxu1 %v12308_v9 }
 0x93b   : > { %9532 = vmatprep.subr.bf16.mxu1 %v13755_v13 }
 0x93c   : > { %3850 = vmatpush1.bf16.msra.mxu0 %v12292_v51 }
 0x93d   : > { %3939 = vmatprep.subr.bf16.mxu0 %v12199_v61 }
 0x93e   : > { %9533 = vmatpush3.bf16.msra.mxu1 %v12315_v59 }
 0x93f   : > { %3868 = vmatmul.mubr.bf16.vlgmr.msra.gmra.mxu0 %v13753_v12  ;;  %9534 = vmatprep.subr.bf16.mxu1 %v13755_v13 }
 0x940   : > { %3940 = vmatpush1.bf16.msra.mxu0 %v12205_v57  ;;  %3971 = vmatprep.mubr.bf16.mxu0 %v13753_v12 }
 0x941   : > { %3941 = vmatprep.subr.bf16.mxu0 %v12209_v16 }
 0x942   : > { %9535 = vmatpush3.bf16.msra.mxu1 %v12323_v24 }
 0x943   : > { %9540 = vmatprep.subr.bf16.mxu1 %v13755_v13 }
 0x944   : > { %3942 = vmatpush1.bf16.msra.mxu0 %v12214_v6 }
 0x945   : > { %3943 = vmatprep.subr.bf16.mxu0 %v12220_v41  ;;  %9537 = vmatmul.mubr.bf16.vlgmr.msra.gmra.mxu1 %v13753_v12 }
 0x946   : > { %9541 = vmatpush3.bf16.msra.mxu1 %v12230_v20  ;;  %9556 = vmatprep.mubr.msk.bf16.mxu1 %vm10993_vm5, %v13755_v13 }
 0x947   : > { %9542 = vmatprep.subr.bf16.mxu1 %v13755_v13 }
 0x948   : > { %3944 = vmatpush1.bf16.msra.mxu0 %v12223_v18 }
 0x949   : > { %3945 = vmatprep.subr.bf16.mxu0 %v12226_v19 }
 0x94a   : > { %9543 = vmatpush3.bf16.msra.mxu1 %v12244_v44 }
 0x94b   : > { %9544 = vmatprep.subr.bf16.mxu1 %v13755_v13 }
 0x94c   : > { %3946 = vmatpush1.bf16.msra.mxu0 %v12234_v21 }
 0x94d   : > { %3947 = vmatprep.subr.bf16.mxu0 %v12239_v22 }
 0x94e   : > { %9545 = vmatpush3.bf16.msra.mxu1 %v12260_v0 }
 0x94f   : > { %9546 = vmatprep.subr.bf16.mxu1 %v13755_v13 }
 0x950   : > { %3948 = vmatpush1.bf16.msra.mxu0 %v12250_v2 }
 0x951   : > { %3949 = vmatprep.subr.bf16.mxu0 %v12254_v23 }
 0x952   : > { %9547 = vmatpush3.bf16.msra.mxu1 %v12282_v25 }
 0x953   : > { %9548 = vmatprep.subr.bf16.mxu1 %v13755_v13 }
 0x954   : > { %3950 = vmatpush1.bf16.msra.mxu0 %v12263_v3 }
 0x955   : > { %3951 = vmatprep.subr.bf16.mxu0 %v12270_v43 }
 0x956   : > { %9549 = vmatpush3.bf16.msra.mxu1 %v12295_v15 }
 0x957   : > { %9550 = vmatprep.subr.bf16.mxu1 %v13755_v13 }
 0x958   : > { %3952 = vmatpush1.bf16.msra.mxu0 %v12278_v62 }
 0x959   : > { %3953 = vmatprep.subr.bf16.mxu0 %v12285_v31 }
 0x95a   : > { %9551 = vmatpush3.bf16.msra.mxu1 %v12308_v9 }
 0x95b   : > { %9552 = vmatprep.subr.bf16.mxu1 %v13755_v13 }
 0x95c   : > { %3954 = vmatpush1.bf16.msra.mxu0 %v12292_v51 }
 0x95d   : > { %4043 = vmatprep.subr.bf16.mxu0 %v12199_v61 }
 0x95e   : > { %9553 = vmatpush3.bf16.msra.mxu1 %v12315_v59 }
 0x95f   : > { %9554 = vmatprep.subr.bf16.mxu1 %v13755_v13 }
 0x962   : > { %9555 = vmatpush3.bf16.msra.mxu1 %v12323_v24 }
 0x963   : > { %9560 = vmatprep.subr.bf16.mxu1 %v13755_v13 }
 0x9ad   : > { %v12361_v26 = vpop.f32.mrf.mxu1 }
 0x9af   : > { %v12363_v27 = vpop.f32.mrf.mxu1 }
 0x9b1   : > { %v3533_v33 = vpop.f32.mrf.mxu1 }
 0x9b3   : > { %v3535_v39 = vpop.f32.mrf.mxu1 }
 0x9b5   : > { %v3539_v55 = vpop.f32.mrf.mxu1 }
 0x9b7   : > { %v3541_v47 = vpop.f32.mrf.mxu1 }
 0x9b9   : > { %v3543_v11 = vpop.f32.mrf.mxu1 }
 0x9bb   : > { %v12365_v10 = vpop.f32.mrf.mxu1 }
 0x9bd   : > { %v12367_v38 = vpop.f32.mrf.mxu1 }
 0x9bf   : > { %v12369_v7 = vpop.f32.mrf.mxu1 }
 0x9c1   : > { %v3553_v5 = vpop.f32.mrf.mxu1 }
 0x9c3   : > { %v3554_v48 = vpop.f32.mrf.mxu1 }
 0x9cd   : > { %v9072_v40 = vpop.f32.mrf.mxu1 }
 0x9cf   : > { %v9073_v56 = vpop.f32.mrf.mxu1 }
 0x9d0   : > { %v12374_v37 = vadd.f32 %v9073_v56, %v9072_v40 }
 0x9d1   : > { %v9075_v54 = vpop.f32.mrf.mxu1 }
 0x9d3   : > { %v9076_v17 = vpop.f32.mrf.mxu1 }
 0x9d4   : > { %v9077_v35 = vadd.f32 %v9076_v17, %v9075_v54  ;;  %v3065_v17 = vrot.slane %v3056_v8, %v13758_v14 }
 0x9d5   : > { %v9078_v50 = vpop.f32.mrf.mxu1 }
 0x9d6   : > { %v3594_v45 = vadd.f32 %v9077_v35, %v12379_v60 }
 0x9d7   : > { %v9079_v52 = vpop.f32.mrf.mxu1 }
 0x9d8   : > { %v9080_v58 = vadd.f32 %v9079_v52, %v9078_v50 }
 0x9d9   : > { %v9081_v36 = vpop.f32.mrf.mxu1 }
 0x9da   : > { %v3599_v28 = vadd.f32 %v9080_v58, %v12379_v60 }
 0x9db   : > { %v9082_v29 = vpop.f32.mrf.mxu1 }
 0x9dc   : > { %v9083_v32 = vadd.f32 %v9082_v29, %v9081_v36 }
 0x9dd   : > { %v9084_v63 = vpop.f32.mrf.mxu1 }
 0x9de   : > { %v3602_v1 = vadd.f32 %v9083_v32, %v12379_v60 }
 0x9df   : > { %v3468_v30 = vpop.f32.mrf.mxu0  ;;  %v9085_v48 = vpop.f32.mrf.mxu1 }
 0x9e0   : > { %v9086_v40 = vadd.f32 %v9085_v48, %v9084_v63 }
 0x9e1   : > { %v3470_v5 = vpop.f32.mrf.mxu0  ;;  %v9087_v54 = vpop.f32.mrf.mxu1 }
 0x9e2   : > { %v3607_v50 = vadd.f32 %v9086_v40, %v12379_v60 }
 0x9e3   : > { %v3472_v56 = vpop.f32.mrf.mxu0  ;;  %v9088_v58 = vpop.f32.mrf.mxu1 }
 0x9e4   : > { %v3473_v35 = vadd.f32 %v3472_v56, %v3061_v46 }
 0x9e5   : > { %v3474_v52 = vpop.f32.mrf.mxu0  ;;  %v12393_v49 = vpop.f32.mrf.mxu1 }
 0x9e6   : > { %v3475_v36 = vadd.f32 %v3474_v52, %v3065_v17  ;;  %v12391_v29 = vadd.f32 %v3533_v33, %v3473_v35 }
 0x9e7   : > { %v3478_v32 = vpop.f32.mrf.mxu0  ;;  %v9510_v48 = vpop.f32.mrf.mxu1 }
 0x9e8   : > { %v3479_v12 = vadd.f32 %v3478_v32, %v3061_v46  ;;  %v12395_v13 = vadd.f32 %v3535_v39, %v3475_v36 }
 0x9e9   : > { %v3480_v63 = vpop.f32.mrf.mxu0  ;;  %v3649_v56 = vpop.f32.mrf.mxu1 }
 0x9ea   : > { %v3481_v54 = vadd.f32 %v3480_v63, %v3065_v17  ;;  %v12397_v34 = vadd.f32 %v3539_v55, %v3479_v12  ;;  %v12399_v40 = vadd.f32 %v3649_v56, %v3594_v45 }
 0x9eb   : > { %v3482_v8 = vpop.f32.mrf.mxu0  ;;  %v9511_v35 = vpop.f32.mrf.mxu1 }
 0x9ec   : > { %v3483_v14 = vadd.f32 %v3482_v8, %v3061_v46  ;;  %v12401_v58 = vadd.f32 %v3541_v47, %v3481_v54  ;;  %v3469_v35 = vadd.f32 %v3468_v30, %v3061_v46 }
 0x9ed   : > { %v3484_v33 = vpop.f32.mrf.mxu0  ;;  %v3654_v39 = vpop.f32.mrf.mxu1 }
 0x9ee   : > { %v3485_v52 = vadd.f32 %v3484_v33, %v3065_v17  ;;  %v12403_v42 = vadd.f32 %v3543_v11, %v3483_v14  ;;  %v12405_v53 = vadd.f32 %v3654_v39, %v3599_v28  ;;  %v3530_v39 = vadd.f32 %v12361_v26, %v3469_v35 }
 0x9ef   : > { %v3488_v32 = vpop.f32.mrf.mxu0  ;;  %v9514_v63 = vpop.f32.mrf.mxu1 }
 0x9f0   : > { %v3489_v36 = vadd.f32 %v3488_v32, %v3061_v46  ;;  %v12408_v12 = vadd.f32 %v12365_v10, %v3485_v52 }
 0x9f1   : > { %v3490_v55 = vpop.f32.mrf.mxu0  ;;  %v3657_v47 = vpop.f32.mrf.mxu1 }
 0x9f2   : > { %v3491_v48 = vadd.f32 %v3490_v55, %v3065_v17  ;;  %v12411_v45 = vadd.f32 %v12367_v38, %v3489_v36  ;;  %v12413_v8 = vadd.f32 %v3657_v47, %v3602_v1  ;;  %v3471_v36 = vadd.f32 %v3470_v5, %v3065_v17  ;;  %v12423_v17 = vld [vmem:[%s11227_s27] ss:$0 sm:$0xff] }
 0x9f3   : > { %v3492_v54 = vpop.f32.mrf.mxu0  ;;  %v9515_v56 = vpop.f32.mrf.mxu1 }
 0x9f4   : > { %v12416_v11 = vadd.f32 %v12369_v7, %v3491_v48  ;;  %v3532_v7 = vadd.f32 %v12363_v27, %v3471_v36 }
 0x9f5   : > { %v3493_v14 = vpop.f32.mrf.mxu0  ;;  %v3662_v28 = vpop.f32.mrf.mxu1 }
 0x9f6   : > { %v12418_v33 = vadd.f32 %v3662_v28, %v3607_v50 }
 0x9f7   : > { %v9518_v10 = vpop.f32.mrf.mxu1 }
 0x9f8   : > { %v3591_v10 = vadd.f32 %v12374_v37, %v12379_v60  ;;  %v13814_v60 = vmov 0  }
 0x9f9   : > { %v3665_v52 = vpop.f32.mrf.mxu1 }
 0x9fb   : > { %v9519_v32 = vpop.f32.mrf.mxu1 }
 0x9fc   : > { %v3647_v32 = vadd.f32 %v12393_v49, %v3591_v10  ;;  %v13813_v49 = vmov 0.0  }
 0x9ff   : > { %v3869_v38 = vpop.f32.mrf.mxu0 }
 0xa00   : > { %v3916_v55 = vadd.f32 %v3869_v38, %v3530_v39 }
 0xa01   : > { %v3871_v63 = vpop.f32.mrf.mxu0 }
 0xa02   : > { %v8593_v1 = vmul.f32 -1.442695, %v3916_v55  ;;  %v3923_v54 = vadd.f32 %v3871_v63, %v3532_v7 }
 0xa03   : > { %v3873_v47 = vpop.f32.mrf.mxu0 }
 0xa04   : > { %10328 = vpow2.f32 %v8593_v1  ;;  %v8594_v50 = vmul.f32 -1.442695, %v3923_v54 }
 0xa05   : > { %v3874_v48 = vpop.f32.mrf.mxu0  ;;  %v3910_v14 = vpop.f32.mrf.mxu1 }
 0xa06   : > { %10330 = vpow2.f32 %v8594_v50  ;;  %v3930_v27 = vadd.f32 %v12423_v17, %v3910_v14 }
 0xa07   : > { %v9538_v56 = vpop.f32.mrf.mxu1 }
 0xa09   : > { %v3913_v30 = vpop.f32.mrf.mxu1 }
 0xa0b   : > { %v9539_v28 = vpop.f32.mrf.mxu1 }
 0xa11   : > { %v10329_v46 = vpop.eup %10328 }
 0xa12   : > { %v3920_v26 = vadd.f32 1.0, %v10329_v46 }
 0xa13   : > { %v10331_v5 = vpop.eup %10330 }
 0xa14   : > { %10332 = vrcp.f32 %v3920_v26  ;;  %v3927_v35 = vadd.f32 1.0, %v10331_v5 }
 0xa16   : > { %10334 = vrcp.f32 %v3927_v35 }
 0xa21   : > { %v10333_v52 = vpop.eup %10332 }
 0xa22   : > { %v3931_v39 = vmul.f32 %v10333_v52, %v3930_v27 }
 0xa23   : > { %v10335_v36 = vpop.eup %10334 }
 0xa24   : > { %v3932_v38 = vadd.f32 %v3931_v39, %v3647_v32  ;;  %v3934_v55 = vsub.f32 1.0, %v10335_v36  ;;  %v3936_v47 = vmul.f32 0.0, %v10335_v36 }
 0xa26   : > { %10336 = vtanh.f32 %v3932_v38 }
 0xa33   : > { %v10337_v63 = vpop.eup %10336 }
 0xa34   : > { %v3935_v1 = vmul.f32 %v10337_v63, %v3934_v55 }
 0xa36   : > { %v12429_v7 = vadd.f32 %v3936_v47, %v3935_v1 }
 0xa38   : > { %v3938_v37 = vpack.c.bf16 %v12429_v7, %v12429_v7 }
 0xa3a   : > { %3972 = vmatmul.mubr.bf16.vlgmr.msra.gmra.mxu0 %v3938_v37  ;;  %9557 = vmatmul.mubr.bf16.vlgmr.msra.gmra.mxu1 %v3938_v37 }
 0xa3b   : > { %4044 = vmatpush1.bf16.msra.mxu0 %v12205_v57  ;;  %9561 = vmatpush3.bf16.msra.mxu1 %v12230_v20 }
 0xa3c   : > { %4045 = vmatprep.subr.bf16.mxu0 %v12209_v16  ;;  %9562 = vmatprep.subr.bf16.mxu1 %v13813_v49 }
 0xa3d   : > { %4075 = vmatprep.mubr.bf16.mxu0 %v13814_v60  ;;  %9576 = vmatprep.mubr.msk.bf16.mxu1 %vm10993_vm5, %v13813_v49 }
 0xa3f   : > { %4046 = vmatpush1.bf16.msra.mxu0 %v12214_v6  ;;  %9563 = vmatpush3.bf16.msra.mxu1 %v12244_v44 }
 0xa40   : > { %4047 = vmatprep.subr.bf16.mxu0 %v12220_v41  ;;  %9564 = vmatprep.subr.bf16.mxu1 %v13813_v49 }
 0xa43   : > { %4048 = vmatpush1.bf16.msra.mxu0 %v12223_v18  ;;  %9565 = vmatpush3.bf16.msra.mxu1 %v12260_v0 }
 0xa44   : > { %4049 = vmatprep.subr.bf16.mxu0 %v12226_v19  ;;  %9566 = vmatprep.subr.bf16.mxu1 %v13813_v49 }
 0xa47   : > { %4050 = vmatpush1.bf16.msra.mxu0 %v12234_v21  ;;  %9567 = vmatpush3.bf16.msra.mxu1 %v12282_v25 }
 0xa48   : > { %4051 = vmatprep.subr.bf16.mxu0 %v12239_v22  ;;  %9568 = vmatprep.subr.bf16.mxu1 %v13813_v49 }
 0xa4b   : > { %4052 = vmatpush1.bf16.msra.mxu0 %v12250_v2  ;;  %9569 = vmatpush3.bf16.msra.mxu1 %v12295_v15 }
 0xa4c   : > { %4053 = vmatprep.subr.bf16.mxu0 %v12254_v23  ;;  %9570 = vmatprep.subr.bf16.mxu1 %v13813_v49 }
 0xa4f   : > { %4054 = vmatpush1.bf16.msra.mxu0 %v12263_v3  ;;  %9571 = vmatpush3.bf16.msra.mxu1 %v12308_v9 }
 0xa50   : > { %4055 = vmatprep.subr.bf16.mxu0 %v12270_v43  ;;  %9572 = vmatprep.subr.bf16.mxu1 %v13813_v49 }
 0xa53   : > { %4056 = vmatpush1.bf16.msra.mxu0 %v12278_v62  ;;  %9573 = vmatpush3.bf16.msra.mxu1 %v12315_v59 }
 0xa54   : > { %4057 = vmatprep.subr.bf16.mxu0 %v12285_v31  ;;  %9574 = vmatprep.subr.bf16.mxu1 %v13813_v49 }
 0xa57   : > { %4058 = vmatpush1.bf16.msra.mxu0 %v12292_v51  ;;  %9575 = vmatpush3.bf16.msra.mxu1 %v12323_v24 }
 0xa58   : > { %4147 = vmatprep.subr.bf16.mxu0 %v12199_v61  ;;  %9580 = vmatprep.subr.bf16.mxu1 %v13813_v49 }
 0xafa   : > { %v3973_v48 = vpop.f32.mrf.mxu0  ;;  %v4014_v54 = vpop.f32.mrf.mxu1 }
 0xafb   : > { %v4020_v50 = vadd.f32 %v3973_v48, %v12391_v29  ;;  %v4034_v38 = vadd.f32 %v12423_v17, %v4014_v54 }
 0xafc   : > { %v3975_v14 = vpop.f32.mrf.mxu0  ;;  %v9558_v56 = vpop.f32.mrf.mxu1 }
 0xafd   : > { %v8595_v30 = vmul.f32 -1.442695, %v4020_v50  ;;  %v4027_v10 = vadd.f32 %v3975_v14, %v12395_v13 }
 0xafe   : > { %v3977_v46 = vpop.f32.mrf.mxu0  ;;  %v4017_v28 = vpop.f32.mrf.mxu1 }
 0xaff   : > { %10338 = vpow2.f32 %v8595_v30  ;;  %v8596_v35 = vmul.f32 -1.442695, %v4027_v10 }
 0xb00   : > { %v3978_v26 = vpop.f32.mrf.mxu0  ;;  %v9559_v5 = vpop.f32.mrf.mxu1 }
 0xb01   : > { %10340 = vpow2.f32 %v8596_v35 }
 0xb0c   : > { %v10339_v27 = vpop.eup %10338 }
 0xb0d   : > { %v4024_v52 = vadd.f32 1.0, %v10339_v27 }
 0xb0e   : > { %v10341_v32 = vpop.eup %10340 }
 0xb0f   : > { %10342 = vrcp.f32 %v4024_v52  ;;  %v4031_v39 = vadd.f32 1.0, %v10341_v32 }
 0xb11   : > { %10344 = vrcp.f32 %v4031_v39 }
 0xb1c   : > { %v10343_v29 = vpop.eup %10342 }
 0xb1d   : > { %v4035_v36 = vmul.f32 %v10343_v29, %v4034_v38 }
 0xb1e   : > { %v10345_v63 = vpop.eup %10344 }
 0xb1f   : > { %v4036_v55 = vadd.f32 %v4035_v36, %v12399_v40  ;;  %v4038_v1 = vsub.f32 1.0, %v10345_v63  ;;  %v4040_v13 = vmul.f32 %v10345_v63, %v12429_v7 }
 0xb21   : > { %10346 = vtanh.f32 %v4036_v55 }
 0xb2e   : > { %v10347_v47 = vpop.eup %10346 }
 0xb2f   : > { %v4039_v37 = vmul.f32 %v10347_v47, %v4038_v1 }
 0xb31   : > { %v12473_v48 = vadd.f32 %v4040_v13, %v4039_v37 }
 0xb33   : > { %v4042_v50 = vpack.c.bf16 %v12473_v48, %v12473_v48 }
 0xb35   : > { %4076 = vmatmul.mubr.bf16.vlgmr.msra.gmra.mxu0 %v4042_v50  ;;  %9577 = vmatmul.mubr.bf16.vlgmr.msra.gmra.mxu1 %v4042_v50 }
 0xb36   : > { %4148 = vmatpush1.bf16.msra.mxu0 %v12205_v57  ;;  %9581 = vmatpush3.bf16.msra.mxu1 %v12230_v20 }
 0xb37   : > { %4149 = vmatprep.subr.bf16.mxu0 %v12209_v16  ;;  %9582 = vmatprep.subr.bf16.mxu1 %v13813_v49 }
 0xb38   : > { %4179 = vmatprep.mubr.bf16.mxu0 %v13814_v60  ;;  %9596 = vmatprep.mubr.msk.bf16.mxu1 %vm10993_vm5, %v13813_v49 }
 0xb3a   : > { %4150 = vmatpush1.bf16.msra.mxu0 %v12214_v6  ;;  %9583 = vmatpush3.bf16.msra.mxu1 %v12244_v44 }
 0xb3b   : > { %4151 = vmatprep.subr.bf16.mxu0 %v12220_v41  ;;  %9584 = vmatprep.subr.bf16.mxu1 %v13813_v49 }
 0xb3e   : > { %4152 = vmatpush1.bf16.msra.mxu0 %v12223_v18  ;;  %9585 = vmatpush3.bf16.msra.mxu1 %v12260_v0 }
 0xb3f   : > { %4153 = vmatprep.subr.bf16.mxu0 %v12226_v19  ;;  %9586 = vmatprep.subr.bf16.mxu1 %v13813_v49 }
 0xb42   : > { %4154 = vmatpush1.bf16.msra.mxu0 %v12234_v21  ;;  %9587 = vmatpush3.bf16.msra.mxu1 %v12282_v25 }
 0xb43   : > { %4155 = vmatprep.subr.bf16.mxu0 %v12239_v22  ;;  %9588 = vmatprep.subr.bf16.mxu1 %v13813_v49 }
 0xb46   : > { %4156 = vmatpush1.bf16.msra.mxu0 %v12250_v2  ;;  %9589 = vmatpush3.bf16.msra.mxu1 %v12295_v15 }
 0xb47   : > { %4157 = vmatprep.subr.bf16.mxu0 %v12254_v23  ;;  %9590 = vmatprep.subr.bf16.mxu1 %v13813_v49 }
 0xb4a   : > { %4158 = vmatpush1.bf16.msra.mxu0 %v12263_v3  ;;  %9591 = vmatpush3.bf16.msra.mxu1 %v12308_v9 }
 0xb4b   : > { %4159 = vmatprep.subr.bf16.mxu0 %v12270_v43  ;;  %9592 = vmatprep.subr.bf16.mxu1 %v13813_v49 }
 0xb4e   : > { %4160 = vmatpush1.bf16.msra.mxu0 %v12278_v62  ;;  %9593 = vmatpush3.bf16.msra.mxu1 %v12315_v59 }
 0xb4f   : > { %4161 = vmatprep.subr.bf16.mxu0 %v12285_v31  ;;  %9594 = vmatprep.subr.bf16.mxu1 %v13813_v49 }
 0xb52   : > { %4162 = vmatpush1.bf16.msra.mxu0 %v12292_v51  ;;  %9595 = vmatpush3.bf16.msra.mxu1 %v12323_v24 }
 0xb53   : > { %4251 = vmatprep.subr.bf16.mxu0 %v12199_v61  ;;  %9600 = vmatprep.subr.bf16.mxu1 %v13813_v49 }
 0xbf5   : > { %v4077_v40 = vpop.f32.mrf.mxu0  ;;  %v4118_v7 = vpop.f32.mrf.mxu1 }
 0xbf6   : > { %v4124_v54 = vadd.f32 %v4077_v40, %v12397_v34  ;;  %v4138_v39 = vadd.f32 %v12423_v17, %v4118_v7  ;;  %v10252_v40 = vld [vmem:[%s11216_s25 + $0xa8] ss:$12 sps:$4 sm:$0xff]  }
 0xbf7   : > { %v4079_v14 = vpop.f32.mrf.mxu0  ;;  %v9578_v56 = vpop.f32.mrf.mxu1 }
 0xbf8   : > { %v8597_v30 = vmul.f32 -1.442695, %v4124_v54  ;;  %v4131_v10 = vadd.f32 %v4079_v14, %v12401_v58  ;;  %v10257_v54 = vld [vmem:[%s11216_s25 + $0x94] ss:$12 sps:$4 sm:$0xff]   ;;  %v10290_v14 = vld [vmem:[%s11216_s25 + $0x19c] ss:$12 sps:$4 sm:$0xff]  }
 0xbf9   : > { %v4081_v46 = vpop.f32.mrf.mxu0  ;;  %v4121_v28 = vpop.f32.mrf.mxu1  ;;  %v10255_v56 = vld [vmem:[%s11216_s25 + $0x90] ss:$12 sps:$4 sm:$0xff]  }
 0xbfa   : > { %10348 = vpow2.f32 %v8597_v30  ;;  %v8598_v35 = vmul.f32 -1.442695, %v4131_v10  ;;  %v10288_v30 = vld [vmem:[%s11216_s25 + $0x198] ss:$12 sps:$4 sm:$0xff]   ;;  %v10260_v46 = vld [vmem:[%s11216_s25 + $0x7c] ss:$12 sps:$4 sm:$0xff]  }
 0xbfb   : > { %v4082_v26 = vpop.f32.mrf.mxu0  ;;  %v9579_v5 = vpop.f32.mrf.mxu1  ;;  %v10296_v28 = vld [vmem:[%s11216_s25 + $0x184] ss:$12 sps:$4 sm:$0xff]  }
 0xbfc   : > { %10350 = vpow2.f32 %v8598_v35  ;;  %v10258_v26 = vld [vmem:[%s11216_s25 + $0x78] ss:$12 sps:$4 sm:$0xff]   ;;  %v10294_v5 = vld [vmem:[%s11216_s25 + $0x180] ss:$12 sps:$4 sm:$0xff]   ;;  %v10300_v35 = vld [vmem:[%s11216_s25 + $0x170] ss:$12 sps:$4 sm:$0xff]  }
 0xbfd   : > { %v10263_v10 = vld [vmem:[%s11216_s25 + $0x64] ss:$12 sps:$4 sm:$0xff]  }
 0xc07   : > { %v10349_v27 = vpop.eup %10348 }
 0xc08   : > { %v4128_v61 = vadd.f32 1.0, %v10349_v27  ;;  %v10261_v27 = vld [vmem:[%s11216_s25 + $0x60] ss:$12 sps:$4 sm:$0xff]  }
 0xc09   : > { %v10351_v52 = vpop.eup %10350 }
 0xc0a   : > { %10352 = vrcp.f32 %v4128_v61  ;;  %v4135_v32 = vadd.f32 1.0, %v10351_v52  ;;  %v10301_v61 = vld [vmem:[%s11216_s25 + $0xb0] ss:$12 sps:$4 sm:$0xff]   ;;  %v10305_v52 = vld [vmem:[%s11216_s25 + $0x158] ss:$12 sps:$4 sm:$0xff]  }
 0xc0c   : > { %10354 = vrcp.f32 %v4135_v32  ;;  %v12588_v32 = vld [vmem:[%s13713_s1 + $0x38] ss:$0 sps:$4 sm:$0xff]  }
 0xc17   : > { %v10353_v34 = vpop.eup %10352 }
 0xc18   : > { %v4139_v38 = vmul.f32 %v10353_v34, %v4138_v39  ;;  %v10264_v39 = vld [vmem:[%s11216_s25 + $0x48] ss:$12 sps:$4 sm:$0xff]   ;;  %v10306_v34 = vld [vmem:[%s11216_s25 + $0x98] ss:$12 sps:$4 sm:$0xff]  }
 0xc19   : > { %v10355_v36 = vpop.eup %10354 }
 0xc1a   : > { %v4140_v29 = vadd.f32 %v4139_v38, %v12405_v53  ;;  %v4142_v55 = vsub.f32 1.0, %v10355_v36  ;;  %v4144_v58 = vmul.f32 %v10355_v36, %v12473_v48  ;;  %v10254_v53 = vld [vmem:[%s11216_s25 + $0xac] ss:$12 sps:$4 sm:$0xff]   ;;  %v10284_v48 = vld [vmem:[%s11216_s25 + $0x1b0] ss:$12 sps:$4 sm:$0x3f]  }
 0xc1b   : > { %v10269_v38 = vld [vmem:[%s11216_s25 + $0x34] ss:$12 sps:$4 sm:$0xff]   ;;  %v10267_v36 = vld [vmem:[%s11216_s25 + $0x30] ss:$12 sps:$4 sm:$0xff]  }
 0xc1c   : > { %10356 = vtanh.f32 %v4140_v29  ;;  %v10310_v29 = vld [vmem:[%s11216_s25 + $0x140] ss:$12 sps:$4 sm:$0xff]  }
 0xc29   : > { %v10357_v63 = vpop.eup %10356 }
 0xc2a   : > { %v4143_v1 = vmul.f32 %v10357_v63, %v4142_v55  ;;  %v10311_v55 = vld [vmem:[%s11216_s25 + $0x80] ss:$12 sps:$4 sm:$0xff]   ;;  %v10272_v63 = vld [vmem:[%s11216_s25 + $0x1c] ss:$12 sps:$4 sm:$0xff]  }
 0xc2c   : > { %v12517_v47 = vadd.f32 %v4144_v58, %v4143_v1  ;;  %v10315_v1 = vld [vmem:[%s11216_s25 + $0x128] ss:$12 sps:$4 sm:$0xff]   ;;  %v10270_v58 = vld [vmem:[%s11216_s25 + $0x18] ss:$12 sps:$4 sm:$0xff]  }
 0xc2e   : > { %v4146_v37 = vpack.c.bf16 %v12517_v47, %v12517_v47 }
 0xc30   : > { %4180 = vmatmul.mubr.bf16.vlgmr.msra.gmra.mxu0 %v4146_v37  ;;  %9597 = vmatmul.mubr.bf16.vlgmr.msra.gmra.mxu1 %v4146_v37  ;;  %v10317_v37 = vld [vmem:[%s11216_s25 + $0x110] ss:$12 sps:$4 sm:$0xff]  }
 0xc31   : > { %4252 = vmatpush1.bf16.msra.mxu0 %v12205_v57  ;;  %9601 = vmatpush3.bf16.msra.mxu1 %v12230_v20  ;;  %v10282_v57 = vld [vmem:[%s11216_s25 + $0x1b4] ss:$12 sps:$4 sm:$0x3f]  }
 0xc32   : > { %4253 = vmatprep.subr.bf16.mxu0 %v12209_v16  ;;  %9602 = vmatprep.subr.bf16.mxu1 %v13813_v49 }
 0xc33   : > { %4283 = vmatprep.mubr.bf16.mxu0 %v13814_v60  ;;  %9616 = vmatprep.mubr.msk.bf16.mxu1 %vm10993_vm5, %v13813_v49 }
 0xc35   : > { %4254 = vmatpush1.bf16.msra.mxu0 %v12214_v6  ;;  %9603 = vmatpush3.bf16.msra.mxu1 %v12244_v44 }
 0xc36   : > { %4255 = vmatprep.subr.bf16.mxu0 %v12220_v41  ;;  %9604 = vmatprep.subr.bf16.mxu1 %v13813_v49 }
 0xc39   : > { %4256 = vmatpush1.bf16.msra.mxu0 %v12223_v18  ;;  %9605 = vmatpush3.bf16.msra.mxu1 %v12260_v0 }
 0xc3a   : > { %4257 = vmatprep.subr.bf16.mxu0 %v12226_v19  ;;  %9606 = vmatprep.subr.bf16.mxu1 %v13813_v49 }
 0xc3d   : > { %4258 = vmatpush1.bf16.msra.mxu0 %v12234_v21  ;;  %9607 = vmatpush3.bf16.msra.mxu1 %v12282_v25 }
 0xc3e   : > { %4259 = vmatprep.subr.bf16.mxu0 %v12239_v22  ;;  %9608 = vmatprep.subr.bf16.mxu1 %v13813_v49 }
 0xc41   : > { %4260 = vmatpush1.bf16.msra.mxu0 %v12250_v2  ;;  %9609 = vmatpush3.bf16.msra.mxu1 %v12295_v15 }
 0xc42   : > { %4261 = vmatprep.subr.bf16.mxu0 %v12254_v23  ;;  %9610 = vmatprep.subr.bf16.mxu1 %v13813_v49 }
 0xc45   : > { %4262 = vmatpush1.bf16.msra.mxu0 %v12263_v3  ;;  %9611 = vmatpush3.bf16.msra.mxu1 %v12308_v9 }
 0xc46   : > { %4263 = vmatprep.subr.bf16.mxu0 %v12270_v43  ;;  %9612 = vmatprep.subr.bf16.mxu1 %v13813_v49 }
 0xc49   : > { %4264 = vmatpush1.bf16.msra.mxu0 %v12278_v62  ;;  %9613 = vmatpush3.bf16.msra.mxu1 %v12315_v59 }
 0xc4a   : > { %4265 = vmatprep.subr.bf16.mxu0 %v12285_v31  ;;  %9614 = vmatprep.subr.bf16.mxu1 %v13813_v49 }
 0xc4d   : > { %4266 = vmatpush1.bf16.msra.mxu0 %v12292_v51  ;;  %9615 = vmatpush3.bf16.msra.mxu1 %v12323_v24 }
 0xc4e   : > { %4758 = vmatprep.subr.bf16.mxu0 %v10254_v53  ;;  %8660 = vmatprep.subr.msk.bf16.mxu1 %vm3424_vm3, %v10282_v57  ;;  %v10273_v53 = vld [vmem:[%s11216_s25] ss:$12 sps:$4 sm:$0xff]   ;;  %v10318_v57 = vld [vmem:[%s11216_s25 + $0x50] ss:$12 sps:$4 sm:$0xff]  }
 0xcf0   : > { %v4181_v16 = vpop.f32.mrf.mxu0  ;;  %v4222_v6 = vpop.f32.mrf.mxu1 }
 0xcf1   : > { %v4228_v41 = vadd.f32 %v4181_v16, %v12403_v42  ;;  %v4242_v31 = vadd.f32 %v12423_v17, %v4222_v6  ;;  %v10278_v16 = vld [vmem:[%s11216_s25 + $0x16c] ss:$12 sps:$4 sm:$0xff]  }
 0xcf2   : > { %v4183_v18 = vpop.f32.mrf.mxu0  ;;  %v9598_v19 = vpop.f32.mrf.mxu1  ;;  %v10319_v6 = vld [vmem:[%s11216_s25 + $0xf8] ss:$12 sps:$4 sm:$0xff]  }
 0xcf3   : > { %v8599_v20 = vmul.f32 -1.442695, %v4228_v41  ;;  %v4235_v23 = vadd.f32 %v4183_v18, %v12408_v12  ;;  %v10276_v41 = vld [vmem:[%s11216_s25 + $0x168] ss:$12 sps:$4 sm:$0xff]   ;;  %v10320_v18 = vld [vmem:[%s11216_s25 + $0x38] ss:$12 sps:$4 sm:$0xff]  }
 0xcf4   : > { %v4185_v21 = vpop.f32.mrf.mxu0  ;;  %v4225_v22 = vpop.f32.mrf.mxu1  ;;  %v10281_v19 = vld [vmem:[%s11216_s25 + $0x154] ss:$12 sps:$4 sm:$0xff]  }
 0xcf5   : > { %10358 = vpow2.f32 %v8599_v20  ;;  %v8600_v0 = vmul.f32 -1.442695, %v4235_v23  ;;  %v10321_v20 = vld [vmem:[%s11216_s25 + $0xe0] ss:$12 sps:$4 sm:$0xff]   ;;  %v10279_v21 = vld [vmem:[%s11216_s25 + $0x150] ss:$12 sps:$4 sm:$0xff]  }
 0xcf6   : > { %v4186_v44 = vpop.f32.mrf.mxu0  ;;  %v9599_v2 = vpop.f32.mrf.mxu1  ;;  %v10322_v22 = vld [vmem:[%s11216_s25 + $0x20] ss:$12 sps:$4 sm:$0xff]   ;;  %v10285_v23 = vld [vmem:[%s11216_s25 + $0x138] ss:$12 sps:$4 sm:$0xff]  }
 0xcf7   : > { %10360 = vpow2.f32 %v8600_v0  ;;  %v10287_v44 = vld [vmem:[%s11216_s25 + $0x13c] ss:$12 sps:$4 sm:$0xff]  }
 0xcf8   : > { %v10323_v2 = vld [vmem:[%s11216_s25 + $0xc8] ss:$12 sps:$4 sm:$0xff]  }
 0xcf9   : > { %v10324_v0 = vld [vmem:[%s11216_s25 + $0x8] ss:$12 sps:$4 sm:$0xff]  }
 0xd02   : > { %v10359_v3 = vpop.eup %10358 }
 0xd03   : > { %v4232_v43 = vadd.f32 1.0, %v10359_v3  ;;  %v10293_v3 = vld [vmem:[%s11216_s25 + $0x124] ss:$12 sps:$4 sm:$0xff]  }
 0xd04   : > { %v10361_v62 = vpop.eup %10360 }
 0xd05   : > { %10362 = vrcp.f32 %v4232_v43  ;;  %v4239_v25 = vadd.f32 1.0, %v10361_v62  ;;  %v10325_v43 = vld [vmem:[%s11216_s25 + $0x1b8] ss:$12 sps:$4 sm:$0x3f]   ;;  %v10291_v62 = vld [vmem:[%s11216_s25 + $0x120] ss:$12 sps:$4 sm:$0xff]  }
 0xd07   : > { %10364 = vrcp.f32 %v4239_v25  ;;  %v10299_v25 = vld [vmem:[%s11216_s25 + $0x10c] ss:$12 sps:$4 sm:$0xff]  }
 0xd12   : > { %v10363_v51 = vpop.eup %10362 }
 0xd13   : > { %v4243_v15 = vmul.f32 %v10363_v51, %v4242_v31  ;;  %v4756_v31 = vsel %vm3424_vm3, %v10325_v43, 0  ;;  %v13815_v51 = vld [vmem:[#allocation23_spill] sm:$0xff] }
 0xd14   : > { %v10365_v59 = vpop.eup %10364 }
 0xd15   : > { %v4244_v9 = vadd.f32 %v4243_v15, %v12413_v8  ;;  %v4246_v24 = vsub.f32 1.0, %v10365_v59  ;;  %v4248_v13 = vmul.f32 %v10365_v59, %v12517_v47  ;;  %v4750_v8 = vsel %vm3424_vm3, %v10284_v48, 0  ;;  %v10316_v47 = vld [vmem:[%s11216_s25 + $0x68] ss:$12 sps:$4 sm:$0xff]   ;;  %v10314_v48 = vld [vmem:[%s11216_s25 + $0xc4] ss:$12 sps:$4 sm:$0xff]  }
 0xd16   : > { %v10297_v15 = vld [vmem:[%s11216_s25 + $0x108] ss:$12 sps:$4 sm:$0xff]  }
 0xd17   : > { %10366 = vtanh.f32 %v4244_v9  ;;  %v10326_v9 = vld [vmem:[%s11216_s25 + $0x1a0] ss:$12 sps:$4 sm:$0xff]  }
 0xd18   : > { %v10304_v59 = vld [vmem:[%s11216_s25 + $0xf4] ss:$12 sps:$4 sm:$0xff]  }
 0xd24   : > { %v10367_v42 = vpop.eup %10366 }
 0xd25   : > { %v4247_v12 = vmul.f32 %v10367_v42, %v4246_v24  ;;  %v10302_v24 = vld [vmem:[%s11216_s25 + $0xf0] ss:$12 sps:$4 sm:$0xff]   ;;  %v10327_v42 = vld [vmem:[%s11216_s25 + $0x188] ss:$12 sps:$4 sm:$0xff]  }
 0xd27   : > { %v12563_v50 = vadd.f32 %v4248_v13, %v4247_v12  ;;  %v10309_v12 = vld [vmem:[%s11216_s25 + $0xdc] ss:$12 sps:$4 sm:$0xff]   ;;  %v10307_v13 = vld [vmem:[%s11216_s25 + $0xd8] ss:$12 sps:$4 sm:$0xff]  }
 0xd29   : > { %v4250_v7 = vpack.c.bf16 %v12563_v50, %v12563_v50 }
 0xd2b   : > { %4284 = vmatmul.mubr.bf16.vlgmr.msra.gmra.mxu0 %v4250_v7  ;;  %9617 = vmatmul.mubr.bf16.vlgmr.msra.gmra.mxu1 %v4250_v7 }
 0xd2c   : > { %4759 = vmatpush1.bf16.msra.mxu0 %v10252_v40  ;;  %4810 = vmatpush1.bf16.msra.mxu1 %v4750_v8  ;;  %v10312_v40 = vld [vmem:[%s11216_s25 + $0xc0] ss:$12 sps:$4 sm:$0xff]  }
 0xd2d   : > { %4760 = vmatprep.subr.bf16.mxu0 %v10257_v54  ;;  %4811 = vmatprep.subr.bf16.mxu1 %v10290_v14 }
 0xd2e   : > { %4831 = vmatprep.mubr.bf16.mxu1 %v13814_v60  ;;  %4790 = vmatprep.mubr.bf16.mxu0 %v12191_v4  ;;  %v10266_v60 = vld [vmem:[%s11216_s25 + $0x4c] ss:$12 sps:$4 sm:$0xff]  }
 0xd30   : > { %4761 = vmatpush1.bf16.msra.mxu0 %v10255_v56  ;;  %4812 = vmatpush1.bf16.msra.mxu1 %v10288_v30 }
 0xd31   : > { %4762 = vmatprep.subr.bf16.mxu0 %v10260_v46  ;;  %4813 = vmatprep.subr.bf16.mxu1 %v10296_v28 }
 0xd34   : > { %4763 = vmatpush1.bf16.msra.mxu0 %v10258_v26  ;;  %4814 = vmatpush1.bf16.msra.mxu1 %v10294_v5 }
 0xd35   : > { %4764 = vmatprep.subr.bf16.mxu0 %v10263_v10  ;;  %9141 = vmatprep.subr.bf16.mxu1 %v10300_v35 }
 0xd37   : > { %8661 = vmatmul.mubr.msk.bf16.vlgmr.msra.gmra.mxu1 %vm3414_vm4, %v12588_v32 }
 0xd38   : > { %4765 = vmatpush1.bf16.msra.mxu0 %v10261_v27  ;;  %9142 = vmatpush3.bf16.msra.mxu1 %v10301_v61 }
 0xd39   : > { %4766 = vmatprep.subr.bf16.mxu0 %v10266_v60  ;;  %9143 = vmatprep.subr.bf16.mxu1 %v10305_v52 }
 0xd3a   : > { %4872 = vmatprep.mubr.bf16.mxu1 %v12191_v4  ;;  %v10275_v4 = vld [vmem:[%s11216_s25 + $0x4] ss:$12 sps:$4 sm:$0xff]  }
 0xd3c   : > { %4767 = vmatpush1.bf16.msra.mxu0 %v10264_v39  ;;  %9144 = vmatpush3.bf16.msra.mxu1 %v10306_v34 }
 0xd3d   : > { %4768 = vmatprep.subr.bf16.mxu0 %v10269_v38  ;;  %9145 = vmatprep.subr.bf16.mxu1 %v10310_v29 }
 0xd40   : > { %4769 = vmatpush1.bf16.msra.mxu0 %v10267_v36  ;;  %9146 = vmatpush3.bf16.msra.mxu1 %v10311_v55 }
 0xd41   : > { %4770 = vmatprep.subr.bf16.mxu0 %v10272_v63  ;;  %9147 = vmatprep.subr.bf16.mxu1 %v10315_v1 }
 0xd44   : > { %4771 = vmatpush1.bf16.msra.mxu0 %v10270_v58  ;;  %9148 = vmatpush3.bf16.msra.mxu1 %v10316_v47 }
 0xd45   : > { %4772 = vmatprep.subr.bf16.mxu0 %v10275_v4  ;;  %9149 = vmatprep.subr.bf16.mxu1 %v10317_v37 }
 0xd48   : > { %4773 = vmatpush1.bf16.msra.mxu0 %v10273_v53  ;;  %9150 = vmatpush3.bf16.msra.mxu1 %v10318_v57 }
 0xd49   : > { %4774 = vmatprep.subr.bf16.mxu0 %v10278_v16  ;;  %9151 = vmatprep.subr.bf16.mxu1 %v10319_v6 }
 0xd4c   : > { %4775 = vmatpush2.bf16.msra.mxu0 %v10276_v41  ;;  %9152 = vmatpush3.bf16.msra.mxu1 %v10320_v18  ;;  %v13816_v18 = vld [vmem:[#allocation24_spill] sm:$0xff] }
 0xd4d   : > { %4776 = vmatprep.subr.bf16.mxu0 %v10281_v19  ;;  %9153 = vmatprep.subr.bf16.mxu1 %v10321_v20  ;;  %v13817_v19 = vsub.s32 0, %v13816_v18 }
 0xd50   : > { %4777 = vmatpush2.bf16.msra.mxu0 %v10279_v21  ;;  %9154 = vmatpush3.bf16.msra.mxu1 %v10322_v22 }
 0xd51   : > { %4778 = vmatprep.subr.bf16.mxu0 %v10287_v44  ;;  %9155 = vmatprep.subr.bf16.mxu1 %v10323_v2  ;;  %v13818_v44 = vsub.s32 1, %v13816_v18 }
 0xd54   : > { %4779 = vmatpush2.bf16.msra.mxu0 %v10285_v23  ;;  %9156 = vmatpush3.bf16.msra.mxu1 %v10324_v0 }
 0xd55   : > { %4780 = vmatprep.subr.bf16.mxu0 %v10293_v3  ;;  %9620 = vmatprep.subr.bf16.mxu1 %v13813_v49 }
 0xd57   : > { %4873 = vmatmul.mubr.bf16.vlgmr.msra.gmra.mxu1 %v13815_v51 }
 0xd58   : > { %4781 = vmatpush2.bf16.msra.mxu0 %v10291_v62  ;;  %9621 = vmatpush3.bf16.msra.mxu1 %v4756_v31 }
 0xd59   : > { %4782 = vmatprep.subr.bf16.mxu0 %v10299_v25  ;;  %9622 = vmatprep.subr.bf16.mxu1 %v13813_v49 }
 0xd5a   : > { %9626 = vmatprep.mubr.msk.bf16.mxu1 %vm10993_vm5, %v13813_v49 }
 0xd5c   : > { %4783 = vmatpush2.bf16.msra.mxu0 %v10297_v15  ;;  %9623 = vmatpush3.bf16.msra.mxu1 %v10326_v9 }
 0xd5d   : > { %4784 = vmatprep.subr.bf16.mxu0 %v10304_v59  ;;  %9624 = vmatprep.subr.bf16.mxu1 %v13813_v49  ;;  %v13819_v59 = vsub.s32 2, %v13816_v18 }
 0xd60   : > { %4785 = vmatpush2.bf16.msra.mxu0 %v10302_v24  ;;  %9625 = vmatpush3.bf16.msra.mxu1 %v10327_v42 }
 0xd61   : > { %4786 = vmatprep.subr.bf16.mxu0 %v10309_v12 }
 0xd63   : > { %9627 = vmatmul.mubr.msk.bf16.vlgmr.msra.gmra.mxu1 %vm3414_vm4, %v12588_v32 }
 0xd64   : > { %4787 = vmatpush2.bf16.msra.mxu0 %v10307_v13 }
 0xd65   : > { %4788 = vmatprep.subr.bf16.mxu0 %v10314_v48  ;;  %v8665_v48 = vld [vmem:[%s11232_s28] ss:$0 sm:$0xff] }
 0xd68   : > { %4789 = vmatpush2.bf16.msra.mxu0 %v10312_v40 }
 0xd6b   : > { %4791 = vmatmul.mubr.bf16.vlgmr.msra.gmra.mxu0 %v13815_v51 }
 0xdeb   : > { %v4285_v7 = vpop.f32.mrf.mxu0  ;;  %v4326_v54 = vpop.f32.mrf.mxu1 }
 0xdec   : > { %v4332_v8 = vadd.f32 %v4285_v7, %v12411_v45  ;;  %v4346_v34 = vadd.f32 %v12423_v17, %v4326_v54  ;;  %v4431_v17 = vld [vmem:[%s11247_s19] sm:$0x7] }
 0xded   : > { %v4287_v14 = vpop.f32.mrf.mxu0  ;;  %v9618_v49 = vpop.f32.mrf.mxu1  ;;  %v4440_v2 = vrot.slane %v4431_v17, %v13818_v44  ;;  %v4444_v24 = vrot.slane %v4431_v17, %v13819_v59 }
 0xdee   : > { %v8601_v56 = vmul.f32 -1.442695, %v4332_v8  ;;  %v4339_v5 = vadd.f32 %v4287_v14, %v12416_v11 }
 0xdef   : > { %v4289_v30 = vpop.f32.mrf.mxu0  ;;  %v4329_v46 = vpop.f32.mrf.mxu1 }
 0xdf0   : > { %10368 = vpow2.f32 %v8601_v56  ;;  %v8602_v10 = vmul.f32 -1.442695, %v4339_v5 }
 0xdf1   : > { %v4290_v28 = vpop.f32.mrf.mxu0  ;;  %v9619_v26 = vpop.f32.mrf.mxu1 }
 0xdf2   : > { %10370 = vpow2.f32 %v8602_v10 }
 0xdf7   : > { %v4833_v35 = vpop.f32.mrf.mxu1 }
 0xdf9   : > { %v4835_v27 = vpop.f32.mrf.mxu1 }
 0xdfb   : > { %v4837_v61 = vpop.f32.mrf.mxu1 }
 0xdfd   : > { %v10369_v60 = vpop.eup %10368  ;;  %v4838_v52 = vpop.f32.mrf.mxu1 }
 0xdfe   : > { %v4336_v32 = vadd.f32 1.0, %v10369_v60 }
 0xdff   : > { %v10371_v45 = vpop.eup %10370 }
 0xe00   : > { %10372 = vrcp.f32 %v4336_v32  ;;  %v4343_v39 = vadd.f32 1.0, %v10371_v45 }
 0xe02   : > { %10374 = vrcp.f32 %v4343_v39 }
 0xe0d   : > { %v10373_v38 = vpop.eup %10372 }
 0xe0e   : > { %v4347_v29 = vmul.f32 %v10373_v38, %v4346_v34 }
 0xe0f   : > { %v10375_v63 = vpop.eup %10374 }
 0xe10   : > { %v4348_v36 = vadd.f32 %v4347_v29, %v12418_v33  ;;  %v4350_v47 = vsub.f32 1.0, %v10375_v63  ;;  %v4352_v53 = vmul.f32 %v10375_v63, %v12563_v50  ;;  %v4436_v33 = vrot.slane %v4431_v17, %v13817_v19 }
 0xe12   : > { %10376 = vtanh.f32 %v4348_v36 }
 0xe17   : > { %v9157_v11 = vpop.f32.mrf.mxu1 }
 0xe19   : > { %v9158_v55 = vpop.f32.mrf.mxu1 }
 0xe1a   : > { %v9159_v9 = vadd.f32 %v9158_v55, %v9157_v11 }
 0xe1b   : > { %v9160_v1 = vpop.f32.mrf.mxu1 }
 0xe1c   : > { %v4875_v13 = vadd.f32 %v9159_v9, %v4444_v24 }
 0xe1d   : > { %v9161_v58 = vpop.f32.mrf.mxu1 }
 0xe1f   : > { %v10377_v4 = vpop.eup %10376 }
 0xe20   : > { %v4351_v37 = vmul.f32 %v10377_v4, %v4350_v47 }
 0xe22   : > { %v4353_v57 = vadd.f32 %v4352_v53, %v4351_v37 }
 0xe23   : > { %v4914_v16 = vpop.f32.mrf.mxu1 }
 0xe24   : > { %4354 = vst [vmem:[#allocation4] sm:$0xff] %v4353_v57  ;;  %v4915_v7 = vadd.f32 %v4914_v16, %v4875_v13 }
 0xe25   : > { %v9628_v6 = vpop.f32.mrf.mxu1 }
 0xe27   : > { %v4917_v41 = vpop.f32.mrf.mxu1 }
 0xe29   : > { %v9629_v20 = vpop.f32.mrf.mxu1 }
 0xe2b   : > { %v4792_v21 = vpop.f32.mrf.mxu0 }
 0xe2c   : > { %v4793_v22 = vadd.f32 %v4792_v21, %v4436_v33 }
 0xe2d   : > { %v4794_v23 = vpop.f32.mrf.mxu0 }
 0xe2e   : > { %v4834_v0 = vadd.f32 %v4833_v35, %v4793_v22  ;;  %v4795_v43 = vadd.f32 %v4794_v23, %v4440_v2 }
 0xe2f   : > { %v4796_v3 = vpop.f32.mrf.mxu0 }
 0xe30   : > { %v8663_v50 = vmul.f32 -1.442695, %v4834_v0  ;;  %v4836_v25 = vadd.f32 %v4835_v27, %v4795_v43 }
 0xe31   : > { %v4797_v62 = vpop.f32.mrf.mxu0 }
 0xe32   : > { %10378 = vpow2.f32 %v8663_v50  ;;  %v8664_v31 = vmul.f32 -1.442695, %v4836_v25 }
 0xe34   : > { %10380 = vpow2.f32 %v8664_v31 }
 0xe3f   : > { %v10379_v51 = vpop.eup %10378 }
 0xe40   : > { %v4923_v15 = vadd.f32 1.0, %v10379_v51 }
 0xe41   : > { %v10381_v42 = vpop.eup %10380 }
 0xe42   : > { %10382 = vrcp.f32 %v4923_v15  ;;  %v4929_v12 = vadd.f32 1.0, %v10381_v42 }
 0xe44   : > { %10384 = vrcp.f32 %v4929_v12 }
 0xe4f   : > { %v10383_v40 = vpop.eup %10382 }
 0xe50   : > { %v4939_v54 = vmul.f32 %v10383_v40, %v8665_v48 }
 0xe51   : > { %v10385_v14 = vpop.eup %10384 }
 0xe52   : > { %v4940_v8 = vadd.f32 %v4939_v54, %v4915_v7  ;;  %v4942_v49 = vsub.f32 1.0, %v10385_v14 }
 0xe54   : > { %10386 = vtanh.f32 %v4940_v8 }
 0xe61   : > { %v10387_v56 = vpop.eup %10386 }
 0xe62   : > { %v4943_v30 = vmul.f32 %v10387_v56, %v4942_v49 }
 0xe64   : > { %4944 = vst [vmem:[#allocation5] sm:$0xff] %v4943_v30 }
 0xe65 PF: > { %p8666_p4 = scmp.ne.s32.totalorder %s11091_s17, 2 }
 0xe67   : > { %4948 = sbr.rel (%p8666_p4) target bundleno = 5383 (0x1507), region = 96 }
 0xe6c   : > { %v10389_v46 = vld [vmem:[%s11210_s24 + $0xac] ss:$12 sps:$4 sm:$0xff]   ;;  %vm5520_vm6 = vcmask 1045504   ;;  %v10391_v28 = vld [vmem:[%s11210_s24 + $0x1b4] ss:$12 sps:$4 sm:$0x3f]  }
 0xe6d   : > { %v13765_v26 = vmov 0   ;;  %5530 = vmatprep.subr.bf16.mxu0 %v10389_v46  ;;  %v10393_v5 = vld [vmem:[%s11210_s24 + $0xa8] ss:$12 sps:$4 sm:$0xff]   ;;  %v10394_v10 = vld [vmem:[%s11210_s24 + $0x1b0] ss:$12 sps:$4 sm:$0x3f]   ;;  %8748 = vmatprep.subr.msk.bf16.mxu1 %vm5520_vm6, %v10391_v28 }
 0xe6e   : > { %5675 = vmatprep.mubr.bf16.mxu1 %v13765_v26  ;;  %v10395_v35 = vld [vmem:[%s11210_s24 + $0x94] ss:$12 sps:$4 sm:$0xff]   ;;  %5531 = vmatpush1.bf16.msra.mxu0 %v10393_v5  ;;  %v5522_v27 = vsel %vm5520_vm6, %v10394_v10, 0  ;;  %v10397_v61 = vld [vmem:[%s11210_s24 + $0x19c] ss:$12 sps:$4 sm:$0xff]   ;;  %vm5495_vm7 = vcmask 359424  }
 0xe6f   : > { %v10399_v60 = vld [vmem:[%s11210_s24 + $0x90] ss:$12 sps:$4 sm:$0xff]   ;;  %5654 = vmatpush1.bf16.msra.mxu1 %v5522_v27  ;;  %5532 = vmatprep.subr.bf16.mxu0 %v10395_v35  ;;  %v10400_v52 = vld [vmem:[%s11210_s24 + $0x198] ss:$12 sps:$4 sm:$0xff]   ;;  %v10406_v34 = vld [vmem:[%s11210_s24 + $0x180] ss:$12 sps:$4 sm:$0xff]  }
 0xe70   : > { %5655 = vmatprep.subr.bf16.mxu1 %v10397_v61  ;;  %v10401_v32 = vld [vmem:[%s11210_s24 + $0x7c] ss:$12 sps:$4 sm:$0xff]   ;;  %v10403_v45 = vld [vmem:[%s11210_s24 + $0x184] ss:$12 sps:$4 sm:$0xff]   ;;  %v10411_v11 = vld [vmem:[%s11210_s24 + $0x60] ss:$12 sps:$4 sm:$0xff]  }
 0xe71   : > { %v10405_v39 = vld [vmem:[%s11210_s24 + $0x78] ss:$12 sps:$4 sm:$0xff]   ;;  %v10410_v29 = vld [vmem:[%s11210_s24 + $0x170] ss:$12 sps:$4 sm:$0xff]   ;;  %v12676_v36 = vld [vmem:[%s13714_s2 + $0x8] ss:$12 sps:$4 sm:$0xff]  }
 0xe72   : > { %5533 = vmatpush1.bf16.msra.mxu0 %v10399_v60  ;;  %v10407_v38 = vld [vmem:[%s11210_s24 + $0x64] ss:$12 sps:$4 sm:$0xff]   ;;  %v10413_v63 = vld [vmem:[%s11210_s24 + $0x4c] ss:$12 sps:$4 sm:$0xff]   ;;  %v10415_v1 = vld [vmem:[%s11210_s24 + $0x48] ss:$12 sps:$4 sm:$0xff]  }
 0xe73   : > { %5656 = vmatpush1.bf16.msra.mxu1 %v10400_v52  ;;  %5534 = vmatprep.subr.bf16.mxu0 %v10401_v32  ;;  %v10412_v55 = vld [vmem:[%s11210_s24 + $0xb0] ss:$12 sps:$4 sm:$0xff]   ;;  %v10416_v58 = vld [vmem:[%s11210_s24 + $0x34] ss:$12 sps:$4 sm:$0xff]   ;;  %v10419_v47 = vld [vmem:[%s11210_s24 + $0x158] ss:$12 sps:$4 sm:$0xff]  }
 0xe74   : > { %5657 = vmatprep.subr.bf16.mxu1 %v10403_v45  ;;  %v10421_v4 = vld [vmem:[%s11210_s24 + $0x98] ss:$12 sps:$4 sm:$0xff]   ;;  %v10420_v53 = vld [vmem:[%s11210_s24 + $0x30] ss:$12 sps:$4 sm:$0xff]   ;;  %v10428_v16 = vld [vmem:[%s11210_s24 + $0x140] ss:$12 sps:$4 sm:$0xff]  }
 0xe75   : > { %v12691_v37 = vld [vmem:[%s13714_s2 + $0x20] ss:$12 sps:$4 sm:$0xff]   ;;  %v10422_v57 = vld [vmem:[%s11210_s24 + $0x1c] ss:$12 sps:$4 sm:$0xff]   ;;  %vm10996_vm8 = vmmov 0   ;;  %vm8104_vm10 = vcmask 130048  }
 0xe76   : > { %5535 = vmatpush1.bf16.msra.mxu0 %v10405_v39  ;;  %v10430_v17 = vld [vmem:[%s11210_s24 + $0x80] ss:$12 sps:$4 sm:$0xff]   ;;  %v10424_v6 = vld [vmem:[%s11210_s24 + $0x18] ss:$12 sps:$4 sm:$0xff]   ;;  %v10437_v33 = vld [vmem:[%s11210_s24 + $0x128] ss:$12 sps:$4 sm:$0xff]  }
 0xe77   : > { %5658 = vmatpush1.bf16.msra.mxu1 %v10406_v34  ;;  %5536 = vmatprep.subr.bf16.mxu0 %v10407_v38  ;;  %v10425_v41 = vld [vmem:[%s11210_s24 + $0x4] ss:$12 sps:$4 sm:$0xff]   ;;  %v10429_v19 = vld [vmem:[%s11210_s24] ss:$12 sps:$4 sm:$0xff]   ;;  %v10439_v21 = vld [vmem:[%s11210_s24 + $0x68] ss:$12 sps:$4 sm:$0xff]  }
 0xe78   : > { %9167 = vmatprep.subr.bf16.mxu1 %v10410_v29  ;;  %v12705_v18 = vld [vmem:[%s13714_s2 + $0x38] ss:$12 sps:$4 sm:$0xff]   ;;  %v10433_v22 = vld [vmem:[%s11210_s24 + $0x168] ss:$12 sps:$4 sm:$0xff]   ;;  %v10447_v15 = vld [vmem:[%s11210_s24 + $0x120] ss:$12 sps:$4 sm:$0xff]  }
 0xe79   : > { %v10431_v20 = vld [vmem:[%s11210_s24 + $0x16c] ss:$12 sps:$4 sm:$0xff]   ;;  %v10434_v44 = vld [vmem:[%s11210_s24 + $0x154] ss:$12 sps:$4 sm:$0xff]   ;;  %v10446_v2 = vld [vmem:[%s11210_s24 + $0x110] ss:$12 sps:$4 sm:$0xff]  }
 0xe7a   : > { %8749 = vmatmul.mubr.msk.bf16.vlgmr.msra.gmra.mxu1 %vm5495_vm7, %v12676_v36  ;;  %5537 = vmatpush1.bf16.msra.mxu0 %v10411_v11  ;;  %v10448_v23 = vld [vmem:[%s11210_s24 + $0x50] ss:$12 sps:$4 sm:$0xff]   ;;  %v10442_v43 = vld [vmem:[%s11210_s24 + $0x138] ss:$12 sps:$4 sm:$0xff]   ;;  %v12735_v51 = vld [vmem:[%s13714_s2 + $0x68] ss:$12 sps:$4 sm:$0xff]  }
 0xe7b   : > { %9168 = vmatpush3.bf16.msra.mxu1 %v10412_v55  ;;  %5538 = vmatprep.subr.bf16.mxu0 %v10413_v63  ;;  %v12721_v0 = vld [vmem:[%s13714_s2 + $0x50] ss:$12 sps:$4 sm:$0xff]   ;;  %v10455_v62 = vld [vmem:[%s11210_s24 + $0xf8] ss:$12 sps:$4 sm:$0xff]   ;;  %v10464_v9 = vld [vmem:[%s11210_s24 + $0xe0] ss:$12 sps:$4 sm:$0xff]  }
 0xe7c   : > { %5685 = vmatprep.mubr.bf16.mxu1 %v13765_v26  ;;  %9169 = vmatprep.subr.bf16.mxu1 %v10419_v47  ;;  %v10438_v3 = vld [vmem:[%s11210_s24 + $0x150] ss:$12 sps:$4 sm:$0xff]   ;;  %v10457_v25 = vld [vmem:[%s11210_s24 + $0x38] ss:$12 sps:$4 sm:$0xff]   ;;  %v10466_v24 = vld [vmem:[%s11210_s24 + $0x20] ss:$12 sps:$4 sm:$0xff]  }
 0xe7d   : > { %v10440_v50 = vld [vmem:[%s11210_s24 + $0x13c] ss:$12 sps:$4 sm:$0xff]   ;;  %v10443_v31 = vld [vmem:[%s11210_s24 + $0x124] ss:$12 sps:$4 sm:$0xff]   ;;  %v10449_v59 = vld [vmem:[%s11210_s24 + $0x10c] ss:$12 sps:$4 sm:$0xff]  }
 0xe7e   : > { %5539 = vmatpush1.bf16.msra.mxu0 %v10415_v1  ;;  %v10451_v42 = vld [vmem:[%s11210_s24 + $0x108] ss:$12 sps:$4 sm:$0xff]   ;;  %v12754_v7 = vld [vmem:[%s13714_s2 + $0x80] ss:$12 sps:$4 sm:$0xff]   ;;  %v10456_v54 = vld [vmem:[%s11210_s24 + $0xf0] ss:$12 sps:$4 sm:$0xff]  }
 0xe7f   : > { %5540 = vmatprep.subr.bf16.mxu0 %v10416_v58  ;;  %9170 = vmatpush3.bf16.msra.mxu1 %v10421_v4  ;;  %v10469_v12 = vld [vmem:[%s13714_s2 + $0x4] ss:$12 sps:$4 sm:$0xff]   ;;  %v10452_v13 = vld [vmem:[%s11210_s24 + $0xf4] ss:$12 sps:$4 sm:$0xff]   ;;  %v12759_v14 = vld [vmem:[%s11237_s22 + $0xac] ss:$12 sps:$4 sm:$0xff]  }
 0xe80   : > { %9171 = vmatprep.subr.bf16.mxu1 %v10428_v16  ;;  %v10471_v48 = vld [vmem:[%s11210_s24 + $0xc8] ss:$12 sps:$4 sm:$0xff]   ;;  %5562 = vmatprep.mubr.bf16.mxu0 %v10469_v12  ;;  %v10460_v49 = vld [vmem:[%s11210_s24 + $0xd8] ss:$12 sps:$4 sm:$0xff]   ;;  %v10465_v46 = vld [vmem:[%s11210_s24 + $0xc0] ss:$12 sps:$4 sm:$0xff]  }
 0xe81   : > { %v10472_v40 = vld [vmem:[%s11210_s24 + $0x8] ss:$12 sps:$4 sm:$0xff]   ;;  %v10461_v56 = vld [vmem:[%s11210_s24 + $0xc4] ss:$12 sps:$4 sm:$0xff]   ;;  %v10495_v27 = vld [vmem:[%s11210_s24 + $0x1a0] ss:$12 sps:$4 sm:$0xff]  }
 0xe82   : > { %8750 = vmatmul.mubr.msk.bf16.gmra.mxu1 %vm5495_vm7, %v12691_v37  ;;  %5541 = vmatpush1.bf16.msra.mxu0 %v10420_v53  ;;  %v10458_v8 = vld [vmem:[%s11210_s24 + $0xdc] ss:$12 sps:$4 sm:$0xff]   ;;  %v10476_v28 = vld [vmem:[%s11210_s24 + $0x1b8] ss:$12 sps:$4 sm:$0x3f]  }
 0xe83   : > { %5542 = vmatprep.subr.bf16.mxu0 %v10422_v57  ;;  %5695 = vmatprep.mubr.bf16.mxu1 %v13765_v26  ;;  %v12770_v30 = vld [vmem:[%s13714_s2 + $0x98] ss:$12 sps:$4 sm:$0xff]   ;;  %v10467_v5 = vld [vmem:[%s13714_s2] ss:$12 sps:$4 sm:$0xff]   ;;  %v10473_v10 = vld [vmem:[%s13714_s2 + $0x1c] ss:$12 sps:$4 sm:$0xff]  }
 0xe84   : > { %9172 = vmatpush3.bf16.msra.mxu1 %v10430_v17  ;;  %v5528_v35 = vsel %vm5520_vm6, %v10476_v28, 0  ;;  %v12789_v61 = vld [vmem:[%s13714_s2 + $0xb0] ss:$12 sps:$4 sm:$0xff]   ;;  %v10475_v52 = vld [vmem:[%s13714_s2 + $0x18] ss:$12 sps:$4 sm:$0xff]  }
 0xe85   : > { %9173 = vmatprep.subr.bf16.mxu1 %v10437_v33  ;;  %v10510_v60 = vld [vmem:[%s11210_s24 + $0x188] ss:$12 sps:$4 sm:$0xff]   ;;  %v10486_v11 = vld [vmem:[%s13714_s2 + $0x4c] ss:$12 sps:$4 sm:$0xff]  }
 0xe86   : > { %5543 = vmatpush1.bf16.msra.mxu0 %v10424_v6  ;;  %v10480_v32 = vld [vmem:[%s13714_s2 + $0x34] ss:$12 sps:$4 sm:$0xff]   ;;  %v12801_v45 = vld [vmem:[%s11237_s22 + $0xb0] ss:$12 sps:$4 sm:$0xff]   ;;  %v12825_v63 = vld [vmem:[%s11237_s22 + $0x78] ss:$12 sps:$4 sm:$0xff]  }
 0xe87   : > { %5544 = vmatprep.subr.bf16.mxu0 %v10425_v41  ;;  %v12804_v39 = vld [vmem:[%s11237_s22 + $0xa8] ss:$12 sps:$4 sm:$0xff]   ;;  %v10482_v34 = vld [vmem:[%s13714_s2 + $0x30] ss:$12 sps:$4 sm:$0xff]   ;;  %v12839_v4 = vld [vmem:[%s11237_s22 + $0x60] ss:$12 sps:$4 sm:$0xff]  }
 0xe88   : > { %9174 = vmatpush3.bf16.msra.mxu1 %v10439_v21  ;;  %v12811_v38 = vld [vmem:[%s11237_s22 + $0x94] ss:$12 sps:$4 sm:$0xff]   ;;  %v12814_v29 = vld [vmem:[%s11237_s22 + $0x90] ss:$12 sps:$4 sm:$0xff]   ;;  %v12842_v53 = vld [vmem:[%s11237_s22 + $0x4c] ss:$12 sps:$4 sm:$0xff]  }
 0xe89   : > { %9175 = vmatprep.subr.bf16.mxu1 %v10446_v2  ;;  %v12821_v55 = vld [vmem:[%s11237_s22 + $0x7c] ss:$12 sps:$4 sm:$0xff]   ;;  %v12828_v1 = vld [vmem:[%s11237_s22 + $0x64] ss:$12 sps:$4 sm:$0xff]   ;;  %v12850_v16 = vld [vmem:[%s11237_s22 + $0x34] ss:$12 sps:$4 sm:$0xff]  }
 0xe8a   : > { %8751 = vmatmul.mubr.msk.bf16.gmra.mxu1 %vm5495_vm7, %v12705_v18  ;;  %5545 = vmatpush1.bf16.msra.mxu0 %v10429_v19  ;;  %v10488_v58 = vld [vmem:[%s13714_s2 + $0x48] ss:$12 sps:$4 sm:$0xff]   ;;  %v10492_v47 = vld [vmem:[%s13714_s2 + $0x64] ss:$12 sps:$4 sm:$0xff]   ;;  %v10494_v17 = vld [vmem:[%s13714_s2 + $0x60] ss:$12 sps:$4 sm:$0xff]  }
 0xe8b   : > { %5546 = vmatprep.subr.bf16.mxu0 %v10431_v20  ;;  %5705 = vmatprep.mubr.bf16.mxu1 %v13765_v26  ;;  %v12847_v57 = vld [vmem:[%s11237_s22 + $0x48] ss:$12 sps:$4 sm:$0xff]   ;;  %v12861_v41 = vld [vmem:[%s11237_s22 + $0x30] ss:$12 sps:$4 sm:$0xff]   ;;  %v12869_v33 = vld [vmem:[%s11237_s22 + $0x18] ss:$12 sps:$4 sm:$0xff]  }
 0xe8c   : > { %9176 = vmatpush3.bf16.msra.mxu1 %v10448_v23  ;;  %v10499_v6 = vld [vmem:[%s13714_s2 + $0x7c] ss:$12 sps:$4 sm:$0xff]   ;;  %v12872_v20 = vld [vmem:[%s11237_s22 + $0x4] ss:$12 sps:$4 sm:$0xff]   ;;  %v10512_v23 = vld [vmem:[%s13714_s2 + $0xac] ss:$12 sps:$4 sm:$0xff]  }
 0xe8d   : > { %9177 = vmatprep.subr.bf16.mxu1 %v10455_v62  ;;  %v12864_v19 = vld [vmem:[%s11237_s22 + $0x1c] ss:$12 sps:$4 sm:$0xff]   ;;  %v10501_v21 = vld [vmem:[%s13714_s2 + $0x78] ss:$12 sps:$4 sm:$0xff]  }
 0xe8e   : > { %5547 = vmatpush2.bf16.msra.mxu0 %v10433_v22  ;;  %v10505_v22 = vld [vmem:[%s13714_s2 + $0x94] ss:$12 sps:$4 sm:$0xff]   ;;  %v10507_v2 = vld [vmem:[%s13714_s2 + $0x90] ss:$12 sps:$4 sm:$0xff]  }
 0xe8f   : > { %5548 = vmatprep.subr.bf16.mxu0 %v10434_v44  ;;  %v12883_v44 = vld [vmem:[%s11237_s22] ss:$12 sps:$4 sm:$0xff]   ;;  %v12951_v62 = vld [vmem:[%s11237_s22 + $0x8] ss:$12 sps:$4 sm:$0xff]  }
 0xe90   : > { %9178 = vmatpush3.bf16.msra.mxu1 %v10457_v25  ;;  %13821 = vst [vmem:[#allocation26_spill] sm:$0xff] %v12951_v62 }
 0xe91   : > { %9179 = vmatprep.subr.bf16.mxu1 %v10464_v9 }
 0xe92   : > { %8752 = vmatmul.mubr.msk.bf16.gmra.mxu1 %vm5495_vm7, %v12721_v0  ;;  %5549 = vmatpush2.bf16.msra.mxu0 %v10438_v3  ;;  %v10514_v3 = vld [vmem:[%s13714_s2 + $0xa8] ss:$12 sps:$4 sm:$0xff]  }
 0xe93   : > { %5550 = vmatprep.subr.bf16.mxu0 %v10440_v50  ;;  %5715 = vmatprep.mubr.bf16.mxu1 %v13765_v26  ;;  %v12901_v50 = vld [vmem:[%s11237_s22 + $0x98] ss:$12 sps:$4 sm:$0xff]  }
 0xe94   : > { %9180 = vmatpush3.bf16.msra.mxu1 %v10466_v24 }
 0xe95   : > { %9181 = vmatprep.subr.bf16.mxu1 %v10471_v48 }
 0xe96   : > { %5551 = vmatpush2.bf16.msra.mxu0 %v10442_v43  ;;  %v12910_v43 = vld [vmem:[%s11237_s22 + $0x80] ss:$12 sps:$4 sm:$0xff]  }
 0xe97   : > { %5552 = vmatprep.subr.bf16.mxu0 %v10443_v31 }
 0xe98   : > { %9182 = vmatpush3.bf16.msra.mxu1 %v10472_v40 }
 0xe99   : > { %6117 = vmatprep.subr.bf16.mxu1 %v12759_v14 }
 0xe9a   : > { %8753 = vmatmul.mubr.msk.bf16.gmra.mxu1 %vm5495_vm7, %v12735_v51  ;;  %5553 = vmatpush2.bf16.msra.mxu0 %v10447_v15 }
 0xe9b   : > { %5554 = vmatprep.subr.bf16.mxu0 %v10449_v59  ;;  %5725 = vmatprep.mubr.bf16.mxu1 %v13765_v26 }
 0xe9e   : > { %5555 = vmatpush2.bf16.msra.mxu0 %v10451_v42 }
 0xe9f   : > { %5556 = vmatprep.subr.bf16.mxu0 %v10452_v13 }
 0xea2   : > { %8754 = vmatmul.mubr.msk.bf16.gmra.mxu1 %vm5495_vm7, %v12754_v7  ;;  %5557 = vmatpush2.bf16.msra.mxu0 %v10456_v54 }
 0xea3   : > { %5558 = vmatprep.subr.bf16.mxu0 %v10458_v8  ;;  %5735 = vmatprep.mubr.bf16.mxu1 %v13765_v26 }
 0xea6   : > { %5559 = vmatpush2.bf16.msra.mxu0 %v10460_v49 }
 0xea7   : > { %5560 = vmatprep.subr.bf16.mxu0 %v10461_v56 }
 0xeaa   : > { %8755 = vmatmul.mubr.msk.bf16.gmra.mxu1 %vm5495_vm7, %v12770_v30  ;;  %5561 = vmatpush2.bf16.msra.mxu0 %v10465_v46  ;;  %v5059_v46 = vlaneseq }
 0xeab   : > { %5745 = vmatprep.mubr.bf16.mxu1 %v13765_v26  ;;  %9750 = vmatprep.subr.msk.bf16.mxu0 %vm5520_vm6, %v10476_v28 }
 0xead   : > { %5563 = vmatmul.mubr.bf16.vlgmr.msra.gmra.mxu0 %v10467_v5 }
 0xeae   : > { %5572 = vmatprep.mubr.bf16.mxu0 %v10473_v10  ;;  %9631 = vmatpush3.bf16.msra.mxu0 %v5528_v35 }
 0xeaf   : > { %9632 = vmatprep.subr.bf16.mxu0 %v10495_v27 }
 0xeb2   : > { %8756 = vmatmul.mubr.msk.bf16.gmra.mxu1 %vm5495_vm7, %v12789_v61  ;;  %9633 = vmatpush3.bf16.msra.mxu0 %v10495_v27 }
 0xeb3   : > { %5788 = vmatprep.mubr.bf16.mxu1 %v10469_v12  ;;  %9634 = vmatprep.subr.bf16.mxu0 %v10510_v60 }
 0xeb5   : > { %5573 = vmatmul.mubr.bf16.gmra.mxu0 %v10475_v52 }
 0xeb6   : > { %5582 = vmatprep.mubr.bf16.mxu0 %v10480_v32  ;;  %9635 = vmatpush3.bf16.msra.mxu0 %v10510_v60  ;;  %v13026_v60 = vld [vmem:[%s11242_s26] sm:$0x7]  ;;  %s13863_s26 = sld [smem:[#allocation47_spill]] }
 0xeb7   : > { %9652 = vmatprep.subr.bf16.mxu0 %v12801_v45 }
 0xeba   : > { %5789 = vmatmul.mubr.bf16.vlgmr.msra.gmra.mxu1 %v10467_v5 }
 0xebb   : > { %6118 = vmatpush1.bf16.msra.mxu1 %v12804_v39  ;;  %5796 = vmatprep.mubr.bf16.mxu1 %v10473_v10  ;;  %v13018_v10 = vshrl.u32 %v5059_v46, 7 }
 0xebc   : > { %6119 = vmatprep.subr.bf16.mxu1 %v12811_v38 }
 0xebd   : > { %5583 = vmatmul.mubr.bf16.gmra.mxu0 %v10482_v34  ;;  %13822 = vst [vmem:[#allocation27_spill] sm:$0xff] %v13018_v10 }
 0xebe   : > { %5592 = vmatprep.mubr.bf16.mxu0 %v10486_v11 }
 0xebf   : > { %6120 = vmatpush1.bf16.msra.mxu1 %v12814_v29 }
 0xec0   : > { %6121 = vmatprep.subr.bf16.mxu1 %v12821_v55 }
 0xec2   : > { %5797 = vmatmul.mubr.bf16.gmra.mxu1 %v10475_v52 }
 0xec3   : > { %5804 = vmatprep.mubr.bf16.mxu1 %v10480_v32  ;;  %6122 = vmatpush1.bf16.msra.mxu1 %v12825_v63  ;;  %v13763_v32 = vsub.s32 1, %v13018_v10 }
 0xec4   : > { %6123 = vmatprep.subr.bf16.mxu1 %v12828_v1 }
 0xec5   : > { %5593 = vmatmul.mubr.bf16.gmra.mxu0 %v10488_v58 }
 0xec6   : > { %5602 = vmatprep.mubr.bf16.mxu0 %v10492_v47 }
 0xec7   : > { %6124 = vmatpush1.bf16.msra.mxu1 %v12839_v4 }
 0xec8   : > { %6125 = vmatprep.subr.bf16.mxu1 %v12842_v53 }
 0xeca   : > { %5805 = vmatmul.mubr.bf16.gmra.mxu1 %v10482_v34 }
 0xecb   : > { %5812 = vmatprep.mubr.bf16.mxu1 %v10486_v11  ;;  %6126 = vmatpush1.bf16.msra.mxu1 %v12847_v57 }
 0xecc   : > { %6127 = vmatprep.subr.bf16.mxu1 %v12850_v16 }
 0xecd   : > { %5603 = vmatmul.mubr.bf16.gmra.mxu0 %v10494_v17 }
 0xece   : > { %5612 = vmatprep.mubr.bf16.mxu0 %v10499_v6 }
 0xecf   : > { %6128 = vmatpush1.bf16.msra.mxu1 %v12861_v41 }
 0xed0   : > { %6129 = vmatprep.subr.bf16.mxu1 %v12864_v19 }
 0xed2   : > { %5813 = vmatmul.mubr.bf16.gmra.mxu1 %v10488_v58 }
 0xed3   : > { %5820 = vmatprep.mubr.bf16.mxu1 %v10492_v47  ;;  %6130 = vmatpush1.bf16.msra.mxu1 %v12869_v33 }
 0xed4   : > { %6131 = vmatprep.subr.bf16.mxu1 %v12872_v20 }
 0xed5   : > { %5613 = vmatmul.mubr.bf16.gmra.mxu0 %v10501_v21 }
 0xed6   : > { %5622 = vmatprep.mubr.bf16.mxu0 %v10505_v22 }
 0xed7   : > { %6132 = vmatpush1.bf16.msra.mxu1 %v12883_v44 }
 0xed8   : > { %6309 = vmatprep.subr.bf16.mxu1 %v12759_v14 }
 0xeda   : > { %5821 = vmatmul.mubr.bf16.gmra.mxu1 %v10494_v17 }
 0xedb   : > { %5828 = vmatprep.mubr.bf16.mxu1 %v10499_v6 }
 0xedd   : > { %5623 = vmatmul.mubr.bf16.gmra.mxu0 %v10507_v2 }
 0xede   : > { %5632 = vmatprep.mubr.bf16.mxu0 %v10512_v23 }
 0xee2   : > { %5829 = vmatmul.mubr.bf16.gmra.mxu1 %v10501_v21 }
 0xee3   : > { %5836 = vmatprep.mubr.bf16.mxu1 %v10505_v22 }
 0xee5   : > { %5633 = vmatmul.mubr.bf16.gmra.mxu0 %v10514_v3 }
 0xee6   : > { %9636 = vmatprep.mubr.msk.bf16.mxu0 %vm5495_vm7, %v12676_v36  ;;  %v12916_v36 = vld [vmem:[%s11237_s22 + $0x68] ss:$12 sps:$4 sm:$0xff]  }
 0xeea   : > { %5837 = vmatmul.mubr.bf16.gmra.mxu1 %v10507_v2 }
 0xeeb   : > { %5844 = vmatprep.mubr.bf16.mxu1 %v10512_v23 }
 0xeed   : > { %9637 = vmatmul.mubr.msk.bf16.vlgmr.msra.gmra.mxu0 %vm5495_vm7, %v12691_v37  ;;  %v12925_v37 = vld [vmem:[%s11237_s22 + $0x50] ss:$12 sps:$4 sm:$0xff]  }
 0xeee   : > { %9653 = vmatpush3.bf16.msra.mxu0 %v12801_v45  ;;  %9640 = vmatprep.mubr.msk.bf16.mxu0 %vm5495_vm7, %v12705_v18  ;;  %v12932_v18 = vld [vmem:[%s11237_s22 + $0x38] ss:$12 sps:$4 sm:$0xff]  }
 0xeef   : > { %9654 = vmatprep.subr.bf16.mxu0 %v12901_v50 }
 0xef2   : > { %5845 = vmatmul.mubr.bf16.gmra.mxu1 %v10514_v3  ;;  %9655 = vmatpush3.bf16.msra.mxu0 %v12901_v50 }
 0xef3   : > { %6149 = vmatprep.mubr.bf16.mxu1 %v13765_v26  ;;  %9656 = vmatprep.subr.bf16.mxu0 %v12910_v43 }
 0xef5   : > { %9641 = vmatmul.mubr.msk.bf16.gmra.mxu0 %vm5495_vm7, %v12721_v0  ;;  %v12943_v0 = vld [vmem:[%s11237_s22 + $0x20] ss:$12 sps:$4 sm:$0xff]  }
 0xef6   : > { %9657 = vmatpush3.bf16.msra.mxu0 %v12910_v43  ;;  %9644 = vmatprep.mubr.msk.bf16.mxu0 %vm5495_vm7, %v12735_v51  ;;  %13820 = vst [vmem:[#allocation25_spill] sm:$0xff] %v12943_v0 }
 0xef7   : > { %9658 = vmatprep.subr.bf16.mxu0 %v12916_v36 }
 0xefa   : > { %6150 = vmatmul.mubr.bf16.vlgmr.msra.gmra.mxu1 %v13765_v26  ;;  %9659 = vmatpush3.bf16.msra.mxu0 %v12916_v36 }
 0xefb   : > { %6159 = vmatprep.mubr.bf16.mxu1 %v13765_v26  ;;  %9660 = vmatprep.subr.bf16.mxu0 %v12925_v37 }
 0xefc   : > { %6310 = vmatpush1.bf16.msra.mxu1 %v12804_v39 }
 0xefd   : > { %9645 = vmatmul.mubr.msk.bf16.gmra.mxu0 %vm5495_vm7, %v12754_v7  ;;  %6311 = vmatprep.subr.bf16.mxu1 %v12811_v38  ;;  %v13043_v38 = vrot.slane %v13026_v60, %v13763_v32 }
 0xefe   : > { %9661 = vmatpush3.bf16.msra.mxu0 %v12925_v37  ;;  %9648 = vmatprep.mubr.msk.bf16.mxu0 %vm5495_vm7, %v12770_v30 }
 0xeff   : > { %9662 = vmatprep.subr.bf16.mxu0 %v12932_v18 }
 0xf00   : > { %6312 = vmatpush1.bf16.msra.mxu1 %v12814_v29 }
 0xf01   : > { %6313 = vmatprep.subr.bf16.mxu1 %v12821_v55 }
 0xf02   : > { %6160 = vmatmul.mubr.bf16.gmra.mxu1 %v13765_v26  ;;  %9663 = vmatpush3.bf16.msra.mxu0 %v12932_v18 }
 0xf03   : > { %9664 = vmatprep.subr.bf16.mxu0 %v12943_v0  ;;  %6341 = vmatprep.mubr.bf16.mxu1 %v13765_v26 }
 0xf04   : > { %6314 = vmatpush1.bf16.msra.mxu1 %v12825_v63 }
 0xf05   : > { %9649 = vmatmul.mubr.msk.bf16.gmra.mxu0 %vm5495_vm7, %v12789_v61  ;;  %6315 = vmatprep.subr.bf16.mxu1 %v12828_v1  ;;  %v13764_v61 = vsub.s32 0, %v13018_v10 }
 0xf06   : > { %9665 = vmatpush3.bf16.msra.mxu0 %v12943_v0  ;;  %9668 = vmatprep.mubr.bf16.mxu0 %v13765_v26 }
 0xf07   : > { %9666 = vmatprep.subr.bf16.mxu0 %v12951_v62  ;;  %v13036_v39 = vrot.slane %v13026_v60, %v13764_v61 }
 0xf08   : > { %6316 = vmatpush1.bf16.msra.mxu1 %v12839_v4 }
 0xf09   : > { %6317 = vmatprep.subr.bf16.mxu1 %v12842_v53 }
 0xf0a   : > { %9667 = vmatpush3.bf16.msra.mxu0 %v12951_v62 }
 0xf0b   : > { %9672 = vmatprep.subr.bf16.mxu0 %v12801_v45 }
 0xf0c   : > { %6318 = vmatpush1.bf16.msra.mxu1 %v12847_v57 }
 0xf0d   : > { %9669 = vmatmul.mubr.bf16.vlgmr.msra.gmra.mxu0 %v13765_v26  ;;  %6319 = vmatprep.subr.bf16.mxu1 %v12850_v16 }
 0xf0e   : > { %9673 = vmatpush3.bf16.msra.mxu0 %v12801_v45 }
 0xf0f   : > { %9674 = vmatprep.subr.bf16.mxu0 %v12901_v50 }
 0xf10   : > { %6320 = vmatpush1.bf16.msra.mxu1 %v12861_v41 }
 0xf11   : > { %6321 = vmatprep.subr.bf16.mxu1 %v12864_v19 }
 0xf12   : > { %9675 = vmatpush3.bf16.msra.mxu0 %v12901_v50 }
 0xf13   : > { %9676 = vmatprep.subr.bf16.mxu0 %v12910_v43 }
 0xf14   : > { %6322 = vmatpush1.bf16.msra.mxu1 %v12869_v33 }
 0xf15   : > { %6323 = vmatprep.subr.bf16.mxu1 %v12872_v20 }
 0xf16   : > { %9677 = vmatpush3.bf16.msra.mxu0 %v12910_v43 }
 0xf17   : > { %9678 = vmatprep.subr.bf16.mxu0 %v12916_v36 }
 0xf18   : > { %6324 = vmatpush1.bf16.msra.mxu1 %v12883_v44 }
 0xf19   : > { %6501 = vmatprep.subr.bf16.mxu1 %v12759_v14 }
 0xf1a   : > { %9679 = vmatpush3.bf16.msra.mxu0 %v12916_v36 }
 0xf1b   : > { %9680 = vmatprep.subr.bf16.mxu0 %v12925_v37 }
 0xf1e   : > { %9681 = vmatpush3.bf16.msra.mxu0 %v12925_v37 }
 0xf1f   : > { %9682 = vmatprep.subr.bf16.mxu0 %v12932_v18 }
 0xf22   : > { %9683 = vmatpush3.bf16.msra.mxu0 %v12932_v18 }
 0xf23   : > { %9684 = vmatprep.subr.bf16.mxu0 %v12943_v0 }
 0xf26   : > { %9685 = vmatpush3.bf16.msra.mxu0 %v12943_v0 }
 0xf27   : > { %9686 = vmatprep.subr.bf16.mxu0 %v12951_v62 }
 0xf2a   : > { %9687 = vmatpush3.bf16.msra.mxu0 %v12951_v62 }
 0xf2b   : > { %9692 = vmatprep.subr.bf16.mxu0 %v12801_v45 }
 0xf3a   : > { %v5677_v25 = vpop.f32.mrf.mxu1 }
 0xf3c   : > { %v5679_v31 = vpop.f32.mrf.mxu1 }
 0xf3e   : > { %v12990_v51 = vpop.f32.mrf.mxu1 }
 0xf40   : > { %v5683_v15 = vpop.f32.mrf.mxu1 }
 0xf42   : > { %v5687_v9 = vpop.f32.mrf.mxu1 }
 0xf44   : > { %v5689_v59 = vpop.f32.mrf.mxu1 }
 0xf46   : > { %v12992_v24 = vpop.f32.mrf.mxu1 }
 0xf48   : > { %v5693_v42 = vpop.f32.mrf.mxu1 }
 0xf4a   : > { %v5697_v12 = vpop.f32.mrf.mxu1 }
 0xf4c   : > { %v12994_v13 = vpop.f32.mrf.mxu1 }
 0xf4e   : > { %v12996_v48 = vpop.f32.mrf.mxu1 }
 0xf50   : > { %v12998_v40 = vpop.f32.mrf.mxu1 }
 0xf52   : > { %v13000_v7 = vpop.f32.mrf.mxu1 }
 0xf54   : > { %v13002_v54 = vpop.f32.mrf.mxu1 }
 0xf56   : > { %v13004_v8 = vpop.f32.mrf.mxu1 }
 0xf58   : > { %v13006_v14 = vpop.f32.mrf.mxu1 }
 0xf5a   : > { %v13008_v49 = vpop.f32.mrf.mxu1 }
 0xf5c   : > { %v13010_v56 = vpop.f32.mrf.mxu1 }
 0xf5e   : > { %v13012_v30 = vpop.f32.mrf.mxu1 }
 0xf60   : > { %v13014_v28 = vpop.f32.mrf.mxu1 }
 0xf62   : > { %v13016_v5 = vpop.f32.mrf.mxu1 }
 0xf64   : > { %v13020_v35 = vpop.f32.mrf.mxu1 }
 0xf66   : > { %v13022_v27 = vpop.f32.mrf.mxu1 }
 0xf68   : > { %v13028_v52 = vpop.f32.mrf.mxu1 }
 0xf6a   : > { %v13031_v45 = vpop.f32.mrf.mxu1 }
 0xf6c   : > { %v13038_v34 = vpop.f32.mrf.mxu1 }
 0xf6d   : > { %v5564_v29 = vpop.f32.mrf.mxu0 }
 0xf6e   : > { %v5565_v11 = vadd.f32 %v5564_v29, %v13036_v39  ;;  %v13046_v55 = vpop.f32.mrf.mxu1 }
 0xf6f   : > { %v5566_v63 = vpop.f32.mrf.mxu0 }
 0xf70   : > { %v5567_v1 = vadd.f32 %v5566_v63, %v13043_v38  ;;  %v13049_v58 = vpop.f32.mrf.mxu1  ;;  %v13051_v47 = vadd.f32 %v5677_v25, %v5565_v11 }
 0xf71   : > { %v13053_v4 = vpop.f32.mrf.mxu0 }
 0xf72   : > { %v13055_v53 = vpop.f32.mrf.mxu1  ;;  %v13057_v57 = vadd.f32 %v5679_v31, %v5567_v1 }
 0xf73   : > { %v5570_v16 = vpop.f32.mrf.mxu0 }
 0xf74   : > { %v5571_v17 = vadd.f32 %v5570_v16, %v13043_v38  ;;  %v13060_v6 = vpop.f32.mrf.mxu1 }
 0xf75   : > { %v5574_v21 = vpop.f32.mrf.mxu0 }
 0xf76   : > { %v5575_v22 = vadd.f32 %v5574_v21, %v13036_v39  ;;  %v13063_v2 = vpop.f32.mrf.mxu1  ;;  %v13065_v23 = vadd.f32 %v5683_v15, %v5571_v17 }
 0xf77   : > { %v5576_v3 = vpop.f32.mrf.mxu0 }
 0xf78   : > { %v5577_v25 = vadd.f32 %v5576_v3, %v13043_v38  ;;  %v13068_v46 = vpop.f32.mrf.mxu1  ;;  %v13070_v29 = vadd.f32 %v5687_v9, %v5575_v22 }
 0xf79   : > { %v13072_v31 = vpop.f32.mrf.mxu0 }
 0xf7a   : > { %v9183_v11 = vpop.f32.mrf.mxu1  ;;  %v13074_v63 = vadd.f32 %v5689_v59, %v5577_v25 }
 0xf7b   : > { %v5580_v1 = vpop.f32.mrf.mxu0 }
 0xf7c   : > { %v5581_v16 = vadd.f32 %v5580_v1, %v13043_v38  ;;  %v9184_v21 = vpop.f32.mrf.mxu1 }
 0xf7d   : > { %v13077_v32 = vadd.f32 %v9184_v21, %v9183_v11  ;;  %v5584_v15 = vpop.f32.mrf.mxu0 }
 0xf7e   : > { %v5585_v17 = vadd.f32 %v5584_v15, %v13036_v39  ;;  %v9186_v61 = vpop.f32.mrf.mxu1  ;;  %v13080_v3 = vadd.f32 %v5693_v42, %v5581_v16 }
 0xf7f   : > { %v5586_v26 = vpop.f32.mrf.mxu0 }
 0xf80   : > { %v5587_v9 = vadd.f32 %v5586_v26, %v13043_v38  ;;  %v9187_v22 = vpop.f32.mrf.mxu1  ;;  %v13083_v62 = vadd.f32 %v5697_v12, %v5585_v17 }
 0xf81   : > { %v13085_v59 = vadd.f32 %v9187_v22, %v9186_v61  ;;  %v5588_v25 = vpop.f32.mrf.mxu0 }
 0xf82   : > { %v5589_v1 = vadd.f32 %v5588_v25, %v13036_v39  ;;  %v9189_v0 = vpop.f32.mrf.mxu1  ;;  %v13089_v11 = vadd.f32 %v12994_v13, %v5587_v9 }
 0xf83   : > { %v5590_v21 = vpop.f32.mrf.mxu0 }
 0xf84   : > { %13823 = vst [vmem:[#allocation28_spill] sm:$0xff] %v13089_v11  ;;  %v5591_v15 = vadd.f32 %v5590_v21, %v13043_v38  ;;  %v9190_v42 = vpop.f32.mrf.mxu1  ;;  %v13093_v16 = vadd.f32 %v12996_v48, %v5589_v1 }
 0xf85   : > { %v13095_v26 = vadd.f32 %v9190_v42, %v9189_v0  ;;  %v5594_v12 = vpop.f32.mrf.mxu0  ;;  %v13773_v0 = vsub.s32 2, %v13018_v10 }
 0xf86   : > { %v5595_v61 = vadd.f32 %v5594_v12, %v13036_v39  ;;  %v9192_v17 = vpop.f32.mrf.mxu1  ;;  %v13099_v22 = vadd.f32 %v12998_v40, %v5591_v15 }
 0xf87   : > { %v5596_v25 = vpop.f32.mrf.mxu0 }
 0xf88   : > { %13824 = vst [vmem:[#allocation29_spill] sm:$0xff] %v13099_v22  ;;  %v5597_v13 = vadd.f32 %v5596_v25, %v13043_v38  ;;  %v9193_v9 = vpop.f32.mrf.mxu1  ;;  %v13103_v11 = vadd.f32 %v13000_v7, %v5595_v61 }
 0xf89   : > { %v13105_v21 = vadd.f32 %v9193_v9, %v9192_v17  ;;  %v5598_v48 = vpop.f32.mrf.mxu0  ;;  %v13119_v17 = vrot.slane %v13026_v60, %v13773_v0 }
 0xf8a   : > { %v5599_v1 = vadd.f32 %v5598_v48, %v13036_v39  ;;  %v9195_v42 = vpop.f32.mrf.mxu1  ;;  %v13110_v12 = vadd.f32 %v13002_v54, %v5597_v13 }
 0xf8b   : > { %v5600_v40 = vpop.f32.mrf.mxu0 }
 0xf8c   : > { %v5601_v15 = vadd.f32 %v5600_v40, %v13043_v38  ;;  %v9196_v22 = vpop.f32.mrf.mxu1  ;;  %v13114_v25 = vadd.f32 %v13004_v8, %v5599_v1 }
 0xf8d   : > { %v9197_v7 = vadd.f32 %v9196_v22, %v9195_v42  ;;  %v5604_v61 = vpop.f32.mrf.mxu0 }
 0xf8e   : > { %v5605_v9 = vadd.f32 %v5604_v61, %v13036_v39  ;;  %v9198_v48 = vpop.f32.mrf.mxu1  ;;  %v13123_v54 = vadd.f32 %v13006_v14, %v5601_v15 }
 0xf8f   : > { %v5606_v13 = vpop.f32.mrf.mxu0  ;;  %v13126_v40 = vadd.f32 %v9197_v7, %v13119_v17 }
 0xf90   : > { %13825 = vst [vmem:[#allocation30_spill] sm:$0xff] %v13123_v54  ;;  %v5607_v8 = vadd.f32 %v5606_v13, %v13043_v38  ;;  %v9199_v1 = vpop.f32.mrf.mxu1  ;;  %v13130_v22 = vadd.f32 %v13008_v49, %v5605_v9 }
 0xf91   : > { %v9200_v42 = vadd.f32 %v9199_v1, %v9198_v48  ;;  %v5608_v10 = vpop.f32.mrf.mxu0 }
 0xf92   : > { %v5609_v60 = vadd.f32 %v5608_v10, %v13036_v39  ;;  %v9201_v0 = vpop.f32.mrf.mxu1  ;;  %v13134_v61 = vadd.f32 %v13010_v56, %v5607_v8 }
 0xf93   : > { %v5610_v14 = vpop.f32.mrf.mxu0  ;;  %v13137_v15 = vadd.f32 %v9200_v42, %v13119_v17 }
 0xf94   : > { %13826 = vst [vmem:[#allocation31_spill] sm:$0xff] %v13134_v61  ;;  %v5611_v7 = vadd.f32 %v5610_v14, %v13043_v38  ;;  %v9202_v54 = vpop.f32.mrf.mxu1  ;;  %v13141_v13 = vadd.f32 %v13012_v30, %v5609_v60 }
 0xf95   : > { %v9203_v49 = vadd.f32 %v9202_v54, %v9201_v0  ;;  %v5614_v9 = vpop.f32.mrf.mxu0 }
 0xf96   : > { %v5615_v48 = vadd.f32 %v5614_v9, %v13036_v39  ;;  %v9204_v1 = vpop.f32.mrf.mxu1  ;;  %v13145_v10 = vadd.f32 %v13014_v28, %v5611_v7 }
 0xf97   : > { %v5616_v56 = vpop.f32.mrf.mxu0  ;;  %v13148_v8 = vadd.f32 %v9203_v49, %v13119_v17 }
 0xf98   : > { %13827 = vst [vmem:[#allocation32_spill] sm:$0xff] %v13145_v10  ;;  %v5617_v42 = vadd.f32 %v5616_v56, %v13043_v38  ;;  %v9205_v61 = vpop.f32.mrf.mxu1  ;;  %v13152_v14 = vadd.f32 %v13016_v5, %v5615_v48 }
 0xf99   : > { %v9206_v30 = vadd.f32 %v9205_v61, %v9204_v1  ;;  %v5618_v60 = vpop.f32.mrf.mxu0 }
 0xf9a   : > { %v5619_v0 = vadd.f32 %v5618_v60, %v13036_v39  ;;  %v9207_v54 = vpop.f32.mrf.mxu1  ;;  %v13156_v9 = vadd.f32 %v13020_v35, %v5617_v42 }
 0xf9b   : > { %v5620_v28 = vpop.f32.mrf.mxu0  ;;  %v13159_v7 = vadd.f32 %v9206_v30, %v13119_v17 }
 0xf9c   : > { %13828 = vst [vmem:[#allocation33_spill] sm:$0xff] %v13156_v9  ;;  %v5621_v49 = vadd.f32 %v5620_v28, %v13043_v38  ;;  %v9208_v10 = vpop.f32.mrf.mxu1  ;;  %v13163_v56 = vadd.f32 %v13022_v27, %v5619_v0 }
 0xf9d   : > { %v9209_v5 = vadd.f32 %v9208_v10, %v9207_v54  ;;  %v5624_v48 = vpop.f32.mrf.mxu0 }
 0xf9e   : > { %13829 = vst [vmem:[#allocation34_spill] sm:$0xff] %v13163_v56  ;;  %v5625_v61 = vadd.f32 %v5624_v48, %v13036_v39  ;;  %v9210_v1 = vpop.f32.mrf.mxu1  ;;  %v13167_v60 = vadd.f32 %v13028_v52, %v5621_v49 }
 0xf9f   : > { %v5626_v35 = vpop.f32.mrf.mxu0  ;;  %v13170_v42 = vadd.f32 %v9209_v5, %v13119_v17 }
 0xfa0   : > { %13830 = vst [vmem:[#allocation35_spill] sm:$0xff] %v13167_v60  ;;  %v5627_v30 = vadd.f32 %v5626_v35, %v13043_v38  ;;  %v9211_v9 = vpop.f32.mrf.mxu1  ;;  %v13174_v28 = vadd.f32 %v13031_v45, %v5625_v61 }
 0xfa1   : > { %v9212_v27 = vadd.f32 %v9211_v9, %v9210_v1  ;;  %v5628_v0 = vpop.f32.mrf.mxu0 }
 0xfa2   : > { %13831 = vst [vmem:[#allocation36_spill] sm:$0xff] %v13174_v28  ;;  %v5629_v10 = vadd.f32 %v5628_v0, %v13036_v39  ;;  %v9213_v54 = vpop.f32.mrf.mxu1  ;;  %v13178_v48 = vadd.f32 %v13038_v34, %v5627_v30 }
 0xfa3   : > { %v5630_v52 = vpop.f32.mrf.mxu0  ;;  %v13181_v49 = vadd.f32 %v9212_v27, %v13119_v17 }
 0xfa4   : > { %13832 = vst [vmem:[#allocation37_spill] sm:$0xff] %v13178_v48  ;;  %v5631_v5 = vadd.f32 %v5630_v52, %v13043_v38  ;;  %v9214_v60 = vpop.f32.mrf.mxu1  ;;  %v13185_v35 = vadd.f32 %v13046_v55, %v5629_v10 }
 0xfa5   : > { %v9215_v45 = vadd.f32 %v9214_v60, %v9213_v54  ;;  %v5634_v61 = vpop.f32.mrf.mxu0 }
 0xfa6   : > { %13833 = vst [vmem:[#allocation38_spill] sm:$0xff] %v13185_v35  ;;  %v5635_v9 = vadd.f32 %v5634_v61, %v13036_v39  ;;  %v9216_v1 = vpop.f32.mrf.mxu1  ;;  %v13189_v0 = vadd.f32 %v13049_v58, %v5631_v5 }
 0xfa7   : > { %v5636_v34 = vpop.f32.mrf.mxu0  ;;  %v5831_v30 = vadd.f32 %v9215_v45, %v13119_v17 }
 0xfa8   : > { %13834 = vst [vmem:[#allocation39_spill] sm:$0xff] %v13189_v0  ;;  %v5637_v27 = vadd.f32 %v5636_v34, %v13043_v38  ;;  %v9217_v48 = vpop.f32.mrf.mxu1  ;;  %v13194_v52 = vadd.f32 %v13055_v53, %v5635_v9 }
 0xfa9   : > { %v9218_v28 = vadd.f32 %v9217_v48, %v9216_v1  ;;  %v5638_v55 = vpop.f32.mrf.mxu0 }
 0xfaa   : > { %13835 = vst [vmem:[#allocation40_spill] sm:$0xff] %v13194_v52  ;;  %v5639_v60 = vadd.f32 %v5638_v55, %v13036_v39  ;;  %v9219_v10 = vpop.f32.mrf.mxu1  ;;  %v13198_v54 = vadd.f32 %v13060_v6, %v5637_v27 }
 0xfab   : > { %v5640_v61 = vpop.f32.mrf.mxu0  ;;  %v5834_v58 = vadd.f32 %v9218_v28, %v13119_v17 }
 0xfac   : > { %13836 = vst [vmem:[#allocation41_spill] sm:$0xff] %v13198_v54  ;;  %v5641_v5 = vadd.f32 %v5640_v61, %v13043_v38  ;;  %v9220_v45 = vpop.f32.mrf.mxu1  ;;  %v13203_v34 = vadd.f32 %v13063_v2, %v5639_v60 }
 0xfad   : > { %v9221_v0 = vadd.f32 %v9220_v45, %v9219_v10  ;;  %v13205_v53 = vpop.f32.mrf.mxu0 }
 0xfae   : > { %13837 = vst [vmem:[#allocation42_spill] sm:$0xff] %v13203_v34  ;;  %v9222_v48 = vpop.f32.mrf.mxu1  ;;  %v13208_v9 = vadd.f32 %v13068_v46, %v5641_v5 }
 0xfaf   : > { %v13210_v1 = vpop.f32.mrf.mxu0  ;;  %v5839_v6 = vadd.f32 %v9221_v0, %v13119_v17 }
 0xfb0   : > { %13838 = vst [vmem:[#allocation43_spill] sm:$0xff] %v13208_v9  ;;  %v9223_v27 = vpop.f32.mrf.mxu1 }
 0xfb1   : > { %v9224_v55 = vadd.f32 %v9223_v27, %v9222_v48  ;;  %v13213_v28 = vpop.f32.mrf.mxu0  ;;  %v5569_v27 = vadd.f32 %v13053_v4, %v13036_v39 }
 0xfb2   : > { %v9225_v38 = vpop.f32.mrf.mxu1 }
 0xfb3   : > { %v13215_v61 = vpop.f32.mrf.mxu0  ;;  %v13218_v2 = vadd.f32 %v9224_v55, %v13119_v17  ;;  %v5682_v56 = vadd.f32 %v12990_v51, %v5569_v27 }
 0xfb4   : > { %v9226_v60 = vpop.f32.mrf.mxu1 }
 0xfb5   : > { %v9227_v10 = vadd.f32 %v9226_v60, %v9225_v38  ;;  %v9642_v45 = vpop.f32.mrf.mxu0 }
 0xfb6   : > { %v9228_v54 = vpop.f32.mrf.mxu1  ;;  %v13221_v46 = vadd.f32 %v9642_v45, %v13148_v8 }
 0xfb7   : > { %v5903_v5 = vpop.f32.mrf.mxu0  ;;  %v5847_v0 = vadd.f32 %v9227_v10, %v13119_v17 }
 0xfb8   : > { %v9229_v9 = vpop.f32.mrf.mxu1  ;;  %v13225_v48 = vadd.f32 %v5903_v5, %v13126_v40 }
 0xfb9   : > { %v9230_v34 = vadd.f32 %v9229_v9, %v9228_v54  ;;  %v9643_v55 = vpop.f32.mrf.mxu0 }
 0xfba   : > { %v13230_v52 = vadd.f32 %v9643_v55, %v13159_v7  ;;  %v6151_v38 = vpop.f32.mrf.mxu1 }
 0xfbb   : > { %v6219_v60 = vadd.f32 %v6151_v38, %v13051_v47  ;;  %v5906_v8 = vpop.f32.mrf.mxu0  ;;  %v5850_v45 = vadd.f32 %v9230_v34, %v13119_v17  ;;  %v5579_v34 = vadd.f32 %v13072_v31, %v13036_v39 }
 0xfbc   : > { %v13235_v10 = vadd.f32 %v5906_v8, %v13137_v15  ;;  %v6153_v35 = vpop.f32.mrf.mxu1 }
 0xfbd   : > { %v8790_v40 = vmul.f32 -1.442695, %v6219_v60  ;;  %v9646_v5 = vpop.f32.mrf.mxu0  ;;  %v6247_v15 = vadd.f32 %v6153_v35, %v13057_v57  ;;  %v5692_v57 = vadd.f32 %v12992_v24, %v5579_v34 }
 0xfbe   : > { %v13238_v4 = vadd.f32 %v9646_v5, %v5831_v30  ;;  %v6155_v54 = vpop.f32.mrf.mxu1 }
 0xfbf   : > { %10605 = vpow2.f32 %v8790_v40  ;;  %v6220_v7 = vadd.f32 %v6155_v54, %v5682_v56  ;;  %v5919_v9 = vpop.f32.mrf.mxu0  ;;  %v8794_v5 = vmul.f32 -1.442695, %v6247_v15 }
 0xfc0   : > { %v13241_v55 = vadd.f32 %v5919_v9, %v13170_v42  ;;  %v6157_v47 = vpop.f32.mrf.mxu1 }
 0xfc1   : > { %v8791_v38 = vmul.f32 -1.442695, %v6220_v7  ;;  %v9647_v60 = vpop.f32.mrf.mxu0  ;;  %v6248_v56 = vadd.f32 %v6157_v47, %v13065_v23 }
 0xfc2   : > { %v13246_v8 = vadd.f32 %v9647_v60, %v5834_v58  ;;  %v6161_v51 = vpop.f32.mrf.mxu1 }
 0xfc3   : > { %10607 = vpow2.f32 %v8791_v38  ;;  %v6221_v30 = vadd.f32 %v6161_v51, %v13070_v29  ;;  %v5922_v27 = vpop.f32.mrf.mxu0  ;;  %v8795_v9 = vmul.f32 -1.442695, %v6248_v56 }
 0xfc4   : > { %v13251_v42 = vadd.f32 %v5922_v27, %v13181_v49  ;;  %v6163_v40 = vpop.f32.mrf.mxu1 }
 0xfc5   : > { %v8792_v54 = vmul.f32 -1.442695, %v6221_v30  ;;  %v9650_v39 = vpop.f32.mrf.mxu0  ;;  %v6249_v29 = vadd.f32 %v6163_v40, %v13074_v63 }
 0xfc6   : > { %v13254_v31 = vadd.f32 %v9650_v39, %v5847_v0  ;;  %v6165_v35 = vpop.f32.mrf.mxu1 }
 0xfc7   : > { %10609 = vpow2.f32 %v8792_v54  ;;  %v6222_v58 = vadd.f32 %v6165_v35, %v5692_v57  ;;  %v5935_v7 = vpop.f32.mrf.mxu0  ;;  %v8796_v0 = vmul.f32 -1.442695, %v6249_v29 }
 0xfc8   : > { %v13257_v38 = vadd.f32 %v5935_v7, %v5839_v6  ;;  %10611 = vpow2.f32 %v8794_v5  ;;  %v6167_v49 = vpop.f32.mrf.mxu1  ;;  %v5791_v7 = vadd.f32 %v13077_v32, %v13119_v17 }
 0xfc9   : > { %v8793_v23 = vmul.f32 -1.442695, %v6222_v58  ;;  %v9651_v47 = vpop.f32.mrf.mxu0  ;;  %v6250_v34 = vadd.f32 %v6167_v49, %v13080_v3  ;;  %v13266_v3 = vld [vmem:[%s11227_s27] ss:$0 sm:$0xff] }
 0xfca   : > { %v13259_v15 = vadd.f32 %v9651_v47, %v5850_v45 }
 0xfcb   : > { %10613 = vpow2.f32 %v8793_v23  ;;  %v5938_v60 = vpop.f32.mrf.mxu0  ;;  %v8797_v30 = vmul.f32 -1.442695, %v6250_v34 }
 0xfcc   : > { %v10606_v24 = vpop.eup %10605  ;;  %10615 = vpow2.f32 %v8795_v9  ;;  %v13263_v51 = vadd.f32 %v5938_v60, %v13218_v2  ;;  %v5888_v60 = vadd.f32 %v13210_v1, %v5791_v7 }
 0xfcd   : > { %v6235_v63 = vadd.f32 1.0, %v10606_v24  ;;  %v9670_v27 = vpop.f32.mrf.mxu0 }
 0xfce   : > { %v6277_v1 = vadd.f32 %v9670_v27, %v13266_v3 }
 0xfcf   : > { %10617 = vrcp.f32 %v6235_v63  ;;  %v6204_v40 = vpop.f32.mrf.mxu0 }
 0xfd0   : > { %v10608_v6 = vpop.eup %10607  ;;  %10619 = vpow2.f32 %v8796_v0  ;;  %v6275_v9 = vadd.f32 %v13266_v3, %v6204_v40  ;;  %v5794_v0 = vadd.f32 %v13085_v59, %v13119_v17  ;;  %v5799_v40 = vadd.f32 %v13095_v26, %v13119_v17 }
 0xfd1   : > { %v6236_v56 = vadd.f32 1.0, %v10608_v6  ;;  %v9671_v2 = vpop.f32.mrf.mxu0 }
 0xfd3   : > { %10621 = vrcp.f32 %v6236_v56  ;;  %v6207_v49 = vpop.f32.mrf.mxu0  ;;  %v5891_v56 = vadd.f32 %v13215_v61, %v5794_v0  ;;  %v6278_v61 = vadd.f32 %v9671_v2, %v13266_v3 }
 0xfd4   : > { %v10610_v45 = vpop.eup %10609  ;;  %10623 = vpow2.f32 %v8797_v30  ;;  %v6276_v63 = vadd.f32 %v13266_v3, %v6207_v49 }
 0xfd5   : > { %v6237_v5 = vadd.f32 1.0, %v10610_v45  ;;  %v10612_v54 = vpop.eup %10611 }
 0xfd6   : > { %v6263_v35 = vadd.f32 1.0, %v10612_v54 }
 0xfd7   : > { %10625 = vrcp.f32 %v6237_v5 }
 0xfd8   : > { %v10614_v39 = vpop.eup %10613 }
 0xfd9   : > { %v10616_v57 = vpop.eup %10615  ;;  %v6238_v58 = vadd.f32 1.0, %v10614_v39  ;;  %v5896_v39 = vadd.f32 %v13205_v53, %v5799_v40 }
 0xfda   : > { %v6264_v23 = vadd.f32 1.0, %v10616_v57 }
 0xfdb   : > { %10627 = vrcp.f32 %v6238_v58 }
 0xfdc   : > { %v10618_v29 = vpop.eup %10617  ;;  %10629 = vrcp.f32 %v6263_v35  ;;  %v5802_v35 = vadd.f32 %v13105_v21, %v13119_v17 }
 0xfdd   : > { %v10620_v47 = vpop.eup %10619  ;;  %v6279_v24 = vmul.f32 %v10618_v29, %v6275_v9  ;;  %10631 = vrcp.f32 %v6264_v23 }
 0xfde   : > { %v6265_v32 = vadd.f32 1.0, %v10620_v47  ;;  %v5899_v26 = vadd.f32 %v13213_v28, %v5802_v35  ;;  %v13298_v35 = vld [vmem:[%s11237_s22 + $0x94] ss:$12 sps:$4 sm:$0xff]  }
 0xfdf   : > { %v6283_v34 = vadd.f32 %v6279_v24, %v5888_v60 }
 0xfe0   : > { %v10622_v6 = vpop.eup %10621 }
 0xfe1   : > { %v10624_v30 = vpop.eup %10623  ;;  %10633 = vtanh.f32 %v6283_v34  ;;  %v6280_v45 = vmul.f32 %v10622_v6, %v6276_v63 }
 0xfe2   : > { %10635 = vrcp.f32 %v6265_v32  ;;  %v6266_v59 = vadd.f32 1.0, %v10624_v30 }
 0xfe3   : > { %v6284_v5 = vadd.f32 %v6280_v45, %v5891_v56 }
 0xfe4   : > { %v10626_v54 = vpop.eup %10625 }
 0xfe5   : > { %v6281_v57 = vmul.f32 %v10626_v54, %v6277_v1  ;;  %10637 = vtanh.f32 %v6284_v5  ;;  %v13839_v54 = vmov 0  }
 0xfe6   : > { %10639 = vrcp.f32 %v6266_v59  ;;  %v13294_v59 = vld [vmem:[%s11237_s22 + $0xa8] ss:$12 sps:$4 sm:$0xff]  }
 0xfe7   : > { %v6285_v58 = vadd.f32 %v6281_v57, %v5896_v39 }
 0xfe8   : > { %v10628_v7 = vpop.eup %10627 }
 0xfe9   : > { %10641 = vtanh.f32 %v6285_v58  ;;  %v6282_v27 = vmul.f32 %v10628_v7, %v6278_v61  ;;  %v10630_v9 = vpop.eup %10629  ;;  %v13304_v61 = vld [vmem:[%s11237_s22 + $0x90] ss:$12 sps:$4 sm:$0xff]  }
 0xfea   : > { %v10632_v23 = vpop.eup %10631  ;;  %v6291_v49 = vsub.f32 1.0, %v10630_v9  ;;  %v6299_v60 = vmul.f32 0.0, %v10630_v9  ;;  %v13318_v9 = vld [vmem:[%s11237_s22 + $0xb0] ss:$12 sps:$4 sm:$0xff]  }
 0xfeb   : > { %v6286_v29 = vadd.f32 %v6282_v27, %v5899_v26  ;;  %v6292_v0 = vsub.f32 1.0, %v10632_v23  ;;  %v6300_v34 = vmul.f32 0.0, %v10632_v23  ;;  %v13310_v26 = vld [vmem:[%s11237_s22 + $0x7c] ss:$12 sps:$4 sm:$0xff]   ;;  %v13314_v27 = vld [vmem:[%s11237_s22 + $0x78] ss:$12 sps:$4 sm:$0xff]  }
 0xfec   : > { %v13328_v23 = vld [vmem:[%s11237_s22 + $0x60] ss:$12 sps:$4 sm:$0xff]  }
 0xfed   : > { %10643 = vtanh.f32 %v6286_v29  ;;  %v13322_v29 = vld [vmem:[%s11237_s22 + $0x64] ss:$12 sps:$4 sm:$0xff]  }
 0xfee   : > { %v10634_v53 = vpop.eup %10633 }
 0xfef   : > { %v6295_v47 = vmul.f32 %v10634_v53, %v6291_v49  ;;  %v10636_v24 = vpop.eup %10635  ;;  %v13333_v49 = vld [vmem:[%s11237_s22 + $0x4c] ss:$12 sps:$4 sm:$0xff]   ;;  %v13338_v53 = vld [vmem:[%s11237_s22 + $0x48] ss:$12 sps:$4 sm:$0xff]  }
 0xff0   : > { %v6293_v6 = vsub.f32 1.0, %v10636_v24  ;;  %v6301_v45 = vmul.f32 0.0, %v10636_v24 }
 0xff1   : > { %v13284_v21 = vadd.f32 %v6299_v60, %v6295_v47  ;;  %v13343_v47 = vld [vmem:[%s11237_s22 + $0x34] ss:$12 sps:$4 sm:$0xff]   ;;  %v13842_v60 = vld [vmem:[#allocation28_spill] sm:$0xff] }
 0xff2   : > { %v10638_v17 = vpop.eup %10637 }
 0xff3   : > { %v6296_v2 = vmul.f32 %v10638_v17, %v6292_v0  ;;  %v10640_v63 = vpop.eup %10639 }
 0xff4   : > { %v6294_v40 = vsub.f32 1.0, %v10640_v63  ;;  %v6302_v57 = vmul.f32 0.0, %v10640_v63 }
 0xff5   : > { %v13286_v28 = vadd.f32 %v6300_v34, %v6296_v2  ;;  %v13843_v34 = vld [vmem:[#allocation29_spill] sm:$0xff] }
 0xff6   : > { %v10642_v32 = vpop.eup %10641 }
 0xff7   : > { %v6307_v30 = vpack.c.bf16 %v13286_v28, %v13284_v21  ;;  %v6297_v56 = vmul.f32 %v10642_v32, %v6293_v6 }
 0xff9   : > { %6342 = vmatmul.mubr.bf16.vlgmr.msra.gmra.mxu1 %v6307_v30  ;;  %9688 = vmatprep.mubr.bf16.mxu0 %v6307_v30  ;;  %v13290_v1 = vadd.f32 %v6301_v45, %v6297_v56 }
 0xffa   : > { %v10644_v5 = vpop.eup %10643  ;;  %6351 = vmatprep.mubr.bf16.mxu1 %v13839_v54  ;;  %6502 = vmatpush1.bf16.msra.mxu1 %v13294_v59 }
 0xffb   : > { %v6298_v39 = vmul.f32 %v10644_v5, %v6294_v40  ;;  %6503 = vmatprep.subr.bf16.mxu1 %v13298_v35 }
 0xffd   : > { %v13301_v58 = vadd.f32 %v6302_v57, %v6298_v39 }
 0xffe   : > { %6504 = vmatpush1.bf16.msra.mxu1 %v13304_v61 }
 0xfff   : > { %v6308_v7 = vpack.c.bf16 %v13301_v58, %v13290_v1  ;;  %6505 = vmatprep.subr.bf16.mxu1 %v13310_v26 }
0x1001   : > { %6352 = vmatmul.mubr.bf16.gmra.mxu1 %v6308_v7  ;;  %9689 = vmatmul.mubr.bf16.vlgmr.msra.gmra.mxu0 %v6308_v7 }
0x1002   : > { %6506 = vmatpush1.bf16.msra.mxu1 %v13314_v27  ;;  %9693 = vmatpush3.bf16.msra.mxu0 %v13318_v9 }
0x1003   : > { %6507 = vmatprep.subr.bf16.mxu1 %v13322_v29  ;;  %9694 = vmatprep.subr.bf16.mxu0 %v12901_v50 }
0x1004   : > { %6533 = vmatprep.mubr.bf16.mxu1 %v13839_v54 }
0x1006   : > { %6508 = vmatpush1.bf16.msra.mxu1 %v13328_v23  ;;  %9695 = vmatpush3.bf16.msra.mxu0 %v12901_v50  ;;  %v13840_v50 = vld [vmem:[#allocation25_spill] sm:$0xff] }
0x1007   : > { %6509 = vmatprep.subr.bf16.mxu1 %v13333_v49  ;;  %9696 = vmatprep.subr.bf16.mxu0 %v12910_v43 }
0x100a   : > { %6510 = vmatpush1.bf16.msra.mxu1 %v13338_v53  ;;  %9697 = vmatpush3.bf16.msra.mxu0 %v12910_v43 }
0x100b   : > { %6511 = vmatprep.subr.bf16.mxu1 %v13343_v47  ;;  %9698 = vmatprep.subr.bf16.mxu0 %v12916_v36 }
0x100e   : > { %6512 = vmatpush1.bf16.msra.mxu1 %v12861_v41  ;;  %9699 = vmatpush3.bf16.msra.mxu0 %v12916_v36  ;;  %v10868_v41 = vld [vmem:[%s11237_s22 + $0xac] ss:$12 sps:$4 sm:$0xff]  }
0x100f   : > { %6513 = vmatprep.subr.bf16.mxu1 %v12864_v19  ;;  %9700 = vmatprep.subr.bf16.mxu0 %v12925_v37  ;;  %v13841_v19 = vld [vmem:[#allocation26_spill] sm:$0xff] }
0x1012   : > { %6514 = vmatpush1.bf16.msra.mxu1 %v12869_v33  ;;  %9701 = vmatpush3.bf16.msra.mxu0 %v12925_v37 }
0x1013   : > { %6515 = vmatprep.subr.bf16.mxu1 %v12872_v20  ;;  %9702 = vmatprep.subr.bf16.mxu0 %v12932_v18 }
0x1016   : > { %6516 = vmatpush1.bf16.msra.mxu1 %v12883_v44  ;;  %9703 = vmatpush3.bf16.msra.mxu0 %v12932_v18 }
0x1017   : > { %9704 = vmatprep.subr.bf16.mxu0 %v13840_v50  ;;  %6693 = vmatprep.subr.bf16.mxu1 %v10868_v41 }
0x101a   : > { %9705 = vmatpush3.bf16.msra.mxu0 %v13840_v50 }
0x101b   : > { %9706 = vmatprep.subr.bf16.mxu0 %v13841_v19 }
0x101e   : > { %9707 = vmatpush3.bf16.msra.mxu0 %v13841_v19 }
0x101f   : > { %9712 = vmatprep.subr.bf16.mxu0 %v13318_v9 }
0x10b9   : > { %v6343_v33 = vpop.f32.mrf.mxu1 }
0x10ba   : > { %v6411_v20 = vadd.f32 %v6343_v33, %v13083_v62 }
0x10bb   : > { %v6345_v43 = vpop.f32.mrf.mxu1 }
0x10bc   : > { %v8798_v36 = vmul.f32 -1.442695, %v6411_v20  ;;  %v6439_v24 = vadd.f32 %v6345_v43, %v13842_v60 }
0x10bd   : > { %v6347_v44 = vpop.f32.mrf.mxu1 }
0x10be   : > { %10645 = vpow2.f32 %v8798_v36  ;;  %v6412_v37 = vadd.f32 %v6347_v44, %v13093_v16  ;;  %v8802_v32 = vmul.f32 -1.442695, %v6439_v24 }
0x10bf   : > { %v6349_v18 = vpop.f32.mrf.mxu1 }
0x10c0   : > { %v8799_v0 = vmul.f32 -1.442695, %v6412_v37  ;;  %v6440_v63 = vadd.f32 %v6349_v18, %v13843_v34 }
0x10c1   : > { %v6353_v17 = vpop.f32.mrf.mxu1  ;;  %v9690_v19 = vpop.f32.mrf.mxu0 }
0x10c2   : > { %10647 = vpow2.f32 %v8799_v0  ;;  %v6413_v2 = vadd.f32 %v6353_v17, %v13103_v11  ;;  %v8803_v45 = vmul.f32 -1.442695, %v6440_v63  ;;  %v13844_v11 = vld [vmem:[#allocation30_spill] sm:$0xff] }
0x10c3   : > { %v6355_v6 = vpop.f32.mrf.mxu1  ;;  %v6396_v43 = vpop.f32.mrf.mxu0 }
0x10c4   : > { %v8800_v30 = vmul.f32 -1.442695, %v6413_v2  ;;  %v6441_v16 = vadd.f32 %v6355_v6, %v13110_v12  ;;  %v6467_v0 = vadd.f32 %v13266_v3, %v6396_v43 }
0x10c5   : > { %v6357_v62 = vpop.f32.mrf.mxu1  ;;  %v9691_v37 = vpop.f32.mrf.mxu0 }
0x10c6   : > { %10649 = vpow2.f32 %v8800_v30  ;;  %v6414_v56 = vadd.f32 %v6357_v62, %v13114_v25  ;;  %v8804_v57 = vmul.f32 -1.442695, %v6441_v16 }
0x10c7   : > { %10651 = vpow2.f32 %v8802_v32  ;;  %v6359_v5 = vpop.f32.mrf.mxu1  ;;  %v6399_v34 = vpop.f32.mrf.mxu0 }
0x10c8   : > { %v8801_v40 = vmul.f32 -1.442695, %v6414_v56  ;;  %v6442_v7 = vadd.f32 %v6359_v5, %v13844_v11  ;;  %v6468_v30 = vadd.f32 %v13266_v3, %v6399_v34 }
0x10ca   : > { %10653 = vpow2.f32 %v8801_v40  ;;  %v8805_v33 = vmul.f32 -1.442695, %v6442_v7  ;;  %v6469_v40 = vadd.f32 %v9690_v19, %v13266_v3 }
0x10cb   : > { %v10646_v39 = vpop.eup %10645  ;;  %10655 = vpow2.f32 %v8803_v45 }
0x10cc   : > { %v6427_v50 = vadd.f32 1.0, %v10646_v39 }
0x10ce   : > { %10657 = vrcp.f32 %v6427_v50 }
0x10cf   : > { %v10648_v41 = vpop.eup %10647  ;;  %10659 = vpow2.f32 %v8804_v57 }
0x10d0   : > { %v6428_v20 = vadd.f32 1.0, %v10648_v41 }
0x10d2   : > { %10661 = vrcp.f32 %v6428_v20 }
0x10d3   : > { %v10650_v25 = vpop.eup %10649  ;;  %10663 = vpow2.f32 %v8805_v33 }
0x10d4   : > { %v6429_v12 = vadd.f32 1.0, %v10650_v25  ;;  %v10652_v36 = vpop.eup %10651 }
0x10d5   : > { %v6455_v60 = vadd.f32 1.0, %v10652_v36 }
0x10d6   : > { %10665 = vrcp.f32 %v6429_v12 }
0x10d7   : > { %v10654_v44 = vpop.eup %10653 }
0x10d8   : > { %v10656_v18 = vpop.eup %10655  ;;  %v6430_v24 = vadd.f32 1.0, %v10654_v44 }
0x10d9   : > { %v6456_v2 = vadd.f32 1.0, %v10656_v18 }
0x10da   : > { %10667 = vrcp.f32 %v6430_v24 }
0x10db   : > { %v10658_v17 = vpop.eup %10657  ;;  %10669 = vrcp.f32 %v6455_v60 }
0x10dc   : > { %v10660_v63 = vpop.eup %10659  ;;  %v6471_v6 = vmul.f32 %v10658_v17, %v6467_v0  ;;  %10671 = vrcp.f32 %v6456_v2 }
0x10dd   : > { %v6457_v56 = vadd.f32 1.0, %v10660_v63 }
0x10de   : > { %v6475_v32 = vadd.f32 %v6471_v6, %v13225_v48  ;;  %v6470_v48 = vadd.f32 %v9691_v37, %v13266_v3 }
0x10df   : > { %v10662_v62 = vpop.eup %10661 }
0x10e0   : > { %v10664_v45 = vpop.eup %10663  ;;  %10673 = vtanh.f32 %v6475_v32  ;;  %v6472_v16 = vmul.f32 %v10662_v62, %v6468_v30 }
0x10e1   : > { %10675 = vrcp.f32 %v6457_v56  ;;  %v6458_v57 = vadd.f32 1.0, %v10664_v45  ;;  %v10531_v56 = vld [vmem:[%s11216_s25 + $0xac] ss:$12 sps:$4 sm:$0xff]   ;;  %v10547_v45 = vld [vmem:[%s11216_s25 + $0x1b4] ss:$12 sps:$4 sm:$0x3f]  }
0x10e2   : > { %v6476_v5 = vadd.f32 %v6472_v16, %v13235_v10 }
0x10e3   : > { %v10666_v39 = vpop.eup %10665 }
0x10e4   : > { %v6473_v11 = vmul.f32 %v10666_v39, %v6469_v40  ;;  %10677 = vtanh.f32 %v6476_v5 }
0x10e5   : > { %10679 = vrcp.f32 %v6458_v57 }
0x10e6   : > { %v6477_v7 = vadd.f32 %v6473_v11, %v13221_v46 }
0x10e7   : > { %v10668_v50 = vpop.eup %10667 }
0x10e8   : > { %10681 = vtanh.f32 %v6477_v7  ;;  %v6474_v41 = vmul.f32 %v10668_v50, %v6470_v48  ;;  %v10670_v33 = vpop.eup %10669  ;;  %v13845_v48 = vld [vmem:[#allocation31_spill] sm:$0xff] }
0x10e9   : > { %v10672_v25 = vpop.eup %10671  ;;  %v6483_v19 = vsub.f32 1.0, %v10670_v33  ;;  %v6491_v12 = vmul.f32 %v10670_v33, %v13284_v21 }
0x10ea   : > { %v6478_v20 = vadd.f32 %v6474_v41, %v13230_v52  ;;  %v6484_v44 = vsub.f32 1.0, %v10672_v25  ;;  %v6492_v60 = vmul.f32 %v10672_v25, %v13286_v28  ;;  %v13846_v25 = vld [vmem:[#allocation32_spill] sm:$0xff] }
0x10ec   : > { %10683 = vtanh.f32 %v6478_v20 }
0x10ed   : > { %v10674_v10 = vpop.eup %10673 }
0x10ee   : > { %v6487_v43 = vmul.f32 %v10674_v10, %v6483_v19  ;;  %v10676_v36 = vpop.eup %10675 }
0x10ef   : > { %v6485_v17 = vsub.f32 1.0, %v10676_v36  ;;  %v6493_v63 = vmul.f32 %v10676_v36, %v13290_v1  ;;  %v13847_v36 = vld [vmem:[#allocation34_spill] sm:$0xff] }
0x10f0   : > { %v13380_v18 = vadd.f32 %v6491_v12, %v6487_v43 }
0x10f1   : > { %v10678_v46 = vpop.eup %10677 }
0x10f2   : > { %v6488_v37 = vmul.f32 %v10678_v46, %v6484_v44  ;;  %v10680_v24 = vpop.eup %10679 }
0x10f3   : > { %v6486_v21 = vsub.f32 1.0, %v10680_v24  ;;  %v6494_v30 = vmul.f32 %v10680_v24, %v13301_v58  ;;  %v10871_v58 = vld [vmem:[%s11237_s22 + $0x68] ss:$12 sps:$4 sm:$0xff]  }
0x10f4   : > { %v13383_v0 = vadd.f32 %v6492_v60, %v6488_v37  ;;  %v13848_v37 = vld [vmem:[#allocation33_spill] sm:$0xff] }
0x10f5   : > { %v10682_v52 = vpop.eup %10681 }
0x10f6   : > { %v6499_v2 = vpack.c.bf16 %v13383_v0, %v13380_v18  ;;  %v6489_v34 = vmul.f32 %v10682_v52, %v6485_v17 }
0x10f8   : > { %6534 = vmatmul.mubr.bf16.vlgmr.msra.gmra.mxu1 %v6499_v2  ;;  %9708 = vmatprep.mubr.bf16.mxu0 %v6499_v2  ;;  %v13388_v6 = vadd.f32 %v6493_v63, %v6489_v34 }
0x10f9   : > { %v10684_v32 = vpop.eup %10683  ;;  %6543 = vmatprep.mubr.bf16.mxu1 %v13839_v54  ;;  %6694 = vmatpush1.bf16.msra.mxu1 %v13294_v59  ;;  %v10869_v59 = vld [vmem:[%s11237_s22 + $0x98] ss:$12 sps:$4 sm:$0xff]  }
0x10fa   : > { %v6490_v28 = vmul.f32 %v10684_v32, %v6486_v21  ;;  %6695 = vmatprep.subr.bf16.mxu1 %v13298_v35  ;;  %v10870_v35 = vld [vmem:[%s11237_s22 + $0x80] ss:$12 sps:$4 sm:$0xff]  }
0x10fc   : > { %v13394_v62 = vadd.f32 %v6494_v30, %v6490_v28 }
0x10fd   : > { %6696 = vmatpush1.bf16.msra.mxu1 %v13304_v61  ;;  %v10872_v61 = vld [vmem:[%s11237_s22 + $0x30] ss:$12 sps:$4 sm:$0xff]  }
0x10fe   : > { %v6500_v1 = vpack.c.bf16 %v13394_v62, %v13388_v6  ;;  %6697 = vmatprep.subr.bf16.mxu1 %v13310_v26  ;;  %v10873_v26 = vld [vmem:[%s11237_s22 + $0x1c] ss:$12 sps:$4 sm:$0xff]  }
0x1100   : > { %6544 = vmatmul.mubr.bf16.gmra.mxu1 %v6500_v1  ;;  %9709 = vmatmul.mubr.bf16.vlgmr.msra.gmra.mxu0 %v6500_v1 }
0x1101   : > { %6698 = vmatpush1.bf16.msra.mxu1 %v13314_v27  ;;  %9713 = vmatpush3.bf16.msra.mxu0 %v13318_v9  ;;  %v10874_v27 = vld [vmem:[%s11237_s22 + $0x50] ss:$12 sps:$4 sm:$0xff]   ;;  %v10875_v9 = vld [vmem:[%s11237_s22 + $0x18] ss:$12 sps:$4 sm:$0xff]  }
0x1102   : > { %6699 = vmatprep.subr.bf16.mxu1 %v13322_v29  ;;  %9714 = vmatprep.subr.bf16.mxu0 %v10869_v59  ;;  %v10876_v29 = vld [vmem:[%s11237_s22 + $0x4] ss:$12 sps:$4 sm:$0xff]  }
0x1103   : > { %6725 = vmatprep.mubr.bf16.mxu1 %v13839_v54 }
0x1105   : > { %6700 = vmatpush1.bf16.msra.mxu1 %v13328_v23  ;;  %9715 = vmatpush3.bf16.msra.mxu0 %v10869_v59  ;;  %v10877_v23 = vld [vmem:[%s11237_s22 + $0x38] ss:$12 sps:$4 sm:$0xff]  }
0x1106   : > { %6701 = vmatprep.subr.bf16.mxu1 %v13333_v49  ;;  %9716 = vmatprep.subr.bf16.mxu0 %v10870_v35  ;;  %v10878_v49 = vld [vmem:[%s11237_s22] ss:$12 sps:$4 sm:$0xff]  }
0x1109   : > { %6702 = vmatpush1.bf16.msra.mxu1 %v13338_v53  ;;  %9717 = vmatpush3.bf16.msra.mxu0 %v10870_v35  ;;  %v10879_v53 = vld [vmem:[%s11237_s22 + $0x20] ss:$12 sps:$4 sm:$0xff]  }
0x110a   : > { %6703 = vmatprep.subr.bf16.mxu1 %v13343_v47  ;;  %9718 = vmatprep.subr.bf16.mxu0 %v10871_v58  ;;  %v10880_v47 = vld [vmem:[%s11237_s22 + $0x8] ss:$12 sps:$4 sm:$0xff]  }
0x110d   : > { %6704 = vmatpush1.bf16.msra.mxu1 %v10872_v61  ;;  %9719 = vmatpush3.bf16.msra.mxu0 %v10871_v58 }
0x110e   : > { %6705 = vmatprep.subr.bf16.mxu1 %v10873_v26  ;;  %9720 = vmatprep.subr.bf16.mxu0 %v10874_v27 }
0x1111   : > { %6706 = vmatpush1.bf16.msra.mxu1 %v10875_v9  ;;  %9721 = vmatpush3.bf16.msra.mxu0 %v10874_v27 }
0x1112   : > { %6707 = vmatprep.subr.bf16.mxu1 %v10876_v29  ;;  %9722 = vmatprep.subr.bf16.mxu0 %v10877_v23 }
0x1115   : > { %6708 = vmatpush1.bf16.msra.mxu1 %v10878_v49  ;;  %9723 = vmatpush3.bf16.msra.mxu0 %v10877_v23 }
0x1116   : > { %9724 = vmatprep.subr.bf16.mxu0 %v10879_v53  ;;  %7286 = vmatprep.subr.bf16.mxu1 %v10531_v56 }
0x1119   : > { %9725 = vmatpush3.bf16.msra.mxu0 %v10879_v53 }
0x111a   : > { %9726 = vmatprep.subr.bf16.mxu0 %v10880_v47 }
0x111d   : > { %9727 = vmatpush3.bf16.msra.mxu0 %v10880_v47 }
0x111e   : > { %8879 = vmatprep.subr.msk.bf16.mxu0 %vm5520_vm6, %v10547_v45 }
0x11b8   : > { %v6535_v16 = vpop.f32.mrf.mxu1 }
0x11b9   : > { %v6603_v40 = vadd.f32 %v6535_v16, %v13130_v22 }
0x11ba   : > { %v6537_v5 = vpop.f32.mrf.mxu1 }
0x11bb   : > { %v8806_v39 = vmul.f32 -1.442695, %v6603_v40  ;;  %v6631_v50 = vadd.f32 %v6537_v5, %v13845_v48 }
0x11bc   : > { %v6539_v57 = vpop.f32.mrf.mxu1 }
0x11bd   : > { %10685 = vpow2.f32 %v8806_v39  ;;  %v6604_v11 = vadd.f32 %v6539_v57, %v13141_v13  ;;  %v8810_v43 = vmul.f32 -1.442695, %v6631_v50 }
0x11be   : > { %v6541_v7 = vpop.f32.mrf.mxu1 }
0x11bf   : > { %v8807_v41 = vmul.f32 -1.442695, %v6604_v11  ;;  %v6632_v19 = vadd.f32 %v6541_v7, %v13846_v25 }
0x11c0   : > { %v6545_v33 = vpop.f32.mrf.mxu1  ;;  %v9710_v21 = vpop.f32.mrf.mxu0 }
0x11c1   : > { %10687 = vpow2.f32 %v8807_v41  ;;  %v6605_v20 = vadd.f32 %v6545_v33, %v13152_v14  ;;  %v8811_v46 = vmul.f32 -1.442695, %v6632_v19  ;;  %v13849_v14 = vld [vmem:[#allocation35_spill] sm:$0xff]  ;;  %v6661_v11 = vadd.f32 %v9710_v21, %v13266_v3 }
0x11c2   : > { %v6547_v10 = vpop.f32.mrf.mxu1  ;;  %v6588_v1 = vpop.f32.mrf.mxu0 }
0x11c3   : > { %v8808_v12 = vmul.f32 -1.442695, %v6605_v20  ;;  %v6633_v13 = vadd.f32 %v6547_v10, %v13848_v37  ;;  %v6659_v29 = vadd.f32 %v13266_v3, %v6588_v1  ;;  %v10549_v1 = vld [vmem:[%s11216_s25 + $0x1b0] ss:$12 sps:$4 sm:$0x3f]  }
0x11c4   : > { %v6549_v22 = vpop.f32.mrf.mxu1  ;;  %v9711_v61 = vpop.f32.mrf.mxu0 }
0x11c5   : > { %10689 = vpow2.f32 %v8808_v12  ;;  %v6606_v44 = vadd.f32 %v6549_v22, %v13847_v36  ;;  %v8812_v52 = vmul.f32 -1.442695, %v6633_v13 }
0x11c6   : > { %10691 = vpow2.f32 %v8810_v43  ;;  %v6551_v24 = vpop.f32.mrf.mxu1  ;;  %v6591_v53 = vpop.f32.mrf.mxu0 }
0x11c7   : > { %v8809_v60 = vmul.f32 -1.442695, %v6606_v44  ;;  %v6634_v2 = vadd.f32 %v6551_v24, %v13849_v14  ;;  %v6660_v16 = vadd.f32 %v13266_v3, %v6591_v53  ;;  %v10541_v53 = vld [vmem:[%s11216_s25 + $0x48] ss:$12 sps:$4 sm:$0xff]  }
0x11c9   : > { %10693 = vpow2.f32 %v8809_v60  ;;  %v8813_v32 = vmul.f32 -1.442695, %v6634_v2 }
0x11ca   : > { %v10686_v17 = vpop.eup %10685  ;;  %10695 = vpow2.f32 %v8811_v46 }
0x11cb   : > { %v6619_v34 = vadd.f32 1.0, %v10686_v17 }
0x11cd   : > { %10697 = vrcp.f32 %v6619_v34 }
0x11ce   : > { %v10688_v63 = vpop.eup %10687  ;;  %10699 = vpow2.f32 %v8812_v52  ;;  %v10529_v52 = vld [vmem:[%s11216_s25 + $0xa8] ss:$12 sps:$4 sm:$0xff]  }
0x11cf   : > { %v6620_v28 = vadd.f32 1.0, %v10688_v63 }
0x11d1   : > { %10701 = vrcp.f32 %v6620_v28  ;;  %v10537_v28 = vld [vmem:[%s11216_s25 + $0x7c] ss:$12 sps:$4 sm:$0xff]  }
0x11d2   : > { %v10690_v30 = vpop.eup %10689  ;;  %10703 = vpow2.f32 %v8813_v32  ;;  %v10532_v32 = vld [vmem:[%s11216_s25 + $0x90] ss:$12 sps:$4 sm:$0xff]  }
0x11d3   : > { %v6621_v59 = vadd.f32 1.0, %v10690_v30  ;;  %v10692_v35 = vpop.eup %10691 }
0x11d4   : > { %v6647_v27 = vadd.f32 1.0, %v10692_v35  ;;  %v10535_v35 = vld [vmem:[%s11216_s25 + $0x78] ss:$12 sps:$4 sm:$0xff]  }
0x11d5   : > { %10705 = vrcp.f32 %v6621_v59 }
0x11d6   : > { %v10694_v58 = vpop.eup %10693 }
0x11d7   : > { %v10696_v26 = vpop.eup %10695  ;;  %v6622_v9 = vadd.f32 1.0, %v10694_v58 }
0x11d8   : > { %v6648_v49 = vadd.f32 1.0, %v10696_v26  ;;  %v7278_v26 = vsel %vm5520_vm6, %v10549_v1, 0  ;;  %v10885_v1 = vld [vmem:[%s13714_s2 + $0xac] ss:$12 sps:$4 sm:$0xff]  }
0x11d9   : > { %10707 = vrcp.f32 %v6622_v9  ;;  %v10553_v9 = vld [vmem:[%s11216_s25 + $0x198] ss:$12 sps:$4 sm:$0xff]  }
0x11da   : > { %v10698_v23 = vpop.eup %10697  ;;  %10709 = vrcp.f32 %v6647_v27  ;;  %v10555_v27 = vld [vmem:[%s11216_s25 + $0x19c] ss:$12 sps:$4 sm:$0xff]  }
0x11db   : > { %v10700_v47 = vpop.eup %10699  ;;  %v6663_v56 = vmul.f32 %v10698_v23, %v6659_v29  ;;  %10711 = vrcp.f32 %v6648_v49  ;;  %v10543_v29 = vld [vmem:[%s11216_s25 + $0x4c] ss:$12 sps:$4 sm:$0xff]   ;;  %v10561_v23 = vld [vmem:[%s11216_s25 + $0x184] ss:$12 sps:$4 sm:$0xff]  }
0x11dc   : > { %v6649_v5 = vadd.f32 1.0, %v10700_v47  ;;  %v10881_v49 = vld [vmem:[%s13714_s2 + $0x94] ss:$12 sps:$4 sm:$0xff]   ;;  %v10559_v47 = vld [vmem:[%s11216_s25 + $0x180] ss:$12 sps:$4 sm:$0xff]  }
0x11dd   : > { %v6667_v45 = vadd.f32 %v6663_v56, %v13241_v55  ;;  %v6662_v55 = vadd.f32 %v9711_v61, %v13266_v3  ;;  %v10540_v61 = vld [vmem:[%s11216_s25 + $0x64] ss:$12 sps:$4 sm:$0xff]   ;;  %v10546_v56 = vld [vmem:[%s11216_s25 + $0x34] ss:$12 sps:$4 sm:$0xff]  }
0x11de   : > { %v10702_v40 = vpop.eup %10701 }
0x11df   : > { %v10704_v39 = vpop.eup %10703  ;;  %10713 = vtanh.f32 %v6667_v45  ;;  %v6664_v57 = vmul.f32 %v10702_v40, %v6660_v16  ;;  %v10565_v45 = vld [vmem:[%s11216_s25 + $0x170] ss:$12 sps:$4 sm:$0xff]  }
0x11e0   : > { %10715 = vrcp.f32 %v6649_v5  ;;  %v6650_v50 = vadd.f32 1.0, %v10704_v39  ;;  %v10544_v16 = vld [vmem:[%s11216_s25 + $0x30] ss:$12 sps:$4 sm:$0xff]   ;;  %v10570_v39 = vld [vmem:[%s11216_s25 + $0x158] ss:$12 sps:$4 sm:$0xff]  }
0x11e1   : > { %v6668_v7 = vadd.f32 %v6664_v57, %v13251_v42  ;;  %v10566_v40 = vld [vmem:[%s11216_s25 + $0xb0] ss:$12 sps:$4 sm:$0xff]   ;;  %v13484_v57 = vld [vmem:[%s13714_s2 + $0x98] ss:$12 sps:$4 sm:$0xff]  }
0x11e2   : > { %v10706_v48 = vpop.eup %10705  ;;  %v10552_v5 = vld [vmem:[%s11216_s25 + $0x1c] ss:$12 sps:$4 sm:$0xff]  }
0x11e3   : > { %v6665_v41 = vmul.f32 %v10706_v48, %v6661_v11  ;;  %10717 = vtanh.f32 %v6668_v7  ;;  %v10550_v11 = vld [vmem:[%s11216_s25 + $0x18] ss:$12 sps:$4 sm:$0xff]  }
0x11e4   : > { %10719 = vrcp.f32 %v6650_v50  ;;  %v10571_v7 = vld [vmem:[%s11216_s25 + $0x98] ss:$12 sps:$4 sm:$0xff]   ;;  %v10575_v50 = vld [vmem:[%s11216_s25 + $0x140] ss:$12 sps:$4 sm:$0xff]  }
0x11e5   : > { %v6669_v33 = vadd.f32 %v6665_v41, %v13238_v4  ;;  %v10558_v48 = vld [vmem:[%s11216_s25 + $0x4] ss:$12 sps:$4 sm:$0xff]   ;;  %v10556_v41 = vld [vmem:[%s11216_s25] ss:$12 sps:$4 sm:$0xff]  }
0x11e6   : > { %v10708_v20 = vpop.eup %10707 }
0x11e7   : > { %10721 = vtanh.f32 %v6669_v33  ;;  %v6666_v25 = vmul.f32 %v10708_v20, %v6662_v55  ;;  %v10710_v19 = vpop.eup %10709  ;;  %v10576_v33 = vld [vmem:[%s11216_s25 + $0x80] ss:$12 sps:$4 sm:$0xff]   ;;  %v10580_v20 = vld [vmem:[%s11216_s25 + $0x128] ss:$12 sps:$4 sm:$0xff]  }
0x11e8   : > { %v10712_v43 = vpop.eup %10711  ;;  %v6675_v42 = vsub.f32 1.0, %v10710_v19  ;;  %v6683_v36 = vmul.f32 %v10710_v19, %v13380_v18  ;;  %v10534_v18 = vld [vmem:[%s11216_s25 + $0x94] ss:$12 sps:$4 sm:$0xff]   ;;  %v10564_v55 = vld [vmem:[%s11216_s25 + $0x16c] ss:$12 sps:$4 sm:$0xff]  }
0x11e9   : > { %v6670_v10 = vadd.f32 %v6666_v25, %v13246_v8  ;;  %v6676_v4 = vsub.f32 1.0, %v10712_v43  ;;  %v6684_v13 = vmul.f32 %v10712_v43, %v13383_v0  ;;  %v13500_v25 = vld [vmem:[%s13714_s2 + $0xb0] ss:$12 sps:$4 sm:$0xff]   ;;  %v10581_v19 = vld [vmem:[%s11216_s25 + $0x68] ss:$12 sps:$4 sm:$0xff]  }
0x11ea   : > { %v10585_v43 = vld [vmem:[%s11216_s25 + $0x110] ss:$12 sps:$4 sm:$0xff]  }
0x11eb   : > { %10723 = vtanh.f32 %v6670_v10  ;;  %v10569_v10 = vld [vmem:[%s11216_s25 + $0x154] ss:$12 sps:$4 sm:$0xff]  }
0x11ec   : > { %v10714_v12 = vpop.eup %10713 }
0x11ed   : > { %v6679_v22 = vmul.f32 %v10714_v12, %v6675_v42  ;;  %v10716_v44 = vpop.eup %10715  ;;  %v10567_v42 = vld [vmem:[%s11216_s25 + $0x150] ss:$12 sps:$4 sm:$0xff]  }
0x11ee   : > { %v6677_v24 = vsub.f32 1.0, %v10716_v44  ;;  %v6685_v34 = vmul.f32 %v10716_v44, %v13388_v6  ;;  %v10586_v12 = vld [vmem:[%s11216_s25 + $0x50] ss:$12 sps:$4 sm:$0xff]   ;;  %v10572_v44 = vld [vmem:[%s11216_s25 + $0x138] ss:$12 sps:$4 sm:$0xff]  }
0x11ef   : > { %v13440_v46 = vadd.f32 %v6683_v36, %v6679_v22  ;;  %v10574_v22 = vld [vmem:[%s11216_s25 + $0x13c] ss:$12 sps:$4 sm:$0xff]   ;;  %v10590_v36 = vld [vmem:[%s11216_s25 + $0xf8] ss:$12 sps:$4 sm:$0xff]  }
0x11f0   : > { %v10718_v3 = vpop.eup %10717 }
0x11f1   : > { %v6680_v37 = vmul.f32 %v10718_v3, %v6676_v4  ;;  %v10720_v60 = vpop.eup %10719  ;;  %v10591_v4 = vld [vmem:[%s11216_s25 + $0x38] ss:$12 sps:$4 sm:$0xff]  }
0x11f2   : > { %v6678_v0 = vsub.f32 1.0, %v10720_v60  ;;  %v6686_v6 = vmul.f32 %v10720_v60, %v13394_v62  ;;  %v10538_v62 = vld [vmem:[%s11216_s25 + $0x60] ss:$12 sps:$4 sm:$0xff]   ;;  %v10579_v3 = vld [vmem:[%s11216_s25 + $0x124] ss:$12 sps:$4 sm:$0xff]  }
0x11f3   : > { %v13443_v8 = vadd.f32 %v6684_v13, %v6680_v37  ;;  %v10595_v37 = vld [vmem:[%s11216_s25 + $0xe0] ss:$12 sps:$4 sm:$0xff]  }
0x11f4   : > { %v10722_v17 = vpop.eup %10721  ;;  %v10577_v13 = vld [vmem:[%s11216_s25 + $0x120] ss:$12 sps:$4 sm:$0xff]  }
0x11f5   : > { %v6691_v14 = vpack.c.bf16 %v13443_v8, %v13440_v46  ;;  %v6681_v2 = vmul.f32 %v10722_v17, %v6677_v24  ;;  %v10596_v60 = vld [vmem:[%s11216_s25 + $0x20] ss:$12 sps:$4 sm:$0xff]   ;;  %v10600_v17 = vld [vmem:[%s11216_s25 + $0xc8] ss:$12 sps:$4 sm:$0xff]  }
0x11f6   : > { %v10584_v24 = vld [vmem:[%s11216_s25 + $0x10c] ss:$12 sps:$4 sm:$0xff]  }
0x11f7   : > { %6726 = vmatmul.mubr.bf16.vlgmr.msra.gmra.mxu1 %v6691_v14  ;;  %9728 = vmatprep.mubr.bf16.mxu0 %v6691_v14  ;;  %v13450_v63 = vadd.f32 %v6685_v34, %v6681_v2  ;;  %v10601_v14 = vld [vmem:[%s11216_s25 + $0x8] ss:$12 sps:$4 sm:$0xff]   ;;  %v10602_v2 = vld [vmem:[%s11216_s25 + $0x1b8] ss:$12 sps:$4 sm:$0x3f]  }
0x11f8   : > { %v10724_v21 = vpop.eup %10723  ;;  %7287 = vmatpush1.bf16.msra.mxu1 %v10529_v52  ;;  %6735 = vmatprep.mubr.bf16.mxu1 %v13839_v54  ;;  %v10582_v52 = vld [vmem:[%s11216_s25 + $0x108] ss:$12 sps:$4 sm:$0xff]   ;;  %v10587_v34 = vld [vmem:[%s11216_s25 + $0xf0] ss:$12 sps:$4 sm:$0xff]  }
0x11f9   : > { %7288 = vmatprep.subr.bf16.mxu1 %v10534_v18  ;;  %v6682_v30 = vmul.f32 %v10724_v21, %v6678_v0  ;;  %v10589_v18 = vld [vmem:[%s11216_s25 + $0xf4] ss:$12 sps:$4 sm:$0xff]   ;;  %v10594_v0 = vld [vmem:[%s11216_s25 + $0xdc] ss:$12 sps:$4 sm:$0xff]   ;;  %v7284_v21 = vsel %vm5520_vm6, %v10602_v2, 0 }
0x11fb   : > { %v13457_v59 = vadd.f32 %v6686_v6, %v6682_v30  ;;  %v10592_v30 = vld [vmem:[%s11216_s25 + $0xd8] ss:$12 sps:$4 sm:$0xff]  }
0x11fc   : > { %7289 = vmatpush1.bf16.msra.mxu1 %v10532_v32  ;;  %v10603_v32 = vld [vmem:[%s11216_s25 + $0x1a0] ss:$12 sps:$4 sm:$0xff]   ;;  %v10599_v6 = vld [vmem:[%s11216_s25 + $0xc4] ss:$12 sps:$4 sm:$0xff]  }
0x11fd   : > { %7290 = vmatprep.subr.bf16.mxu1 %v10537_v28  ;;  %v6692_v58 = vpack.c.bf16 %v13457_v59, %v13450_v63  ;;  %v10884_v28 = vld [vmem:[%s13714_s2 + $0x90] ss:$12 sps:$4 sm:$0xff]  }
0x11ff   : > { %6736 = vmatmul.mubr.bf16.gmra.mxu1 %v6692_v58  ;;  %9729 = vmatmul.mubr.bf16.vlgmr.msra.gmra.mxu0 %v6692_v58  ;;  %v10597_v58 = vld [vmem:[%s11216_s25 + $0xc0] ss:$12 sps:$4 sm:$0xff]  }
0x1200   : > { %7291 = vmatpush1.bf16.msra.mxu1 %v10535_v35  ;;  %7350 = vmatpush1.bf16.msra.mxu0 %v7278_v26  ;;  %v10604_v35 = vld [vmem:[%s11216_s25 + $0x188] ss:$12 sps:$4 sm:$0xff]  }
0x1201   : > { %7292 = vmatprep.subr.bf16.mxu1 %v10540_v61  ;;  %7351 = vmatprep.subr.bf16.mxu0 %v10555_v27  ;;  %v10886_v61 = vld [vmem:[%s13714_s2 + $0xa8] ss:$12 sps:$4 sm:$0xff]  }
0x1202   : > { %7371 = vmatprep.mubr.bf16.mxu0 %v13839_v54  ;;  %7318 = vmatprep.mubr.bf16.mxu1 %v10881_v49  ;;  %v7566_v26 = vld [vmem:[#allocation3] sm:$0xff] }
0x1203   : > { %v8894_v27 = vmul.f32 -1.442695, %v7566_v26  ;;  %v7658_v26 = vld [vmem:[%s13722_s10 + $0x88] sm:$0xff] }
0x1204   : > { %7293 = vmatpush1.bf16.msra.mxu1 %v10538_v62  ;;  %7352 = vmatpush1.bf16.msra.mxu0 %v10553_v9  ;;  %v7565_v62 = vld [vmem:[#allocation2] sm:$0xff] }
0x1205   : > { %7294 = vmatprep.subr.bf16.mxu1 %v10543_v29  ;;  %7353 = vmatprep.subr.bf16.mxu0 %v10561_v23  ;;  %v8893_v9 = vmul.f32 -1.442695, %v7565_v62  ;;  %v7568_v29 = vld [vmem:[#allocation5] sm:$0xff]  ;;  %10725 = vpow2.f32 %v8894_v27  ;;  %v7643_v27 = vld [vmem:[%s13722_s10 + $0x10] sm:$0xff] }
0x1206   : > { %v8896_v23 = vmul.f32 -1.442695, %v7568_v29 }
0x1207   : > { %10727 = vpow2.f32 %v8893_v9 }
0x1208   : > { %7295 = vmatpush1.bf16.msra.mxu1 %v10541_v53  ;;  %7354 = vmatpush1.bf16.msra.mxu0 %v10559_v47  ;;  %10729 = vpow2.f32 %v8896_v23  ;;  %v7657_v23 = vld [vmem:[%s13722_s10 + $0x80] sm:$0xff] }
0x1209   : > { %7296 = vmatprep.subr.bf16.mxu1 %v10546_v56  ;;  %9282 = vmatprep.subr.bf16.mxu0 %v10565_v45  ;;  %v13850_v56 = vld [vmem:[#allocation36_spill] sm:$0xff] }
0x120b   : > { %8880 = vmatmul.mubr.msk.bf16.vlgmr.msra.gmra.mxu0 %vm5495_vm7, %v13484_v57 }
0x120c   : > { %7297 = vmatpush1.bf16.msra.mxu1 %v10544_v16  ;;  %9283 = vmatpush3.bf16.msra.mxu0 %v10566_v40 }
0x120d   : > { %7298 = vmatprep.subr.bf16.mxu1 %v10552_v5  ;;  %9284 = vmatprep.subr.bf16.mxu0 %v10570_v39 }
0x120e   : > { %7381 = vmatprep.mubr.bf16.mxu0 %v13839_v54  ;;  %v10562_v54 = vld [vmem:[%s11216_s25 + $0x168] ss:$12 sps:$4 sm:$0xff]  }
0x1210   : > { %7299 = vmatpush1.bf16.msra.mxu1 %v10550_v11  ;;  %9285 = vmatpush3.bf16.msra.mxu0 %v10571_v7 }
0x1211   : > { %7300 = vmatprep.subr.bf16.mxu1 %v10558_v48  ;;  %9286 = vmatprep.subr.bf16.mxu0 %v10575_v50 }
0x1212   : > { %v10726_v16 = vpop.eup %10725 }
0x1213   : > { %8881 = vmatmul.mubr.msk.bf16.gmra.mxu0 %vm5495_vm7, %v13500_v25 }
0x1214   : > { %7301 = vmatpush1.bf16.msra.mxu1 %v10556_v41  ;;  %9287 = vmatpush3.bf16.msra.mxu0 %v10576_v33  ;;  %v10728_v5 = vpop.eup %10727  ;;  %v13851_v41 = vld [vmem:[#allocation38_spill] sm:$0xff] }
0x1215   : > { %7302 = vmatprep.subr.bf16.mxu1 %v10564_v55  ;;  %9288 = vmatprep.subr.bf16.mxu0 %v10580_v20  ;;  %v10730_v11 = vpop.eup %10729  ;;  %v7605_v48 = vadd.f32 1.0, %v10728_v5 }
0x1216   : > { %7424 = vmatprep.mubr.bf16.mxu0 %v10881_v49  ;;  %v7567_v49 = vld [vmem:[#allocation4] sm:$0xff]  ;;  %v7608_v20 = vadd.f32 1.0, %v10730_v11 }
0x1217   : > { %v8895_v53 = vmul.f32 -1.442695, %v7567_v49 }
0x1218   : > { %7303 = vmatpush2.bf16.msra.mxu1 %v10562_v54  ;;  %9289 = vmatpush3.bf16.msra.mxu0 %v10581_v19 }
0x1219   : > { %7304 = vmatprep.subr.bf16.mxu1 %v10569_v10  ;;  %9290 = vmatprep.subr.bf16.mxu0 %v10585_v43  ;;  %10731 = vpow2.f32 %v8895_v53 }
0x121c   : > { %7305 = vmatpush2.bf16.msra.mxu1 %v10567_v42  ;;  %9291 = vmatpush3.bf16.msra.mxu0 %v10586_v12  ;;  %v13853_v42 = vld [vmem:[#allocation40_spill] sm:$0xff] }
0x121d   : > { %7306 = vmatprep.subr.bf16.mxu1 %v10574_v22  ;;  %9292 = vmatprep.subr.bf16.mxu0 %v10590_v36  ;;  %v13854_v22 = vld [vmem:[#allocation39_spill] sm:$0xff] }
0x1220   : > { %7307 = vmatpush2.bf16.msra.mxu1 %v10572_v44  ;;  %9293 = vmatpush3.bf16.msra.mxu0 %v10591_v4  ;;  %v7654_v4 = vld [vmem:[%s13722_s10 + $0x68] sm:$0xff] }
0x1221   : > { %7308 = vmatprep.subr.bf16.mxu1 %v10579_v3  ;;  %9294 = vmatprep.subr.bf16.mxu0 %v10595_v37 }
0x1224   : > { %7309 = vmatpush2.bf16.msra.mxu1 %v10577_v13  ;;  %9295 = vmatpush3.bf16.msra.mxu0 %v10596_v60  ;;  %v7653_v13 = vld [vmem:[%s13722_s10 + $0x60] sm:$0xff] }
0x1225   : > { %7310 = vmatprep.subr.bf16.mxu1 %v10584_v24  ;;  %9296 = vmatprep.subr.bf16.mxu0 %v10600_v17  ;;  %v13855_v24 = vld [vmem:[#allocation42_spill] sm:$0xff] }
0x1226   : > { %v10732_v50 = vpop.eup %10731 }
0x1227   : > { %v7607_v43 = vadd.f32 1.0, %v10732_v50  ;;  %v7662_v50 = vld [vmem:[%s13722_s10 + $0xa8] sm:$0xff] }
0x1228   : > { %7311 = vmatpush2.bf16.msra.mxu1 %v10582_v52  ;;  %9297 = vmatpush3.bf16.msra.mxu0 %v10601_v14  ;;  %v7656_v52 = vld [vmem:[%s13722_s10 + $0x78] sm:$0xff] }
0x1229   : > { %7312 = vmatprep.subr.bf16.mxu1 %v10589_v18  ;;  %9751 = vmatprep.subr.msk.bf16.mxu0 %vm5520_vm6, %v10602_v2  ;;  %v13856_v18 = vld [vmem:[#allocation41_spill] sm:$0xff] }
0x122b   : > { %7425 = vmatmul.mubr.bf16.vlgmr.msra.gmra.mxu0 %v10884_v28 }
0x122c   : > { %7313 = vmatpush2.bf16.msra.mxu1 %v10587_v34  ;;  %9733 = vmatpush3.bf16.msra.mxu0 %v7284_v21  ;;  %v7642_v34 = vld [vmem:[%s13722_s10 + $0x8] sm:$0xff] }
0x122d   : > { %7314 = vmatprep.subr.bf16.mxu1 %v10594_v0  ;;  %7432 = vmatprep.mubr.bf16.mxu0 %v10885_v1  ;;  %v7655_v0 = vld [vmem:[%s13722_s10 + $0x70] sm:$0xff] }
0x122e   : > { %9734 = vmatprep.subr.bf16.mxu0 %v10603_v32 }
0x1230   : > { %7315 = vmatpush2.bf16.msra.mxu1 %v10592_v30  ;;  %9735 = vmatpush3.bf16.msra.mxu0 %v10603_v32  ;;  %v7641_v30 = vld [vmem:[%s13722_s10] sm:$0xff] }
0x1231   : > { %7316 = vmatprep.subr.bf16.mxu1 %v10599_v6  ;;  %9736 = vmatprep.subr.bf16.mxu0 %v10604_v35  ;;  %v7644_v6 = vld [vmem:[%s13722_s10 + $0x18] sm:$0xff] }
0x1233   : > { %7433 = vmatmul.mubr.bf16.gmra.mxu0 %v10886_v61 }
0x1234   : > { %7317 = vmatpush2.bf16.msra.mxu1 %v10597_v58  ;;  %9737 = vmatpush3.bf16.msra.mxu0 %v10604_v35  ;;  %v13857_v58 = vld [vmem:[#allocation43_spill] sm:$0xff] }
0x1235   : > { %9738 = vmatprep.mubr.msk.bf16.mxu0 %vm5495_vm7, %v13484_v57  ;;  %v7606_v57 = vadd.f32 1.0, %v10726_v16  ;;  %7700 = vmatprep.subr.mxu1 %v7654_v4 }
0x1236   : > { %7770 = vmatprep.subr.mxu0 %v7656_v52 }
0x1237   : > { %7319 = vmatmul.mubr.bf16.vlgmr.msra.gmra.mxu1 %v10884_v28 }
0x1238   : > { %7328 = vmatprep.mubr.bf16.mxu1 %v10885_v1  ;;  %7701 = vmatpush1.xpose.msra.mxu1 %v7653_v13 }
0x1239   : > { %7702 = vmatprep.subr.mxu1 %v7642_v34 }
0x123b   : > { %9739 = vmatmul.mubr.msk.bf16.vlgmr.msra.gmra.mxu0 %vm5495_vm7, %v13500_v25  ;;  %v13852_v25 = vld [vmem:[#allocation37_spill] sm:$0xff] }
0x123c   : > { %7771 = vmatpush1.xpose.msra.mxu0 %v7655_v0  ;;  %7703 = vmatpush1.xpose.msra.mxu1 %v7641_v30 }
0x123d   : > { %7772 = vmatprep.subr.mxu0 %v7644_v6  ;;  %7840 = vmatprep.subr.mxu1 %v7658_v26 }
0x123f   : > { %7329 = vmatmul.mubr.bf16.gmra.mxu1 %v10886_v61 }
0x1240   : > { %7773 = vmatpush1.xpose.msra.mxu0 %v7643_v27 }
0x12b7   : > { %v6727_v47 = vpop.f32.mrf.mxu1 }
0x12b8   : > { %v6795_v45 = vadd.f32 %v6727_v47, %v13850_v56  ;;  %v7646_v56 = vld [vmem:[%s13722_s10 + $0x28] sm:$0xff] }
0x12b9   : > { %v6729_v40 = vpop.f32.mrf.mxu1 }
0x12ba   : > { %v8814_v39 = vmul.f32 -1.442695, %v6795_v45  ;;  %v6823_v54 = vadd.f32 %v6729_v40, %v13852_v25  ;;  %v7660_v45 = vld [vmem:[%s13722_s10 + $0x98] sm:$0xff] }
0x12bb   : > { %v6731_v7 = vpop.f32.mrf.mxu1  ;;  %7910 = vmatprep.subr.mxu0 %v7660_v45 }
0x12bc   : > { %10733 = vpow2.f32 %v8814_v39  ;;  %v6796_v33 = vadd.f32 %v6731_v7, %v13851_v41  ;;  %v8818_v3 = vmul.f32 -1.442695, %v6823_v54  ;;  %v7645_v39 = vld [vmem:[%s13722_s10 + $0x20] sm:$0xff] }
0x12bd   : > { %v6733_v55 = vpop.f32.mrf.mxu1  ;;  %10735 = vrcp.f32 %v7606_v57  ;;  %v7659_v57 = vld [vmem:[%s13722_s10 + $0x90] sm:$0xff] }
0x12be   : > { %v8815_v19 = vmul.f32 -1.442695, %v6796_v33  ;;  %10737 = vrcp.f32 %v7605_v48  ;;  %v6824_v36 = vadd.f32 %v6733_v55, %v13854_v22  ;;  %v7648_v48 = vld [vmem:[%s13722_s10 + $0x38] sm:$0xff] }
0x12bf   : > { %v6737_v10 = vpop.f32.mrf.mxu1  ;;  %v13568_v21 = vpop.f32.mrf.mxu0 }
0x12c0   : > { %10739 = vpow2.f32 %v8815_v19  ;;  %v6797_v12 = vadd.f32 %v6737_v10, %v13853_v42  ;;  %v8819_v14 = vmul.f32 -1.442695, %v6824_v36  ;;  %v7664_v19 = vld [vmem:[%s13722_s10 + $0xb8] sm:$0xff] }
0x12c1   : > { %v6739_v44 = vpop.f32.mrf.mxu1  ;;  %10741 = vrcp.f32 %v7608_v20  ;;  %v6780_v29 = vpop.f32.mrf.mxu0  ;;  %v7647_v20 = vld [vmem:[%s13722_s10 + $0x30] sm:$0xff] }
0x12c2   : > { %v8816_v37 = vmul.f32 -1.442695, %v6797_v12  ;;  %10743 = vrcp.f32 %v7607_v43  ;;  %v6825_v2 = vadd.f32 %v6739_v44, %v13856_v18  ;;  %v10887_v12 = vld [vmem:[%s11227_s27] ss:$0 sm:$0xff] }
0x12c3   : > { %v6741_v60 = vpop.f32.mrf.mxu1  ;;  %v9731_v5 = vpop.f32.mrf.mxu0  ;;  %v6851_v22 = vadd.f32 %v10887_v12, %v6780_v29 }
0x12c4   : > { %10745 = vpow2.f32 %v8816_v37  ;;  %v6798_v17 = vadd.f32 %v6741_v60, %v13855_v24  ;;  %v8820_v35 = vmul.f32 -1.442695, %v6825_v2  ;;  %v6853_v2 = vadd.f32 %v10887_v12, %v13568_v21 }
0x12c5   : > { %10747 = vpow2.f32 %v8818_v3  ;;  %v6743_v28 = vpop.f32.mrf.mxu1  ;;  %v6783_v33 = vpop.f32.mrf.mxu0 }
0x12c6   : > { %v8817_v32 = vmul.f32 -1.442695, %v6798_v17  ;;  %v6826_v61 = vadd.f32 %v6743_v28, %v13857_v58  ;;  %v6852_v60 = vadd.f32 %v10887_v12, %v6783_v33 }
0x12c8   : > { %10749 = vpow2.f32 %v8817_v32  ;;  %v8821_v47 = vmul.f32 -1.442695, %v6826_v61 }
0x12c9   : > { %v10734_v1 = vpop.eup %10733  ;;  %10751 = vpow2.f32 %v8819_v14 }
0x12ca   : > { %v10736_v62 = vpop.eup %10735  ;;  %v6811_v9 = vadd.f32 1.0, %v10734_v1  ;;  %v6854_v1 = vadd.f32 %v10887_v12, %v9731_v5 }
0x12cb   : > { %7736 = vmatprep.mubr.f32.mxu1 %v10736_v62  ;;  %v10738_v49 = vpop.eup %10737  ;;  %v13607_v25 = vpop.f32.mrf.mxu0 }
0x12cc   : > { %10753 = vrcp.f32 %v6811_v9  ;;  %7737 = vmatmul.mubr.f32.vlgmr.msra.gmra.mxu1 %v10738_v49 }
0x12cd   : > { %v10740_v53 = vpop.eup %10739  ;;  %10755 = vpow2.f32 %v8820_v35  ;;  %7841 = vmatpush1.xpose.msra.mxu1 %v7657_v23  ;;  %v13613_v36 = vpop.f32.mrf.mxu0 }
0x12ce   : > { %v10742_v16 = vpop.eup %10741  ;;  %v6812_v40 = vadd.f32 1.0, %v10740_v53  ;;  %7842 = vmatprep.subr.mxu1 %v7646_v56 }
0x12cf   : > { %7806 = vmatprep.mubr.f32.mxu0 %v10742_v16  ;;  %v10744_v11 = vpop.eup %10743  ;;  %v13616_v24 = vpop.f32.mrf.mxu0 }
0x12d0   : > { %10757 = vrcp.f32 %v6812_v40  ;;  %7807 = vmatmul.mubr.f32.vlgmr.msra.gmra.mxu0 %v10744_v11  ;;  %v13633_v40 = vld [vmem:[%s11247_s19] sm:$0x7] }
0x12d1   : > { %v10746_v7 = vpop.eup %10745  ;;  %10759 = vpow2.f32 %v8821_v47  ;;  %7843 = vmatpush1.xpose.msra.mxu1 %v7645_v39  ;;  %7911 = vmatpush1.xpose.msra.mxu0 %v7659_v57  ;;  %v13620_v0 = vpop.f32.mrf.mxu0 }
0x12d2   : > { %v6813_v41 = vadd.f32 1.0, %v10746_v7  ;;  %v10748_v55 = vpop.eup %10747  ;;  %7912 = vmatprep.subr.mxu0 %v7648_v48  ;;  %7980 = vmatprep.subr.mxu1 %v7662_v50  ;;  %v13858_v48 = vld [vmem:[#allocation27_spill] sm:$0xff] }
0x12d3   : > { %v6839_v43 = vadd.f32 1.0, %v10748_v55  ;;  %v13859_v50 = vsub.s32 0, %v13858_v48 }
0x12d4   : > { %10761 = vrcp.f32 %v6813_v41 }
0x12d5   : > { %v10750_v54 = vpop.eup %10749  ;;  %7913 = vmatpush1.xpose.msra.mxu0 %v7647_v20  ;;  %v6964_v41 = vrot.slane %v13633_v40, %v13859_v50 }
0x12d6   : > { %v10752_v10 = vpop.eup %10751  ;;  %v6814_v42 = vadd.f32 1.0, %v10750_v54  ;;  %8050 = vmatprep.subr.mxu0 %v7664_v19 }
0x12d7   : > { %v6840_v4 = vadd.f32 1.0, %v10752_v10 }
0x12d8   : > { %10763 = vrcp.f32 %v6814_v42  ;;  %v13860_v42 = vsub.s32 1, %v13858_v48 }
0x12d9   : > { %v10754_v44 = vpop.eup %10753  ;;  %10765 = vrcp.f32 %v6839_v43 }
0x12da   : > { %v10756_v3 = vpop.eup %10755  ;;  %v6855_v37 = vmul.f32 %v10754_v44, %v6851_v22  ;;  %10767 = vrcp.f32 %v6840_v4  ;;  %v6968_v12 = vrot.slane %v13633_v40, %v13860_v42  ;;  %v8892_v42 = vld [vmem:[%s11232_s28] ss:$0 sm:$0xff]  ;;  %s13862_s28 = sld [smem:[#allocation46_spill]] }
0x12db   : > { %v6841_v52 = vadd.f32 1.0, %v10756_v3 }
0x12dc   : > { %v6859_v13 = vadd.f32 %v6855_v37, %v13257_v38  ;;  %v7383_v38 = vpop.f32.mrf.mxu0 }
0x12dd   : > { %v10758_v17 = vpop.eup %10757 }
0x12de   : > { %v10760_v14 = vpop.eup %10759  ;;  %10769 = vtanh.f32 %v6859_v13  ;;  %v6856_v18 = vmul.f32 %v10758_v17, %v6852_v60  ;;  %v13623_v61 = vpop.f32.mrf.mxu0 }
0x12df   : > { %10771 = vrcp.f32 %v6841_v52  ;;  %v6842_v28 = vadd.f32 1.0, %v10760_v14 }
0x12e0   : > { %v6860_v34 = vadd.f32 %v6856_v18, %v13263_v51  ;;  %v7387_v62 = vpop.f32.mrf.mxu0 }
0x12e1   : > { %v10762_v32 = vpop.eup %10761 }
0x12e2   : > { %v6857_v30 = vmul.f32 %v10762_v32, %v6853_v2  ;;  %10773 = vtanh.f32 %v6860_v34  ;;  %v13629_v47 = vpop.f32.mrf.mxu0 }
0x12e3   : > { %10775 = vrcp.f32 %v6842_v28 }
0x12e4   : > { %v6861_v6 = vadd.f32 %v6857_v30, %v13254_v31 }
0x12e5   : > { %v10764_v35 = vpop.eup %10763 }
0x12e6   : > { %10777 = vtanh.f32 %v6861_v6  ;;  %v6858_v58 = vmul.f32 %v10764_v35, %v6854_v1  ;;  %v10766_v21 = vpop.eup %10765 }
0x12e7   : > { %v10768_v26 = vpop.eup %10767  ;;  %v6867_v27 = vsub.f32 1.0, %v10766_v21  ;;  %v6875_v29 = vmul.f32 %v10766_v21, %v13440_v46 }
0x12e8   : > { %v6862_v51 = vadd.f32 %v6858_v58, %v13259_v15  ;;  %v6868_v49 = vsub.f32 1.0, %v10768_v26  ;;  %v6876_v45 = vmul.f32 %v10768_v26, %v13443_v8 }
0x12ea   : > { %10779 = vtanh.f32 %v6862_v51 }
0x12eb   : > { %v10770_v9 = vpop.eup %10769  ;;  %v13637_v57 = vpop.f32.mrf.mxu0 }
0x12ec   : > { %v6871_v23 = vmul.f32 %v10770_v9, %v6867_v27  ;;  %v10772_v31 = vpop.eup %10771 }
0x12ed   : > { %v6869_v5 = vsub.f32 1.0, %v10772_v31  ;;  %v6877_v7 = vmul.f32 %v10772_v31, %v13450_v63  ;;  %v9299_v55 = vpop.f32.mrf.mxu0 }
0x12ee   : > { %v13627_v53 = vadd.f32 %v6875_v29, %v6871_v23 }
0x12ef   : > { %v10774_v56 = vpop.eup %10773  ;;  %v9301_v4 = vpop.f32.mrf.mxu0 }
0x12f0   : > { %v6872_v16 = vmul.f32 %v10774_v56, %v6868_v49  ;;  %v10776_v15 = vpop.eup %10775 }
0x12f1   : > { %v6870_v8 = vsub.f32 1.0, %v10776_v15  ;;  %v6878_v10 = vmul.f32 %v10776_v15, %v13457_v59  ;;  %v9302_v14 = vpop.f32.mrf.mxu0 }
0x12f2   : > { %v13635_v39 = vadd.f32 %v6876_v45, %v6872_v16 }
0x12f3   : > { %v10778_v46 = vpop.eup %10777  ;;  %v9304_v30 = vpop.f32.mrf.mxu0 }
0x12f4   : > { %v6873_v11 = vmul.f32 %v10778_v46, %v6869_v5  ;;  %v9300_v46 = vadd.f32 %v9299_v55, %v13637_v57 }
0x12f5   : > { %v9305_v27 = vpop.f32.mrf.mxu0 }
0x12f6   : > { %v13643_v33 = vadd.f32 %v6877_v7, %v6873_v11  ;;  %v13861_v7 = vsub.s32 2, %v13858_v48  ;;  %v9306_v57 = vadd.f32 %v9305_v27, %v9304_v30 }
0x12f7   : > { %v10780_v20 = vpop.eup %10779  ;;  %v7320_v54 = vpop.f32.mrf.mxu1 }
0x12f8   : > { %v6874_v19 = vmul.f32 %v10780_v20, %v6870_v8  ;;  %v7321_v43 = vadd.f32 %v7320_v54, %v6964_v41  ;;  %v9307_v31 = vpop.f32.mrf.mxu0  ;;  %v6972_v50 = vrot.slane %v13633_v40, %v13861_v7 }
0x12f9   : > { %v7322_v22 = vpop.f32.mrf.mxu1 }
0x12fa   : > { %v13649_v63 = vadd.f32 %v6878_v10, %v6874_v19  ;;  %v7374_v44 = vadd.f32 %v13607_v25, %v7321_v43  ;;  %v7323_v60 = vadd.f32 %v7322_v22, %v6968_v12  ;;  %v9308_v45 = vpop.f32.mrf.mxu0  ;;  %v9303_v19 = vadd.f32 %v9302_v14, %v9301_v4 }
0x12fb   : > { %v7324_v3 = vpop.f32.mrf.mxu1  ;;  %v7427_v43 = vadd.f32 %v9300_v46, %v6972_v50  ;;  %v9309_v14 = vadd.f32 %v9308_v45, %v9307_v31 }
0x12fc   : > { %v8884_v37 = vmul.f32 -1.442695, %v7374_v44  ;;  %v7325_v13 = vadd.f32 %v7324_v3, %v6964_v41  ;;  %v7376_v34 = vadd.f32 %v13613_v36, %v7323_v60  ;;  %v9740_v5 = vpop.f32.mrf.mxu0  ;;  %v7430_v40 = vadd.f32 %v9303_v19, %v6972_v50 }
0x12fd   : > { %v7326_v17 = vpop.f32.mrf.mxu1 }
0x12fe   : > { %v7378_v52 = vadd.f32 %v13616_v24, %v7325_v13  ;;  %10781 = vpow2.f32 %v8884_v37  ;;  %v7327_v2 = vadd.f32 %v7326_v17, %v6968_v12  ;;  %v8888_v21 = vmul.f32 -1.442695, %v7376_v34 }
0x12ff   : > { %v7330_v59 = vpop.f32.mrf.mxu1 }
0x1300   : > { %v8885_v18 = vmul.f32 -1.442695, %v7378_v52  ;;  %v7331_v32 = vadd.f32 %v7330_v59, %v6964_v41  ;;  %v7380_v1 = vadd.f32 %v13620_v0, %v7327_v2  ;;  %v7435_v52 = vadd.f32 %v9306_v57, %v6972_v50 }
0x1301   : > { %v7332_v28 = vpop.f32.mrf.mxu1 }
0x1302   : > { %10783 = vpow2.f32 %v8885_v18  ;;  %v7384_v25 = vadd.f32 %v7383_v38, %v7331_v32  ;;  %v7333_v35 = vadd.f32 %v7332_v28, %v6968_v12  ;;  %v8889_v9 = vmul.f32 -1.442695, %v7380_v1 }
0x1303   : > { %v7334_v6 = vpop.f32.mrf.mxu1  ;;  %v7484_v28 = vadd.f32 %v9740_v5, %v7435_v52  ;;  %v8903_v5 = vmul.f32 -1.442695, %v13649_v63  ;;  %v7652_v52 = vld [vmem:[%s13722_s10 + $0x58] sm:$0xff] }
0x1304   : > { %v7335_v58 = vadd.f32 %v7334_v6, %v6964_v41  ;;  %v8886_v51 = vmul.f32 -1.442695, %v7384_v25  ;;  %v7386_v29 = vadd.f32 %v13623_v61, %v7333_v35  ;;  %v7475_v41 = vpop.f32.mrf.mxu0  ;;  %v7438_v25 = vadd.f32 %v9309_v14, %v6972_v50  ;;  %v7651_v14 = vld [vmem:[%s13722_s10 + $0x50] sm:$0xff] }
0x1305   : > { %v7336_v24 = vpop.f32.mrf.mxu1  ;;  %v7476_v48 = vadd.f32 %v7475_v41, %v7427_v43 }
0x1306   : > { %v7388_v26 = vadd.f32 %v7387_v62, %v7335_v58  ;;  %10785 = vpow2.f32 %v8886_v51  ;;  %v7337_v23 = vadd.f32 %v7336_v24, %v6968_v12  ;;  %v8890_v49 = vmul.f32 -1.442695, %v7386_v29  ;;  %v9741_v12 = vpop.f32.mrf.mxu0 }
0x1307   : > { %10787 = vpow2.f32 %v8888_v21  ;;  %v7487_v35 = vadd.f32 %v9741_v12, %v7438_v25  ;;  %v8897_v24 = vmul.f32 -1.442695, %v13627_v53 }
0x1308   : > { %v8887_v36 = vmul.f32 -1.442695, %v7388_v26  ;;  %v7390_v0 = vadd.f32 %v13629_v47, %v7337_v23  ;;  %v7478_v37 = vpop.f32.mrf.mxu0 }
0x1309   : > { %v7479_v59 = vadd.f32 %v7478_v37, %v7430_v40  ;;  %v7650_v40 = vld [vmem:[%s13722_s10 + $0x48] sm:$0xff] }
0x130a   : > { %10789 = vpow2.f32 %v8887_v36  ;;  %v8891_v62 = vmul.f32 -1.442695, %v7390_v0  ;;  %v8899_v36 = vmul.f32 -1.442695, %v13635_v39 }
0x130b   : > { %v10782_v38 = vpop.eup %10781  ;;  %10791 = vpow2.f32 %v8889_v9 }
0x130c   : > { %v7502_v56 = vadd.f32 1.0, %v10782_v38 }
0x130e   : > { %10793 = vrcp.f32 %v7502_v56  ;;  %v8901_v56 = vmul.f32 -1.442695, %v13643_v33 }
0x130f   : > { %v10784_v16 = vpop.eup %10783  ;;  %10795 = vpow2.f32 %v8890_v49 }
0x1310   : > { %v7503_v15 = vadd.f32 1.0, %v10784_v16 }
0x1312   : > { %10797 = vrcp.f32 %v7503_v15 }
0x1313   : > { %v10786_v61 = vpop.eup %10785  ;;  %10799 = vpow2.f32 %v8891_v62 }
0x1314   : > { %v7504_v11 = vadd.f32 1.0, %v10786_v61  ;;  %v10788_v47 = vpop.eup %10787 }
0x1315   : > { %v7526_v54 = vadd.f32 1.0, %v10788_v47 }
0x1316   : > { %10801 = vrcp.f32 %v7504_v11 }
0x1317   : > { %v10790_v8 = vpop.eup %10789 }
0x1318   : > { %v10792_v20 = vpop.eup %10791  ;;  %v7505_v10 = vadd.f32 1.0, %v10790_v8 }
0x1319   : > { %v7527_v44 = vadd.f32 1.0, %v10792_v20 }
0x131a   : > { %10803 = vrcp.f32 %v7505_v10 }
0x131b   : > { %v10794_v22 = vpop.eup %10793  ;;  %10805 = vrcp.f32 %v7526_v54 }
0x131c   : > { %v10796_v55 = vpop.eup %10795  ;;  %v7545_v3 = vmul.f32 %v10794_v22, %v8892_v42  ;;  %10807 = vrcp.f32 %v7527_v44 }
0x131d   : > { %v7528_v17 = vadd.f32 1.0, %v10796_v55 }
0x131e   : > { %v7549_v13 = vadd.f32 %v7545_v3, %v7476_v48  ;;  %v7661_v48 = vld [vmem:[%s13722_s10 + $0xa0] sm:$0xff] }
0x131f   : > { %v10798_v60 = vpop.eup %10797 }
0x1320   : > { %v10800_v4 = vpop.eup %10799  ;;  %10809 = vtanh.f32 %v7549_v13  ;;  %v7546_v18 = vmul.f32 %v10798_v60, %v8892_v42  ;;  %v7649_v13 = vld [vmem:[%s13722_s10 + $0x40] sm:$0xff]  ;;  %v7663_v60 = vld [vmem:[%s13722_s10 + $0xb0] sm:$0xff] }
0x1321   : > { %10811 = vrcp.f32 %v7528_v17  ;;  %v7529_v32 = vadd.f32 1.0, %v10800_v4 }
0x1322   : > { %v7550_v2 = vadd.f32 %v7546_v18, %v7479_v59 }
0x1323   : > { %v10802_v34 = vpop.eup %10801 }
0x1324   : > { %v7547_v30 = vmul.f32 %v10802_v34, %v8892_v42  ;;  %10813 = vtanh.f32 %v7550_v2  ;;  %v8905_v34 = vld [vmem:[%s13723_s11] ss:$0 sm:$0xff] }
0x1325   : > { %10815 = vrcp.f32 %v7529_v32 }
0x1326   : > { %v7551_v6 = vadd.f32 %v7547_v30, %v7484_v28 }
0x1327   : > { %v10804_v1 = vpop.eup %10803 }
0x1328   : > { %10817 = vtanh.f32 %v7551_v6  ;;  %v7548_v58 = vmul.f32 %v10804_v1, %v8892_v42  ;;  %v10806_v21 = vpop.eup %10805 }
0x1329   : > { %v10808_v26 = vpop.eup %10807  ;;  %v7557_v27 = vsub.f32 1.0, %v10806_v21  ;;  %v8095_v21 = vld [vmem:[%s13724_s12] sm:$0xff] }
0x132a   : > { %v7552_v51 = vadd.f32 %v7548_v58, %v7487_v35  ;;  %v7558_v31 = vsub.f32 1.0, %v10808_v26  ;;  %v10995_v35 = vmov 0.0   ;;  %v8096_v58 = vld [vmem:[%s13724_s12 + $0x8] sm:$0xff] }
0x132c   : > { %10819 = vtanh.f32 %v7552_v51 }
0x132d   : > { %v10810_v9 = vpop.eup %10809  ;;  %10821 = vpow2.f32 %v8897_v24 }
0x132e   : > { %v7561_v29 = vmul.f32 %v10810_v9, %v7557_v27  ;;  %v10812_v23 = vpop.eup %10811 }
0x132f   : > { %v7559_v16 = vsub.f32 1.0, %v10812_v23 }
0x1330   : > { %v8898_v38 = vmul.f32 -1.442695, %v7561_v29 }
0x1331   : > { %v10814_v49 = vpop.eup %10813 }
0x1332   : > { %10823 = vpow2.f32 %v8898_v38  ;;  %v7562_v0 = vmul.f32 %v10814_v49, %v7558_v31  ;;  %v10816_v45 = vpop.eup %10815 }
0x1333   : > { %10825 = vpow2.f32 %v8899_v36  ;;  %v7560_v61 = vsub.f32 1.0, %v10816_v45 }
0x1334   : > { %v8900_v53 = vmul.f32 -1.442695, %v7562_v0 }
0x1335   : > { %v10818_v62 = vpop.eup %10817 }
0x1336   : > { %v7563_v15 = vmul.f32 %v10818_v62, %v7559_v16  ;;  %10827 = vpow2.f32 %v8900_v53  ;;  %v8906_v16 = vld [vmem:[%s13862_s28] ss:$0 sm:$0xff] }
0x1337   : > { %10829 = vpow2.f32 %v8901_v56 }
0x1338   : > { %v8902_v39 = vmul.f32 -1.442695, %v7563_v15 }
0x1339   : > { %v10820_v46 = vpop.eup %10819 }
0x133a   : > { %10831 = vpow2.f32 %v8902_v39  ;;  %v7564_v11 = vmul.f32 %v10820_v46, %v7560_v61  ;;  %v10822_v7 = vpop.eup %10821 }
0x133b   : > { %10833 = vpow2.f32 %v8903_v5  ;;  %v7609_v47 = vadd.f32 1.0, %v10822_v7 }
0x133c   : > { %v8904_v50 = vmul.f32 -1.442695, %v7564_v11 }
0x133e   : > { %10835 = vpow2.f32 %v8904_v50 }
0x133f   : > { %v10824_v33 = vpop.eup %10823 }
0x1340   : > { %v10826_v41 = vpop.eup %10825  ;;  %v7610_v8 = vadd.f32 1.0, %v10824_v33 }
0x1341   : > { %v7611_v54 = vadd.f32 1.0, %v10826_v41 }
0x1342   : > { %10837 = vrcp.f32 %v7610_v8 }
0x1343   : > { %v10828_v20 = vpop.eup %10827  ;;  %10839 = vrcp.f32 %v7609_v47 }
0x1344   : > { %v10830_v19 = vpop.eup %10829  ;;  %v7612_v10 = vadd.f32 1.0, %v10828_v20 }
0x1345   : > { %v7613_v43 = vadd.f32 1.0, %v10830_v19 }
0x1346   : > { %10841 = vrcp.f32 %v7612_v10 }
0x1347   : > { %v10832_v63 = vpop.eup %10831  ;;  %10843 = vrcp.f32 %v7611_v54 }
0x1348   : > { %v10834_v42 = vpop.eup %10833  ;;  %v7614_v12 = vadd.f32 1.0, %v10832_v63 }
0x1349   : > { %v7615_v44 = vadd.f32 1.0, %v10834_v42 }
0x134a   : > { %10845 = vrcp.f32 %v7614_v12 }
0x134b   : > { %v10836_v22 = vpop.eup %10835  ;;  %10847 = vrcp.f32 %v7613_v43 }
0x134c   : > { %v7616_v57 = vadd.f32 1.0, %v10836_v22 }
0x134e   : > { %10849 = vrcp.f32 %v7616_v57 }
0x134f   : > { %v10838_v55 = vpop.eup %10837  ;;  %10851 = vrcp.f32 %v7615_v44 }
0x1350   : > { %v10840_v3 = vpop.eup %10839  ;;  %7876 = vmatprep.mubr.f32.mxu1 %v10838_v55 }
0x1351   : > { %7877 = vmatmul.mubr.f32.vlgmr.msra.gmra.mxu1 %v10840_v3 }
0x1352   : > { %7981 = vmatpush1.xpose.msra.mxu1 %v7661_v48 }
0x1353   : > { %v10842_v37 = vpop.eup %10841  ;;  %7982 = vmatprep.subr.mxu1 %v7650_v40 }
0x1354   : > { %v10844_v17 = vpop.eup %10843  ;;  %7946 = vmatprep.mubr.f32.mxu0 %v10842_v37 }
0x1355   : > { %7947 = vmatmul.mubr.f32.vlgmr.msra.gmra.mxu0 %v10844_v17 }
0x1356   : > { %7983 = vmatpush1.xpose.msra.mxu1 %v7649_v13  ;;  %8051 = vmatpush1.xpose.msra.mxu0 %v7663_v60 }
0x1357   : > { %v10846_v4 = vpop.eup %10845  ;;  %8052 = vmatprep.subr.mxu0 %v7652_v52  ;;  %9742 = vmatprep.subr.mxu1 %v10995_v35 }
0x1358   : > { %v10848_v59 = vpop.eup %10847  ;;  %8016 = vmatprep.mubr.f32.mxu1 %v10846_v4 }
0x1359   : > { %8017 = vmatmul.mubr.f32.vlgmr.msra.gmra.mxu1 %v10848_v59 }
0x135a   : > { %8053 = vmatpush1.xpose.msra.mxu0 %v7651_v14  ;;  %9743 = vmatpush3.msra.mxu1 %v8096_v58 }
0x135b   : > { %v10850_v18 = vpop.eup %10849  ;;  %9744 = vmatprep.subr.mxu1 %v10995_v35  ;;  %9746 = vmatprep.mubr.msk.f32.mxu1 %vm10996_vm8, %v10995_v35 }
0x135c   : > { %v10852_v2 = vpop.eup %10851  ;;  %8086 = vmatprep.mubr.f32.mxu0 %v10850_v18  ;;  %9745 = vmatpush3.msra.mxu1 %v8095_v21 }
0x135d   : > { %8087 = vmatmul.mubr.f32.vlgmr.msra.gmra.mxu0 %v10852_v2 }
0x138c   : > { %v7738_v32 = vpop.f32.mrf.mxu1 }
0x138d   : > { %v7739_v28 = vadd.f32 %v8905_v34, %v7738_v32 }
0x138e   : > { %v7740_v30 = vpop.f32.mrf.mxu1 }
0x1390   : > { %v7808_v25 = vpop.f32.mrf.mxu0 }
0x1391   : > { %v7809_v6 = vadd.f32 %v7808_v25, %v7739_v28 }
0x1392   : > { %v7810_v1 = vpop.f32.mrf.mxu0 }
0x1411   : > { %v7878_v51 = vpop.f32.mrf.mxu1 }
0x1412   : > { %v7879_v9 = vadd.f32 %v7878_v51, %v7809_v6 }
0x1413   : > { %v7880_v24 = vpop.f32.mrf.mxu1 }
0x1415   : > { %v7948_v26 = vpop.f32.mrf.mxu0 }
0x1416   : > { %v7949_v36 = vadd.f32 %v7948_v26, %v7879_v9 }
0x1417   : > { %v7950_v27 = vpop.f32.mrf.mxu0 }
0x1419   : > { %v8018_v29 = vpop.f32.mrf.mxu1 }
0x141a   : > { %v8019_v31 = vadd.f32 %v8018_v29, %v7949_v36 }
0x141b   : > { %v8020_v23 = vpop.f32.mrf.mxu1 }
0x141d   : > { %v8088_v38 = vpop.f32.mrf.mxu0 }
0x141e   : > { %v8089_v49 = vadd.f32 %v8088_v38, %v8019_v31 }
0x141f   : > { %v8090_v0 = vpop.f32.mrf.mxu0 }
0x1420   : > { %vm8092_vm9 = vcmp.ge.f32.partialorder %v8089_v49, 0.0  ;;  %v8093_v56 = vmul.f32 0.01, %v8089_v49 }
0x1422   : > { %v8094_v45 = vsel %vm8092_vm9, %v8089_v49, %v8093_v56 }
0x1423   : > { %9747 = vmatmul.mubr.msk.f32.vlgmr.msra.gmra.mxu1 %vm8104_vm10, %v8094_v45 }
0x14e3   : > { %v8174_v53 = vpop.f32.mrf.mxu1 }
0x14e4   : > { %v8175_v62 = vadd.f32 %v8906_v16, %v8174_v53 }
0x14e5   : > { %v9748_v15 = vpop.f32.mrf.mxu1 }
0x14e6   : > { %v8908_v5 = vmul.f32 -1.442695, %v8175_v62 }
0x14e8   : > { %10853 = vpow2.f32 %v8908_v5 }
0x14f5   : > { %v10854_v61 = vpop.eup %10853 }
0x14f6   : > { %v8181_v39 = vadd.f32 1.0, %v10854_v61 }
0x14f8   : > { %10855 = vrcp.f32 %v8181_v39 }
0x1505   : > { %v10856_v46 = vpop.eup %10855 }
0x1506   : > { %8184 = vst [vmem:[%s13863_s26] sm:$0xff] %v10856_v46 }
0x1507 PF: > { %s13864_s16 = sld [smem:[#allocation13_spill]]  ;;  %s13867_s29 = smov %s10974_s30 }
0x1508   : > { %s13865_s14 = sld [smem:[#allocation12_spill]] }
0x1509   : > { %s13866_s15 = sld [smem:[#allocation14_spill]] }
0x150d   : > { %p27_p6 = scmp.ge.s32.totalorder %s13864_s16, 5  }
0x150e   : > { %s13868_s30 = smov %s13865_s14 }
0x150f   :  { %29 = sbr.rel (!%p27_p6) target bundleno = 10 (0xa), region = 152 }
0x1514   :  { %8196 = vsyncpa [#allocation7], 1 }
0x1515   :  { %8198 = vsyncpa [#allocation7 + $0x1], 1 }
0x1516   :  { %8199 = vsyncpa [#allocation9], 1 }
0x1517   :  { %8201 = vsyncpa [#allocation9 + $0x1], 1 }

</bundles_post_ra>
